<compile_context>
chip_gen: v5e
topology: v5e:2x2
jax: 0.10.0
libtpu: 0.0.40
codegen_flags: <defaults>
</compile_context>

<pallas_src>
import functools

import jax
import jax.numpy as jnp
import numpy as np
from jax import lax
from jax.experimental import pallas as pl
from jax.experimental.pallas import tpu as pltpu

EPS = 1e-5          # nn.InstanceNorm1d default eps
NEG_SLOPE = 0.01    # nn.LeakyReLU default negative_slope


# --------------------------------- kernel ---------------------------------- #
def _fusion2head_kernel(
    pts_ref, des_ref,
    w11, g11, be11,
    w21, g21, be21,
    w31, g31, be31,
    w12, b12,
    w22, b22,
    w32, b32,
    w4a, w4b, g4, be4,
    w5a, g5a, be5a,
    w5bt, b5b,
    out_ref,
):
    bblk, n, _ = pts_ref.shape   # static ints

    # Stack the bblk batch elements into one (bblk*n, C) activation matrix so every
    # matmul fills bblk*n MXU rows.  (Concat along sublanes; n is a multiple of 8
    # whenever bblk > 1 -- enforced in the wrapper.)
    if bblk == 1:
        pts = pts_ref[0]                                              # (n, Cp)
        des = des_ref[0]                                              # (n, Cf)
    else:
        pts = jnp.concatenate([pts_ref[b] for b in range(bblk)], axis=0)
        des = jnp.concatenate([des_ref[b] for b in range(bblk)], axis=0)

    def conv(x, w_ref, b_ref=None):
        # x: (M, Cin) f32, w_ref: (Cin, Cout) bf16 -> (M, Cout) f32
        y = jnp.dot(x.astype(jnp.bfloat16), w_ref[...],
                    preferred_element_type=jnp.float32)
        if b_ref is not None:
            y = y + b_ref[...]
        return y

    def inorm(x, g_ref, be_ref):
        # InstanceNorm1d over the point axis, per batch element (rank-2 math only).
        g = g_ref[...]
        be = be_ref[...]

        def norm_one(xb):
            mean = jnp.mean(xb, axis=0, keepdims=True)
            var = jnp.mean(jnp.square(xb - mean), axis=0, keepdims=True)  # biased var
            return (xb - mean) * lax.rsqrt(var + EPS) * g + be

        if bblk == 1:
            return norm_one(x)
        return jnp.concatenate(
            [norm_one(x[b * n:(b + 1) * n, :]) for b in range(bblk)], axis=0)

    def lrelu(x):
        return jnp.where(x >= 0.0, x, NEG_SLOPE * x)

    # branch 1: conv -> InstanceNorm -> LeakyReLU  (conv bias omitted: cancelled by IN)
    f = lrelu(inorm(conv(pts, w11), g11, be11))          # (M, 64)
    f = lrelu(inorm(conv(f, w21), g21, be21))            # (M, 128)
    feat3_1 = lrelu(inorm(conv(f, w31), g31, be31))      # (M, 1024)

    # branch 2: conv(+bias) -> LeakyReLU
    h = lrelu(conv(des, w12, b12))                       # (M, 64)
    h = lrelu(conv(h, w22, b22))                         # (M, 128)
    feat3_2 = lrelu(conv(h, w32, b32))                   # (M, 1024)

    # l4: channel concat folded into two matmuls on the pre-split halves of w4
    # (bias omitted: cancelled by IN).
    f4 = conv(feat3_1, w4a) + conv(feat3_2, w4b)         # (M, 512)
    f4 = lrelu(inorm(f4, g4, be4))

    # l5a: conv(512->256) -> IN -> LeakyReLU  (bias omitted: cancelled by IN)
    f5 = lrelu(inorm(conv(f4, w5a), g5a, be5a))          # (M, 256)

    # l5b: conv(256->1) emitted lane-dense: one (1, n) row per batch element so the
    # output store is a full-lane vector store.
    w_last = w5bt[...]                                   # (1, 256) bf16
    b_last = b5b[...]                                    # (1, 1)   f32
    for b in range(bblk):
        f5_b = f5[b * n:(b + 1) * n, :]                  # (n, 256)
        row = lax.dot_general(
            w_last, f5_b.astype(jnp.bfloat16),
            dimension_numbers=(((1,), (1,)), ((), ())),  # contract channels: A @ B^T
            preferred_element_type=jnp.float32)          # (1, n)
        out_ref[b] = row + b_last


# ------------------------------- parameters -------------------------------- #
def _conv_init(key, cin, cout):
    # PyTorch Conv1d default init: U(-1/sqrt(fan_in), 1/sqrt(fan_in)).
    kw, kb = jax.random.split(key)
    bound = 1.0 / np.sqrt(cin)
    w = jax.random.uniform(kw, (cin, cout), jnp.float32, -bound, bound)
    b = jax.random.uniform(kb, (1, cout), jnp.float32, -bound, bound)
    return w, b


def _inorm_init(key, c):
    # affine=True; perturb away from (1, 0) so the test is non-trivial.
    kg, kb = jax.random.split(key)
    g = 1.0 + 0.1 * jax.random.normal(kg, (1, c), jnp.float32)
    be = 0.1 * jax.random.normal(kb, (1, c), jnp.float32)
    return g, be


def init_params(key, points_channel, feat_channel):
    keys = jax.random.split(key, 16)
    p = {}
    p["w1_1"], p["b1_1"] = _conv_init(keys[0], points_channel, 64)
    p["g1_1"], p["be1_1"] = _inorm_init(keys[1], 64)
    p["w2_1"], p["b2_1"] = _conv_init(keys[2], 64, 128)
    p["g2_1"], p["be2_1"] = _inorm_init(keys[3], 128)
    p["w3_1"], p["b3_1"] = _conv_init(keys[4], 128, 1024)
    p["g3_1"], p["be3_1"] = _inorm_init(keys[5], 1024)
    p["w1_2"], p["b1_2"] = _conv_init(keys[6], feat_channel, 64)
    p["w2_2"], p["b2_2"] = _conv_init(keys[7], 64, 128)
    p["w3_2"], p["b3_2"] = _conv_init(keys[8], 128, 1024)
    p["w4"], p["b4"] = _conv_init(keys[9], 2048, 512)
    p["g4"], p["be4"] = _inorm_init(keys[10], 512)
    p["w5a"], p["b5a"] = _conv_init(keys[11], 512, 256)
    p["g5a"], p["be5a"] = _inorm_init(keys[12], 256)
    p["w5b"], p["b5b"] = _conv_init(keys[13], 256, 1)
    return p


# -------------------------------- wrapper ----------------------------------- #
def _pick_bblk(batch, n):
    """Pack several batch elements per grid step when N is small (MXU M-fill)."""
    if n % 8 != 0:
        return 1
    bblk = 1
    for cand in range(1, batch + 1):
        if batch % cand == 0 and cand * n <= 512:
            bblk = cand
    return bblk


@jax.jit
def error_estimator_feat_fusion2head(pts_in, des_in, params):
    """pts_in: (B, Cp, N), des_in: (B, Cf, N)  ->  (B, 1, N), like the PyTorch module."""
    pts = jnp.transpose(pts_in, (0, 2, 1)).astype(jnp.float32)   # (B, N, Cp)
    des = jnp.transpose(des_in, (0, 2, 1)).astype(jnp.float32)   # (B, N, Cf)
    B, N, Cp = pts.shape
    Cf = des.shape[-1]

    bblk = _pick_bblk(B, N)
    grid = (B // bblk,)

    bf16 = jnp.bfloat16
    f32 = jnp.float32
    # Biases feeding InstanceNorm (b1_1, b2_1, b3_1, b4, b5a) are intentionally NOT
    # passed: the IN mean subtraction cancels them exactly.
    flat = [
        params["w1_1"].astype(bf16), params["g1_1"].astype(f32), params["be1_1"].astype(f32),
        params["w2_1"].astype(bf16), params["g2_1"].astype(f32), params["be2_1"].astype(f32),
        params["w3_1"].astype(bf16), params["g3_1"].astype(f32), params["be3_1"].astype(f32),
        params["w1_2"].astype(bf16), params["b1_2"].astype(f32),
        params["w2_2"].astype(bf16), params["b2_2"].astype(f32),
        params["w3_2"].astype(bf16), params["b3_2"].astype(f32),
        params["w4"][:1024, :].astype(bf16), params["w4"][1024:, :].astype(bf16),
        params["g4"].astype(f32), params["be4"].astype(f32),
        params["w5a"].astype(bf16), params["g5a"].astype(f32), params["be5a"].astype(f32),
        params["w5b"].T.astype(bf16), params["b5b"].astype(f32),
    ]

    in_specs = [
        pl.BlockSpec((bblk, N, Cp), lambda g: (g, 0, 0)),
        pl.BlockSpec((bblk, N, Cf), lambda g: (g, 0, 0)),
    ] + [pl.BlockSpec(p.shape, lambda g: (0, 0)) for p in flat]   # grid-invariant params

    out = pl.pallas_call(
        _fusion2head_kernel,
        out_shape=jax.ShapeDtypeStruct((B, 1, N), jnp.float32),
        grid=grid,
        in_specs=in_specs,
        out_specs=pl.BlockSpec((bblk, 1, N), lambda g: (g, 0, 0)),
        compiler_params=pltpu.CompilerParams(
            dimension_semantics=("parallel",),
            vmem_limit_bytes=48 * 1024 * 1024,   # safe on v5e/v6e (128 MiB) and v7x (64 MiB)
        ),
    )(pts, des, *flat)

    return out   # already (B, 1, N)


# ------------------------- pure-JAX reference (check) ----------------------- #
def _ref_conv(x, w, b):
    return jnp.einsum("bnc,cd->bnd", x, w, precision=lax.Precision.HIGHEST) + b


def _ref_inorm(x, g, be):
    mean = jnp.mean(x, axis=1, keepdims=True)
    var = jnp.mean(jnp.square(x - mean), axis=1, keepdims=True)
    return (x - mean) / jnp.sqrt(var + EPS) * g + be


def _ref_lrelu(x):
    return jnp.where(x >= 0.0, x, NEG_SLOPE * x)


def reference_forward(pts_in, des_in, p):
    pts = jnp.transpose(pts_in, (0, 2, 1)).astype(jnp.float32)
    des = jnp.transpose(des_in, (0, 2, 1)).astype(jnp.float32)

    f11 = _ref_lrelu(_ref_inorm(_ref_conv(pts, p["w1_1"], p["b1_1"]), p["g1_1"], p["be1_1"]))
    f21 = _ref_lrelu(_ref_inorm(_ref_conv(f11, p["w2_1"], p["b2_1"]), p["g2_1"], p["be2_1"]))
    f31 = _ref_lrelu(_ref_inorm(_ref_conv(f21, p["w3_1"], p["b3_1"]), p["g3_1"], p["be3_1"]))

    f12 = _ref_lrelu(_ref_conv(des, p["w1_2"], p["b1_2"]))
    f22 = _ref_lrelu(_ref_conv(f12, p["w2_2"], p["b2_2"]))
    f32 = _ref_lrelu(_ref_conv(f22, p["w3_2"], p["b3_2"]))

    cat = jnp.concatenate([f31, f32], axis=-1)                    # (B, N, 2048)
    f4 = _ref_lrelu(_ref_inorm(_ref_conv(cat, p["w4"], p["b4"]), p["g4"], p["be4"]))
    f5 = _ref_lrelu(_ref_inorm(_ref_conv(f4, p["w5a"], p["b5a"]), p["g5a"], p["be5a"]))
    out = _ref_conv(f5, p["w5b"], p["b5b"])                       # (B, N, 1)
    return jnp.transpose(out, (0, 2, 1))                          # (B, 1, N)


# ----------------------------------- main ----------------------------------- #
if __name__ == "__main__":
    B, N = 2, 16
    points_channel, feat_channel = 4, 8

    key = jax.random.PRNGKey(0)
    k_params, k_pts, k_des = jax.random.split(key, 3)

    params = init_params(k_params, points_channel, feat_channel)
    pts_in = jax.random.normal(k_pts, (B, points_channel, N), jnp.float32)   # NCW, like PyTorch
    des_in = jax.random.normal(k_des, (B, feat_channel, N), jnp.float32)

    out = error_estimator_feat_fusion2head(pts_in, des_in, params)
    out = jax.block_until_ready(out)

    ref = jax.block_until_ready(reference_forward(pts_in, des_in, params))
    # bf16 matmuls in the kernel vs a full-f32 reference -> bf16-appropriate tolerance.
    np.testing.assert_allclose(np.asarray(out), np.asarray(ref), rtol=5e-2, atol=3e-2)

    assert out.shape == (B, 1, N)
    print("KERNEL_OK")
</pallas_src>

<mosaic_0001>
module attributes {stable_mosaic.version = 11 : i64} {
  func.func @_fusion2head_kernel(%arg0: i32, %arg1: memref<2x16x4xf32, #tpu.memory_space<vmem>>, %arg2: memref<2x16x8xf32, #tpu.memory_space<vmem>>, %arg3: memref<4x64xbf16, #tpu.memory_space<vmem>>, %arg4: memref<1x64xf32, #tpu.memory_space<vmem>>, %arg5: memref<1x64xf32, #tpu.memory_space<vmem>>, %arg6: memref<64x128xbf16, #tpu.memory_space<vmem>>, %arg7: memref<1x128xf32, #tpu.memory_space<vmem>>, %arg8: memref<1x128xf32, #tpu.memory_space<vmem>>, %arg9: memref<128x1024xbf16, #tpu.memory_space<vmem>>, %arg10: memref<1x1024xf32, #tpu.memory_space<vmem>>, %arg11: memref<1x1024xf32, #tpu.memory_space<vmem>>, %arg12: memref<8x64xbf16, #tpu.memory_space<vmem>>, %arg13: memref<1x64xf32, #tpu.memory_space<vmem>>, %arg14: memref<64x128xbf16, #tpu.memory_space<vmem>>, %arg15: memref<1x128xf32, #tpu.memory_space<vmem>>, %arg16: memref<128x1024xbf16, #tpu.memory_space<vmem>>, %arg17: memref<1x1024xf32, #tpu.memory_space<vmem>>, %arg18: memref<1024x512xbf16, #tpu.memory_space<vmem>>, %arg19: memref<1024x512xbf16, #tpu.memory_space<vmem>>, %arg20: memref<1x512xf32, #tpu.memory_space<vmem>>, %arg21: memref<1x512xf32, #tpu.memory_space<vmem>>, %arg22: memref<512x256xbf16, #tpu.memory_space<vmem>>, %arg23: memref<1x256xf32, #tpu.memory_space<vmem>>, %arg24: memref<1x256xf32, #tpu.memory_space<vmem>>, %arg25: memref<1x256xbf16, #tpu.memory_space<vmem>>, %arg26: memref<1x1xf32, #tpu.memory_space<vmem>>, %arg27: memref<2x1x16xf32, #tpu.memory_space<vmem>>) attributes {dimension_semantics = [#tpu.dimension_semantics<parallel>], iteration_bounds = array<i64: 1>, scalar_prefetch = 0 : i64, scratch_operands = 0 : i64, tpu.core_type = #tpu.core_type<tc>, window_params = [{transform_indices = @transform_0, window_bounds = array<i64: 2, 16, 4>}, {transform_indices = @transform_1, window_bounds = array<i64: 2, 16, 8>}, {pipeline_mode = #tpu.pipeline_mode<synchronous>, transform_indices = @transform_2, window_bounds = array<i64: 4, 64>}, {pipeline_mode = #tpu.pipeline_mode<synchronous>, transform_indices = @transform_3, window_bounds = array<i64: 1, 64>}, {pipeline_mode = #tpu.pipeline_mode<synchronous>, transform_indices = @transform_4, window_bounds = array<i64: 1, 64>}, {pipeline_mode = #tpu.pipeline_mode<synchronous>, transform_indices = @transform_5, window_bounds = array<i64: 64, 128>}, {pipeline_mode = #tpu.pipeline_mode<synchronous>, transform_indices = @transform_6, window_bounds = array<i64: 1, 128>}, {pipeline_mode = #tpu.pipeline_mode<synchronous>, transform_indices = @transform_7, window_bounds = array<i64: 1, 128>}, {pipeline_mode = #tpu.pipeline_mode<synchronous>, transform_indices = @transform_8, window_bounds = array<i64: 128, 1024>}, {pipeline_mode = #tpu.pipeline_mode<synchronous>, transform_indices = @transform_9, window_bounds = array<i64: 1, 1024>}, {pipeline_mode = #tpu.pipeline_mode<synchronous>, transform_indices = @transform_10, window_bounds = array<i64: 1, 1024>}, {pipeline_mode = #tpu.pipeline_mode<synchronous>, transform_indices = @transform_11, window_bounds = array<i64: 8, 64>}, {pipeline_mode = #tpu.pipeline_mode<synchronous>, transform_indices = @transform_12, window_bounds = array<i64: 1, 64>}, {pipeline_mode = #tpu.pipeline_mode<synchronous>, transform_indices = @transform_13, window_bounds = array<i64: 64, 128>}, {pipeline_mode = #tpu.pipeline_mode<synchronous>, transform_indices = @transform_14, window_bounds = array<i64: 1, 128>}, {pipeline_mode = #tpu.pipeline_mode<synchronous>, transform_indices = @transform_15, window_bounds = array<i64: 128, 1024>}, {pipeline_mode = #tpu.pipeline_mode<synchronous>, transform_indices = @transform_16, window_bounds = array<i64: 1, 1024>}, {pipeline_mode = #tpu.pipeline_mode<synchronous>, transform_indices = @transform_17, window_bounds = array<i64: 1024, 512>}, {pipeline_mode = #tpu.pipeline_mode<synchronous>, transform_indices = @transform_18, window_bounds = array<i64: 1024, 512>}, {pipeline_mode = #tpu.pipeline_mode<synchronous>, transform_indices = @transform_19, window_bounds = array<i64: 1, 512>}, {pipeline_mode = #tpu.pipeline_mode<synchronous>, transform_indices = @transform_20, window_bounds = array<i64: 1, 512>}, {pipeline_mode = #tpu.pipeline_mode<synchronous>, transform_indices = @transform_21, window_bounds = array<i64: 512, 256>}, {pipeline_mode = #tpu.pipeline_mode<synchronous>, transform_indices = @transform_22, window_bounds = array<i64: 1, 256>}, {pipeline_mode = #tpu.pipeline_mode<synchronous>, transform_indices = @transform_23, window_bounds = array<i64: 1, 256>}, {pipeline_mode = #tpu.pipeline_mode<synchronous>, transform_indices = @transform_24, window_bounds = array<i64: 1, 256>}, {pipeline_mode = #tpu.pipeline_mode<synchronous>, transform_indices = @transform_25, window_bounds = array<i64: 1, 1>}, {transform_indices = @transform_26, window_bounds = array<i64: 2, 1, 16>}]} {
    %c0 = arith.constant 0 : index
    %c0_0 = arith.constant 0 : index
    %c0_1 = arith.constant 0 : index
    %0 = vector.load %arg1[%c0, %c0_0, %c0_1] : memref<2x16x4xf32, #tpu.memory_space<vmem>>, vector<1x16x4xf32>
    %1 = vector.shape_cast %0 : vector<1x16x4xf32> to vector<16x4xf32>
    %c1 = arith.constant 1 : index
    %c0_2 = arith.constant 0 : index
    %c0_3 = arith.constant 0 : index
    %2 = vector.load %arg1[%c1, %c0_2, %c0_3] : memref<2x16x4xf32, #tpu.memory_space<vmem>>, vector<1x16x4xf32>
    %3 = vector.shape_cast %2 : vector<1x16x4xf32> to vector<16x4xf32>
    %4 = tpu.concatenate %1, %3 in 0 : vector<16x4xf32>, vector<16x4xf32> -> vector<32x4xf32>
    %c0_4 = arith.constant 0 : index
    %c0_5 = arith.constant 0 : index
    %c0_6 = arith.constant 0 : index
    %5 = vector.load %arg2[%c0_4, %c0_5, %c0_6] : memref<2x16x8xf32, #tpu.memory_space<vmem>>, vector<1x16x8xf32>
    %6 = vector.shape_cast %5 : vector<1x16x8xf32> to vector<16x8xf32>
    %c1_7 = arith.constant 1 : index
    %c0_8 = arith.constant 0 : index
    %c0_9 = arith.constant 0 : index
    %7 = vector.load %arg2[%c1_7, %c0_8, %c0_9] : memref<2x16x8xf32, #tpu.memory_space<vmem>>, vector<1x16x8xf32>
    %8 = vector.shape_cast %7 : vector<1x16x8xf32> to vector<16x8xf32>
    %9 = tpu.concatenate %6, %8 in 0 : vector<16x8xf32>, vector<16x8xf32> -> vector<32x8xf32>
    %10 = arith.truncf %4 : vector<32x4xf32> to vector<32x4xbf16>
    %c0_10 = arith.constant 0 : index
    %c0_11 = arith.constant 0 : index
    %11 = vector.load %arg3[%c0_10, %c0_11] : memref<4x64xbf16, #tpu.memory_space<vmem>>, vector<4x64xbf16>
    %cst = arith.constant dense<0.000000e+00> : vector<32x64xf32>
    %12 = tpu.matmul %10, %11, %cst {dimension_numbers = #tpu.dot_dimension_numbers<[1], [0], [0], [1], [0, 0, 1, 1], [], []>} : vector<32x4xbf16>, vector<4x64xbf16>, vector<32x64xf32> -> vector<32x64xf32>
    %c0_12 = arith.constant 0 : index
    %c0_13 = arith.constant 0 : index
    %13 = vector.load %arg4[%c0_12, %c0_13] : memref<1x64xf32, #tpu.memory_space<vmem>>, vector<1x64xf32>
    %c0_14 = arith.constant 0 : index
    %c0_15 = arith.constant 0 : index
    %14 = vector.load %arg5[%c0_14, %c0_15] : memref<1x64xf32, #tpu.memory_space<vmem>>, vector<1x64xf32>
    %15 = vector.extract_strided_slice %12 {offsets = [0, 0], sizes = [16, 64], strides = [1, 1]} : vector<32x64xf32> to vector<16x64xf32>
    %cst_16 = arith.constant dense<0.000000e+00> : vector<64xf32>
    %16 = vector.multi_reduction <add>, %15, %cst_16 [0] : vector<16x64xf32> to vector<64xf32>
    %17 = vector.shape_cast %16 : vector<64xf32> to vector<1x64xf32>
    %cst_17 = arith.constant 1.600000e+01 : f32
    %18 = vector.broadcast %cst_17 : f32 to vector<1x64xf32>
    %19 = arith.divf %17, %18 : vector<1x64xf32>
    %20 = vector.broadcast %19 : vector<1x64xf32> to vector<16x64xf32>
    %21 = arith.subf %15, %20 : vector<16x64xf32>
    %22 = arith.mulf %21, %21 : vector<16x64xf32>
    %cst_18 = arith.constant dense<0.000000e+00> : vector<64xf32>
    %23 = vector.multi_reduction <add>, %22, %cst_18 [0] : vector<16x64xf32> to vector<64xf32>
    %24 = vector.shape_cast %23 : vector<64xf32> to vector<1x64xf32>
    %cst_19 = arith.constant 1.600000e+01 : f32
    %25 = vector.broadcast %cst_19 : f32 to vector<1x64xf32>
    %26 = arith.divf %24, %25 : vector<1x64xf32>
    %27 = vector.broadcast %19 : vector<1x64xf32> to vector<16x64xf32>
    %28 = arith.subf %15, %27 : vector<16x64xf32>
    %cst_20 = arith.constant 9.99999974E-6 : f32
    %29 = vector.broadcast %cst_20 : f32 to vector<1x64xf32>
    %30 = arith.addf %26, %29 : vector<1x64xf32>
    %31 = math.rsqrt %30 : vector<1x64xf32>
    %32 = vector.broadcast %31 : vector<1x64xf32> to vector<16x64xf32>
    %33 = arith.mulf %28, %32 : vector<16x64xf32>
    %34 = vector.broadcast %13 : vector<1x64xf32> to vector<16x64xf32>
    %35 = arith.mulf %33, %34 : vector<16x64xf32>
    %36 = vector.broadcast %14 : vector<1x64xf32> to vector<16x64xf32>
    %37 = arith.addf %35, %36 : vector<16x64xf32>
    %38 = vector.extract_strided_slice %12 {offsets = [16, 0], sizes = [16, 64], strides = [1, 1]} : vector<32x64xf32> to vector<16x64xf32>
    %cst_21 = arith.constant dense<0.000000e+00> : vector<64xf32>
    %39 = vector.multi_reduction <add>, %38, %cst_21 [0] : vector<16x64xf32> to vector<64xf32>
    %40 = vector.shape_cast %39 : vector<64xf32> to vector<1x64xf32>
    %cst_22 = arith.constant 1.600000e+01 : f32
    %41 = vector.broadcast %cst_22 : f32 to vector<1x64xf32>
    %42 = arith.divf %40, %41 : vector<1x64xf32>
    %43 = vector.broadcast %42 : vector<1x64xf32> to vector<16x64xf32>
    %44 = arith.subf %38, %43 : vector<16x64xf32>
    %45 = arith.mulf %44, %44 : vector<16x64xf32>
    %cst_23 = arith.constant dense<0.000000e+00> : vector<64xf32>
    %46 = vector.multi_reduction <add>, %45, %cst_23 [0] : vector<16x64xf32> to vector<64xf32>
    %47 = vector.shape_cast %46 : vector<64xf32> to vector<1x64xf32>
    %cst_24 = arith.constant 1.600000e+01 : f32
    %48 = vector.broadcast %cst_24 : f32 to vector<1x64xf32>
    %49 = arith.divf %47, %48 : vector<1x64xf32>
    %50 = vector.broadcast %42 : vector<1x64xf32> to vector<16x64xf32>
    %51 = arith.subf %38, %50 : vector<16x64xf32>
    %cst_25 = arith.constant 9.99999974E-6 : f32
    %52 = vector.broadcast %cst_25 : f32 to vector<1x64xf32>
    %53 = arith.addf %49, %52 : vector<1x64xf32>
    %54 = math.rsqrt %53 : vector<1x64xf32>
    %55 = vector.broadcast %54 : vector<1x64xf32> to vector<16x64xf32>
    %56 = arith.mulf %51, %55 : vector<16x64xf32>
    %57 = vector.broadcast %13 : vector<1x64xf32> to vector<16x64xf32>
    %58 = arith.mulf %56, %57 : vector<16x64xf32>
    %59 = vector.broadcast %14 : vector<1x64xf32> to vector<16x64xf32>
    %60 = arith.addf %58, %59 : vector<16x64xf32>
    %61 = tpu.concatenate %37, %60 in 0 : vector<16x64xf32>, vector<16x64xf32> -> vector<32x64xf32>
    %cst_26 = arith.constant 0.000000e+00 : f32
    %62 = vector.broadcast %cst_26 : f32 to vector<32x64xf32>
    %63 = arith.cmpf oge, %61, %62 : vector<32x64xf32>
    %cst_27 = arith.constant 0.00999999977 : f32
    %64 = vector.broadcast %cst_27 : f32 to vector<32x64xf32>
    %65 = arith.mulf %64, %61 : vector<32x64xf32>
    %66 = arith.select %63, %61, %65 : vector<32x64xi1>, vector<32x64xf32>
    %67 = arith.truncf %66 : vector<32x64xf32> to vector<32x64xbf16>
    %c0_28 = arith.constant 0 : index
    %c0_29 = arith.constant 0 : index
    %68 = vector.load %arg6[%c0_28, %c0_29] : memref<64x128xbf16, #tpu.memory_space<vmem>>, vector<64x128xbf16>
    %cst_30 = arith.constant dense<0.000000e+00> : vector<32x128xf32>
    %69 = tpu.matmul %67, %68, %cst_30 {dimension_numbers = #tpu.dot_dimension_numbers<[1], [0], [0], [1], [0, 0, 1, 1], [], []>} : vector<32x64xbf16>, vector<64x128xbf16>, vector<32x128xf32> -> vector<32x128xf32>
    %c0_31 = arith.constant 0 : index
    %c0_32 = arith.constant 0 : index
    %70 = vector.load %arg7[%c0_31, %c0_32] : memref<1x128xf32, #tpu.memory_space<vmem>>, vector<1x128xf32>
    %c0_33 = arith.constant 0 : index
    %c0_34 = arith.constant 0 : index
    %71 = vector.load %arg8[%c0_33, %c0_34] : memref<1x128xf32, #tpu.memory_space<vmem>>, vector<1x128xf32>
    %72 = vector.extract_strided_slice %69 {offsets = [0, 0], sizes = [16, 128], strides = [1, 1]} : vector<32x128xf32> to vector<16x128xf32>
    %cst_35 = arith.constant dense<0.000000e+00> : vector<128xf32>
    %73 = vector.multi_reduction <add>, %72, %cst_35 [0] : vector<16x128xf32> to vector<128xf32>
    %74 = vector.shape_cast %73 : vector<128xf32> to vector<1x128xf32>
    %cst_36 = arith.constant 1.600000e+01 : f32
    %75 = vector.broadcast %cst_36 : f32 to vector<1x128xf32>
    %76 = arith.divf %74, %75 : vector<1x128xf32>
    %77 = vector.broadcast %76 : vector<1x128xf32> to vector<16x128xf32>
    %78 = arith.subf %72, %77 : vector<16x128xf32>
    %79 = arith.mulf %78, %78 : vector<16x128xf32>
    %cst_37 = arith.constant dense<0.000000e+00> : vector<128xf32>
    %80 = vector.multi_reduction <add>, %79, %cst_37 [0] : vector<16x128xf32> to vector<128xf32>
    %81 = vector.shape_cast %80 : vector<128xf32> to vector<1x128xf32>
    %cst_38 = arith.constant 1.600000e+01 : f32
    %82 = vector.broadcast %cst_38 : f32 to vector<1x128xf32>
    %83 = arith.divf %81, %82 : vector<1x128xf32>
    %84 = vector.broadcast %76 : vector<1x128xf32> to vector<16x128xf32>
    %85 = arith.subf %72, %84 : vector<16x128xf32>
    %cst_39 = arith.constant 9.99999974E-6 : f32
    %86 = vector.broadcast %cst_39 : f32 to vector<1x128xf32>
    %87 = arith.addf %83, %86 : vector<1x128xf32>
    %88 = math.rsqrt %87 : vector<1x128xf32>
    %89 = vector.broadcast %88 : vector<1x128xf32> to vector<16x128xf32>
    %90 = arith.mulf %85, %89 : vector<16x128xf32>
    %91 = vector.broadcast %70 : vector<1x128xf32> to vector<16x128xf32>
    %92 = arith.mulf %90, %91 : vector<16x128xf32>
    %93 = vector.broadcast %71 : vector<1x128xf32> to vector<16x128xf32>
    %94 = arith.addf %92, %93 : vector<16x128xf32>
    %95 = vector.extract_strided_slice %69 {offsets = [16, 0], sizes = [16, 128], strides = [1, 1]} : vector<32x128xf32> to vector<16x128xf32>
    %cst_40 = arith.constant dense<0.000000e+00> : vector<128xf32>
    %96 = vector.multi_reduction <add>, %95, %cst_40 [0] : vector<16x128xf32> to vector<128xf32>
    %97 = vector.shape_cast %96 : vector<128xf32> to vector<1x128xf32>
    %cst_41 = arith.constant 1.600000e+01 : f32
    %98 = vector.broadcast %cst_41 : f32 to vector<1x128xf32>
    %99 = arith.divf %97, %98 : vector<1x128xf32>
    %100 = vector.broadcast %99 : vector<1x128xf32> to vector<16x128xf32>
    %101 = arith.subf %95, %100 : vector<16x128xf32>
    %102 = arith.mulf %101, %101 : vector<16x128xf32>
    %cst_42 = arith.constant dense<0.000000e+00> : vector<128xf32>
    %103 = vector.multi_reduction <add>, %102, %cst_42 [0] : vector<16x128xf32> to vector<128xf32>
    %104 = vector.shape_cast %103 : vector<128xf32> to vector<1x128xf32>
    %cst_43 = arith.constant 1.600000e+01 : f32
    %105 = vector.broadcast %cst_43 : f32 to vector<1x128xf32>
    %106 = arith.divf %104, %105 : vector<1x128xf32>
    %107 = vector.broadcast %99 : vector<1x128xf32> to vector<16x128xf32>
    %108 = arith.subf %95, %107 : vector<16x128xf32>
    %cst_44 = arith.constant 9.99999974E-6 : f32
    %109 = vector.broadcast %cst_44 : f32 to vector<1x128xf32>
    %110 = arith.addf %106, %109 : vector<1x128xf32>
    %111 = math.rsqrt %110 : vector<1x128xf32>
    %112 = vector.broadcast %111 : vector<1x128xf32> to vector<16x128xf32>
    %113 = arith.mulf %108, %112 : vector<16x128xf32>
    %114 = vector.broadcast %70 : vector<1x128xf32> to vector<16x128xf32>
    %115 = arith.mulf %113, %114 : vector<16x128xf32>
    %116 = vector.broadcast %71 : vector<1x128xf32> to vector<16x128xf32>
    %117 = arith.addf %115, %116 : vector<16x128xf32>
    %118 = tpu.concatenate %94, %117 in 0 : vector<16x128xf32>, vector<16x128xf32> -> vector<32x128xf32>
    %cst_45 = arith.constant 0.000000e+00 : f32
    %119 = vector.broadcast %cst_45 : f32 to vector<32x128xf32>
    %120 = arith.cmpf oge, %118, %119 : vector<32x128xf32>
    %cst_46 = arith.constant 0.00999999977 : f32
    %121 = vector.broadcast %cst_46 : f32 to vector<32x128xf32>
    %122 = arith.mulf %121, %118 : vector<32x128xf32>
    %123 = arith.select %120, %118, %122 : vector<32x128xi1>, vector<32x128xf32>
    %124 = arith.truncf %123 : vector<32x128xf32> to vector<32x128xbf16>
    %c0_47 = arith.constant 0 : index
    %c0_48 = arith.constant 0 : index
    %125 = vector.load %arg9[%c0_47, %c0_48] : memref<128x1024xbf16, #tpu.memory_space<vmem>>, vector<128x1024xbf16>
    %cst_49 = arith.constant dense<0.000000e+00> : vector<32x1024xf32>
    %126 = tpu.matmul %124, %125, %cst_49 {dimension_numbers = #tpu.dot_dimension_numbers<[1], [0], [0], [1], [0, 0, 1, 1], [], []>} : vector<32x128xbf16>, vector<128x1024xbf16>, vector<32x1024xf32> -> vector<32x1024xf32>
    %c0_50 = arith.constant 0 : index
    %c0_51 = arith.constant 0 : index
    %127 = vector.load %arg10[%c0_50, %c0_51] : memref<1x1024xf32, #tpu.memory_space<vmem>>, vector<1x1024xf32>
    %c0_52 = arith.constant 0 : index
    %c0_53 = arith.constant 0 : index
    %128 = vector.load %arg11[%c0_52, %c0_53] : memref<1x1024xf32, #tpu.memory_space<vmem>>, vector<1x1024xf32>
    %129 = vector.extract_strided_slice %126 {offsets = [0, 0], sizes = [16, 1024], strides = [1, 1]} : vector<32x1024xf32> to vector<16x1024xf32>
    %cst_54 = arith.constant dense<0.000000e+00> : vector<1024xf32>
    %130 = vector.multi_reduction <add>, %129, %cst_54 [0] : vector<16x1024xf32> to vector<1024xf32>
    %131 = vector.shape_cast %130 : vector<1024xf32> to vector<1x1024xf32>
    %cst_55 = arith.constant 1.600000e+01 : f32
    %132 = vector.broadcast %cst_55 : f32 to vector<1x1024xf32>
    %133 = arith.divf %131, %132 : vector<1x1024xf32>
    %134 = vector.broadcast %133 : vector<1x1024xf32> to vector<16x1024xf32>
    %135 = arith.subf %129, %134 : vector<16x1024xf32>
    %136 = arith.mulf %135, %135 : vector<16x1024xf32>
    %cst_56 = arith.constant dense<0.000000e+00> : vector<1024xf32>
    %137 = vector.multi_reduction <add>, %136, %cst_56 [0] : vector<16x1024xf32> to vector<1024xf32>
    %138 = vector.shape_cast %137 : vector<1024xf32> to vector<1x1024xf32>
    %cst_57 = arith.constant 1.600000e+01 : f32
    %139 = vector.broadcast %cst_57 : f32 to vector<1x1024xf32>
    %140 = arith.divf %138, %139 : vector<1x1024xf32>
    %141 = vector.broadcast %133 : vector<1x1024xf32> to vector<16x1024xf32>
    %142 = arith.subf %129, %141 : vector<16x1024xf32>
    %cst_58 = arith.constant 9.99999974E-6 : f32
    %143 = vector.broadcast %cst_58 : f32 to vector<1x1024xf32>
    %144 = arith.addf %140, %143 : vector<1x1024xf32>
    %145 = math.rsqrt %144 : vector<1x1024xf32>
    %146 = vector.broadcast %145 : vector<1x1024xf32> to vector<16x1024xf32>
    %147 = arith.mulf %142, %146 : vector<16x1024xf32>
    %148 = vector.broadcast %127 : vector<1x1024xf32> to vector<16x1024xf32>
    %149 = arith.mulf %147, %148 : vector<16x1024xf32>
    %150 = vector.broadcast %128 : vector<1x1024xf32> to vector<16x1024xf32>
    %151 = arith.addf %149, %150 : vector<16x1024xf32>
    %152 = vector.extract_strided_slice %126 {offsets = [16, 0], sizes = [16, 1024], strides = [1, 1]} : vector<32x1024xf32> to vector<16x1024xf32>
    %cst_59 = arith.constant dense<0.000000e+00> : vector<1024xf32>
    %153 = vector.multi_reduction <add>, %152, %cst_59 [0] : vector<16x1024xf32> to vector<1024xf32>
    %154 = vector.shape_cast %153 : vector<1024xf32> to vector<1x1024xf32>
    %cst_60 = arith.constant 1.600000e+01 : f32
    %155 = vector.broadcast %cst_60 : f32 to vector<1x1024xf32>
    %156 = arith.divf %154, %155 : vector<1x1024xf32>
    %157 = vector.broadcast %156 : vector<1x1024xf32> to vector<16x1024xf32>
    %158 = arith.subf %152, %157 : vector<16x1024xf32>
    %159 = arith.mulf %158, %158 : vector<16x1024xf32>
    %cst_61 = arith.constant dense<0.000000e+00> : vector<1024xf32>
    %160 = vector.multi_reduction <add>, %159, %cst_61 [0] : vector<16x1024xf32> to vector<1024xf32>
    %161 = vector.shape_cast %160 : vector<1024xf32> to vector<1x1024xf32>
    %cst_62 = arith.constant 1.600000e+01 : f32
    %162 = vector.broadcast %cst_62 : f32 to vector<1x1024xf32>
    %163 = arith.divf %161, %162 : vector<1x1024xf32>
    %164 = vector.broadcast %156 : vector<1x1024xf32> to vector<16x1024xf32>
    %165 = arith.subf %152, %164 : vector<16x1024xf32>
    %cst_63 = arith.constant 9.99999974E-6 : f32
    %166 = vector.broadcast %cst_63 : f32 to vector<1x1024xf32>
    %167 = arith.addf %163, %166 : vector<1x1024xf32>
    %168 = math.rsqrt %167 : vector<1x1024xf32>
    %169 = vector.broadcast %168 : vector<1x1024xf32> to vector<16x1024xf32>
    %170 = arith.mulf %165, %169 : vector<16x1024xf32>
    %171 = vector.broadcast %127 : vector<1x1024xf32> to vector<16x1024xf32>
    %172 = arith.mulf %170, %171 : vector<16x1024xf32>
    %173 = vector.broadcast %128 : vector<1x1024xf32> to vector<16x1024xf32>
    %174 = arith.addf %172, %173 : vector<16x1024xf32>
    %175 = tpu.concatenate %151, %174 in 0 : vector<16x1024xf32>, vector<16x1024xf32> -> vector<32x1024xf32>
    %cst_64 = arith.constant 0.000000e+00 : f32
    %176 = vector.broadcast %cst_64 : f32 to vector<32x1024xf32>
    %177 = arith.cmpf oge, %175, %176 : vector<32x1024xf32>
    %cst_65 = arith.constant 0.00999999977 : f32
    %178 = vector.broadcast %cst_65 : f32 to vector<32x1024xf32>
    %179 = arith.mulf %178, %175 : vector<32x1024xf32>
    %180 = arith.select %177, %175, %179 : vector<32x1024xi1>, vector<32x1024xf32>
    %181 = arith.truncf %9 : vector<32x8xf32> to vector<32x8xbf16>
    %c0_66 = arith.constant 0 : index
    %c0_67 = arith.constant 0 : index
    %182 = vector.load %arg12[%c0_66, %c0_67] : memref<8x64xbf16, #tpu.memory_space<vmem>>, vector<8x64xbf16>
    %cst_68 = arith.constant dense<0.000000e+00> : vector<32x64xf32>
    %183 = tpu.matmul %181, %182, %cst_68 {dimension_numbers = #tpu.dot_dimension_numbers<[1], [0], [0], [1], [0, 0, 1, 1], [], []>} : vector<32x8xbf16>, vector<8x64xbf16>, vector<32x64xf32> -> vector<32x64xf32>
    %c0_69 = arith.constant 0 : index
    %c0_70 = arith.constant 0 : index
    %184 = vector.load %arg13[%c0_69, %c0_70] : memref<1x64xf32, #tpu.memory_space<vmem>>, vector<1x64xf32>
    %185 = vector.broadcast %184 : vector<1x64xf32> to vector<32x64xf32>
    %186 = arith.addf %183, %185 : vector<32x64xf32>
    %cst_71 = arith.constant 0.000000e+00 : f32
    %187 = vector.broadcast %cst_71 : f32 to vector<32x64xf32>
    %188 = arith.cmpf oge, %186, %187 : vector<32x64xf32>
    %cst_72 = arith.constant 0.00999999977 : f32
    %189 = vector.broadcast %cst_72 : f32 to vector<32x64xf32>
    %190 = arith.mulf %189, %186 : vector<32x64xf32>
    %191 = arith.select %188, %186, %190 : vector<32x64xi1>, vector<32x64xf32>
    %192 = arith.truncf %191 : vector<32x64xf32> to vector<32x64xbf16>
    %c0_73 = arith.constant 0 : index
    %c0_74 = arith.constant 0 : index
    %193 = vector.load %arg14[%c0_73, %c0_74] : memref<64x128xbf16, #tpu.memory_space<vmem>>, vector<64x128xbf16>
    %cst_75 = arith.constant dense<0.000000e+00> : vector<32x128xf32>
    %194 = tpu.matmul %192, %193, %cst_75 {dimension_numbers = #tpu.dot_dimension_numbers<[1], [0], [0], [1], [0, 0, 1, 1], [], []>} : vector<32x64xbf16>, vector<64x128xbf16>, vector<32x128xf32> -> vector<32x128xf32>
    %c0_76 = arith.constant 0 : index
    %c0_77 = arith.constant 0 : index
    %195 = vector.load %arg15[%c0_76, %c0_77] : memref<1x128xf32, #tpu.memory_space<vmem>>, vector<1x128xf32>
    %196 = vector.broadcast %195 : vector<1x128xf32> to vector<32x128xf32>
    %197 = arith.addf %194, %196 : vector<32x128xf32>
    %cst_78 = arith.constant 0.000000e+00 : f32
    %198 = vector.broadcast %cst_78 : f32 to vector<32x128xf32>
    %199 = arith.cmpf oge, %197, %198 : vector<32x128xf32>
    %cst_79 = arith.constant 0.00999999977 : f32
    %200 = vector.broadcast %cst_79 : f32 to vector<32x128xf32>
    %201 = arith.mulf %200, %197 : vector<32x128xf32>
    %202 = arith.select %199, %197, %201 : vector<32x128xi1>, vector<32x128xf32>
    %203 = arith.truncf %202 : vector<32x128xf32> to vector<32x128xbf16>
    %c0_80 = arith.constant 0 : index
    %c0_81 = arith.constant 0 : index
    %204 = vector.load %arg16[%c0_80, %c0_81] : memref<128x1024xbf16, #tpu.memory_space<vmem>>, vector<128x1024xbf16>
    %cst_82 = arith.constant dense<0.000000e+00> : vector<32x1024xf32>
    %205 = tpu.matmul %203, %204, %cst_82 {dimension_numbers = #tpu.dot_dimension_numbers<[1], [0], [0], [1], [0, 0, 1, 1], [], []>} : vector<32x128xbf16>, vector<128x1024xbf16>, vector<32x1024xf32> -> vector<32x1024xf32>
    %c0_83 = arith.constant 0 : index
    %c0_84 = arith.constant 0 : index
    %206 = vector.load %arg17[%c0_83, %c0_84] : memref<1x1024xf32, #tpu.memory_space<vmem>>, vector<1x1024xf32>
    %207 = vector.broadcast %206 : vector<1x1024xf32> to vector<32x1024xf32>
    %208 = arith.addf %205, %207 : vector<32x1024xf32>
    %cst_85 = arith.constant 0.000000e+00 : f32
    %209 = vector.broadcast %cst_85 : f32 to vector<32x1024xf32>
    %210 = arith.cmpf oge, %208, %209 : vector<32x1024xf32>
    %cst_86 = arith.constant 0.00999999977 : f32
    %211 = vector.broadcast %cst_86 : f32 to vector<32x1024xf32>
    %212 = arith.mulf %211, %208 : vector<32x1024xf32>
    %213 = arith.select %210, %208, %212 : vector<32x1024xi1>, vector<32x1024xf32>
    %214 = arith.truncf %180 : vector<32x1024xf32> to vector<32x1024xbf16>
    %c0_87 = arith.constant 0 : index
    %c0_88 = arith.constant 0 : index
    %215 = vector.load %arg18[%c0_87, %c0_88] : memref<1024x512xbf16, #tpu.memory_space<vmem>>, vector<1024x512xbf16>
    %cst_89 = arith.constant dense<0.000000e+00> : vector<32x512xf32>
    %216 = tpu.matmul %214, %215, %cst_89 {dimension_numbers = #tpu.dot_dimension_numbers<[1], [0], [0], [1], [0, 0, 1, 1], [], []>} : vector<32x1024xbf16>, vector<1024x512xbf16>, vector<32x512xf32> -> vector<32x512xf32>
    %217 = arith.truncf %213 : vector<32x1024xf32> to vector<32x1024xbf16>
    %c0_90 = arith.constant 0 : index
    %c0_91 = arith.constant 0 : index
    %218 = vector.load %arg19[%c0_90, %c0_91] : memref<1024x512xbf16, #tpu.memory_space<vmem>>, vector<1024x512xbf16>
    %cst_92 = arith.constant dense<0.000000e+00> : vector<32x512xf32>
    %219 = tpu.matmul %217, %218, %cst_92 {dimension_numbers = #tpu.dot_dimension_numbers<[1], [0], [0], [1], [0, 0, 1, 1], [], []>} : vector<32x1024xbf16>, vector<1024x512xbf16>, vector<32x512xf32> -> vector<32x512xf32>
    %220 = arith.addf %216, %219 : vector<32x512xf32>
    %c0_93 = arith.constant 0 : index
    %c0_94 = arith.constant 0 : index
    %221 = vector.load %arg20[%c0_93, %c0_94] : memref<1x512xf32, #tpu.memory_space<vmem>>, vector<1x512xf32>
    %c0_95 = arith.constant 0 : index
    %c0_96 = arith.constant 0 : index
    %222 = vector.load %arg21[%c0_95, %c0_96] : memref<1x512xf32, #tpu.memory_space<vmem>>, vector<1x512xf32>
    %223 = vector.extract_strided_slice %220 {offsets = [0, 0], sizes = [16, 512], strides = [1, 1]} : vector<32x512xf32> to vector<16x512xf32>
    %cst_97 = arith.constant dense<0.000000e+00> : vector<512xf32>
    %224 = vector.multi_reduction <add>, %223, %cst_97 [0] : vector<16x512xf32> to vector<512xf32>
    %225 = vector.shape_cast %224 : vector<512xf32> to vector<1x512xf32>
    %cst_98 = arith.constant 1.600000e+01 : f32
    %226 = vector.broadcast %cst_98 : f32 to vector<1x512xf32>
    %227 = arith.divf %225, %226 : vector<1x512xf32>
    %228 = vector.broadcast %227 : vector<1x512xf32> to vector<16x512xf32>
    %229 = arith.subf %223, %228 : vector<16x512xf32>
    %230 = arith.mulf %229, %229 : vector<16x512xf32>
    %cst_99 = arith.constant dense<0.000000e+00> : vector<512xf32>
    %231 = vector.multi_reduction <add>, %230, %cst_99 [0] : vector<16x512xf32> to vector<512xf32>
    %232 = vector.shape_cast %231 : vector<512xf32> to vector<1x512xf32>
    %cst_100 = arith.constant 1.600000e+01 : f32
    %233 = vector.broadcast %cst_100 : f32 to vector<1x512xf32>
    %234 = arith.divf %232, %233 : vector<1x512xf32>
    %235 = vector.broadcast %227 : vector<1x512xf32> to vector<16x512xf32>
    %236 = arith.subf %223, %235 : vector<16x512xf32>
    %cst_101 = arith.constant 9.99999974E-6 : f32
    %237 = vector.broadcast %cst_101 : f32 to vector<1x512xf32>
    %238 = arith.addf %234, %237 : vector<1x512xf32>
    %239 = math.rsqrt %238 : vector<1x512xf32>
    %240 = vector.broadcast %239 : vector<1x512xf32> to vector<16x512xf32>
    %241 = arith.mulf %236, %240 : vector<16x512xf32>
    %242 = vector.broadcast %221 : vector<1x512xf32> to vector<16x512xf32>
    %243 = arith.mulf %241, %242 : vector<16x512xf32>
    %244 = vector.broadcast %222 : vector<1x512xf32> to vector<16x512xf32>
    %245 = arith.addf %243, %244 : vector<16x512xf32>
    %246 = vector.extract_strided_slice %220 {offsets = [16, 0], sizes = [16, 512], strides = [1, 1]} : vector<32x512xf32> to vector<16x512xf32>
    %cst_102 = arith.constant dense<0.000000e+00> : vector<512xf32>
    %247 = vector.multi_reduction <add>, %246, %cst_102 [0] : vector<16x512xf32> to vector<512xf32>
    %248 = vector.shape_cast %247 : vector<512xf32> to vector<1x512xf32>
    %cst_103 = arith.constant 1.600000e+01 : f32
    %249 = vector.broadcast %cst_103 : f32 to vector<1x512xf32>
    %250 = arith.divf %248, %249 : vector<1x512xf32>
    %251 = vector.broadcast %250 : vector<1x512xf32> to vector<16x512xf32>
    %252 = arith.subf %246, %251 : vector<16x512xf32>
    %253 = arith.mulf %252, %252 : vector<16x512xf32>
    %cst_104 = arith.constant dense<0.000000e+00> : vector<512xf32>
    %254 = vector.multi_reduction <add>, %253, %cst_104 [0] : vector<16x512xf32> to vector<512xf32>
    %255 = vector.shape_cast %254 : vector<512xf32> to vector<1x512xf32>
    %cst_105 = arith.constant 1.600000e+01 : f32
    %256 = vector.broadcast %cst_105 : f32 to vector<1x512xf32>
    %257 = arith.divf %255, %256 : vector<1x512xf32>
    %258 = vector.broadcast %250 : vector<1x512xf32> to vector<16x512xf32>
    %259 = arith.subf %246, %258 : vector<16x512xf32>
    %cst_106 = arith.constant 9.99999974E-6 : f32
    %260 = vector.broadcast %cst_106 : f32 to vector<1x512xf32>
    %261 = arith.addf %257, %260 : vector<1x512xf32>
    %262 = math.rsqrt %261 : vector<1x512xf32>
    %263 = vector.broadcast %262 : vector<1x512xf32> to vector<16x512xf32>
    %264 = arith.mulf %259, %263 : vector<16x512xf32>
    %265 = vector.broadcast %221 : vector<1x512xf32> to vector<16x512xf32>
    %266 = arith.mulf %264, %265 : vector<16x512xf32>
    %267 = vector.broadcast %222 : vector<1x512xf32> to vector<16x512xf32>
    %268 = arith.addf %266, %267 : vector<16x512xf32>
    %269 = tpu.concatenate %245, %268 in 0 : vector<16x512xf32>, vector<16x512xf32> -> vector<32x512xf32>
    %cst_107 = arith.constant 0.000000e+00 : f32
    %270 = vector.broadcast %cst_107 : f32 to vector<32x512xf32>
    %271 = arith.cmpf oge, %269, %270 : vector<32x512xf32>
    %cst_108 = arith.constant 0.00999999977 : f32
    %272 = vector.broadcast %cst_108 : f32 to vector<32x512xf32>
    %273 = arith.mulf %272, %269 : vector<32x512xf32>
    %274 = arith.select %271, %269, %273 : vector<32x512xi1>, vector<32x512xf32>
    %275 = arith.truncf %274 : vector<32x512xf32> to vector<32x512xbf16>
    %c0_109 = arith.constant 0 : index
    %c0_110 = arith.constant 0 : index
    %276 = vector.load %arg22[%c0_109, %c0_110] : memref<512x256xbf16, #tpu.memory_space<vmem>>, vector<512x256xbf16>
    %cst_111 = arith.constant dense<0.000000e+00> : vector<32x256xf32>
    %277 = tpu.matmul %275, %276, %cst_111 {dimension_numbers = #tpu.dot_dimension_numbers<[1], [0], [0], [1], [0, 0, 1, 1], [], []>} : vector<32x512xbf16>, vector<512x256xbf16>, vector<32x256xf32> -> vector<32x256xf32>
    %c0_112 = arith.constant 0 : index
    %c0_113 = arith.constant 0 : index
    %278 = vector.load %arg23[%c0_112, %c0_113] : memref<1x256xf32, #tpu.memory_space<vmem>>, vector<1x256xf32>
    %c0_114 = arith.constant 0 : index
    %c0_115 = arith.constant 0 : index
    %279 = vector.load %arg24[%c0_114, %c0_115] : memref<1x256xf32, #tpu.memory_space<vmem>>, vector<1x256xf32>
    %280 = vector.extract_strided_slice %277 {offsets = [0, 0], sizes = [16, 256], strides = [1, 1]} : vector<32x256xf32> to vector<16x256xf32>
    %cst_116 = arith.constant dense<0.000000e+00> : vector<256xf32>
    %281 = vector.multi_reduction <add>, %280, %cst_116 [0] : vector<16x256xf32> to vector<256xf32>
    %282 = vector.shape_cast %281 : vector<256xf32> to vector<1x256xf32>
    %cst_117 = arith.constant 1.600000e+01 : f32
    %283 = vector.broadcast %cst_117 : f32 to vector<1x256xf32>
    %284 = arith.divf %282, %283 : vector<1x256xf32>
    %285 = vector.broadcast %284 : vector<1x256xf32> to vector<16x256xf32>
    %286 = arith.subf %280, %285 : vector<16x256xf32>
    %287 = arith.mulf %286, %286 : vector<16x256xf32>
    %cst_118 = arith.constant dense<0.000000e+00> : vector<256xf32>
    %288 = vector.multi_reduction <add>, %287, %cst_118 [0] : vector<16x256xf32> to vector<256xf32>
    %289 = vector.shape_cast %288 : vector<256xf32> to vector<1x256xf32>
    %cst_119 = arith.constant 1.600000e+01 : f32
    %290 = vector.broadcast %cst_119 : f32 to vector<1x256xf32>
    %291 = arith.divf %289, %290 : vector<1x256xf32>
    %292 = vector.broadcast %284 : vector<1x256xf32> to vector<16x256xf32>
    %293 = arith.subf %280, %292 : vector<16x256xf32>
    %cst_120 = arith.constant 9.99999974E-6 : f32
    %294 = vector.broadcast %cst_120 : f32 to vector<1x256xf32>
    %295 = arith.addf %291, %294 : vector<1x256xf32>
    %296 = math.rsqrt %295 : vector<1x256xf32>
    %297 = vector.broadcast %296 : vector<1x256xf32> to vector<16x256xf32>
    %298 = arith.mulf %293, %297 : vector<16x256xf32>
    %299 = vector.broadcast %278 : vector<1x256xf32> to vector<16x256xf32>
    %300 = arith.mulf %298, %299 : vector<16x256xf32>
    %301 = vector.broadcast %279 : vector<1x256xf32> to vector<16x256xf32>
    %302 = arith.addf %300, %301 : vector<16x256xf32>
    %303 = vector.extract_strided_slice %277 {offsets = [16, 0], sizes = [16, 256], strides = [1, 1]} : vector<32x256xf32> to vector<16x256xf32>
    %cst_121 = arith.constant dense<0.000000e+00> : vector<256xf32>
    %304 = vector.multi_reduction <add>, %303, %cst_121 [0] : vector<16x256xf32> to vector<256xf32>
    %305 = vector.shape_cast %304 : vector<256xf32> to vector<1x256xf32>
    %cst_122 = arith.constant 1.600000e+01 : f32
    %306 = vector.broadcast %cst_122 : f32 to vector<1x256xf32>
    %307 = arith.divf %305, %306 : vector<1x256xf32>
    %308 = vector.broadcast %307 : vector<1x256xf32> to vector<16x256xf32>
    %309 = arith.subf %303, %308 : vector<16x256xf32>
    %310 = arith.mulf %309, %309 : vector<16x256xf32>
    %cst_123 = arith.constant dense<0.000000e+00> : vector<256xf32>
    %311 = vector.multi_reduction <add>, %310, %cst_123 [0] : vector<16x256xf32> to vector<256xf32>
    %312 = vector.shape_cast %311 : vector<256xf32> to vector<1x256xf32>
    %cst_124 = arith.constant 1.600000e+01 : f32
    %313 = vector.broadcast %cst_124 : f32 to vector<1x256xf32>
    %314 = arith.divf %312, %313 : vector<1x256xf32>
    %315 = vector.broadcast %307 : vector<1x256xf32> to vector<16x256xf32>
    %316 = arith.subf %303, %315 : vector<16x256xf32>
    %cst_125 = arith.constant 9.99999974E-6 : f32
    %317 = vector.broadcast %cst_125 : f32 to vector<1x256xf32>
    %318 = arith.addf %314, %317 : vector<1x256xf32>
    %319 = math.rsqrt %318 : vector<1x256xf32>
    %320 = vector.broadcast %319 : vector<1x256xf32> to vector<16x256xf32>
    %321 = arith.mulf %316, %320 : vector<16x256xf32>
    %322 = vector.broadcast %278 : vector<1x256xf32> to vector<16x256xf32>
    %323 = arith.mulf %321, %322 : vector<16x256xf32>
    %324 = vector.broadcast %279 : vector<1x256xf32> to vector<16x256xf32>
    %325 = arith.addf %323, %324 : vector<16x256xf32>
    %326 = tpu.concatenate %302, %325 in 0 : vector<16x256xf32>, vector<16x256xf32> -> vector<32x256xf32>
    %cst_126 = arith.constant 0.000000e+00 : f32
    %327 = vector.broadcast %cst_126 : f32 to vector<32x256xf32>
    %328 = arith.cmpf oge, %326, %327 : vector<32x256xf32>
    %cst_127 = arith.constant 0.00999999977 : f32
    %329 = vector.broadcast %cst_127 : f32 to vector<32x256xf32>
    %330 = arith.mulf %329, %326 : vector<32x256xf32>
    %331 = arith.select %328, %326, %330 : vector<32x256xi1>, vector<32x256xf32>
    %c0_128 = arith.constant 0 : index
    %c0_129 = arith.constant 0 : index
    %332 = vector.load %arg25[%c0_128, %c0_129] : memref<1x256xbf16, #tpu.memory_space<vmem>>, vector<1x256xbf16>
    %c0_130 = arith.constant 0 : index
    %c0_131 = arith.constant 0 : index
    %333 = vector.load %arg26[%c0_130, %c0_131] : memref<1x1xf32, #tpu.memory_space<vmem>>, vector<1x1xf32>
    %334 = vector.extract_strided_slice %331 {offsets = [0, 0], sizes = [16, 256], strides = [1, 1]} : vector<32x256xf32> to vector<16x256xf32>
    %335 = arith.truncf %334 : vector<16x256xf32> to vector<16x256xbf16>
    %cst_132 = arith.constant dense<0.000000e+00> : vector<1x16xf32>
    %336 = tpu.matmul %332, %335, %cst_132 {dimension_numbers = #tpu.dot_dimension_numbers<[1], [1], [0], [0], [0, 0, 1, 0], [], []>} : vector<1x256xbf16>, vector<16x256xbf16>, vector<1x16xf32> -> vector<1x16xf32>
    %337 = vector.broadcast %333 : vector<1x1xf32> to vector<1x16xf32>
    %338 = arith.addf %336, %337 : vector<1x16xf32>
    %c0_133 = arith.constant 0 : index
    %c0_134 = arith.constant 0 : index
    %c0_135 = arith.constant 0 : index
    %339 = vector.load %arg27[%c0_133, %c0_134, %c0_135] : memref<2x1x16xf32, #tpu.memory_space<vmem>>, vector<1x1x16xf32>
    %340 = vector.shape_cast %339 : vector<1x1x16xf32> to vector<1x16xf32>
    %341 = vector.shape_cast %338 : vector<1x16xf32> to vector<1x1x16xf32>
    tpu.vector_store %arg27[%c0_133, %c0_134, %c0_135], %341 {strides = array<i32>} : memref<2x1x16xf32, #tpu.memory_space<vmem>>, vector<1x1x16xf32>,
    %342 = vector.extract_strided_slice %331 {offsets = [16, 0], sizes = [16, 256], strides = [1, 1]} : vector<32x256xf32> to vector<16x256xf32>
    %343 = arith.truncf %342 : vector<16x256xf32> to vector<16x256xbf16>
    %cst_136 = arith.constant dense<0.000000e+00> : vector<1x16xf32>
    %344 = tpu.matmul %332, %343, %cst_136 {dimension_numbers = #tpu.dot_dimension_numbers<[1], [1], [0], [0], [0, 0, 1, 0], [], []>} : vector<1x256xbf16>, vector<16x256xbf16>, vector<1x16xf32> -> vector<1x16xf32>
    %345 = vector.broadcast %333 : vector<1x1xf32> to vector<1x16xf32>
    %346 = arith.addf %344, %345 : vector<1x16xf32>
    %c1_137 = arith.constant 1 : index
    %c0_138 = arith.constant 0 : index
    %c0_139 = arith.constant 0 : index
    %347 = vector.load %arg27[%c1_137, %c0_138, %c0_139] : memref<2x1x16xf32, #tpu.memory_space<vmem>>, vector<1x1x16xf32>
    %348 = vector.shape_cast %347 : vector<1x1x16xf32> to vector<1x16xf32>
    %349 = vector.shape_cast %346 : vector<1x16xf32> to vector<1x1x16xf32>
    tpu.vector_store %arg27[%c1_137, %c0_138, %c0_139], %349 {strides = array<i32>} : memref<2x1x16xf32, #tpu.memory_space<vmem>>, vector<1x1x16xf32>,
    return
  }
  func.func @transform_0(%arg0: i32) -> (i32, i32, i32) {
    %c0_i32 = arith.constant 0 : i32
    %c0_i32_0 = arith.constant 0 : i32
    %c0_i32_1 = arith.constant 0 : i32
    return %arg0, %c0_i32, %c0_i32_0 : i32, i32, i32
  }
  func.func @transform_1(%arg0: i32) -> (i32, i32, i32) {
    %c0_i32 = arith.constant 0 : i32
    %c0_i32_0 = arith.constant 0 : i32
    %c0_i32_1 = arith.constant 0 : i32
    return %arg0, %c0_i32, %c0_i32_0 : i32, i32, i32
  }
  func.func @transform_2(%arg0: i32) -> (i32, i32) {
    %c0_i32 = arith.constant 0 : i32
    %c0_i32_0 = arith.constant 0 : i32
    %c0_i32_1 = arith.constant 0 : i32
    return %c0_i32, %c0_i32_0 : i32, i32
  }
  func.func @transform_3(%arg0: i32) -> (i32, i32) {
    %c0_i32 = arith.constant 0 : i32
    %c0_i32_0 = arith.constant 0 : i32
    %c0_i32_1 = arith.constant 0 : i32
    return %c0_i32, %c0_i32_0 : i32, i32
  }
  func.func @transform_4(%arg0: i32) -> (i32, i32) {
    %c0_i32 = arith.constant 0 : i32
    %c0_i32_0 = arith.constant 0 : i32
    %c0_i32_1 = arith.constant 0 : i32
    return %c0_i32, %c0_i32_0 : i32, i32
  }
  func.func @transform_5(%arg0: i32) -> (i32, i32) {
    %c0_i32 = arith.constant 0 : i32
    %c0_i32_0 = arith.constant 0 : i32
    %c0_i32_1 = arith.constant 0 : i32
    return %c0_i32, %c0_i32_0 : i32, i32
  }
  func.func @transform_6(%arg0: i32) -> (i32, i32) {
    %c0_i32 = arith.constant 0 : i32
    %c0_i32_0 = arith.constant 0 : i32
    %c0_i32_1 = arith.constant 0 : i32
    return %c0_i32, %c0_i32_0 : i32, i32
  }
  func.func @transform_7(%arg0: i32) -> (i32, i32) {
    %c0_i32 = arith.constant 0 : i32
    %c0_i32_0 = arith.constant 0 : i32
    %c0_i32_1 = arith.constant 0 : i32
    return %c0_i32, %c0_i32_0 : i32, i32
  }
  func.func @transform_8(%arg0: i32) -> (i32, i32) {
    %c0_i32 = arith.constant 0 : i32
    %c0_i32_0 = arith.constant 0 : i32
    %c0_i32_1 = arith.constant 0 : i32
    return %c0_i32, %c0_i32_0 : i32, i32
  }
  func.func @transform_9(%arg0: i32) -> (i32, i32) {
    %c0_i32 = arith.constant 0 : i32
    %c0_i32_0 = arith.constant 0 : i32
    %c0_i32_1 = arith.constant 0 : i32
    return %c0_i32, %c0_i32_0 : i32, i32
  }
  func.func @transform_10(%arg0: i32) -> (i32, i32) {
    %c0_i32 = arith.constant 0 : i32
    %c0_i32_0 = arith.constant 0 : i32
    %c0_i32_1 = arith.constant 0 : i32
    return %c0_i32, %c0_i32_0 : i32, i32
  }
  func.func @transform_11(%arg0: i32) -> (i32, i32) {
    %c0_i32 = arith.constant 0 : i32
    %c0_i32_0 = arith.constant 0 : i32
    %c0_i32_1 = arith.constant 0 : i32
    return %c0_i32, %c0_i32_0 : i32, i32
  }
  func.func @transform_12(%arg0: i32) -> (i32, i32) {
    %c0_i32 = arith.constant 0 : i32
    %c0_i32_0 = arith.constant 0 : i32
    %c0_i32_1 = arith.constant 0 : i32
    return %c0_i32, %c0_i32_0 : i32, i32
  }
  func.func @transform_13(%arg0: i32) -> (i32, i32) {
    %c0_i32 = arith.constant 0 : i32
    %c0_i32_0 = arith.constant 0 : i32
    %c0_i32_1 = arith.constant 0 : i32
    return %c0_i32, %c0_i32_0 : i32, i32
  }
  func.func @transform_14(%arg0: i32) -> (i32, i32) {
    %c0_i32 = arith.constant 0 : i32
    %c0_i32_0 = arith.constant 0 : i32
    %c0_i32_1 = arith.constant 0 : i32
    return %c0_i32, %c0_i32_0 : i32, i32
  }
  func.func @transform_15(%arg0: i32) -> (i32, i32) {
    %c0_i32 = arith.constant 0 : i32
    %c0_i32_0 = arith.constant 0 : i32
    %c0_i32_1 = arith.constant 0 : i32
    return %c0_i32, %c0_i32_0 : i32, i32
  }
  func.func @transform_16(%arg0: i32) -> (i32, i32) {
    %c0_i32 = arith.constant 0 : i32
    %c0_i32_0 = arith.constant 0 : i32
    %c0_i32_1 = arith.constant 0 : i32
    return %c0_i32, %c0_i32_0 : i32, i32
  }
  func.func @transform_17(%arg0: i32) -> (i32, i32) {
    %c0_i32 = arith.constant 0 : i32
    %c0_i32_0 = arith.constant 0 : i32
    %c0_i32_1 = arith.constant 0 : i32
    return %c0_i32, %c0_i32_0 : i32, i32
  }
  func.func @transform_18(%arg0: i32) -> (i32, i32) {
    %c0_i32 = arith.constant 0 : i32
    %c0_i32_0 = arith.constant 0 : i32
    %c0_i32_1 = arith.constant 0 : i32
    return %c0_i32, %c0_i32_0 : i32, i32
  }
  func.func @transform_19(%arg0: i32) -> (i32, i32) {
    %c0_i32 = arith.constant 0 : i32
    %c0_i32_0 = arith.constant 0 : i32
    %c0_i32_1 = arith.constant 0 : i32
    return %c0_i32, %c0_i32_0 : i32, i32
  }
  func.func @transform_20(%arg0: i32) -> (i32, i32) {
    %c0_i32 = arith.constant 0 : i32
    %c0_i32_0 = arith.constant 0 : i32
    %c0_i32_1 = arith.constant 0 : i32
    return %c0_i32, %c0_i32_0 : i32, i32
  }
  func.func @transform_21(%arg0: i32) -> (i32, i32) {
    %c0_i32 = arith.constant 0 : i32
    %c0_i32_0 = arith.constant 0 : i32
    %c0_i32_1 = arith.constant 0 : i32
    return %c0_i32, %c0_i32_0 : i32, i32
  }
  func.func @transform_22(%arg0: i32) -> (i32, i32) {
    %c0_i32 = arith.constant 0 : i32
    %c0_i32_0 = arith.constant 0 : i32
    %c0_i32_1 = arith.constant 0 : i32
    return %c0_i32, %c0_i32_0 : i32, i32
  }
  func.func @transform_23(%arg0: i32) -> (i32, i32) {
    %c0_i32 = arith.constant 0 : i32
    %c0_i32_0 = arith.constant 0 : i32
    %c0_i32_1 = arith.constant 0 : i32
    return %c0_i32, %c0_i32_0 : i32, i32
  }
  func.func @transform_24(%arg0: i32) -> (i32, i32) {
    %c0_i32 = arith.constant 0 : i32
    %c0_i32_0 = arith.constant 0 : i32
    %c0_i32_1 = arith.constant 0 : i32
    return %c0_i32, %c0_i32_0 : i32, i32
  }
  func.func @transform_25(%arg0: i32) -> (i32, i32) {
    %c0_i32 = arith.constant 0 : i32
    %c0_i32_0 = arith.constant 0 : i32
    %c0_i32_1 = arith.constant 0 : i32
    return %c0_i32, %c0_i32_0 : i32, i32
  }
  func.func @transform_26(%arg0: i32) -> (i32, i32, i32) {
    %c0_i32 = arith.constant 0 : i32
    %c0_i32_0 = arith.constant 0 : i32
    %c0_i32_1 = arith.constant 0 : i32
    return %arg0, %c0_i32, %c0_i32_0 : i32, i32, i32
  }
}

</mosaic_0001>

<bundles_post_ra>
// kernel: error_estimator_feat_fusion2head.1
= control target key start
LH: loop header
LB: loop body
LE: loop exit
PB: predicated region body
PF: predicated region fallthrough
CT: control target
= control target key end

     0   :  { %s18534_s0 = inlined_call_operand.vmem [shape: f32[2,16,4], index: 0, kind: input, shape index: {}]   ;;  %s18535_s1 = inlined_call_operand.vmem [shape: f32[2,16,8], index: 1, kind: input, shape index: {}]   ;;  %s18536_s2 = inlined_call_operand.vmem [shape: bf16[4,64], index: 2, kind: input, shape index: {}]   ;;  %s18537_s3 = inlined_call_operand.vmem [shape: f32[1,64], index: 3, kind: input, shape index: {}]   ;;  %s18538_s4 = inlined_call_operand.vmem [shape: f32[1,64], index: 4, kind: input, shape index: {}]   ;;  %s18539_s5 = inlined_call_operand.vmem [shape: bf16[64,128], index: 5, kind: input, shape index: {}]   ;;  %s18540_s6 = inlined_call_operand.vmem [shape: f32[1,128], index: 6, kind: input, shape index: {}]   ;;  %s18541_s7 = inlined_call_operand.vmem [shape: f32[1,128], index: 7, kind: input, shape index: {}]   ;;  %s18542_s8 = inlined_call_operand.vmem [shape: bf16[128,1024], index: 8, kind: input, shape index: {}]   ;;  %s18543_s9 = inlined_call_operand.vmem [shape: f32[1,1024], index: 9, kind: input, shape index: {}]   ;;  %s18544_s10 = inlined_call_operand.vmem [shape: f32[1,1024], index: 10, kind: input, shape index: {}]   ;;  %s18545_s11 = inlined_call_operand.vmem [shape: bf16[8,64], index: 11, kind: input, shape index: {}]   ;;  %s18546_s12 = inlined_call_operand.vmem [shape: f32[1,64], index: 12, kind: input, shape index: {}]   ;;  %s18547_s13 = inlined_call_operand.vmem [shape: bf16[64,128], index: 13, kind: input, shape index: {}]   ;;  %s18548_s14 = inlined_call_operand.vmem [shape: f32[1,128], index: 14, kind: input, shape index: {}]   ;;  %s18549_s15 = inlined_call_operand.vmem [shape: bf16[128,1024], index: 15, kind: input, shape index: {}]   ;;  %s18550_s16 = inlined_call_operand.vmem [shape: f32[1,1024], index: 16, kind: input, shape index: {}]   ;;  %s18551_s17 = inlined_call_operand.vmem [shape: bf16[1024,512], index: 17, kind: input, shape index: {}]   ;;  %s18552_s18 = inlined_call_operand.vmem [shape: bf16[1024,512], index: 18, kind: input, shape index: {}]   ;;  %s18553_s19 = inlined_call_operand.vmem [shape: f32[1,512], index: 19, kind: input, shape index: {}]   ;;  %s18554_s20 = inlined_call_operand.vmem [shape: f32[1,512], index: 20, kind: input, shape index: {}]   ;;  %s18555_s21 = inlined_call_operand.vmem [shape: bf16[512,256], index: 21, kind: input, shape index: {}]   ;;  %s18556_s22 = inlined_call_operand.vmem [shape: f32[1,256], index: 22, kind: input, shape index: {}]   ;;  %s18557_s23 = inlined_call_operand.vmem [shape: f32[1,256], index: 23, kind: input, shape index: {}]   ;;  %s18558_s24 = inlined_call_operand.vmem [shape: bf16[1,256], index: 24, kind: input, shape index: {}]   ;;  %s18559_s25 = inlined_call_operand.<no memory space> [shape: f32[1,1], index: 25, kind: input, shape index: {}]   ;;  %s18560_s26 = inlined_call_operand.hbm [shape: f32[2,1,16], index: 26, kind: output, shape index: {}]  }
   0x1   :  { %18656 = sst [smem:[#allocation58_spill]] %s18534_s0  ;;  %v31_v0 = vstv %s18559_s25 }
   0x2   :  { %18657 = sst [smem:[#allocation59_spill]] %s18535_s1  ;;  %32 = vst [vmem:[#allocation2] sm:$0x1] %v31_v0 }
   0x3   :  { %18658 = sst [smem:[#allocation60_spill]] %s18536_s2 }
   0x4   :  { %18659 = sst [smem:[#allocation61_spill]] %s18537_s3 }
   0x5   :  { %18660 = sst [smem:[#allocation62_spill]] %s18538_s4 }
   0x6   :  { %18661 = sst [smem:[#allocation63_spill]] %s18539_s5 }
   0x7   :  { %18662 = sst [smem:[#allocation64_spill]] %s18540_s6 }
   0x8   :  { %18663 = sst [smem:[#allocation65_spill]] %s18541_s7 }
   0x9   :  { %18664 = sst [smem:[#allocation66_spill]] %s18542_s8 }
   0xa   :  { %18665 = sst [smem:[#allocation67_spill]] %s18543_s9 }
   0xb   :  { %18666 = sst [smem:[#allocation68_spill]] %s18544_s10 }
   0xc   :  { %s18667_s8 = sld [smem:[#allocation60_spill]]  ;;  %vm107_vm0 = vcmask 1041408   ;;  %vm100_vm1 = vcmask 31744  }
   0xd   :  { %s18668_s0 = sld [smem:[#allocation58_spill]] }
  0x12   :  { %v99_v1 = vld [vmem:[%s18667_s8] sm:$0x3] }
  0x13   :  { %v87_v2 = vld [vmem:[%s18668_s0] sm:$0xff]  ;;  %v88_v3 = vld [vmem:[%s18668_s0 + $0x8] sm:$0xff]  ;;  %v109_v4 = vsel %vm107_vm0, %v99_v1, 0 }
  0x14   :  { %v97_v5 = vpack.c.bf16 %v88_v3, %v87_v2  ;;  %118 = vmatpush.bf16.msra.mxu0 %v109_v4 }
  0x15   :  { %33 = vsyncpa [#allocation4], 0  ;;  %v7940_v6 = vld [vmem:[%s18668_s0 + $0x10] sm:$0xff]  ;;  %v7941_v7 = vld [vmem:[%s18668_s0 + $0x18] sm:$0xff]  ;;  %v11621_v9 = vmov 16.0   ;;  %vm132_vm2 = vcmask 523264  }
  0x16   :  { %v98_v8 = vpack.c.bf16 %v7941_v7, %v7940_v6  ;;  %11524 = vrcp.f32 %v11621_v9  ;;  %s18670_s27 = sld [smem:[#allocation63_spill]]  ;;  %s7928_s28 = sshll.u32 %s18560_s26, 4  ;;  %s7929_s28 = int_to_ptr.hbm [resolvable:$true] %s7928_s28 }
  0x17   :  { %7944 = vmatmul.msk.bf16.vlgmr.msra.gmra.mxu0 %vm100_vm1, %v97_v5  ;;  %s18671_s30 = sld [smem:[#allocation61_spill]]  ;;  %s11624_s8 = smov 16  }
  0x18   :  { %s18672_s5 = sld [smem:[#allocation62_spill]] }
  0x19   :  { %s18673_s1 = sld [smem:[#allocation66_spill]] }
  0x1a   :  { %s18676_s0 = sld [smem:[#allocation64_spill]] }
  0x1b   :  { %s18677_s4 = sld [smem:[#allocation65_spill]] }
  0x1c   :  { %v11525_v11 = vpop.eup %11524  ;;  %v10803_v38 = vld [vmem:[%s18670_s27 + $0x18] sm:$0xff]  ;;  %v10802_v45 = vld [vmem:[%s18670_s27 + $0x10] sm:$0xff]  ;;  %v10801_v50 = vld [vmem:[%s18670_s27 + $0x8] sm:$0xff]  ;;  %s18678_s9 = sld [smem:[#allocation59_spill]] }
  0x1d   :  { %v143_v12 = vmul.f32 16.0, %v11525_v11  ;;  %vm147_vm3 = vweird.f32 %v11525_v11  ;;  %284 = vmatpush.bf16.msra.mxu1 %v10803_v38  ;;  %v10800_v55 = vld [vmem:[%s18670_s27] sm:$0xff]  ;;  %s18696_s7 = sld [smem:[#allocation68_spill]] }
  0x1f   :  { %v144_v16 = vsub.f32 1.0, %v143_v12 }
  0x21   :  { %v145_v19 = vmul.f32 %v11525_v11, %v144_v16  ;;  %285 = vmatpush.bf16.msra.mxu1 %v10802_v45  ;;  %v11518_v16 = vld [vmem:[%s18671_s30] ss:$0 sm:$0xff]  ;;  %s18694_s30 = sld [smem:[#allocation67_spill]] }
  0x23   :  { %v146_v23 = vadd.f32 %v11525_v11, %v145_v19 }
  0x25   :  { %v11781_v26 = vsel %vm147_vm3, %v11525_v11, %v146_v23  ;;  %286 = vmatpush.bf16.msra.mxu1 %v10801_v50 }
  0x26   :  { %18669 = vst [vmem:[#allocation6_spill] sm:$0xff] %v11781_v26 }
  0x27   :  { %7945 = vmatmul.msk.bf16.gmra.mxu0 %vm100_vm1, %v98_v8 }
  0x29   :  { %287 = vmatpush.bf16.msra.mxu1 %v10800_v55 }
  0x94   :  { %v120_v10 = vpop.f32.mrf.mxu0 }
  0x95   :  { %v133_v14 = vsel %vm132_vm2, %v120_v10, 0.0 }
  0x9c   :  { %v122_v13 = vpop.f32.mrf.mxu0 }
  0x9d   :  { %v134_v15 = vsel %vm132_vm2, %v122_v13, 0.0 }
  0x9e   :  { %v135_v17 = vadd.f32 %v134_v15, %v133_v14 }
  0xa0   :  { %v136_v18 = vrot.slane %v135_v17, 4 }
  0xa2   :  { %v137_v20 = vadd.f32 %v136_v18, %v135_v17 }
  0xa4   :  { %v138_v21 = vrot.slane %v137_v20, 2  ;;  %v125_v22 = vpop.f32.mrf.mxu0 }
  0xa5   :  { %v187_v30 = vsel %vm132_vm2, %v125_v22, 0.0 }
  0xa6   :  { %v139_v24 = vadd.f32 %v138_v21, %v137_v20  ;;  %v11519_v20 = vld [vmem:[%s18672_s5] ss:$0 sm:$0xff] }
  0xa8   :  { %v140_v25 = vrot.slane %v139_v24, 1 }
  0xaa   :  { %v141_v27 = vadd.f32 %v140_v25, %v139_v24 }
  0xac   :  { %v149_v28 = vmul.f32 %v11781_v26, %v141_v27  ;;  %v127_v29 = vpop.f32.mrf.mxu0 }
  0xad   :  { %v188_v31 = vsel %vm132_vm2, %v127_v29, 0.0 }
  0xae   :  { %v150_v32 = vsub.f32 %v120_v10, %v149_v28  ;;  %v151_v33 = vsub.f32 %v122_v13, %v149_v28  ;;  %v189_v34 = vadd.f32 %v188_v31, %v187_v30 }
  0xb0   :  { %v152_v35 = vmul.f32 %v150_v32, %v150_v32  ;;  %v153_v36 = vmul.f32 %v151_v33, %v151_v33  ;;  %v190_v37 = vrot.slane %v189_v34, 4 }
  0xb2   :  { %v154_v39 = vsel %vm132_vm2, %v152_v35, 0.0  ;;  %v155_v40 = vsel %vm132_vm2, %v153_v36, 0.0  ;;  %v191_v41 = vadd.f32 %v190_v37, %v189_v34 }
  0xb3   :  { %v156_v42 = vadd.f32 %v155_v40, %v154_v39 }
  0xb4   :  { %v192_v43 = vrot.slane %v191_v41, 2 }
  0xb5   :  { %v157_v44 = vrot.slane %v156_v42, 4 }
  0xb6   :  { %v193_v46 = vadd.f32 %v192_v43, %v191_v41 }
  0xb7   :  { %v158_v47 = vadd.f32 %v157_v44, %v156_v42 }
  0xb8   :  { %v194_v48 = vrot.slane %v193_v46, 1 }
  0xb9   :  { %v159_v49 = vrot.slane %v158_v47, 2 }
  0xba   :  { %v195_v51 = vadd.f32 %v194_v48, %v193_v46 }
  0xbb   :  { %v160_v52 = vadd.f32 %v159_v49, %v158_v47 }
  0xbc   :  { %v196_v53 = vmul.f32 %v195_v51, %v11781_v26 }
  0xbd   :  { %v161_v54 = vrot.slane %v160_v52, 1 }
  0xbe   :  { %v197_v56 = vsub.f32 %v125_v22, %v196_v53  ;;  %v198_v57 = vsub.f32 %v127_v29, %v196_v53  ;;  %v10864_v53 = vld [vmem:[%s18673_s1 + $0x1dc] sm:$0xf0] }
  0xbf   :  { %v162_v58 = vadd.f32 %v161_v54, %v160_v52  ;;  %v8190_v52 = vld [vmem:[%s18673_s1 + $0x1c0] sm:$0xf]  ;;  %v10860_v54 = vld [vmem:[%s18673_s1 + $0x1c4] sm:$0xf] }
  0xc0   :  { %v199_v59 = vmul.f32 %v197_v56, %v197_v56  ;;  %v200_v60 = vmul.f32 %v198_v57, %v198_v57 }
  0xc1   :  { %v163_v61 = vmul.f32 %v162_v58, %v11781_v26  ;;  %v8198_v58 = vld [vmem:[%s18673_s1 + $0x1c8] sm:$0xf] }
  0xc2   :  { %v201_v62 = vsel %vm132_vm2, %v199_v59, 0.0  ;;  %v202_v63 = vsel %vm132_vm2, %v200_v60, 0.0  ;;  %v10865_v60 = vld [vmem:[%s18673_s1 + $0x1e4] sm:$0xf0] }
  0xc3   :  { %v164_v0 = vadd.f32 1e-05, %v163_v61  ;;  %v203_v1 = vadd.f32 %v202_v63, %v201_v62  ;;  %v10861_v61 = vld [vmem:[%s18673_s1 + $0x1cc] sm:$0xf] }
  0xc4   :  { %v8200_v62 = vld [vmem:[%s18673_s1 + $0x1e8] sm:$0xf0] }
  0xc5   :  { %11526 = vrsqrt.f32 %v164_v0  ;;  %v204_v2 = vrot.slane %v203_v1, 4  ;;  %vm171_vm5 = vweird.f32 %v164_v0 }
  0xc7   :  { %v205_v3 = vadd.f32 %v204_v2, %v203_v1  ;;  %v8203_v1 = vor.u32 %v10861_v61, %v8200_v62  ;;  %v8158_v2 = vld [vmem:[%s18673_s1 + $0x180] sm:$0xf]  ;;  %v8072_v61 = vld [vmem:[%s18673_s1 + $0xe8] sm:$0xf0] }
  0xc9   :  { %v206_v4 = vrot.slane %v205_v3, 2  ;;  %836 = vmatpush.bf16.msrb.mxu1 %v8203_v1 }
  0xcb   :  { %v11527_v5 = vpop.eup %11526  ;;  %v207_v6 = vadd.f32 %v206_v4, %v205_v3  ;;  %v10856_v3 = vld [vmem:[%s18673_s1 + $0x19c] sm:$0xf0]  ;;  %v10852_v4 = vld [vmem:[%s18673_s1 + $0x184] sm:$0xf] }
  0xcc   :  { %v166_v7 = vmul.f32 %v11527_v5, %v164_v0  ;;  %vm172_vm4 = vweird.f32 %v11527_v5  ;;  %v8199_v0 = vor.u32 %v10865_v60, %v8198_v58  ;;  %v10829_v60 = vld [vmem:[%s18673_s1 + $0xcc] sm:$0xf] }
  0xcd   :  { %v208_v8 = vrot.slane %v207_v6, 1  ;;  %vm173_vm6 = vmor %vm171_vm5, %vm172_vm4  ;;  %v8075_v1 = vor.u32 %v10829_v60, %v8072_v61  ;;  %v8208_v61 = vld [vmem:[%s18673_s1 + $0x1f0] sm:$0xf0] }
  0xce   :  { %v167_v9 = vmul.f32 %v11527_v5, %v166_v7  ;;  %817 = vmatpush.bf16.msrb.mxu0 %v8199_v0  ;;  %v8160_v7 = vld [vmem:[%s18673_s1 + $0x1a0] sm:$0xf0] }
  0xcf   :  { %v209_v10 = vadd.f32 %v208_v8, %v207_v6  ;;  %v8159_v6 = vor.u32 %v10856_v3, %v8158_v2  ;;  %v8166_v8 = vld [vmem:[%s18673_s1 + $0x188] sm:$0xf]  ;;  %v8030_v2 = vld [vmem:[%s18673_s1 + $0x80] sm:$0xf] }
  0xd0   :  { %v168_v11 = vmul.f32 0.5, %v167_v9  ;;  %v10824_v3 = vld [vmem:[%s18673_s1 + $0x9c] sm:$0xf0] }
  0xd1   :  { %v210_v12 = vmul.f32 %v209_v10, %v11781_v26  ;;  %v8163_v10 = vor.u32 %v10852_v4, %v8160_v7  ;;  %v10820_v4 = vld [vmem:[%s18673_s1 + $0x84] sm:$0xf]  ;;  %v8031_v7 = vor.u32 %v10824_v3, %v8030_v2 }
  0xd2   :  { %v169_v13 = vsub.f32 1.5, %v168_v11  ;;  %v10857_v11 = vld [vmem:[%s18673_s1 + $0x1a4] sm:$0xf0] }
  0xd3   :  { %v211_v14 = vadd.f32 1e-05, %v210_v12  ;;  %v10853_v12 = vld [vmem:[%s18673_s1 + $0x18c] sm:$0xf] }
  0xd4   :  { %v170_v15 = vmul.f32 %v11527_v5, %v169_v13  ;;  %v8168_v13 = vld [vmem:[%s18673_s1 + $0x1a8] sm:$0xf0] }
  0xd5   :  { %11528 = vrsqrt.f32 %v211_v14  ;;  %vm218_vm10 = vweird.f32 %v211_v14 }
  0xd6   :  { %v174_v17 = vsel %vm173_vm6, %v11527_v5, %v170_v15  ;;  %v8167_v15 = vor.u32 %v10857_v11, %v8166_v8  ;;  %v8032_v8 = vld [vmem:[%s18673_s1 + $0xa0] sm:$0xf0] }
  0xd7   :  { %v175_v18 = vmul.f32 %v174_v17, %v150_v32  ;;  %v176_v19 = vmul.f32 %v174_v17, %v151_v33  ;;  %v8126_v17 = vld [vmem:[%s18673_s1 + $0x140] sm:$0xf]  ;;  %v8035_v11 = vor.u32 %v10820_v4, %v8032_v8  ;;  %v10863_v4 = vld [vmem:[%s18673_s1 + $0x1dc] sm:$0xf]  ;;  %v8174_v8 = vld [vmem:[%s18673_s1 + $0x190] sm:$0xf] }
  0xd8   :  { %818 = vmatpush.bf16.msrb.mxu0 %v8167_v15 }
  0xd9   :  { %v180_v21 = vmul.f32 %v11518_v16, %v175_v18  ;;  %v181_v22 = vmul.f32 %v11518_v16, %v176_v19  ;;  %v10848_v18 = vld [vmem:[%s18673_s1 + $0x15c] sm:$0xf0]  ;;  %v10844_v19 = vld [vmem:[%s18673_s1 + $0x144] sm:$0xf] }
  0xdb   :  { %v11529_v23 = vpop.eup %11528  ;;  %v185_v24 = vadd.f32 %v11519_v20, %v180_v21  ;;  %v186_v25 = vadd.f32 %v11519_v20, %v181_v22  ;;  %v8127_v21 = vor.u32 %v10848_v18, %v8126_v17  ;;  %v8128_v22 = vld [vmem:[%s18673_s1 + $0x160] sm:$0xf0] }
  0xdc   :  { %v213_v27 = vmul.f32 %v11529_v23, %v211_v14  ;;  %vm219_vm9 = vweird.f32 %v11529_v23 }
  0xdd   :  { %vm228_vm7 = vcmp.ge.f32.partialorder %v185_v24, 0.0  ;;  %vm229_vm8 = vcmp.ge.f32.partialorder %v186_v25, 0.0  ;;  %v232_v28 = vmul.f32 0.01, %v185_v24  ;;  %v233_v29 = vmul.f32 0.01, %v186_v25  ;;  %vm220_vm11 = vmor %vm218_vm10, %vm219_vm9 }
  0xde   :  { %v214_v30 = vmul.f32 %v11529_v23, %v213_v27  ;;  %v10845_v27 = vld [vmem:[%s18673_s1 + $0x14c] sm:$0xf]  ;;  %vm1669_vm9 = vcmask 1043456   ;;  %vm1662_vm10 = vcmask 64512  }
  0xdf   :  { %v236_v31 = vsel %vm228_vm7, %v185_v24, %v232_v28  ;;  %v237_v34 = vsel %vm229_vm8, %v186_v25, %v233_v29  ;;  %v8131_v24 = vor.u32 %v10844_v19, %v8128_v22  ;;  %v10849_v25 = vld [vmem:[%s18673_s1 + $0x164] sm:$0xf0]  ;;  %v8136_v28 = vld [vmem:[%s18673_s1 + $0x168] sm:$0xf0]  ;;  %v7998_v19 = vld [vmem:[%s18673_s1 + $0x40] sm:$0xf] }
  0xe0   :  { %v215_v35 = vmul.f32 0.5, %v214_v30  ;;  %v240_v32 = vpack.c.bf16 %v237_v34, %v236_v31  ;;  %v8139_v31 = vor.u32 %v10845_v27, %v8136_v28  ;;  %v8094_v34 = vld [vmem:[%s18673_s1 + $0x100] sm:$0xf]  ;;  %v8006_v28 = vld [vmem:[%s18673_s1 + $0x48] sm:$0xf] }
  0xe2   :  { %v216_v33 = vsub.f32 1.5, %v215_v35  ;;  %7962 = vmatmul.msk.bf16.vlgmr.msra.gmra.mxu1 %vm132_vm2, %v240_v32  ;;  %v10840_v35 = vld [vmem:[%s18673_s1 + $0x11c] sm:$0xf0]  ;;  %v10836_v32 = vld [vmem:[%s18673_s1 + $0x104] sm:$0xf] }
  0xe4   :  { %v217_v36 = vmul.f32 %v11529_v23, %v216_v33 }
  0xe6   :  { %v221_v37 = vsel %vm220_vm11, %v11529_v23, %v217_v36  ;;  %v8134_v23 = vld [vmem:[%s18673_s1 + $0x148] sm:$0xf]  ;;  %v8095_v36 = vor.u32 %v10840_v35, %v8094_v34 }
  0xe7   :  { %v222_v38 = vmul.f32 %v221_v37, %v197_v56  ;;  %v223_v39 = vmul.f32 %v221_v37, %v198_v57  ;;  %v8191_v56 = vor.u32 %v10864_v53, %v8190_v52  ;;  %v8192_v57 = vld [vmem:[%s18673_s1 + $0x1e0] sm:$0xf0]  ;;  %v8135_v30 = vor.u32 %v10849_v25, %v8134_v23  ;;  %v10832_v52 = vld [vmem:[%s18673_s1 + $0xdc] sm:$0xf0] }
  0xe8   :  { %v8195_v59 = vor.u32 %v10860_v54, %v8192_v57  ;;  %v8096_v37 = vld [vmem:[%s18673_s1 + $0x120] sm:$0xf0]  ;;  %v8070_v57 = vld [vmem:[%s18673_s1 + $0xc8] sm:$0xf] }
  0xe9   :  { %v224_v40 = vmul.f32 %v11518_v16, %v222_v38  ;;  %v225_v41 = vmul.f32 %v11518_v16, %v223_v39  ;;  %779 = vmatpush.bf16.msra.mxu2 %v8191_v56  ;;  %v8171_v16 = vor.u32 %v10853_v12, %v8168_v13  ;;  %819 = vmatpush.bf16.msrb.mxu0 %v8135_v30  ;;  %v8102_v38 = vld [vmem:[%s18673_s1 + $0x108] sm:$0xf]  ;;  %v8064_v56 = vld [vmem:[%s18673_s1 + $0xe0] sm:$0xf0]  ;;  %v10821_v13 = vld [vmem:[%s18673_s1 + $0x8c] sm:$0xf] }
  0xea   :  { %798 = vmatpush.bf16.msra.mxu3 %v8195_v59  ;;  %v10841_v39 = vld [vmem:[%s18673_s1 + $0x124] sm:$0xf0]  ;;  %v8000_v25 = vld [vmem:[%s18673_s1 + $0x60] sm:$0xf0]  ;;  %v10813_v30 = vld [vmem:[%s18673_s1 + $0x4c] sm:$0xf] }
  0xeb   :  { %v226_v42 = vadd.f32 %v11519_v20, %v224_v40  ;;  %v227_v43 = vadd.f32 %v11519_v20, %v225_v41  ;;  %837 = vmatpush.bf16.msrb.mxu1 %v8171_v16  ;;  %v8099_v41 = vor.u32 %v10836_v32, %v8096_v37  ;;  %v10833_v59 = vld [vmem:[%s18673_s1 + $0xe4] sm:$0xf0]  ;;  %v8008_v32 = vld [vmem:[%s18673_s1 + $0x68] sm:$0xf0]  ;;  %v10808_v37 = vld [vmem:[%s18673_s1 + $0x1c] sm:$0xf0] }
  0xec   :  { %v8071_v0 = vor.u32 %v10833_v59, %v8070_v57  ;;  %v10825_v12 = vld [vmem:[%s18673_s1 + $0xa4] sm:$0xf0]  ;;  %v10862_v59 = vld [vmem:[%s18673_s1 + $0x1d4] sm:$0xf] }
  0xed   :  { %vm230_vm12 = vcmp.ge.f32.partialorder %v226_v42, 0.0  ;;  %vm231_vm13 = vcmp.ge.f32.partialorder %v227_v43, 0.0  ;;  %v234_v44 = vmul.f32 0.01, %v226_v42  ;;  %v235_v45 = vmul.f32 0.01, %v227_v43  ;;  %780 = vmatpush.bf16.msra.mxu2 %v8159_v6 }
  0xee   :  { %799 = vmatpush.bf16.msra.mxu3 %v8163_v10  ;;  %v8038_v10 = vld [vmem:[%s18673_s1 + $0x88] sm:$0xf]  ;;  %v8211_v2 = vor.u32 %v10862_v59, %v8208_v61  ;;  %v8078_v59 = vld [vmem:[%s18673_s1 + $0xd0] sm:$0xf]  ;;  %v10830_v61 = vld [vmem:[%s18673_s1 + $0xd4] sm:$0xf] }
  0xef   :  { %v238_v46 = vsel %vm230_vm12, %v226_v42, %v234_v44  ;;  %v239_v47 = vsel %vm231_vm13, %v227_v43, %v235_v45  ;;  %838 = vmatpush.bf16.msrb.mxu1 %v8139_v31  ;;  %v8103_v42 = vor.u32 %v10841_v39, %v8102_v38  ;;  %v10837_v43 = vld [vmem:[%s18673_s1 + $0x10c] sm:$0xf]  ;;  %v8039_v17 = vor.u32 %v10825_v12, %v8038_v10  ;;  %v10804_v38 = vld [vmem:[%s18673_s1 + $0x4] sm:$0xf]  ;;  %v10858_v10 = vld [vmem:[%s18673_s1 + $0x1ac] sm:$0xf0] }
  0xf0   :  { %v241_v48 = vpack.c.bf16 %v239_v47, %v238_v46  ;;  %v8104_v44 = vld [vmem:[%s18673_s1 + $0x128] sm:$0xf0]  ;;  %v10854_v12 = vld [vmem:[%s18673_s1 + $0x194] sm:$0xf] }
  0xf1   :  { %781 = vmatpush.bf16.msra.mxu2 %v8127_v21  ;;  %820 = vmatpush.bf16.msrb.mxu0 %v8103_v42  ;;  %v10812_v21 = vld [vmem:[%s18673_s1 + $0x44] sm:$0xf] }
  0xf2   :  { %7963 = vmatmul.msk.bf16.gmra.mxu1 %vm132_vm2, %v241_v48  ;;  %800 = vmatpush.bf16.msra.mxu3 %v8131_v24  ;;  %v8107_v48 = vor.u32 %v10837_v43, %v8104_v44  ;;  %v8003_v27 = vor.u32 %v10812_v21, %v8000_v25  ;;  %v7968_v43 = vld [vmem:[%s18673_s1 + $0x20] sm:$0xf0]  ;;  %v7974_v44 = vld [vmem:[%s18673_s1 + $0x8] sm:$0xf] }
  0xf4   :  { %839 = vmatpush.bf16.msrb.mxu1 %v8107_v48  ;;  %v10809_v48 = vld [vmem:[%s18673_s1 + $0x24] sm:$0xf0] }
  0xf5   :  { %782 = vmatpush.bf16.msra.mxu2 %v8095_v36  ;;  %821 = vmatpush.bf16.msrb.mxu0 %v8071_v0  ;;  %v7966_v36 = vld [vmem:[%s18673_s1] sm:$0xf] }
  0xf6   :  { %801 = vmatpush.bf16.msra.mxu3 %v8099_v41  ;;  %v7967_v42 = vor.u32 %v10808_v37, %v7966_v36 }
  0xf8   :  { %840 = vmatpush.bf16.msrb.mxu1 %v8075_v1 }
  0xf9   :  { %822 = vmatpush.bf16.msrb.mxu0 %v8039_v17  ;;  %v10859_v17 = vld [vmem:[%s18673_s1 + $0x1b4] sm:$0xf0] }
 0x15f   :  { %v11813_v49 = vpop.f32.mrf.mxu1 }
 0x167   :  { %v11815_v50 = vpop.f32.mrf.mxu1 }
 0x168   :  { %v301_v51 = vadd.f32 %v11815_v50, %v11813_v49 }
 0x16a   :  { %v302_v55 = vrot.slane %v301_v51, 4 }
 0x16c   :  { %v303_v63 = vadd.f32 %v302_v55, %v301_v51  ;;  %v8062_v51 = vld [vmem:[%s18673_s1 + $0xc0] sm:$0xf] }
 0x16d   :  { %v8063_v55 = vor.u32 %v10832_v52, %v8062_v51  ;;  %v10805_v51 = vld [vmem:[%s18673_s1 + $0xc] sm:$0xf] }
 0x16e   :  { %v304_v5 = vrot.slane %v303_v63, 2  ;;  %v7976_v52 = vld [vmem:[%s18673_s1 + $0x28] sm:$0xf0] }
 0x16f   :  { %v11858_v9 = vpop.f32.mrf.mxu1  ;;  %783 = vmatpush.bf16.msra.mxu2 %v8063_v55  ;;  %v7979_v55 = vor.u32 %v10805_v51, %v7976_v52  ;;  %v8118_v51 = vld [vmem:[%s18673_s1 + $0x118] sm:$0xf] }
 0x170   :  { %v305_v14 = vadd.f32 %v304_v5, %v303_v63 }
 0x172   :  { %v306_v20 = vrot.slane %v305_v14, 1 }
 0x173   :  { %784 = vmatpush.bf16.msra.mxu2 %v8031_v7 }
 0x174   :  { %v307_v29 = vadd.f32 %v306_v20, %v305_v14  ;;  %v8040_v14 = vld [vmem:[%s18673_s1 + $0xa8] sm:$0xf0]  ;;  %v10816_v20 = vld [vmem:[%s18673_s1 + $0x5c] sm:$0xf0] }
 0x175   :  { %v8043_v18 = vor.u32 %v10821_v13, %v8040_v14  ;;  %v7999_v24 = vor.u32 %v10816_v20, %v7998_v19  ;;  %v8176_v13 = vld [vmem:[%s18673_s1 + $0x1b0] sm:$0xf0]  ;;  %v8182_v14 = vld [vmem:[%s18673_s1 + $0x198] sm:$0xf]  ;;  %v8184_v19 = vld [vmem:[%s18673_s1 + $0x1b8] sm:$0xf0] }
 0x176   :  { %v308_v33 = vmul.f32 %v307_v29, %v11781_v26  ;;  %v10817_v29 = vld [vmem:[%s18673_s1 + $0x64] sm:$0xf0]  ;;  %v8183_v20 = vor.u32 %v10859_v17, %v8182_v14  ;;  %v12194_v14 = vld [vmem:[%s18677_s4] ss:$0 sm:$0xff]  ;;  %v10822_v17 = vld [vmem:[%s18673_s1 + $0x94] sm:$0xf] }
 0x177   :  { %v11912_v40 = vpop.f32.mrf.mxu1  ;;  %841 = vmatpush.bf16.msrb.mxu1 %v8043_v18  ;;  %785 = vmatpush.bf16.msra.mxu2 %v7999_v24  ;;  %v8007_v35 = vor.u32 %v10817_v29, %v8006_v28  ;;  %v10855_v18 = vld [vmem:[%s18673_s1 + $0x19c] sm:$0xf]  ;;  %v10850_v24 = vld [vmem:[%s18673_s1 + $0x16c] sm:$0xf0]  ;;  %v8144_v28 = vld [vmem:[%s18673_s1 + $0x170] sm:$0xf0] }
 0x178   :  { %v11921_v45 = vsub.f32 %v11813_v49, %v308_v33  ;;  %v11924_v46 = vsub.f32 %v11815_v50, %v308_v33  ;;  %v344_v47 = vadd.f32 %v11912_v40, %v11858_v9  ;;  %v10828_v49 = vld [vmem:[%s18673_s1 + $0xc4] sm:$0xf]  ;;  %v8011_v33 = vor.u32 %v10813_v30, %v8008_v32  ;;  %v8150_v29 = vld [vmem:[%s18673_s1 + $0x158] sm:$0xf]  ;;  %v10847_v32 = vld [vmem:[%s18673_s1 + $0x15c] sm:$0xf] }
 0x179   :  { %v8067_v58 = vor.u32 %v10828_v49, %v8064_v56  ;;  %823 = vmatpush.bf16.msrb.mxu0 %v8007_v35  ;;  %v8187_v21 = vor.u32 %v10855_v18, %v8184_v19  ;;  %v10851_v35 = vld [vmem:[%s18673_s1 + $0x174] sm:$0xf0]  ;;  %v8048_v18 = vld [vmem:[%s18673_s1 + $0xb0] sm:$0xf0] }
 0x17a   :  { %v311_v50 = vmul.f32 %v11921_v45, %v11921_v45  ;;  %v312_v53 = vmul.f32 %v11924_v46, %v11924_v46  ;;  %v345_v54 = vrot.slane %v344_v47, 4  ;;  %v8151_v37 = vor.u32 %v10851_v35, %v8150_v29  ;;  %v8054_v19 = vld [vmem:[%s18673_s1 + $0x98] sm:$0xf] }
 0x17b   :  { %802 = vmatpush.bf16.msra.mxu3 %v8067_v58  ;;  %842 = vmatpush.bf16.msrb.mxu1 %v8011_v33  ;;  %v8152_v33 = vld [vmem:[%s18673_s1 + $0x178] sm:$0xf0] }
 0x17c   :  { %v313_v62 = vadd.f32 %v312_v53, %v311_v50  ;;  %v346_v63 = vadd.f32 %v345_v54, %v344_v47  ;;  %v7971_v47 = vor.u32 %v10804_v38, %v7968_v43  ;;  %786 = vmatpush.bf16.msra.mxu2 %v7967_v42  ;;  %v7975_v54 = vor.u32 %v10809_v48, %v7974_v44  ;;  %v10842_v42 = vld [vmem:[%s18673_s1 + $0x12c] sm:$0xf0]  ;;  %v8112_v48 = vld [vmem:[%s18673_s1 + $0x130] sm:$0xf0] }
 0x17d   :  { %v8155_v38 = vor.u32 %v10847_v32, %v8152_v33  ;;  %v10819_v32 = vld [vmem:[%s18673_s1 + $0x74] sm:$0xf0] }
 0x17e   :  { %v314_v5 = vrot.slane %v313_v62, 4  ;;  %v347_v6 = vrot.slane %v346_v63, 2  ;;  %824 = vmatpush.bf16.msrb.mxu0 %v7975_v54  ;;  %v10843_v54 = vld [vmem:[%s18673_s1 + $0x134] sm:$0xf0] }
 0x17f   :  { %803 = vmatpush.bf16.msra.mxu3 %v8035_v11  ;;  %843 = vmatpush.bf16.msrb.mxu1 %v7979_v55  ;;  %v8175_v11 = vor.u32 %v10858_v10, %v8174_v8  ;;  %v10839_v55 = vld [vmem:[%s18673_s1 + $0x11c] sm:$0xf] }
 0x180   :  { %v315_v15 = vadd.f32 %v314_v5, %v313_v62  ;;  %v348_v16 = vadd.f32 %v347_v6, %v346_v63  ;;  %v8214_v62 = vld [vmem:[%s18673_s1 + $0x1d8] sm:$0xf]  ;;  %v8216_v5 = vld [vmem:[%s18673_s1 + $0x1f8] sm:$0xf0] }
 0x181   :  { %v10867_v63 = vld [vmem:[%s18673_s1 + $0x1f4] sm:$0xf0]  ;;  %v8219_v6 = vor.u32 %v10863_v4, %v8216_v5 }
 0x182   :  { %v316_v22 = vrot.slane %v315_v15, 2  ;;  %v349_v23 = vrot.slane %v348_v16, 1  ;;  %v8215_v3 = vor.u32 %v10867_v63, %v8214_v62 }
 0x183   :  { %804 = vmatpush.bf16.msra.mxu3 %v8003_v27  ;;  %912 = vmatpush.bf16.msra.mxu1 %v8219_v6  ;;  %v10846_v27 = vld [vmem:[%s18673_s1 + $0x154] sm:$0xf]  ;;  %v10835_v6 = vld [vmem:[%s18673_s1 + $0xf4] sm:$0xf0] }
 0x184   :  { %v317_v31 = vadd.f32 %v316_v22, %v315_v15  ;;  %v350_v34 = vadd.f32 %v349_v23, %v348_v16  ;;  %893 = vmatpush.bf16.msra.mxu0 %v8215_v3  ;;  %v8179_v16 = vor.u32 %v10854_v12, %v8176_v13  ;;  %v8142_v23 = vld [vmem:[%s18673_s1 + $0x150] sm:$0xf] }
 0x185   :  { %v8143_v25 = vor.u32 %v10850_v24, %v8142_v23  ;;  %v8046_v12 = vld [vmem:[%s18673_s1 + $0x90] sm:$0xf]  ;;  %v10823_v23 = vld [vmem:[%s18673_s1 + $0x9c] sm:$0xf] }
 0x186   :  { %v318_v39 = vrot.slane %v317_v31, 1  ;;  %v351_v41 = vmul.f32 %v350_v34, %v11781_v26  ;;  %v8147_v34 = vor.u32 %v10846_v27, %v8144_v28  ;;  %v10826_v13 = vld [vmem:[%s18673_s1 + $0xac] sm:$0xf0]  ;;  %v8056_v24 = vld [vmem:[%s18673_s1 + $0xb8] sm:$0xf0] }
 0x187   :  { %805 = vmatpush.bf16.msra.mxu3 %v7971_v47  ;;  %913 = vmatpush.bf16.msra.mxu1 %v8187_v21  ;;  %v10838_v47 = vld [vmem:[%s18673_s1 + $0x114] sm:$0xf]  ;;  %v8051_v21 = vor.u32 %v10822_v17, %v8048_v18  ;;  %v8059_v29 = vor.u32 %v10823_v23, %v8056_v24  ;;  %v7943_v23 = vld [vmem:[%s18678_s9 + $0x18] sm:$0xff] }
 0x188   :  { %v319_v49 = vadd.f32 %v318_v39, %v317_v31  ;;  %v12030_v50 = vsub.f32 %v11858_v9, %v351_v41  ;;  %v12033_v53 = vsub.f32 %v11912_v40, %v351_v41  ;;  %v8206_v9 = vld [vmem:[%s18673_s1 + $0x1d0] sm:$0xf]  ;;  %894 = vmatpush.bf16.msra.mxu0 %v8183_v20 }
 0x189   :  { %v10866_v40 = vld [vmem:[%s18673_s1 + $0x1ec] sm:$0xf0] }
 0x18a   :  { %v320_v56 = vmul.f32 %v319_v49, %v11781_v26  ;;  %v354_v57 = vmul.f32 %v12030_v50, %v12030_v50  ;;  %v355_v58 = vmul.f32 %v12033_v53, %v12033_v53  ;;  %v8207_v60 = vor.u32 %v10866_v40, %v8206_v9  ;;  %v8110_v41 = vld [vmem:[%s18673_s1 + $0x110] sm:$0xf] }
 0x18b   :  { %874 = vmatpush.bf16.msrb.mxu3 %v8211_v2  ;;  %914 = vmatpush.bf16.msra.mxu1 %v8155_v38  ;;  %v8111_v44 = vor.u32 %v10842_v42, %v8110_v41  ;;  %v8115_v49 = vor.u32 %v10838_v47, %v8112_v48  ;;  %v8086_v2 = vld [vmem:[%s18673_s1 + $0xd8] sm:$0xf]  ;;  %v10815_v38 = vld [vmem:[%s18673_s1 + $0x5c] sm:$0xf]  ;;  %v7982_v41 = vld [vmem:[%s18673_s1 + $0x10] sm:$0xf] }
 0x18c   :  { %v12058_v0 = vadd.f32 1e-05, %v320_v56  ;;  %v356_v1 = vadd.f32 %v355_v58, %v354_v57  ;;  %855 = vmatpush.bf16.msrb.mxu2 %v8207_v60  ;;  %895 = vmatpush.bf16.msra.mxu0 %v8151_v37  ;;  %v8120_v56 = vld [vmem:[%s18673_s1 + $0x138] sm:$0xf0]  ;;  %v8119_v58 = vor.u32 %v10843_v54, %v8118_v51  ;;  %v10834_v60 = vld [vmem:[%s18673_s1 + $0xec] sm:$0xf0]  ;;  %v8087_v10 = vor.u32 %v10835_v6, %v8086_v2 }
 0x18d   :  { %v8123_v9 = vor.u32 %v10839_v55, %v8120_v56  ;;  %v8079_v63 = vor.u32 %v10834_v60, %v8078_v59  ;;  %v7984_v47 = vld [vmem:[%s18673_s1 + $0x30] sm:$0xf0]  ;;  %v7990_v54 = vld [vmem:[%s18673_s1 + $0x18] sm:$0xf] }
 0x18e   :  { %11530 = vrsqrt.f32 %v12058_v0  ;;  %v357_v7 = vrot.slane %v356_v1, 4  ;;  %vm328_vm15 = vweird.f32 %v12058_v0 }
 0x18f   :  { %875 = vmatpush.bf16.msrb.mxu3 %v8179_v16  ;;  %915 = vmatpush.bf16.msra.mxu1 %v8123_v9  ;;  %v8047_v16 = vor.u32 %v10826_v13, %v8046_v12  ;;  %v10807_v9 = vld [vmem:[%s18673_s1 + $0x1c] sm:$0xf] }
 0x190   :  { %v358_v15 = vadd.f32 %v357_v7, %v356_v1  ;;  %856 = vmatpush.bf16.msrb.mxu2 %v8175_v11  ;;  %896 = vmatpush.bf16.msra.mxu0 %v8119_v58  ;;  %v8080_v1 = vld [vmem:[%s18673_s1 + $0xf0] sm:$0xf0]  ;;  %v10831_v7 = vld [vmem:[%s18673_s1 + $0xdc] sm:$0xf]  ;;  %v10811_v58 = vld [vmem:[%s18673_s1 + $0x34] sm:$0xf0] }
 0x191   :  { %v8083_v5 = vor.u32 %v10830_v61, %v8080_v1  ;;  %v8088_v11 = vld [vmem:[%s18673_s1 + $0xf8] sm:$0xf0]  ;;  %v7991_v3 = vor.u32 %v10811_v58, %v7990_v54  ;;  %v8466_v58 = vld [vmem:[%s18549_s15 + $0x1c0] sm:$0xf] }
 0x192   :  { %v359_v22 = vrot.slane %v358_v15, 2 }
 0x193   :  { %876 = vmatpush.bf16.msrb.mxu3 %v8147_v34  ;;  %v10814_v34 = vld [vmem:[%s18673_s1 + $0x54] sm:$0xf] }
 0x194   :  { %v12106_v30 = vpop.eup %11530  ;;  %v360_v31 = vadd.f32 %v359_v22, %v358_v15  ;;  %857 = vmatpush.bf16.msrb.mxu2 %v8143_v25  ;;  %v8091_v15 = vor.u32 %v10831_v7, %v8088_v11  ;;  %897 = vmatpush.bf16.msra.mxu0 %v8087_v10  ;;  %v10827_v22 = vld [vmem:[%s18673_s1 + $0xb4] sm:$0xf0] }
 0x195   :  { %v323_v36 = vmul.f32 %v12106_v30, %v12058_v0  ;;  %vm329_vm14 = vweird.f32 %v12106_v30  ;;  %v12171_v0 = vld [vmem:[%s18676_s0] ss:$0 sm:$0xff]  ;;  %v8055_v28 = vor.u32 %v10827_v22, %v8054_v19  ;;  %v7942_v22 = vld [vmem:[%s18678_s9 + $0x10] sm:$0xff] }
 0x196   :  { %v361_v39 = vrot.slane %v360_v31, 1  ;;  %vm12164_vm0 = vmor %vm328_vm15, %vm329_vm14  ;;  %916 = vmatpush.bf16.msra.mxu1 %v8091_v15  ;;  %v1656_v24 = vpack.c.bf16 %v7943_v23, %v7942_v22  ;;  %v8410_v22 = vld [vmem:[%s18549_s15 + $0x148] sm:$0xf] }
 0x197   :  { %v324_v43 = vmul.f32 %v12106_v30, %v323_v36  ;;  %877 = vmatpush.bf16.msrb.mxu3 %v8115_v49 }
 0x198   :  { %v362_v52 = vadd.f32 %v361_v39, %v360_v31  ;;  %858 = vmatpush.bf16.msrb.mxu2 %v8111_v44  ;;  %v10818_v31 = vld [vmem:[%s18673_s1 + $0x6c] sm:$0xf0]  ;;  %v8024_v39 = vld [vmem:[%s18673_s1 + $0x78] sm:$0xf0]  ;;  %898 = vmatpush.bf16.msra.mxu0 %v8055_v28  ;;  %v10806_v44 = vld [vmem:[%s18673_s1 + $0x14] sm:$0xf] }
 0x199   :  { %v325_v57 = vmul.f32 0.5, %v324_v43  ;;  %v10810_v43 = vld [vmem:[%s18673_s1 + $0x2c] sm:$0xf0]  ;;  %v8027_v49 = vor.u32 %v10815_v38, %v8024_v39  ;;  %v11522_v38 = vld [vmem:[%s18546_s12] ss:$0 sm:$0xff] }
 0x19a   :  { %v363_v40 = vmul.f32 %v362_v52, %v11781_v26  ;;  %917 = vmatpush.bf16.msra.mxu1 %v8059_v29  ;;  %v7983_v56 = vor.u32 %v10810_v43, %v7982_v41 }
 0x19b   :  { %v326_v62 = vsub.f32 1.5, %v325_v57  ;;  %878 = vmatpush.bf16.msrb.mxu3 %v8083_v5  ;;  %v7987_v57 = vor.u32 %v10806_v44, %v7984_v47 }
 0x19c   :  { %v12173_v4 = vadd.f32 1e-05, %v363_v40  ;;  %859 = vmatpush.bf16.msrb.mxu2 %v8079_v63  ;;  %v7992_v40 = vld [vmem:[%s18673_s1 + $0x38] sm:$0xf0] }
 0x19d   :  { %v327_v8 = vmul.f32 %v12106_v30, %v326_v62  ;;  %v7995_v5 = vor.u32 %v10807_v9, %v7992_v40  ;;  %v10932_v9 = vld [vmem:[%s18549_s15 + $0x1dc] sm:$0xf0]  ;;  %v10928_v40 = vld [vmem:[%s18549_s15 + $0x1c4] sm:$0xf] }
 0x19e   :  { %11532 = vrsqrt.f32 %v12173_v4  ;;  %918 = vmatpush.bf16.msra.mxu1 %v8027_v49  ;;  %vm371_vm5 = vweird.f32 %v12173_v4 }
 0x19f   :  { %v331_v20 = vsel %vm12164_vm0, %v12106_v30, %v327_v8  ;;  %v8014_v30 = vld [vmem:[%s18673_s1 + $0x50] sm:$0xf]  ;;  %879 = vmatpush.bf16.msrb.mxu3 %v8051_v21 }
 0x1a0   :  { %v332_v25 = vmul.f32 %v331_v20, %v11921_v45  ;;  %v333_v27 = vmul.f32 %v331_v20, %v11924_v46  ;;  %860 = vmatpush.bf16.msrb.mxu2 %v8047_v16  ;;  %v8015_v35 = vor.u32 %v10818_v31, %v8014_v30  ;;  %v8016_v45 = vld [vmem:[%s18673_s1 + $0x70] sm:$0xf0]  ;;  %v8022_v46 = vld [vmem:[%s18673_s1 + $0x58] sm:$0xf]  ;;  %s11625_s1 = smov 1  }
 0x1a1   :  { %v8019_v37 = vor.u32 %v10814_v34, %v8016_v45  ;;  %v8023_v42 = vor.u32 %v10819_v32, %v8022_v46  ;;  %v10870_v46 = vld [vmem:[%s18547_s13 + $0x10] sm:$0xff]  ;;  %v10869_v32 = vld [vmem:[%s18547_s13 + $0x8] sm:$0xff] }
 0x1a2   :  { %v337_v33 = vmul.f32 %v12171_v0, %v332_v25  ;;  %v338_v36 = vmul.f32 %v12171_v0, %v333_v27  ;;  %919 = vmatpush.bf16.msra.mxu1 %v7995_v5  ;;  %v8476_v5 = vld [vmem:[%s18549_s15 + $0x1e8] sm:$0xf0] }
 0x1a3   :  { %880 = vmatpush.bf16.msrb.mxu3 %v8019_v37  ;;  %899 = vmatpush.bf16.msra.mxu0 %v8023_v42 }
 0x1a4   :  { %v11533_v48 = vpop.eup %11532  ;;  %v342_v51 = vadd.f32 %v12194_v14, %v337_v33  ;;  %v343_v52 = vadd.f32 %v12194_v14, %v338_v36  ;;  %861 = vmatpush.bf16.msrb.mxu2 %v8015_v35  ;;  %v10871_v35 = vld [vmem:[%s18547_s13 + $0x18] sm:$0xff]  ;;  %v10868_v36 = vld [vmem:[%s18547_s13] sm:$0xff] }
 0x1a5   :  { %v366_v55 = vmul.f32 %v11533_v48, %v12173_v4  ;;  %vm372_vm4 = vweird.f32 %v11533_v48 }
 0x1a6   :  { %vm381_vm1 = vcmp.ge.f32.partialorder %v342_v51, 0.0  ;;  %vm382_vm3 = vcmp.ge.f32.partialorder %v343_v52, 0.0  ;;  %v385_v59 = vmul.f32 0.01, %v342_v51  ;;  %v386_v60 = vmul.f32 0.01, %v343_v52  ;;  %vm373_vm6 = vmor %vm371_vm5, %vm372_vm4 }
 0x1a7   :  { %v367_v61 = vmul.f32 %v11533_v48, %v366_v55  ;;  %881 = vmatpush.bf16.msrb.mxu3 %v7987_v57  ;;  %900 = vmatpush.bf16.msra.mxu0 %v7991_v3  ;;  %v10929_v3 = vld [vmem:[%s18549_s15 + $0x1cc] sm:$0xf] }
 0x1a8   :  { %v389_v62 = vsel %vm381_vm1, %v342_v51, %v385_v59  ;;  %v390_v63 = vsel %vm382_vm3, %v343_v52, %v386_v60  ;;  %862 = vmatpush.bf16.msrb.mxu2 %v7983_v56  ;;  %v8467_v60 = vor.u32 %v10932_v9, %v8466_v58  ;;  %v8338_v58 = vld [vmem:[%s18549_s15 + $0xc0] sm:$0xf] }
 0x1a9   :  { %v393_v1 = vpack.c.bf16 %v390_v63, %v389_v62  ;;  %v368_v2 = vmul.f32 0.5, %v367_v61  ;;  %v8468_v61 = vld [vmem:[%s18549_s15 + $0x1e0] sm:$0xf0]  ;;  %v8474_v62 = vld [vmem:[%s18549_s15 + $0x1c8] sm:$0xf] }
 0x1aa   :  { %v10900_v9 = vld [vmem:[%s18549_s15 + $0xdc] sm:$0xf0] }
 0x1ab   :  { %v369_v6 = vsub.f32 1.5, %v368_v2  ;;  %787 = vmatmul.bf16.vlgmr.msra.gmra.mxu2 %v393_v1  ;;  %806 = vmatmul.bf16.vlgmr.msra.gmra.mxu3 %v393_v1  ;;  %v10933_v2 = vld [vmem:[%s18549_s15 + $0x1e4] sm:$0xf0] }
 0x1ac   :  { %825 = vmatmul.bf16.vlgmr.msrb.gmra.mxu0 %v393_v1  ;;  %844 = vmatmul.bf16.vlgmr.msrb.gmra.mxu1 %v393_v1 }
 0x1ad   :  { %v370_v7 = vmul.f32 %v11533_v48, %v369_v6  ;;  %1752 = vmatpush.bf16.msra.mxu3 %v10871_v35  ;;  %2183 = vmatpush.bf16.msrb.mxu0 %v8467_v60  ;;  %v8434_v6 = vld [vmem:[%s18549_s15 + $0x180] sm:$0xf]  ;;  %v10913_v35 = vld [vmem:[%s18549_s15 + $0x14c] sm:$0xf]  ;;  %v8339_v60 = vor.u32 %v10900_v9, %v8338_v58  ;;  %v8482_v58 = vld [vmem:[%s18549_s15 + $0x1d0] sm:$0xf] }
 0x1ae   :  { %v10934_v9 = vld [vmem:[%s18549_s15 + $0x1ec] sm:$0xf0] }
 0x1af   :  { %v374_v8 = vsel %vm373_vm6, %v11533_v48, %v370_v7  ;;  %v10924_v7 = vld [vmem:[%s18549_s15 + $0x19c] sm:$0xf0] }
 0x1b0   :  { %v375_v10 = vmul.f32 %v374_v8, %v12030_v50  ;;  %v376_v11 = vmul.f32 %v374_v8, %v12033_v53  ;;  %v1657_v50 = vld [vmem:[%s18545_s11] sm:$0xf]  ;;  %v10920_v8 = vld [vmem:[%s18549_s15 + $0x184] sm:$0xf] }
 0x1b1   :  { %v1671_v53 = vsel %vm1669_vm9, %v1657_v50, 0  ;;  %1753 = vmatpush.bf16.msra.mxu3 %v10870_v46  ;;  %v10916_v50 = vld [vmem:[%s18549_s15 + $0x15c] sm:$0xf0]  ;;  %v8412_v46 = vld [vmem:[%s18549_s15 + $0x168] sm:$0xf0] }
 0x1b2   :  { %v377_v12 = vmul.f32 %v12171_v0, %v375_v10  ;;  %v378_v13 = vmul.f32 %v12171_v0, %v376_v11  ;;  %1680 = vmatpush.bf16.msra.mxu2 %v1671_v53  ;;  %v92_v0 = vld [vmem:[%s18678_s9] sm:$0xff]  ;;  %v8475_v10 = vor.u32 %v10933_v2, %v8474_v62  ;;  %v8479_v11 = vor.u32 %v10929_v3, %v8476_v5  ;;  %v8346_v62 = vld [vmem:[%s18549_s15 + $0xc8] sm:$0xf]  ;;  %v10897_v3 = vld [vmem:[%s18549_s15 + $0xcc] sm:$0xf] }
 0x1b3   :  { %v10912_v53 = vld [vmem:[%s18549_s15 + $0x144] sm:$0xf]  ;;  %v8348_v5 = vld [vmem:[%s18549_s15 + $0xe8] sm:$0xf0] }
 0x1b4   :  { %v379_v15 = vadd.f32 %v12194_v14, %v377_v12  ;;  %v380_v16 = vadd.f32 %v12194_v14, %v378_v13  ;;  %v93_v14 = vld [vmem:[%s18678_s9 + $0x8] sm:$0xff]  ;;  %v8435_v12 = vor.u32 %v10924_v7, %v8434_v6  ;;  %v8436_v13 = vld [vmem:[%s18549_s15 + $0x1a0] sm:$0xf0]  ;;  %v8306_v6 = vld [vmem:[%s18549_s15 + $0x80] sm:$0xf]  ;;  %v8351_v7 = vor.u32 %v10897_v3, %v8348_v5 }
 0x1b5   :  { %v1655_v21 = vpack.c.bf16 %v93_v14, %v92_v0  ;;  %1754 = vmatpush.bf16.msra.mxu3 %v10869_v32  ;;  %v8370_v32 = vld [vmem:[%s18549_s15 + $0x100] sm:$0xf]  ;;  %v10931_v3 = vld [vmem:[%s18549_s15 + $0x1dc] sm:$0xf] }
 0x1b6   :  { %vm383_vm7 = vcmp.ge.f32.partialorder %v379_v15, 0.0  ;;  %vm384_vm8 = vcmp.ge.f32.partialorder %v380_v16, 0.0  ;;  %v387_v17 = vmul.f32 0.01, %v379_v15  ;;  %v388_v4 = vmul.f32 0.01, %v380_v16  ;;  %2184 = vmatpush.bf16.msrb.mxu0 %v8435_v12 }
 0x1b7   :  { %v8492_v5 = vld [vmem:[%s18549_s15 + $0x1f8] sm:$0xf0] }
 0x1b8   :  { %v391_v18 = vsel %vm383_vm7, %v379_v15, %v387_v17  ;;  %v392_v19 = vsel %vm384_vm8, %v380_v16, %v388_v4  ;;  %v8442_v15 = vld [vmem:[%s18549_s15 + $0x188] sm:$0xf]  ;;  %v8439_v16 = vor.u32 %v10920_v8, %v8436_v13  ;;  %v10921_v4 = vld [vmem:[%s18549_s15 + $0x18c] sm:$0xf]  ;;  %v10892_v8 = vld [vmem:[%s18549_s15 + $0x9c] sm:$0xf0] }
 0x1b9   :  { %v394_v20 = vpack.c.bf16 %v392_v19, %v391_v18  ;;  %1755 = vmatpush.bf16.msra.mxu3 %v10868_v36  ;;  %v10925_v17 = vld [vmem:[%s18549_s15 + $0x1a4] sm:$0xf0]  ;;  %v8444_v18 = vld [vmem:[%s18549_s15 + $0x1a8] sm:$0xf0]  ;;  %v10908_v36 = vld [vmem:[%s18549_s15 + $0x11c] sm:$0xf0]  ;;  %v8307_v12 = vor.u32 %v10892_v8, %v8306_v6 }
 0x1ba   :  { %v8443_v19 = vor.u32 %v10925_v17, %v8442_v15  ;;  %v8447_v0 = vor.u32 %v10921_v4, %v8444_v18  ;;  %v8314_v15 = vld [vmem:[%s18549_s15 + $0x88] sm:$0xf]  ;;  %v10889_v17 = vld [vmem:[%s18549_s15 + $0x8c] sm:$0xf]  ;;  %v8450_v6 = vld [vmem:[%s18549_s15 + $0x190] sm:$0xf] }
 0x1bb   :  { %792 = vmatmul.bf16.gmra.mxu2 %v394_v20  ;;  %811 = vmatmul.bf16.gmra.mxu3 %v394_v20  ;;  %v8316_v18 = vld [vmem:[%s18549_s15 + $0xa8] sm:$0xf0]  ;;  %v10926_v8 = vld [vmem:[%s18549_s15 + $0x1ac] sm:$0xf0] }
 0x1bc   :  { %830 = vmatmul.bf16.gmra.mxu0 %v394_v20  ;;  %849 = vmatmul.bf16.gmra.mxu1 %v394_v20 }
 0x1cb   :  { %863 = vmatmul.bf16.vlgmr.msrb.gmra.mxu2 %v393_v1  ;;  %882 = vmatmul.bf16.vlgmr.msrb.gmra.mxu3 %v393_v1 }
 0x1cc   :  { %901 = vmatmul.bf16.vlgmr.msra.gmra.mxu0 %v393_v1  ;;  %920 = vmatmul.bf16.vlgmr.msra.gmra.mxu1 %v393_v1  ;;  %v8471_v1 = vor.u32 %v10928_v40, %v8468_v61  ;;  %v10896_v40 = vld [vmem:[%s18549_s15 + $0xc4] sm:$0xf] }
 0x1cd   :  { %2221 = vmatpush.bf16.msrb.mxu2 %v8475_v10  ;;  %2240 = vmatpush.bf16.msrb.mxu3 %v8479_v11  ;;  %v8340_v61 = vld [vmem:[%s18549_s15 + $0xe0] sm:$0xf0] }
 0x1ce   :  { %2202 = vmatpush.bf16.msrb.mxu1 %v8471_v1  ;;  %v8343_v1 = vor.u32 %v10896_v40, %v8340_v61  ;;  %v10888_v10 = vld [vmem:[%s18549_s15 + $0x84] sm:$0xf]  ;;  %v10930_v40 = vld [vmem:[%s18549_s15 + $0x1d4] sm:$0xf] }
 0x1cf   :  { %v8308_v11 = vld [vmem:[%s18549_s15 + $0xa0] sm:$0xf0]  ;;  %v8484_v61 = vld [vmem:[%s18549_s15 + $0x1f0] sm:$0xf0] }
 0x1d0   :  { %v8311_v13 = vor.u32 %v10888_v10, %v8308_v11  ;;  %v10922_v10 = vld [vmem:[%s18549_s15 + $0x194] sm:$0xf] }
 0x1d1   :  { %2222 = vmatpush.bf16.msrb.mxu2 %v8443_v19  ;;  %2241 = vmatpush.bf16.msrb.mxu3 %v8447_v0  ;;  %v8319_v19 = vor.u32 %v10889_v17, %v8316_v18  ;;  %v8452_v11 = vld [vmem:[%s18549_s15 + $0x1b0] sm:$0xf0]  ;;  %v10923_v17 = vld [vmem:[%s18549_s15 + $0x19c] sm:$0xf] }
 0x1d2   :  { %2203 = vmatpush.bf16.msrb.mxu1 %v8439_v16  ;;  %v10893_v16 = vld [vmem:[%s18549_s15 + $0xa4] sm:$0xf0] }
 0x1d3   :  { %v8315_v4 = vor.u32 %v10893_v16, %v8314_v15  ;;  %v8458_v15 = vld [vmem:[%s18549_s15 + $0x198] sm:$0xf] }
 0x1d4   :  { %v10927_v16 = vld [vmem:[%s18549_s15 + $0x1b4] sm:$0xf0] }
 0x1d5   :  { %v8459_v18 = vor.u32 %v10927_v16, %v8458_v15  ;;  %v10890_v15 = vld [vmem:[%s18549_s15 + $0x94] sm:$0xf] }
 0x1d6   :  { %v8324_v16 = vld [vmem:[%s18549_s15 + $0xb0] sm:$0xf0] }
 0x1db   :  { %868 = vmatmul.bf16.gmra.mxu2 %v394_v20  ;;  %887 = vmatmul.bf16.gmra.mxu3 %v394_v20 }
 0x1dc   :  { %906 = vmatmul.bf16.gmra.mxu0 %v394_v20  ;;  %925 = vmatmul.bf16.gmra.mxu1 %v394_v20  ;;  %v8402_v20 = vld [vmem:[%s18549_s15 + $0x140] sm:$0xf] }
 0x1dd   :  { %v8403_v14 = vor.u32 %v10916_v50, %v8402_v20  ;;  %v8274_v20 = vld [vmem:[%s18549_s15 + $0x40] sm:$0xf] }
 0x1de   :  { %v10884_v50 = vld [vmem:[%s18549_s15 + $0x5c] sm:$0xf0] }
 0x1df   :  { %2185 = vmatpush.bf16.msrb.mxu0 %v8403_v14  ;;  %v8275_v0 = vor.u32 %v10884_v50, %v8274_v20  ;;  %v8276_v14 = vld [vmem:[%s18549_s15 + $0x60] sm:$0xf0]  ;;  %v8418_v50 = vld [vmem:[%s18549_s15 + $0x150] sm:$0xf] }
 0x1eb   :  { %8220 = vmatmul.msk.bf16.vlgmr.msra.gmra.mxu2 %vm1662_vm10, %v1655_v21  ;;  %v8404_v21 = vld [vmem:[%s18549_s15 + $0x160] sm:$0xf0] }
 0x1ec   :  { %v8407_v23 = vor.u32 %v10912_v53, %v8404_v21  ;;  %v10880_v53 = vld [vmem:[%s18549_s15 + $0x44] sm:$0xf]  ;;  %v8282_v21 = vld [vmem:[%s18549_s15 + $0x48] sm:$0xf] }
 0x1ee   :  { %2204 = vmatpush.bf16.msrb.mxu1 %v8407_v23  ;;  %v8279_v23 = vor.u32 %v10880_v53, %v8276_v14  ;;  %v10918_v53 = vld [vmem:[%s18549_s15 + $0x16c] sm:$0xf0] }
 0x1ef   :  { %v8419_v14 = vor.u32 %v10918_v53, %v8418_v50  ;;  %v8332_v50 = vld [vmem:[%s18549_s15 + $0xb8] sm:$0xf0]  ;;  %v8327_v53 = vor.u32 %v10890_v15, %v8324_v16 }
 0x1fb   :  { %8221 = vmatmul.msk.bf16.gmra.mxu2 %vm1662_vm10, %v1656_v24  ;;  %v10917_v24 = vld [vmem:[%s18549_s15 + $0x164] sm:$0xf0] }
 0x22e   :  { %v12295_v25 = vpop.f32.mrf.mxu2 }
 0x236   :  { %v12297_v27 = vpop.f32.mrf.mxu2 }
 0x23e   :  { %v12299_v28 = vpop.f32.mrf.mxu2 }
 0x246   :  { %v12301_v29 = vpop.f32.mrf.mxu2 }
 0x24e   :  { %v12303_v30 = vpop.f32.mrf.mxu2 }
 0x24f   :  { %18679 = vst [vmem:[#allocation7_spill] sm:$0xff] %v12303_v30 }
 0x256   :  { %v12305_v31 = vpop.f32.mrf.mxu2 }
 0x257   :  { %18680 = vst [vmem:[#allocation8_spill] sm:$0xff] %v12305_v31 }
 0x25e   :  { %v12307_v34 = vpop.f32.mrf.mxu2 }
 0x25f   :  { %18681 = vst [vmem:[#allocation9_spill] sm:$0xff] %v12307_v34 }
 0x266   :  { %v12312_v45 = vpop.f32.mrf.mxu2 }
 0x267   :  { %18682 = vst [vmem:[#allocation10_spill] sm:$0xff] %v12312_v45 }
 0x26e   :  { %v1682_v33 = vpop.f32.mrf.mxu2 }
 0x26f   :  { %v1683_v42 = vadd.f32 %v11522_v38, %v1682_v33  ;;  %v8411_v33 = vor.u32 %v10917_v24, %v8410_v22  ;;  %v10885_v22 = vld [vmem:[%s18549_s15 + $0x64] sm:$0xf0] }
 0x270   :  { %v8283_v24 = vor.u32 %v10885_v22, %v8282_v21  ;;  %v8420_v21 = vld [vmem:[%s18549_s15 + $0x170] sm:$0xf0]  ;;  %v8426_v22 = vld [vmem:[%s18549_s15 + $0x158] sm:$0xf] }
 0x271   :  { %v1696_v44 = vmul.f32 0.01, %v1683_v42  ;;  %vm1692_vm12 = vcmp.ge.f32.partialorder %v1683_v42, 0.0  ;;  %2223 = vmatpush.bf16.msrb.mxu2 %v8411_v33 }
 0x273   :  { %v1700_v48 = vsel %vm1692_vm12, %v1683_v42, %v1696_v44  ;;  %v8378_v42 = vld [vmem:[%s18549_s15 + $0x108] sm:$0xf] }
 0x276   :  { %v1684_v37 = vpop.f32.mrf.mxu2 }
 0x277   :  { %v1685_v39 = vadd.f32 %v11522_v38, %v1684_v37  ;;  %v10904_v37 = vld [vmem:[%s18549_s15 + $0x104] sm:$0xf] }
 0x279   :  { %v1697_v43 = vmul.f32 0.01, %v1685_v39  ;;  %vm1693_vm11 = vcmp.ge.f32.partialorder %v1685_v39, 0.0 }
 0x27b   :  { %v1701_v47 = vsel %vm1693_vm11, %v1685_v39, %v1697_v43  ;;  %v8415_v39 = vor.u32 %v10913_v35, %v8412_v46  ;;  %v10909_v43 = vld [vmem:[%s18549_s15 + $0x124] sm:$0xf0]  ;;  %v10881_v35 = vld [vmem:[%s18549_s15 + $0x4c] sm:$0xf] }
 0x27c   :  { %v1704_v51 = vpack.c.bf16 %v1701_v47, %v1700_v48  ;;  %v10905_v47 = vld [vmem:[%s18549_s15 + $0x10c] sm:$0xf] }
 0x27d   :  { %v8380_v48 = vld [vmem:[%s18549_s15 + $0x128] sm:$0xf0]  ;;  %2242 = vmatpush.bf16.msrb.mxu3 %v8415_v39 }
 0x27e   :  { %v1687_v41 = vpop.f32.mrf.mxu2  ;;  %8238 = vmatmul.msk.bf16.vlgmr.msra.gmra.mxu3 %vm132_vm2, %v1704_v51  ;;  %v8379_v51 = vor.u32 %v10909_v43, %v8378_v42  ;;  %v8284_v46 = vld [vmem:[%s18549_s15 + $0x68] sm:$0xf0]  ;;  %v8250_v42 = vld [vmem:[%s18549_s15 + $0x8] sm:$0xf] }
 0x27f   :  { %v1688_v54 = vadd.f32 %v11522_v38, %v1687_v41  ;;  %v8371_v41 = vor.u32 %v10908_v36, %v8370_v32  ;;  %v8287_v33 = vor.u32 %v10881_v35, %v8284_v46  ;;  %v8242_v36 = vld [vmem:[%s18549_s15] sm:$0xf]  ;;  %v10877_v43 = vld [vmem:[%s18549_s15 + $0x24] sm:$0xf0]  ;;  %v10915_v46 = vld [vmem:[%s18549_s15 + $0x15c] sm:$0xf] }
 0x280   :  { %2224 = vmatpush.bf16.msrb.mxu2 %v8379_v51  ;;  %v8252_v51 = vld [vmem:[%s18549_s15 + $0x28] sm:$0xf0] }
 0x281   :  { %v1698_v56 = vmul.f32 0.01, %v1688_v54  ;;  %vm1694_vm14 = vcmp.ge.f32.partialorder %v1688_v54, 0.0  ;;  %2186 = vmatpush.bf16.msrb.mxu0 %v8371_v41  ;;  %v8244_v41 = vld [vmem:[%s18549_s15 + $0x20] sm:$0xf0] }
 0x283   :  { %v1702_v59 = vsel %vm1694_vm14, %v1688_v54, %v1698_v56 }
 0x285   :  { %2187 = vmatpush.bf16.msrb.mxu0 %v8339_v60  ;;  %v8483_v60 = vor.u32 %v10934_v9, %v8482_v58  ;;  %v10907_v58 = vld [vmem:[%s18549_s15 + $0x11c] sm:$0xf] }
 0x286   :  { %v1689_v52 = vpop.f32.mrf.mxu2  ;;  %v8396_v9 = vld [vmem:[%s18549_s15 + $0x138] sm:$0xf0] }
 0x287   :  { %v1690_v49 = vadd.f32 %v11522_v38, %v1689_v52  ;;  %v8372_v38 = vld [vmem:[%s18549_s15 + $0x120] sm:$0xf0]  ;;  %v8383_v52 = vor.u32 %v10905_v47, %v8380_v48  ;;  %v8251_v47 = vor.u32 %v10877_v43, %v8250_v42  ;;  %v10873_v48 = vld [vmem:[%s18549_s15 + $0xc] sm:$0xf]  ;;  %v8388_v42 = vld [vmem:[%s18549_s15 + $0x130] sm:$0xf0] }
 0x288   :  { %v8375_v44 = vor.u32 %v10904_v37, %v8372_v38  ;;  %v10876_v37 = vld [vmem:[%s18549_s15 + $0x1c] sm:$0xf0]  ;;  %v10872_v38 = vld [vmem:[%s18549_s15 + $0x4] sm:$0xf]  ;;  %v8394_v43 = vld [vmem:[%s18549_s15 + $0x118] sm:$0xf] }
 0x289   :  { %v1699_v55 = vmul.f32 0.01, %v1690_v49  ;;  %vm1695_vm13 = vcmp.ge.f32.partialorder %v1690_v49, 0.0  ;;  %2243 = vmatpush.bf16.msrb.mxu3 %v8383_v52  ;;  %2188 = vmatpush.bf16.msrb.mxu0 %v8307_v12  ;;  %v8243_v39 = vor.u32 %v10876_v37, %v8242_v36  ;;  %v8255_v52 = vor.u32 %v10873_v48, %v8252_v51  ;;  %v8386_v37 = vld [vmem:[%s18549_s15 + $0x110] sm:$0xf] }
 0x28a   :  { %2205 = vmatpush.bf16.msrb.mxu1 %v8375_v44  ;;  %v8247_v44 = vor.u32 %v10872_v38, %v8244_v41  ;;  %v8451_v12 = vor.u32 %v10926_v8, %v8450_v6  ;;  %v10910_v38 = vld [vmem:[%s18549_s15 + $0x12c] sm:$0xf0]  ;;  %v8364_v8 = vld [vmem:[%s18549_s15 + $0xf8] sm:$0xf0] }
 0x28b   :  { %v1703_v57 = vsel %vm1695_vm13, %v1690_v49, %v1699_v55  ;;  %v12424_v49 = vpop.f32.mrf.mxu3  ;;  %v8387_v41 = vor.u32 %v10910_v38, %v8386_v37  ;;  %v10883_v38 = vld [vmem:[%s18549_s15 + $0x5c] sm:$0xf] }
 0x28c   :  { %v1705_v63 = vpack.c.bf16 %v1703_v57, %v1702_v59 }
 0x28d   :  { %2244 = vmatpush.bf16.msrb.mxu3 %v8351_v7  ;;  %2189 = vmatpush.bf16.msrb.mxu0 %v8275_v0  ;;  %v8495_v7 = vor.u32 %v10931_v3, %v8492_v5  ;;  %v10914_v0 = vld [vmem:[%s18549_s15 + $0x154] sm:$0xf]  ;;  %v10903_v3 = vld [vmem:[%s18549_s15 + $0xf4] sm:$0xf0] }
 0x28e   :  { %8239 = vmatmul.msk.bf16.gmra.mxu3 %vm132_vm2, %v1705_v63  ;;  %v10901_v63 = vld [vmem:[%s18549_s15 + $0xe4] sm:$0xf0]  ;;  %2206 = vmatpush.bf16.msrb.mxu1 %v8343_v1  ;;  %v8487_v1 = vor.u32 %v10930_v40, %v8484_v61  ;;  %v8399_v40 = vor.u32 %v10907_v58, %v8396_v9  ;;  %v10902_v61 = vld [vmem:[%s18549_s15 + $0xec] sm:$0xf0]  ;;  %v8260_v58 = vld [vmem:[%s18549_s15 + $0x30] sm:$0xf0] }
 0x28f   :  { %v8347_v2 = vor.u32 %v10901_v63, %v8346_v62  ;;  %v8490_v62 = vld [vmem:[%s18549_s15 + $0x1d8] sm:$0xf] }
 0x290   :  { %v10935_v63 = vld [vmem:[%s18549_s15 + $0x1f4] sm:$0xf0] }
 0x291   :  { %2225 = vmatpush.bf16.msrb.mxu2 %v8347_v2  ;;  %2245 = vmatpush.bf16.msrb.mxu3 %v8319_v19  ;;  %v8491_v2 = vor.u32 %v10935_v63, %v8490_v62  ;;  %v8460_v19 = vld [vmem:[%s18549_s15 + $0x1b8] sm:$0xf0]  ;;  %v10898_v62 = vld [vmem:[%s18549_s15 + $0xd4] sm:$0xf]  ;;  %v8266_v9 = vld [vmem:[%s18549_s15 + $0x18] sm:$0xf] }
 0x292   :  { %2207 = vmatpush.bf16.msrb.mxu1 %v8311_v13  ;;  %2190 = vmatpush.bf16.msrb.mxu0 %v8243_v39  ;;  %v8455_v13 = vor.u32 %v10922_v10, %v8452_v11  ;;  %v8463_v20 = vor.u32 %v10923_v17, %v8460_v19  ;;  %v10906_v39 = vld [vmem:[%s18549_s15 + $0x114] sm:$0xf]  ;;  %v8322_v10 = vld [vmem:[%s18549_s15 + $0x90] sm:$0xf]  ;;  %v8330_v17 = vld [vmem:[%s18549_s15 + $0x98] sm:$0xf] }
 0x293   :  { %v12426_v54 = vpop.f32.mrf.mxu3  ;;  %v8391_v51 = vor.u32 %v10906_v39, %v8388_v42  ;;  %v10894_v11 = vld [vmem:[%s18549_s15 + $0xac] sm:$0xf0]  ;;  %v10895_v19 = vld [vmem:[%s18549_s15 + $0xb4] sm:$0xf0] }
 0x294   :  { %v8258_v42 = vld [vmem:[%s18549_s15 + $0x10] sm:$0xf] }
 0x295   :  { %2226 = vmatpush.bf16.msrb.mxu2 %v8315_v4  ;;  %2246 = vmatpush.bf16.msrb.mxu3 %v8287_v33  ;;  %v8428_v33 = vld [vmem:[%s18549_s15 + $0x178] sm:$0xf0] }
 0x296   :  { %2208 = vmatpush.bf16.msrb.mxu1 %v8279_v23  ;;  %2259 = vmatpush.bf16.msra.mxu0 %v8483_v60  ;;  %v10919_v23 = vld [vmem:[%s18549_s15 + $0x174] sm:$0xf0]  ;;  %v8431_v36 = vor.u32 %v10915_v46, %v8428_v33  ;;  %v8354_v60 = vld [vmem:[%s18549_s15 + $0xd0] sm:$0xf] }
 0x297   :  { %v8427_v35 = vor.u32 %v10919_v23, %v8426_v22  ;;  %v8355_v63 = vor.u32 %v10902_v61, %v8354_v60  ;;  %v10882_v22 = vld [vmem:[%s18549_s15 + $0x54] sm:$0xf]  ;;  %v8298_v46 = vld [vmem:[%s18549_s15 + $0x58] sm:$0xf] }
 0x298   :  { %v10887_v33 = vld [vmem:[%s18549_s15 + $0x74] sm:$0xf0] }
 0x299   :  { %2227 = vmatpush.bf16.msrb.mxu2 %v8283_v24  ;;  %2247 = vmatpush.bf16.msrb.mxu3 %v8255_v52  ;;  %v8423_v24 = vor.u32 %v10914_v0, %v8420_v21  ;;  %v8331_v0 = vor.u32 %v10895_v19, %v8330_v17  ;;  %v10886_v21 = vld [vmem:[%s18549_s15 + $0x6c] sm:$0xf0]  ;;  %v8610_v19 = vld [vmem:[%s18552_s18 + $0xe0] sm:$0xf] }
 0x29a   :  { %2209 = vmatpush.bf16.msrb.mxu1 %v8247_v44  ;;  %2260 = vmatpush.bf16.msra.mxu0 %v8451_v12  ;;  %v10911_v44 = vld [vmem:[%s18549_s15 + $0x134] sm:$0xf0] }
 0x29b   :  { %v12428_v55 = vpop.f32.mrf.mxu3  ;;  %v8395_v52 = vor.u32 %v10911_v44, %v8394_v43  ;;  %v10878_v43 = vld [vmem:[%s18549_s15 + $0x2c] sm:$0xf0] }
 0x29c   :  { %18683 = vst [vmem:[#allocation11_spill] sm:$0xff] %v12428_v55 }
 0x29d   :  { %2228 = vmatpush.bf16.msrb.mxu2 %v8251_v47  ;;  %2316 = vmatpush.bf16.msra.mxu3 %v8495_v7  ;;  %v12629_v47 = vld [vmem:[%s18548_s14] ss:$0 sm:$0xff]  ;;  %v10899_v7 = vld [vmem:[%s18549_s15 + $0xdc] sm:$0xf] }
 0x29e   :  { %2278 = vmatpush.bf16.msra.mxu1 %v8487_v1  ;;  %2261 = vmatpush.bf16.msra.mxu0 %v8419_v14  ;;  %v8356_v1 = vld [vmem:[%s18549_s15 + $0xf0] sm:$0xf0]  ;;  %v8290_v14 = vld [vmem:[%s18549_s15 + $0x50] sm:$0xf] }
 0x29f   :  { %v8359_v5 = vor.u32 %v10898_v62, %v8356_v1  ;;  %v8291_v39 = vor.u32 %v10886_v21, %v8290_v14  ;;  %v8259_v1 = vor.u32 %v10878_v43, %v8258_v42  ;;  %v11218_v14 = vld [vmem:[%s18552_s18 + $0xcc] sm:$0xf0]  ;;  %v8706_v43 = vld [vmem:[%s18552_s18 + $0x1a0] sm:$0xf] }
 0x2a0   :  { %v11214_v42 = vld [vmem:[%s18552_s18 + $0xac] sm:$0xf0] }
 0x2a1   :  { %2297 = vmatpush.bf16.msra.mxu2 %v8491_v2  ;;  %2317 = vmatpush.bf16.msra.mxu3 %v8463_v20  ;;  %v8362_v2 = vld [vmem:[%s18549_s15 + $0xd8] sm:$0xf]  ;;  %v10891_v20 = vld [vmem:[%s18549_s15 + $0x9c] sm:$0xf] }
 0x2a2   :  { %2279 = vmatpush.bf16.msra.mxu1 %v8455_v13  ;;  %2262 = vmatpush.bf16.msra.mxu0 %v8387_v41  ;;  %v8363_v6 = vor.u32 %v10903_v3, %v8362_v2  ;;  %v8367_v13 = vor.u32 %v10899_v7, %v8364_v8  ;;  %v8300_v41 = vld [vmem:[%s18549_s15 + $0x78] sm:$0xf0] }
 0x2a3   :  { %v12430_v56 = vpop.f32.mrf.mxu3 }
 0x2a4   :  { %18684 = vst [vmem:[#allocation12_spill] sm:$0xff] %v12430_v56 }
 0x2a5   :  { %2298 = vmatpush.bf16.msra.mxu2 %v8459_v18  ;;  %2318 = vmatpush.bf16.msra.mxu3 %v8431_v36  ;;  %v8323_v18 = vor.u32 %v10894_v11, %v8322_v10 }
 0x2a6   :  { %2280 = vmatpush.bf16.msra.mxu1 %v8423_v24  ;;  %2263 = vmatpush.bf16.msra.mxu0 %v8355_v63  ;;  %v8335_v24 = vor.u32 %v10891_v20, %v8332_v50  ;;  %v8303_v63 = vor.u32 %v10883_v38, %v8300_v41  ;;  %v8738_v20 = vld [vmem:[%s18552_s18 + $0x1e0] sm:$0xf] }
 0x2a7   :  { %v8578_v41 = vld [vmem:[%s18552_s18 + $0xa0] sm:$0xf] }
 0x2a9   :  { %2299 = vmatpush.bf16.msra.mxu2 %v8427_v35  ;;  %2319 = vmatpush.bf16.msra.mxu3 %v8399_v40  ;;  %v8292_v35 = vld [vmem:[%s18549_s15 + $0x70] sm:$0xf0]  ;;  %v10879_v40 = vld [vmem:[%s18549_s15 + $0x34] sm:$0xf0] }
 0x2aa   :  { %2281 = vmatpush.bf16.msra.mxu1 %v8391_v51  ;;  %2264 = vmatpush.bf16.msra.mxu0 %v8323_v18  ;;  %v8299_v51 = vor.u32 %v10887_v33, %v8298_v46  ;;  %v8267_v3 = vor.u32 %v10879_v40, %v8266_v9  ;;  %v11286_v46 = vld [vmem:[%s18552_s18 + $0x2ec] sm:$0xf0]  ;;  %v8994_v33 = vld [vmem:[%s18552_s18 + $0x3e0] sm:$0xf]  ;;  %v8579_v40 = vor.u32 %v11214_v42, %v8578_v41 }
 0x2ab   :  { %v12432_v57 = vpop.f32.mrf.mxu3  ;;  %v11314_v9 = vld [vmem:[%s18552_s18 + $0x3cc] sm:$0xf0] }
 0x2ac   :  { %18685 = vst [vmem:[#allocation13_spill] sm:$0xff] %v12432_v57 }
 0x2ad   :  { %2300 = vmatpush.bf16.msra.mxu2 %v8395_v52  ;;  %2320 = vmatpush.bf16.msra.mxu3 %v8367_v13  ;;  %v10874_v52 = vld [vmem:[%s18549_s15 + $0x14] sm:$0xf] }
 0x2ae   :  { %2282 = vmatpush.bf16.msra.mxu1 %v8359_v5  ;;  %2265 = vmatpush.bf16.msra.mxu0 %v8291_v39  ;;  %v8263_v2 = vor.u32 %v10874_v52, %v8260_v58  ;;  %v10875_v5 = vld [vmem:[%s18549_s15 + $0x1c] sm:$0xf]  ;;  %v8978_v58 = vld [vmem:[%s18552_s18 + $0x3c0] sm:$0xf] }
 0x2b1   :  { %2301 = vmatpush.bf16.msra.mxu2 %v8363_v6  ;;  %2321 = vmatpush.bf16.msra.mxu3 %v8335_v24  ;;  %v8268_v6 = vld [vmem:[%s18549_s15 + $0x38] sm:$0xf0]  ;;  %v8866_v24 = vld [vmem:[%s18552_s18 + $0x2e0] sm:$0xf] }
 0x2b2   :  { %2283 = vmatpush.bf16.msra.mxu1 %v8327_v53  ;;  %2266 = vmatpush.bf16.msra.mxu0 %v8259_v1  ;;  %v8271_v8 = vor.u32 %v10875_v5, %v8268_v6  ;;  %v11254_v53 = vld [vmem:[%s18552_s18 + $0x1ec] sm:$0xf0]  ;;  %v8867_v38 = vor.u32 %v11286_v46, %v8866_v24 }
 0x2b3   :  { %v12443_v59 = vpop.f32.mrf.mxu3  ;;  %v8739_v21 = vor.u32 %v11254_v53, %v8738_v20  ;;  %v11278_v1 = vld [vmem:[%s18552_s18 + $0x2ac] sm:$0xf0] }
 0x2b4   :  { %18686 = vst [vmem:[#allocation14_spill] sm:$0xff] %v12443_v59  ;;  %v11310_v5 = vld [vmem:[%s18552_s18 + $0x3ac] sm:$0xf0]  ;;  %v9026_v59 = vld [vmem:[%s18552_s18 + $0x420] sm:$0xf] }
 0x2b5   :  { %2302 = vmatpush.bf16.msra.mxu2 %v8331_v0  ;;  %2322 = vmatpush.bf16.msra.mxu3 %v8303_v63  ;;  %v8594_v0 = vld [vmem:[%s18552_s18 + $0xc0] sm:$0xf]  ;;  %v11210_v6 = vld [vmem:[%s18552_s18 + $0x8c] sm:$0xf0] }
 0x2b6   :  { %v8834_v63 = vld [vmem:[%s18552_s18 + $0x2a0] sm:$0xf] }
 0x2b9   :  { %2303 = vmatpush.bf16.msra.mxu2 %v8299_v51  ;;  %2323 = vmatpush.bf16.msra.mxu3 %v8271_v8  ;;  %v11282_v51 = vld [vmem:[%s18552_s18 + $0x2cc] sm:$0xf0] }
 0x2ba   :  { %v11242_v8 = vld [vmem:[%s18552_s18 + $0x18c] sm:$0xf0] }
 0x2bb   :  { %v12508_v32 = vpop.f32.mrf.mxu3 }
 0x2bc   :  { %18687 = vst [vmem:[#allocation15_spill] sm:$0xff] %v12508_v32 }
 0x2bd   :  { %2304 = vmatpush.bf16.msra.mxu2 %v8267_v3  ;;  %v8562_v3 = vld [vmem:[%s18552_s18 + $0x80] sm:$0xf] }
 0x2c3   :  { %v12579_v4 = vpop.f32.mrf.mxu3 }
 0x2c4   :  { %18688 = vst [vmem:[#allocation16_spill] sm:$0xff] %v12579_v4 }
 0x301   :  { %v1757_v48 = vpop.f32.mrf.mxu3 }
 0x302   :  { %v1758_v12 = vadd.f32 %v12629_v47, %v1757_v48  ;;  %v8295_v48 = vor.u32 %v10882_v22, %v8292_v35  ;;  %v8722_v22 = vld [vmem:[%s18552_s18 + $0x1c0] sm:$0xf]  ;;  %v8595_v35 = vor.u32 %v11218_v14, %v8594_v0  ;;  %v940_v14 = vadd.f32 %v12426_v54, %v12424_v49 }
 0x304   :  { %vm1767_vm2 = vcmp.ge.f32.partialorder %v1758_v12, 0.0  ;;  %v1771_v36 = vmul.f32 0.01, %v1758_v12  ;;  %2284 = vmatpush.bf16.msra.mxu1 %v8295_v48  ;;  %v8850_v48 = vld [vmem:[%s18552_s18 + $0x2c0] sm:$0xf]  ;;  %v941_v24 = vrot.slane %v940_v14, 4 }
 0x305   :  { %v8851_v52 = vor.u32 %v11282_v51, %v8850_v48 }
 0x306   :  { %v1775_v60 = vsel %vm1767_vm2, %v1758_v12, %v1771_v36  ;;  %v11318_v36 = vld [vmem:[%s18552_s18 + $0x3ec] sm:$0xf0] }
 0x307   :  { %v8995_v39 = vor.u32 %v11318_v36, %v8994_v33  ;;  %v942_v36 = vadd.f32 %v941_v24, %v940_v14  ;;  %v12905_v24 = vld [vmem:[%s18694_s30] sm:$0xff] }
 0x308   :  { %2285 = vmatpush.bf16.msra.mxu1 %v8263_v2  ;;  %v8962_v2 = vld [vmem:[%s18552_s18 + $0x3a0] sm:$0xf] }
 0x309   :  { %v1759_v23 = vpop.f32.mrf.mxu3 }
 0x30a   :  { %v1760_v37 = vadd.f32 %v12629_v47, %v1759_v23  ;;  %v11250_v23 = vld [vmem:[%s18552_s18 + $0x1cc] sm:$0xf0] }
 0x30c   :  { %vm1768_vm15 = vcmp.ge.f32.partialorder %v1760_v37, 0.0  ;;  %v1772_v44 = vmul.f32 0.01, %v1760_v37 }
 0x30e   :  { %v1776_v61 = vsel %vm1768_vm15, %v1760_v37, %v1772_v44  ;;  %v8723_v37 = vor.u32 %v11250_v23, %v8722_v22  ;;  %v11246_v44 = vld [vmem:[%s18552_s18 + $0x1ac] sm:$0xf0] }
 0x30f   :  { %v12730_v62 = vpack.c.bf16 %v1776_v61, %v1775_v60  ;;  %v8979_v60 = vor.u32 %v11314_v9, %v8978_v58  ;;  %v8707_v61 = vor.u32 %v11246_v44, %v8706_v43 }
 0x311   :  { %v1762_v7 = vpop.f32.mrf.mxu3  ;;  %2191 = vmatmul.bf16.vlgmr.msrb.gmra.mxu0 %v12730_v62  ;;  %2210 = vmatmul.bf16.vlgmr.msrb.gmra.mxu1 %v12730_v62 }
 0x312   :  { %2229 = vmatmul.bf16.vlgmr.msrb.gmra.mxu2 %v12730_v62  ;;  %2248 = vmatmul.bf16.vlgmr.msrb.gmra.mxu3 %v12730_v62  ;;  %v1763_v10 = vadd.f32 %v12629_v47, %v1762_v7  ;;  %v8690_v7 = vld [vmem:[%s18552_s18 + $0x180] sm:$0xf] }
 0x313   :  { %4274 = vmatpush.bf16.msrb.mxu1 %v8739_v21  ;;  %4293 = vmatpush.bf16.msrb.mxu2 %v8867_v38 }
 0x314   :  { %v1773_v12 = vmul.f32 0.01, %v1763_v10  ;;  %vm1769_vm0 = vcmp.ge.f32.partialorder %v1763_v10, 0.0  ;;  %4312 = vmatpush.bf16.msrb.mxu3 %v8995_v39 }
 0x316   :  { %v1777_v16 = vsel %vm1769_vm0, %v1763_v10, %v1773_v12  ;;  %v8835_v10 = vor.u32 %v11278_v1, %v8834_v63  ;;  %v8563_v12 = vor.u32 %v11210_v6, %v8562_v3 }
 0x317   :  { %4275 = vmatpush.bf16.msrb.mxu1 %v8723_v37  ;;  %4294 = vmatpush.bf16.msrb.mxu2 %v8851_v52 }
 0x318   :  { %4313 = vmatpush.bf16.msrb.mxu3 %v8979_v60 }
 0x319   :  { %v1764_v11 = vpop.f32.mrf.mxu3 }
 0x31a   :  { %v1765_v13 = vadd.f32 %v12629_v47, %v1764_v11  ;;  %v11222_v47 = vld [vmem:[%s18552_s18 + $0xec] sm:$0xf0]  ;;  %v8963_v11 = vor.u32 %v11310_v5, %v8962_v2 }
 0x31b   :  { %v8611_v50 = vor.u32 %v11222_v47, %v8610_v19  ;;  %4276 = vmatpush.bf16.msrb.mxu1 %v8707_v61  ;;  %4295 = vmatpush.bf16.msrb.mxu2 %v8835_v10 }
 0x31c   :  { %vm1770_vm1 = vcmp.ge.f32.partialorder %v1765_v13, 0.0  ;;  %v1774_v15 = vmul.f32 0.01, %v1765_v13  ;;  %4314 = vmatpush.bf16.msrb.mxu3 %v8963_v11 }
 0x31d   :  { %4255 = vmatpush.bf16.msrb.mxu0 %v8611_v50 }
 0x31e   :  { %v1778_v17 = vsel %vm1770_vm1, %v1765_v13, %v1774_v15  ;;  %v8691_v13 = vor.u32 %v11242_v8, %v8690_v7  ;;  %v826_v15 = vpop.f32.mrf.mxu0 }
 0x31f   :  { %v12744_v18 = vpack.c.bf16 %v1778_v17, %v1777_v16  ;;  %v845_v16 = vpop.f32.mrf.mxu1 }
 0x320   :  { %4277 = vmatpush.bf16.msrb.mxu1 %v8691_v13 }
 0x321   :  { %2196 = vmatmul.bf16.gmra.mxu0 %v12744_v18  ;;  %2215 = vmatmul.bf16.gmra.mxu1 %v12744_v18 }
 0x322   :  { %2234 = vmatmul.bf16.gmra.mxu2 %v12744_v18  ;;  %2253 = vmatmul.bf16.gmra.mxu3 %v12744_v18 }
 0x323   :  { %4256 = vmatpush.bf16.msrb.mxu0 %v8595_v35 }
 0x326   :  { %v828_v17 = vpop.f32.mrf.mxu0 }
 0x327   :  { %4257 = vmatpush.bf16.msrb.mxu0 %v8579_v40  ;;  %v947_v19 = vadd.f32 %v828_v17, %v826_v15  ;;  %v847_v47 = vpop.f32.mrf.mxu1 }
 0x328   :  { %v954_v50 = vadd.f32 %v847_v47, %v845_v16 }
 0x329   :  { %v948_v20 = vrot.slane %v947_v19, 4 }
 0x32a   :  { %v955_v0 = vrot.slane %v954_v50, 4 }
 0x32b   :  { %4258 = vmatpush.bf16.msrb.mxu0 %v8563_v12  ;;  %v949_v53 = vadd.f32 %v948_v20, %v947_v19 }
 0x32c   :  { %v956_v22 = vadd.f32 %v955_v0, %v954_v50 }
 0x32d   :  { %v950_v21 = vrot.slane %v949_v53, 2 }
 0x32e   :  { %v957_v46 = vrot.slane %v956_v22, 2  ;;  %v12846_v41 = vpop.f32.mrf.mxu0 }
 0x32f   :  { %v951_v35 = vadd.f32 %v950_v21, %v949_v53  ;;  %v12848_v42 = vpop.f32.mrf.mxu1 }
 0x330   :  { %v958_v38 = vadd.f32 %v957_v46, %v956_v22 }
 0x331   :  { %2267 = vmatmul.bf16.vlgmr.msra.gmra.mxu0 %v12730_v62  ;;  %2286 = vmatmul.bf16.vlgmr.msra.gmra.mxu1 %v12730_v62  ;;  %v952_v37 = vrot.slane %v951_v35, 1 }
 0x332   :  { %2305 = vmatmul.bf16.vlgmr.msra.gmra.mxu2 %v12730_v62  ;;  %2324 = vmatmul.bf16.vlgmr.msra.gmra.mxu3 %v12730_v62  ;;  %v933_v62 = vadd.f32 %v12297_v27, %v12295_v25  ;;  %v959_v44 = vrot.slane %v958_v38, 1 }
 0x333   :  { %v953_v43 = vadd.f32 %v952_v37, %v951_v35 }
 0x334   :  { %v934_v23 = vrot.slane %v933_v62, 4  ;;  %v960_v58 = vadd.f32 %v959_v44, %v958_v38  ;;  %v12908_v38 = vperm.slane %v12905_v24, 2 }
 0x335   :  { %v991_v52 = vmul.f32 %v953_v43, %v11781_v26 }
 0x336   :  { %v935_v33 = vadd.f32 %v934_v23, %v933_v62  ;;  %v992_v63 = vmul.f32 %v960_v58, %v11781_v26  ;;  %v12856_v3 = vpop.f32.mrf.mxu0 }
 0x337   :  { %v12851_v60 = vsub.f32 %v826_v15, %v991_v52  ;;  %v12853_v61 = vsub.f32 %v828_v17, %v991_v52  ;;  %v12858_v5 = vpop.f32.mrf.mxu1  ;;  %v1277_v13 = vadd.f32 %v12856_v3, %v12846_v41  ;;  %v8674_v52 = vld [vmem:[%s18552_s18 + $0x160] sm:$0xf] }
 0x338   :  { %v936_v39 = vrot.slane %v935_v33, 2  ;;  %v12864_v8 = vsub.f32 %v845_v16, %v992_v63  ;;  %v12866_v10 = vsub.f32 %v847_v47, %v992_v63 }
 0x339   :  { %v1015_v6 = vmul.f32 %v12851_v60, %v12851_v60  ;;  %v1023_v7 = vmul.f32 %v12853_v61, %v12853_v61  ;;  %v1278_v53 = vrot.slane %v1277_v13, 4 }
 0x33a   :  { %v937_v48 = vadd.f32 %v936_v39, %v935_v33  ;;  %v1016_v17 = vmul.f32 %v12864_v8, %v12864_v8  ;;  %v1024_v19 = vmul.f32 %v12866_v10, %v12866_v10  ;;  %v12911_v39 = vperm.slane %v12905_v24, 3 }
 0x33b   :  { %v1043_v15 = vadd.f32 %v1023_v7, %v1015_v6  ;;  %v1279_v23 = vadd.f32 %v1278_v53, %v1277_v13  ;;  %v11238_v6 = vld [vmem:[%s18552_s18 + $0x16c] sm:$0xf0]  ;;  %v12932_v7 = vld [vmem:[%s18696_s7] sm:$0xff] }
 0x33c   :  { %v938_v9 = vrot.slane %v937_v48, 1  ;;  %v1050_v21 = vadd.f32 %v1024_v19, %v1016_v17  ;;  %v11274_v13 = vld [vmem:[%s18552_s18 + $0x28c] sm:$0xf0] }
 0x33d   :  { %v1044_v14 = vrot.slane %v1043_v15, 4  ;;  %v11306_v53 = vld [vmem:[%s18552_s18 + $0x38c] sm:$0xf0] }
 0x33e   :  { %v939_v1 = vadd.f32 %v938_v9, %v937_v48  ;;  %v12888_v0 = vpop.f32.mrf.mxu0  ;;  %v1051_v35 = vrot.slane %v1050_v21, 4  ;;  %v8546_v48 = vld [vmem:[%s18552_s18 + $0x60] sm:$0xf] }
 0x33f   :  { %18693 = vst [vmem:[#allocation21_spill] sm:$0xff] %v12888_v0  ;;  %v12890_v62 = vpop.f32.mrf.mxu1  ;;  %v1045_v33 = vadd.f32 %v1044_v14, %v1043_v15  ;;  %v8946_v15 = vld [vmem:[%s18552_s18 + $0x380] sm:$0xf] }
 0x340   :  { %v989_v11 = vmul.f32 %v939_v1, %v11781_v26  ;;  %v1052_v43 = vadd.f32 %v1051_v35, %v1050_v21  ;;  %v8530_v14 = vld [vmem:[%s18552_s18 + $0x40] sm:$0xf]  ;;  %v11202_v21 = vld [vmem:[%s18552_s18 + $0x4c] sm:$0xf0] }
 0x341   :  { %2272 = vmatmul.bf16.gmra.mxu0 %v12744_v18  ;;  %2291 = vmatmul.bf16.gmra.mxu1 %v12744_v18  ;;  %v1046_v58 = vrot.slane %v1045_v33, 2 }
 0x342   :  { %2310 = vmatmul.bf16.gmra.mxu2 %v12744_v18  ;;  %2329 = vmatmul.bf16.gmra.mxu3 %v12744_v18  ;;  %v943_v18 = vrot.slane %v942_v36, 2  ;;  %v12877_v20 = vsub.f32 %v12295_v25, %v989_v11  ;;  %v12880_v16 = vsub.f32 %v12297_v27, %v989_v11  ;;  %v1284_v25 = vadd.f32 %v12858_v5, %v12848_v42 }
 0x343   :  { %v8675_v11 = vor.u32 %v11238_v6, %v8674_v52  ;;  %v1047_v35 = vadd.f32 %v1046_v58, %v1045_v33  ;;  %v11270_v52 = vld [vmem:[%s18552_s18 + $0x26c] sm:$0xf0]  ;;  %v12968_v6 = vperm.slane %v12932_v7, 2  ;;  %v12971_v33 = vperm.slane %v12932_v7, 3 }
 0x344   :  { %v944_v51 = vadd.f32 %v943_v18, %v942_v36  ;;  %18689 = vst [vmem:[#allocation17_spill] sm:$0xff] %v12877_v20  ;;  %v1013_v27 = vmul.f32 %v12877_v20, %v12877_v20  ;;  %v1285_v46 = vrot.slane %v1284_v25, 4  ;;  %v1280_v18 = vrot.slane %v1279_v23, 2  ;;  %v11302_v58 = vld [vmem:[%s18552_s18 + $0x36c] sm:$0xf0] }
 0x345   :  { %18690 = vst [vmem:[#allocation18_spill] sm:$0xff] %v12880_v16  ;;  %4278 = vmatpush.bf16.msrb.mxu1 %v8675_v11 }
 0x346   :  { %v945_v40 = vrot.slane %v944_v51, 1  ;;  %v1286_v44 = vadd.f32 %v1285_v46, %v1284_v25  ;;  %v12922_v63 = vpop.f32.mrf.mxu0  ;;  %v1281_v17 = vadd.f32 %v1280_v18, %v1279_v23  ;;  %v1053_v25 = vrot.slane %v1052_v43, 2  ;;  %v11234_v23 = vld [vmem:[%s18552_s18 + $0x14c] sm:$0xf0] }
 0x347   :  { %18695 = vst [vmem:[#allocation22_spill] sm:$0xff] %v12922_v63  ;;  %v12924_v1 = vpop.f32.mrf.mxu1 }
 0x348   :  { %v946_v2 = vadd.f32 %v945_v40, %v944_v51  ;;  %v11206_v51 = vld [vmem:[%s18552_s18 + $0x6c] sm:$0xf0] }
 0x34a   :  { %v990_v12 = vmul.f32 %v946_v2, %v11781_v26  ;;  %v8547_v2 = vor.u32 %v11206_v51, %v8546_v48  ;;  %v8802_v51 = vld [vmem:[%s18552_s18 + $0x260] sm:$0xf] }
 0x34c   :  { %v12883_v47 = vsub.f32 %v12424_v49, %v990_v12  ;;  %v12886_v50 = vsub.f32 %v12426_v54, %v990_v12  ;;  %v1021_v49 = vmul.f32 %v12880_v16, %v12880_v16  ;;  %v8818_v12 = vld [vmem:[%s18552_s18 + $0x280] sm:$0xf]  ;;  %4259 = vmatpush.bf16.msrb.mxu0 %v8547_v2 }
 0x34d   :  { %v8819_v19 = vor.u32 %v11274_v13, %v8818_v12  ;;  %v8930_v2 = vld [vmem:[%s18552_s18 + $0x360] sm:$0xf]  ;;  %v11198_v13 = vld [vmem:[%s18552_s18 + $0x2c] sm:$0xf0] }
 0x34e   :  { %18691 = vst [vmem:[#allocation19_spill] sm:$0xff] %v12883_v47  ;;  %v1014_v54 = vmul.f32 %v12883_v47, %v12883_v47  ;;  %v1022_v22 = vmul.f32 %v12886_v50, %v12886_v50  ;;  %v1029_v36 = vadd.f32 %v1021_v49, %v1013_v27  ;;  %v1287_v27 = vrot.slane %v1286_v44, 2  ;;  %v8514_v12 = vld [vmem:[%s18552_s18 + $0x20] sm:$0xf] }
 0x34f   :  { %18692 = vst [vmem:[#allocation20_spill] sm:$0xff] %v12886_v50  ;;  %v8947_v49 = vor.u32 %v11306_v53, %v8946_v15  ;;  %4296 = vmatpush.bf16.msrb.mxu2 %v8819_v19  ;;  %v8931_v11 = vor.u32 %v11302_v58, %v8930_v2  ;;  %v8642_v15 = vld [vmem:[%s18552_s18 + $0x120] sm:$0xf]  ;;  %v1048_v19 = vrot.slane %v1047_v35, 1 }
 0x350   :  { %v1036_v37 = vadd.f32 %v1022_v22, %v1014_v54  ;;  %v1030_v9 = vrot.slane %v1029_v36, 4  ;;  %v8531_v54 = vor.u32 %v11202_v21, %v8530_v14  ;;  %v8658_v22 = vld [vmem:[%s18552_s18 + $0x140] sm:$0xf]  ;;  %v11230_v14 = vld [vmem:[%s18552_s18 + $0x12c] sm:$0xf0] }
 0x351   :  { %v8659_v48 = vor.u32 %v11234_v23, %v8658_v22  ;;  %4315 = vmatpush.bf16.msrb.mxu3 %v8947_v49  ;;  %v8643_v21 = vor.u32 %v11230_v14, %v8642_v15  ;;  %v8914_v49 = vld [vmem:[%s18552_s18 + $0x340] sm:$0xf]  ;;  %v13003_v22 = vadd.f32 %v12301_v29, %v12299_v28  ;;  %v13005_v23 = vpop.f32.mrf.mxu0  ;;  %v1049_v15 = vadd.f32 %v1048_v19, %v1047_v35  ;;  %v11294_v19 = vld [vmem:[%s18552_s18 + $0x32c] sm:$0xf0] }
 0x352   :  { %v1037_v40 = vrot.slane %v1036_v37, 4  ;;  %v1031_v46 = vadd.f32 %v1030_v9, %v1029_v36  ;;  %v1282_v36 = vrot.slane %v1281_v17, 1  ;;  %4260 = vmatpush.bf16.msrb.mxu0 %v8531_v54  ;;  %v12976_v9 = vadd.f32 %v1053_v25, %v1052_v43  ;;  %v8786_v25 = vld [vmem:[%s18552_s18 + $0x240] sm:$0xf]  ;;  %18697 = vst [vmem:[#allocation23_spill] sm:$0xff] %v13005_v23 }
 0x353   :  { %4279 = vmatpush.bf16.msrb.mxu1 %v8659_v48  ;;  %v13007_v48 = vpop.f32.mrf.mxu1  ;;  %v8498_v2 = vld [vmem:[%s18552_s18] sm:$0xf] }
 0x354   :  { %v1038_v18 = vadd.f32 %v1037_v40, %v1036_v37  ;;  %v8803_v37 = vor.u32 %v11270_v52, %v8802_v51  ;;  %v12978_v40 = vadd.f32 %v1287_v27, %v1286_v44  ;;  %v1032_v53 = vrot.slane %v1031_v46, 2  ;;  %v11266_v27 = vld [vmem:[%s18552_s18 + $0x24c] sm:$0xf0]  ;;  %18698 = vst [vmem:[#allocation24_spill] sm:$0xff] %v13007_v48 }
 0x355   :  { %v8515_v44 = vor.u32 %v11198_v13, %v8514_v12  ;;  %4316 = vmatpush.bf16.msrb.mxu3 %v8931_v11  ;;  %v1283_v54 = vadd.f32 %v1282_v36, %v1281_v17  ;;  %v8787_v51 = vor.u32 %v11266_v27, %v8786_v25  ;;  %v11298_v52 = vld [vmem:[%s18552_s18 + $0x34c] sm:$0xf0]  ;;  %v1055_v36 = vrot.slane %v12976_v9, 1  ;;  %v8626_v12 = vld [vmem:[%s18552_s18 + $0x100] sm:$0xf] }
 0x356   :  { %v1039_v43 = vrot.slane %v1038_v18, 2  ;;  %4297 = vmatpush.bf16.msrb.mxu2 %v8803_v37  ;;  %v11194_v17 = vld [vmem:[%s18552_s18 + $0xc] sm:$0xf0]  ;;  %v8915_v58 = vor.u32 %v11298_v52, %v8914_v49  ;;  %v8898_v49 = vld [vmem:[%s18552_s18 + $0x320] sm:$0xf]  ;;  %v13036_v52 = vperm.slane %v12905_v24, 0 }
 0x357   :  { %4261 = vmatpush.bf16.msrb.mxu0 %v8515_v44  ;;  %4280 = vmatpush.bf16.msrb.mxu1 %v8643_v21  ;;  %v8499_v11 = vor.u32 %v11194_v17, %v8498_v2  ;;  %v11226_v13 = vld [vmem:[%s18552_s18 + $0x10c] sm:$0xf0]  ;;  %v1033_v44 = vadd.f32 %v1032_v53, %v1031_v46  ;;  %v8770_v21 = vld [vmem:[%s18552_s18 + $0x220] sm:$0xf]  ;;  %v1321_v35 = vmul.f32 %v1283_v54, %v11781_v26  ;;  %v1264_v46 = vrot.slane %v13003_v22, 4 }
 0x358   :  { %v1040_v14 = vadd.f32 %v1039_v43, %v1038_v18  ;;  %v8627_v25 = vor.u32 %v11226_v13, %v8626_v12  ;;  %v11262_v27 = vld [vmem:[%s18552_s18 + $0x22c] sm:$0xf0]  ;;  %18699 = vst [vmem:[#allocation25_spill] sm:$0xff] %v13036_v52  ;;  %v8899_v53 = vor.u32 %v11294_v19, %v8898_v49  ;;  %v9122_v43 = vld [vmem:[%s18552_s18 + $0x4e0] sm:$0xf]  ;;  %v1087_v2 = vmul.f32 %v1049_v15, %v11781_v26 }
 0x359   :  { %4317 = vmatpush.bf16.msrb.mxu3 %v8915_v58  ;;  %v8771_v18 = vor.u32 %v11262_v27, %v8770_v21  ;;  %v9250_v54 = vld [vmem:[%s18552_s18 + $0x5e0] sm:$0xf]  ;;  %v1034_v17 = vrot.slane %v1033_v44, 1  ;;  %v11382_v12 = vld [vmem:[%s18552_s18 + $0x5ec] sm:$0xf0]  ;;  %v1056_v27 = vadd.f32 %v1055_v36, %v12976_v9  ;;  %v13067_v49 = vsub.f32 %v12846_v41, %v1321_v35 }
 0x35a   :  { %4298 = vmatpush.bf16.msrb.mxu2 %v8787_v51  ;;  %v11350_v51 = vld [vmem:[%s18552_s18 + $0x4ec] sm:$0xf0]  ;;  %v1041_v58 = vrot.slane %v1040_v14, 1  ;;  %v9251_v13 = vor.u32 %v11382_v12, %v9250_v54  ;;  %v8882_v15 = vld [vmem:[%s18552_s18 + $0x300] sm:$0xf]  ;;  %v13082_v41 = vperm.slane %v12932_v7, 0 }
 0x35b   :  { %4262 = vmatpush.bf16.msrb.mxu0 %v8499_v11  ;;  %4281 = vmatpush.bf16.msrb.mxu1 %v8627_v25  ;;  %v9123_v11 = vor.u32 %v11350_v51, %v9122_v43  ;;  %v8754_v25 = vld [vmem:[%s18552_s18 + $0x200] sm:$0xf]  ;;  %v11258_v21 = vld [vmem:[%s18552_s18 + $0x20c] sm:$0xf0]  ;;  %18700 = vst [vmem:[#allocation26_spill] sm:$0xff] %v13067_v49  ;;  %v1035_v12 = vadd.f32 %v1034_v17, %v1033_v44 }
 0x35c   :  { %v8755_v19 = vor.u32 %v11258_v21, %v8754_v25  ;;  %v9106_v43 = vld [vmem:[%s18552_s18 + $0x4c0] sm:$0xf]  ;;  %v11346_v9 = vld [vmem:[%s18552_s18 + $0x4cc] sm:$0xf0]  ;;  %18702 = vst [vmem:[#allocation28_spill] sm:$0xff] %v13082_v41  ;;  %v13096_v25 = vperm.slane %v12932_v7, 1  ;;  %v13098_v21 = vpop.f32.mrf.mxu0  ;;  %v1042_v17 = vadd.f32 %v1041_v58, %v1040_v14  ;;  %v13129_v14 = vadd.f32 %v12430_v56, %v12428_v55 }
 0x35d   :  { %4318 = vmatpush.bf16.msrb.mxu3 %v8899_v53  ;;  %v11290_v53 = vld [vmem:[%s18552_s18 + $0x30c] sm:$0xf0]  ;;  %v9234_v51 = vld [vmem:[%s18552_s18 + $0x5c0] sm:$0xf]  ;;  %18705 = vst [vmem:[#allocation31_spill] sm:$0xff] %v13098_v21 }
 0x35e   :  { %4299 = vmatpush.bf16.msrb.mxu2 %v8771_v18  ;;  %v13070_v18 = vsub.f32 %v12856_v3, %v1321_v35  ;;  %v13085_v3 = vperm.slane %v12905_v24, 1  ;;  %v8883_v36 = vor.u32 %v11290_v53, %v8882_v15  ;;  %v9107_v35 = vor.u32 %v11346_v9, %v9106_v43  ;;  %v11378_v54 = vld [vmem:[%s18552_s18 + $0x5cc] sm:$0xf0]  ;;  %18704 = vst [vmem:[#allocation30_spill] sm:$0xff] %v13096_v25  ;;  %v13100_v24 = vpop.f32.mrf.mxu1  ;;  %v9506_v44 = vld [vmem:[%s18552_s18 + $0x7e0] sm:$0xf] }
 0x35f   :  { %4331 = vmatpush.bf16.msra.mxu0 %v9123_v11  ;;  %4350 = vmatpush.bf16.msra.mxu1 %v9251_v13  ;;  %v13093_v11 = vadd.f32 1e-05, %v1087_v2  ;;  %18706 = vst [vmem:[#allocation32_spill] sm:$0xff] %v13100_v24  ;;  %v13105_v13 = vld [vmem:[%s18550_s16] sm:$0xff]  ;;  %v9235_v15 = vor.u32 %v11378_v54, %v9234_v51  ;;  %v11414_v7 = vld [vmem:[%s18552_s18 + $0x6ec] sm:$0xf0]  ;;  %v1345_v53 = vmul.f32 %v13067_v49, %v13067_v49 }
 0x360   :  { %18701 = vst [vmem:[#allocation27_spill] sm:$0xff] %v13070_v18  ;;  %v9378_v2 = vld [vmem:[%s18552_s18 + $0x6e0] sm:$0xf]  ;;  %v11446_v9 = vld [vmem:[%s18552_s18 + $0x7ec] sm:$0xf0]  ;;  %v13125_v51 = vadd.f32 %v1264_v46, %v13003_v22  ;;  %v1085_v22 = vmul.f32 %v1035_v12, %v11781_v26  ;;  %v13142_v46 = vperm.slane %v13105_v13, 0 }
 0x361   :  { %18703 = vst [vmem:[#allocation29_spill] sm:$0xff] %v13085_v3  ;;  %4319 = vmatpush.bf16.msrb.mxu3 %v8883_v36  ;;  %v9379_v43 = vor.u32 %v11414_v7, %v9378_v2  ;;  %v1088_v36 = vmul.f32 %v1056_v27, %v11781_v26  ;;  %v9507_v58 = vor.u32 %v11446_v9, %v9506_v44  ;;  %v11342_v54 = vld [vmem:[%s18552_s18 + $0x4ac] sm:$0xf0]  ;;  %v9218_v27 = vld [vmem:[%s18552_s18 + $0x5a0] sm:$0xf]  ;;  %11534 = vrsqrt.f32 %v13093_v11 }
 0x362   :  { %4300 = vmatpush.bf16.msrb.mxu2 %v8755_v19  ;;  %v1353_v19 = vmul.f32 %v13070_v18, %v13070_v18  ;;  %v11374_v7 = vld [vmem:[%s18552_s18 + $0x5ac] sm:$0xf0]  ;;  %v9362_v9 = vld [vmem:[%s18552_s18 + $0x6c0] sm:$0xf] }
 0x363   :  { %4332 = vmatpush.bf16.msra.mxu0 %v9107_v35  ;;  %4351 = vmatpush.bf16.msra.mxu1 %v9235_v15  ;;  %v9090_v35 = vld [vmem:[%s18552_s18 + $0x4a0] sm:$0xf]  ;;  %v13145_v15 = vperm.slane %v13105_v13, 1  ;;  %v9219_v44 = vor.u32 %v11374_v7, %v9218_v27  ;;  %v11410_v12 = vld [vmem:[%s18552_s18 + $0x6cc] sm:$0xf0] }
 0x364   :  { %v9091_v2 = vor.u32 %v11342_v54, %v9090_v35  ;;  %v9490_v37 = vld [vmem:[%s18552_s18 + $0x7c0] sm:$0xf]  ;;  %v13160_v35 = vadd.f32 %v1353_v19, %v1345_v53  ;;  %v9363_v54 = vor.u32 %v11410_v12, %v9362_v9  ;;  %v11338_v7 = vld [vmem:[%s18552_s18 + $0x48c] sm:$0xf0]  ;;  %v13171_v4 = vadd.f32 1e-05, %v1088_v36 }
 0x365   :  { %4388 = vmatpush.bf16.msra.mxu3 %v9507_v58  ;;  %v11442_v58 = vld [vmem:[%s18552_s18 + $0x7cc] sm:$0xf0]  ;;  %v9074_v27 = vld [vmem:[%s18552_s18 + $0x480] sm:$0xf]  ;;  %v13179_v9 = vadd.f32 1e-05, %v1085_v22 }
 0x366   :  { %4369 = vmatpush.bf16.msra.mxu2 %v9379_v43  ;;  %v1086_v43 = vmul.f32 %v1042_v17, %v11781_v26  ;;  %v9491_v17 = vor.u32 %v11442_v58, %v9490_v37  ;;  %v9075_v53 = vor.u32 %v11338_v7, %v9074_v27  ;;  %v9202_v19 = vld [vmem:[%s18552_s18 + $0x580] sm:$0xf]  ;;  %v11406_v27 = vld [vmem:[%s18552_s18 + $0x6ac] sm:$0xf0]  ;;  %11536 = vrsqrt.f32 %v13171_v4 }
 0x367   :  { %4333 = vmatpush.bf16.msra.mxu0 %v9091_v2  ;;  %4352 = vmatpush.bf16.msra.mxu1 %v9219_v44  ;;  %v11370_v2 = vld [vmem:[%s18552_s18 + $0x58c] sm:$0xf0]  ;;  %v9346_v22 = vld [vmem:[%s18552_s18 + $0x6a0] sm:$0xf]  ;;  %11538 = vrsqrt.f32 %v13179_v9 }
 0x368   :  { %v9203_v44 = vor.u32 %v11370_v2, %v9202_v19  ;;  %v13198_v7 = vadd.f32 1e-05, %v1086_v43  ;;  %v13202_v19 = vperm.slane %v13105_v13, 2  ;;  %v11438_v2 = vld [vmem:[%s18552_s18 + $0x7ac] sm:$0xf0]  ;;  %v13211_v43 = vperm.slane %v13105_v13, 3 }
 0x369   :  { %4389 = vmatpush.bf16.msra.mxu3 %v9491_v17  ;;  %v9347_v17 = vor.u32 %v11406_v27, %v9346_v22  ;;  %v11334_v22 = vld [vmem:[%s18552_s18 + $0x46c] sm:$0xf0]  ;;  %v9186_v12 = vld [vmem:[%s18552_s18 + $0x560] sm:$0xf] }
 0x36a   :  { %4370 = vmatpush.bf16.msra.mxu2 %v9363_v54  ;;  %v9474_v54 = vld [vmem:[%s18552_s18 + $0x7a0] sm:$0xf]  ;;  %11540 = vrsqrt.f32 %v13198_v7 }
 0x36b   :  { %4334 = vmatpush.bf16.msra.mxu0 %v9075_v53  ;;  %4353 = vmatpush.bf16.msra.mxu1 %v9203_v44  ;;  %v9475_v32 = vor.u32 %v11438_v2, %v9474_v54  ;;  %v9058_v53 = vld [vmem:[%s18552_s18 + $0x460] sm:$0xf]  ;;  %v11366_v44 = vld [vmem:[%s18552_s18 + $0x56c] sm:$0xf0] }
 0x36c   :  { %v9059_v27 = vor.u32 %v11334_v22, %v9058_v53  ;;  %v9330_v54 = vld [vmem:[%s18552_s18 + $0x680] sm:$0xf]  ;;  %v11402_v2 = vld [vmem:[%s18552_s18 + $0x68c] sm:$0xf0] }
 0x36d   :  { %4390 = vmatpush.bf16.msra.mxu3 %v9475_v32  ;;  %v9458_v53 = vld [vmem:[%s18552_s18 + $0x780] sm:$0xf]  ;;  %v11434_v22 = vld [vmem:[%s18552_s18 + $0x78c] sm:$0xf0]  ;;  %v9331_v34 = vor.u32 %v11402_v2, %v9330_v54  ;;  %v13252_v2 = vperm.slane %v13105_v13, 4 }
 0x36e   :  { %4371 = vmatpush.bf16.msra.mxu2 %v9347_v17  ;;  %v9187_v17 = vor.u32 %v11366_v44, %v9186_v12  ;;  %v9459_v24 = vor.u32 %v11434_v22, %v9458_v53  ;;  %v9042_v32 = vld [vmem:[%s18552_s18 + $0x440] sm:$0xf]  ;;  %v11330_v12 = vld [vmem:[%s18552_s18 + $0x44c] sm:$0xf0] }
 0x36f   :  { %4335 = vmatpush.bf16.msra.mxu0 %v9059_v27  ;;  %v9170_v44 = vld [vmem:[%s18552_s18 + $0x540] sm:$0xf]  ;;  %v9043_v53 = vor.u32 %v11330_v12, %v9042_v32  ;;  %v11362_v22 = vld [vmem:[%s18552_s18 + $0x54c] sm:$0xf0] }
 0x370   :  { %4354 = vmatpush.bf16.msra.mxu1 %v9187_v17  ;;  %v9314_v3 = vld [vmem:[%s18552_s18 + $0x660] sm:$0xf]  ;;  %v11398_v17 = vld [vmem:[%s18552_s18 + $0x66c] sm:$0xf0] }
 0x371   :  { %4391 = vmatpush.bf16.msra.mxu3 %v9459_v24  ;;  %v9442_v12 = vld [vmem:[%s18552_s18 + $0x760] sm:$0xf]  ;;  %v11430_v24 = vld [vmem:[%s18552_s18 + $0x76c] sm:$0xf0] }
 0x372   :  { %4372 = vmatpush.bf16.msra.mxu2 %v9331_v34  ;;  %v9443_v50 = vor.u32 %v11430_v24, %v9442_v12  ;;  %v9426_v12 = vld [vmem:[%s18552_s18 + $0x740] sm:$0xf] }
 0x373   :  { %4336 = vmatpush.bf16.msra.mxu0 %v9043_v53 }
 0x375   :  { %4392 = vmatpush.bf16.msra.mxu3 %v9443_v50  ;;  %v13322_v50 = vperm.slane %v13105_v13, 6 }
 0x38e   :  { %v2192_v18 = vpop.f32.mrf.mxu0  ;;  %v2211_v36 = vpop.f32.mrf.mxu1 }
 0x38f   :  { %v13184_v37 = vadd.f32 %v2192_v18, %v13142_v46  ;;  %v13187_v58 = vadd.f32 %v2211_v36, %v13145_v15 }
 0x391   :  { %vm2335_vm3 = vcmp.ge.f32.partialorder %v13184_v37, 0.0  ;;  %v2367_v36 = vmul.f32 0.01, %v13184_v37  ;;  %vm2336_vm4 = vcmp.ge.f32.partialorder %v13187_v58, 0.0  ;;  %v2368_v18 = vmul.f32 0.01, %v13187_v58 }
 0x393   :  { %v2400_v53 = vsel %vm2336_vm4, %v13187_v58, %v2368_v18  ;;  %v9298_v58 = vld [vmem:[%s18552_s18 + $0x640] sm:$0xf]  ;;  %v11394_v18 = vld [vmem:[%s18552_s18 + $0x64c] sm:$0xf0] }
 0x395   :  { %v2230_v49 = vpop.f32.mrf.mxu2  ;;  %v2249_v45 = vpop.f32.mrf.mxu3 }
 0x396   :  { %v2231_v48 = vadd.f32 %v2230_v49, %v13202_v19  ;;  %v13249_v21 = vadd.f32 %v2249_v45, %v13211_v43  ;;  %v2194_v27 = vpop.f32.mrf.mxu0  ;;  %v2213_v54 = vpop.f32.mrf.mxu1  ;;  %v13260_v49 = vperm.slane %v13105_v13, 5  ;;  %v9171_v45 = vor.u32 %v11362_v22, %v9170_v44 }
 0x397   :  { %v2195_v23 = vadd.f32 %v2194_v27, %v13142_v46  ;;  %v2214_v25 = vadd.f32 %v2213_v54, %v13145_v15  ;;  %v2399_v27 = vsel %vm2335_vm3, %v13184_v37, %v2367_v36  ;;  %v9315_v22 = vor.u32 %v11398_v17, %v9314_v3  ;;  %v11326_v37 = vld [vmem:[%s18552_s18 + $0x42c] sm:$0xf0]  ;;  %v9154_v3 = vld [vmem:[%s18552_s18 + $0x520] sm:$0xf] }
 0x398   :  { %vm2337_vm5 = vcmp.ge.f32.partialorder %v2231_v48, 0.0  ;;  %v2369_v32 = vmul.f32 0.01, %v2231_v48  ;;  %vm2338_vm6 = vcmp.ge.f32.partialorder %v13249_v21, 0.0  ;;  %v2370_v54 = vmul.f32 0.01, %v13249_v21  ;;  %4355 = vmatpush.bf16.msra.mxu1 %v9171_v45 }
 0x399   :  { %vm2343_vm7 = vcmp.ge.f32.partialorder %v2195_v23, 0.0  ;;  %v2375_v34 = vmul.f32 0.01, %v2195_v23  ;;  %vm2344_vm8 = vcmp.ge.f32.partialorder %v2214_v25, 0.0  ;;  %v2376_v44 = vmul.f32 0.01, %v2214_v25  ;;  %4373 = vmatpush.bf16.msra.mxu2 %v9315_v22 }
 0x39a   :  { %v11358_v36 = vld [vmem:[%s18552_s18 + $0x52c] sm:$0xf0] }
 0x39b   :  { %v2407_v57 = vsel %vm2343_vm7, %v2195_v23, %v2375_v34  ;;  %v2408_v41 = vsel %vm2344_vm8, %v2214_v25, %v2376_v44  ;;  %v9027_v23 = vor.u32 %v11326_v37, %v9026_v59  ;;  %v9155_v25 = vor.u32 %v11358_v36, %v9154_v3  ;;  %v11426_v59 = vld [vmem:[%s18552_s18 + $0x74c] sm:$0xf0]  ;;  %v9138_v3 = vld [vmem:[%s18552_s18 + $0x500] sm:$0xf] }
 0x39c   :  { %v13294_v45 = vpack.c.bf16 %v2407_v57, %v2399_v27  ;;  %v13296_v17 = vpack.c.bf16 %v2408_v41, %v2400_v53  ;;  %v2401_v57 = vsel %vm2337_vm5, %v2231_v48, %v2369_v32  ;;  %v9299_v44 = vor.u32 %v11394_v18, %v9298_v58  ;;  %v9010_v27 = vld [vmem:[%s18552_s18 + $0x400] sm:$0xf]  ;;  %v11322_v22 = vld [vmem:[%s18552_s18 + $0x40c] sm:$0xf0] }
 0x39d   :  { %v2232_v34 = vpop.f32.mrf.mxu2  ;;  %v2251_v41 = vpop.f32.mrf.mxu3  ;;  %v9427_v37 = vor.u32 %v11426_v59, %v9426_v12  ;;  %v2402_v36 = vsel %vm2338_vm6, %v13249_v21, %v2370_v54  ;;  %4337 = vmatpush.bf16.msra.mxu0 %v9027_v23  ;;  %4356 = vmatpush.bf16.msra.mxu1 %v9155_v25  ;;  %v9011_v18 = vor.u32 %v11322_v22, %v9010_v27  ;;  %v9282_v12 = vld [vmem:[%s18552_s18 + $0x620] sm:$0xf]  ;;  %v13346_v59 = vperm.slane %v13105_v13, 7  ;;  %v8612_v13 = vld [vmem:[%s18552_s18 + $0xf0] sm:$0xf0] }
 0x39e   :  { %18707 = vst [vmem:[#allocation33_spill] sm:$0xff] %v13296_v17  ;;  %v2233_v24 = vadd.f32 %v2232_v34, %v13202_v19  ;;  %v2252_v48 = vadd.f32 %v2251_v41, %v13211_v43  ;;  %v2197_v32 = vpop.f32.mrf.mxu0  ;;  %v2216_v53 = vpop.f32.mrf.mxu1  ;;  %4263 = vmatmul.bf16.vlgmr.msrb.gmra.mxu0 %v13294_v45  ;;  %4282 = vmatmul.bf16.vlgmr.msrb.gmra.mxu1 %v13296_v17  ;;  %v11354_v34 = vld [vmem:[%s18552_s18 + $0x50c] sm:$0xf0]  ;;  %v9410_v27 = vld [vmem:[%s18552_s18 + $0x720] sm:$0xf] }
 0x39f   :  { %v13331_v58 = vadd.f32 %v2197_v32, %v13142_v46  ;;  %v11390_v41 = vld [vmem:[%s18552_s18 + $0x62c] sm:$0xf0]  ;;  %4374 = vmatpush.bf16.msra.mxu2 %v9299_v44  ;;  %v2217_v25 = vadd.f32 %v2216_v53, %v13145_v15  ;;  %4393 = vmatpush.bf16.msra.mxu3 %v9427_v37  ;;  %v9139_v47 = vor.u32 %v11354_v34, %v9138_v3  ;;  %v11220_v53 = vld [vmem:[%s18552_s18 + $0xe4] sm:$0xf]  ;;  %v9266_v3 = vld [vmem:[%s18552_s18 + $0x600] sm:$0xf] }
 0x3a0   :  { %vm2345_vm9 = vcmp.ge.f32.partialorder %v2233_v24, 0.0  ;;  %v2377_v21 = vmul.f32 0.01, %v2233_v24  ;;  %vm2346_vm10 = vcmp.ge.f32.partialorder %v2252_v48, 0.0  ;;  %v2378_v54 = vmul.f32 0.01, %v2252_v48 }
 0x3a1   :  { %vm2351_vm11 = vcmp.ge.f32.partialorder %v13331_v58, 0.0  ;;  %v2383_v23 = vmul.f32 0.01, %v13331_v58  ;;  %v9283_v52 = vor.u32 %v11390_v41, %v9282_v12  ;;  %v11422_v44 = vld [vmem:[%s18552_s18 + $0x72c] sm:$0xf0]  ;;  %4338 = vmatpush.bf16.msra.mxu0 %v9011_v18  ;;  %4357 = vmatpush.bf16.msra.mxu1 %v9139_v47  ;;  %vm2352_vm12 = vcmp.ge.f32.partialorder %v2217_v25, 0.0 }
 0x3a2   :  { %v2409_v22 = vsel %vm2345_vm9, %v2233_v24, %v2377_v21  ;;  %v2410_v32 = vsel %vm2346_vm10, %v2252_v48, %v2378_v54  ;;  %v11252_v24 = vld [vmem:[%s18552_s18 + $0x1e4] sm:$0xf]  ;;  %v8740_v48 = vld [vmem:[%s18552_s18 + $0x1f0] sm:$0xf0]  ;;  %v9411_v34 = vor.u32 %v11422_v44, %v9410_v27  ;;  %v9394_v18 = vld [vmem:[%s18552_s18 + $0x700] sm:$0xf] }
 0x3a3   :  { %v13360_v37 = vpack.c.bf16 %v2409_v22, %v2401_v57  ;;  %v13362_v31 = vpack.c.bf16 %v2410_v32, %v2402_v36  ;;  %4375 = vmatpush.bf16.msra.mxu2 %v9283_v52  ;;  %v8615_v57 = vor.u32 %v11220_v53, %v8612_v13  ;;  %v8743_v12 = vor.u32 %v11252_v24, %v8740_v48  ;;  %v11386_v36 = vld [vmem:[%s18552_s18 + $0x60c] sm:$0xf0]  ;;  %v11216_v27 = vld [vmem:[%s18552_s18 + $0xc4] sm:$0xf]  ;;  %v8596_v22 = vld [vmem:[%s18552_s18 + $0xd0] sm:$0xf0] }
 0x3a4   :  { %v11418_v41 = vld [vmem:[%s18552_s18 + $0x70c] sm:$0xf0]  ;;  %v9267_v47 = vor.u32 %v11386_v36, %v9266_v3  ;;  %v11248_v32 = vld [vmem:[%s18552_s18 + $0x1c4] sm:$0xf]  ;;  %v2384_v44 = vmul.f32 0.01, %v2217_v25  ;;  %4394 = vmatpush.bf16.msra.mxu3 %v9411_v34  ;;  %v8599_v3 = vor.u32 %v11216_v27, %v8596_v22 }
 0x3a5   :  { %18708 = vst [vmem:[#allocation34_spill] sm:$0xff] %v13360_v37  ;;  %v2235_v21 = vpop.f32.mrf.mxu2  ;;  %v2254_v54 = vpop.f32.mrf.mxu3  ;;  %4301 = vmatmul.bf16.vlgmr.msrb.gmra.mxu2 %v13360_v37  ;;  %4320 = vmatmul.bf16.vlgmr.msrb.gmra.mxu3 %v13362_v31  ;;  %v9395_v52 = vor.u32 %v11418_v41, %v9394_v18  ;;  %v8724_v36 = vld [vmem:[%s18552_s18 + $0x1d0] sm:$0xf0] }
 0x3a6   :  { %18709 = vst [vmem:[#allocation35_spill] sm:$0xff] %v13362_v31  ;;  %v2236_v53 = vadd.f32 %v2235_v21, %v13202_v19  ;;  %v13395_v13 = vadd.f32 %v2254_v54, %v13211_v43  ;;  %v2199_v24 = vpop.f32.mrf.mxu0  ;;  %v2218_v48 = vpop.f32.mrf.mxu1  ;;  %4407 = vmatpush.bf16.msrb.mxu0 %v8615_v57  ;;  %4426 = vmatpush.bf16.msrb.mxu1 %v8743_v12  ;;  %v11284_v21 = vld [vmem:[%s18552_s18 + $0x2e4] sm:$0xf]  ;;  %v8868_v34 = vld [vmem:[%s18552_s18 + $0x2f0] sm:$0xf0] }
 0x3a7   :  { %v2200_v18 = vadd.f32 %v2199_v24, %v13142_v46  ;;  %v2219_v41 = vadd.f32 %v2218_v48, %v13145_v15  ;;  %v8727_v30 = vor.u32 %v11248_v32, %v8724_v36  ;;  %4376 = vmatpush.bf16.msra.mxu2 %v9267_v47  ;;  %v11316_v46 = vld [vmem:[%s18552_s18 + $0x3e4] sm:$0xf]  ;;  %v2415_v54 = vsel %vm2351_vm11, %v13331_v58, %v2383_v23  ;;  %v8996_v47 = vld [vmem:[%s18552_s18 + $0x3f0] sm:$0xf0] }
 0x3a8   :  { %vm2353_vm13 = vcmp.ge.f32.partialorder %v2236_v53, 0.0  ;;  %v2385_v57 = vmul.f32 0.01, %v2236_v53  ;;  %vm2354_vm14 = vcmp.ge.f32.partialorder %v13395_v13, 0.0  ;;  %v2416_v27 = vsel %vm2352_vm12, %v2217_v25, %v2384_v44  ;;  %4395 = vmatpush.bf16.msra.mxu3 %v9395_v52  ;;  %v11212_v32 = vld [vmem:[%s18552_s18 + $0xa4] sm:$0xf] }
 0x3a9   :  { %vm2359_vm2 = vcmp.ge.f32.partialorder %v2200_v18, 0.0  ;;  %v2391_v15 = vmul.f32 0.01, %v2200_v18  ;;  %vm2360_vm15 = vcmp.ge.f32.partialorder %v2219_v41, 0.0  ;;  %v2392_v12 = vmul.f32 0.01, %v2219_v41 }
 0x3aa   :  { %4408 = vmatpush.bf16.msrb.mxu0 %v8599_v3  ;;  %v8871_v22 = vor.u32 %v11284_v21, %v8868_v34  ;;  %v8580_v24 = vld [vmem:[%s18552_s18 + $0xb0] sm:$0xf0]  ;;  %4427 = vmatpush.bf16.msrb.mxu1 %v8727_v30  ;;  %v8999_v58 = vor.u32 %v11316_v46, %v8996_v47  ;;  %v11244_v25 = vld [vmem:[%s18552_s18 + $0x1a4] sm:$0xf]  ;;  %v18712_v46 = vrot.slane %v12978_v40, 1 }
 0x3ab   :  { %v2423_v48 = vsel %vm2359_vm2, %v2200_v18, %v2391_v15  ;;  %v2424_v36 = vsel %vm2360_vm15, %v2219_v41, %v2392_v12  ;;  %v8583_v23 = vor.u32 %v11212_v32, %v8580_v24  ;;  %v8708_v52 = vld [vmem:[%s18552_s18 + $0x1b0] sm:$0xf0]  ;;  %v11280_v44 = vld [vmem:[%s18552_s18 + $0x2c4] sm:$0xf]  ;;  %v2417_v12 = vsel %vm2353_vm13, %v2236_v53, %v2385_v57 }
 0x3ac   :  { %v13434_v3 = vpack.c.bf16 %v2423_v48, %v2415_v54  ;;  %v13436_v21 = vpack.c.bf16 %v2424_v36, %v2416_v27  ;;  %4445 = vmatpush.bf16.msrb.mxu2 %v8871_v22  ;;  %v8711_v30 = vor.u32 %v11244_v25, %v8708_v52  ;;  %v8852_v18 = vld [vmem:[%s18552_s18 + $0x2d0] sm:$0xf0]  ;;  %v11312_v41 = vld [vmem:[%s18552_s18 + $0x3c4] sm:$0xf]  ;;  %v13450_v15 = vadd.f32 %v18712_v46, %v12978_v40 }
 0x3ad   :  { %v8980_v34 = vld [vmem:[%s18552_s18 + $0x3d0] sm:$0xf0]  ;;  %v2237_v54 = vpop.f32.mrf.mxu2  ;;  %v2256_v27 = vpop.f32.mrf.mxu3  ;;  %4464 = vmatpush.bf16.msrb.mxu3 %v8999_v58  ;;  %v8855_v22 = vor.u32 %v11280_v44, %v8852_v18  ;;  %v11208_v32 = vld [vmem:[%s18552_s18 + $0x84] sm:$0xf]  ;;  %v2386_v48 = vmul.f32 0.01, %v13395_v13 }
 0x3ae   :  { %18710 = vst [vmem:[#allocation36_spill] sm:$0xff] %v13434_v3  ;;  %v8983_v47 = vor.u32 %v11312_v41, %v8980_v34  ;;  %v8564_v24 = vld [vmem:[%s18552_s18 + $0x90] sm:$0xf0]  ;;  %v11240_v40 = vld [vmem:[%s18552_s18 + $0x184] sm:$0xf]  ;;  %v2238_v53 = vadd.f32 %v2237_v54, %v13202_v19  ;;  %v2257_v57 = vadd.f32 %v2256_v27, %v13211_v43  ;;  %v2268_v36 = vpop.f32.mrf.mxu0  ;;  %v2287_v58 = vpop.f32.mrf.mxu1  ;;  %4268 = vmatmul.bf16.gmra.mxu0 %v13434_v3 }
 0x3af   :  { %18711 = vst [vmem:[#allocation37_spill] sm:$0xff] %v13436_v21  ;;  %4287 = vmatmul.bf16.gmra.mxu1 %v13436_v21  ;;  %v8567_v25 = vor.u32 %v11208_v32, %v8564_v24  ;;  %v8692_v52 = vld [vmem:[%s18552_s18 + $0x190] sm:$0xf0]  ;;  %v13471_v44 = vadd.f32 %v2268_v36, %v13252_v2  ;;  %v13474_v18 = vadd.f32 %v2287_v58, %v13260_v49  ;;  %v11276_v43 = vld [vmem:[%s18552_s18 + $0x2a4] sm:$0xf] }
 0x3b0   :  { %4409 = vmatpush.bf16.msrb.mxu0 %v8583_v23  ;;  %4428 = vmatpush.bf16.msrb.mxu1 %v8711_v30  ;;  %v8695_v19 = vor.u32 %v11240_v40, %v8692_v52  ;;  %v8836_v41 = vld [vmem:[%s18552_s18 + $0x2b0] sm:$0xf0]  ;;  %v11308_v34 = vld [vmem:[%s18552_s18 + $0x3a4] sm:$0xf]  ;;  %vm2361_vm0 = vcmp.ge.f32.partialorder %v2238_v53, 0.0  ;;  %vm2362_vm1 = vcmp.ge.f32.partialorder %v2257_v57, 0.0  ;;  %v2418_v27 = vsel %vm2354_vm14, %v13395_v13, %v2386_v48 }
 0x3b1   :  { %v2393_v46 = vmul.f32 0.01, %v2238_v53  ;;  %v2394_v54 = vmul.f32 0.01, %v2257_v57  ;;  %4446 = vmatpush.bf16.msrb.mxu2 %v8855_v22  ;;  %vm2339_vm3 = vcmp.ge.f32.partialorder %v13471_v44, 0.0  ;;  %vm2340_vm4 = vcmp.ge.f32.partialorder %v13474_v18, 0.0  ;;  %4465 = vmatpush.bf16.msrb.mxu3 %v8983_v47 }
 0x3b2   :  { %v13487_v23 = vmul.f32 0.01, %v13471_v44  ;;  %v2372_v30 = vmul.f32 0.01, %v13474_v18  ;;  %v8839_v40 = vor.u32 %v11276_v43, %v8836_v41  ;;  %v8964_v22 = vld [vmem:[%s18552_s18 + $0x3b0] sm:$0xf0] }
 0x3b3   :  { %v2425_v32 = vsel %vm2361_vm0, %v2238_v53, %v2393_v46  ;;  %v2426_v24 = vsel %vm2362_vm1, %v2257_v57, %v2394_v54  ;;  %v11204_v36 = vld [vmem:[%s18552_s18 + $0x64] sm:$0xf]  ;;  %v8548_v58 = vld [vmem:[%s18552_s18 + $0x70] sm:$0xf0]  ;;  %v8967_v57 = vor.u32 %v11308_v34, %v8964_v22 }
 0x3b4   :  { %v13503_v47 = vpack.c.bf16 %v2425_v32, %v2417_v12  ;;  %v13505_v52 = vpack.c.bf16 %v2426_v24, %v2418_v27  ;;  %4410 = vmatpush.bf16.msrb.mxu0 %v8567_v25  ;;  %v11236_v13 = vld [vmem:[%s18552_s18 + $0x164] sm:$0xf]  ;;  %v8676_v48 = vld [vmem:[%s18552_s18 + $0x170] sm:$0xf0]  ;;  %4429 = vmatpush.bf16.msrb.mxu1 %v8695_v19  ;;  %v8551_v12 = vor.u32 %v11204_v36, %v8548_v58 }
 0x3b5   :  { %v11272_v53 = vld [vmem:[%s18552_s18 + $0x284] sm:$0xf]  ;;  %4447 = vmatpush.bf16.msrb.mxu2 %v8839_v40  ;;  %v8679_v43 = vor.u32 %v11236_v13, %v8676_v48  ;;  %v8820_v25 = vld [vmem:[%s18552_s18 + $0x290] sm:$0xf0]  ;;  %v2306_v54 = vpop.f32.mrf.mxu2  ;;  %v2325_v27 = vpop.f32.mrf.mxu3  ;;  %v1322_v40 = vmul.f32 %v13450_v15, %v11781_v26  ;;  %4466 = vmatpush.bf16.msrb.mxu3 %v8967_v57 }
 0x3b6   :  { %18713 = vst [vmem:[#allocation38_spill] sm:$0xff] %v13505_v52  ;;  %v11304_v41 = vld [vmem:[%s18552_s18 + $0x384] sm:$0xf]  ;;  %v8948_v46 = vld [vmem:[%s18552_s18 + $0x390] sm:$0xf0]  ;;  %4306 = vmatmul.bf16.gmra.mxu2 %v13503_v47  ;;  %4325 = vmatmul.bf16.gmra.mxu3 %v13505_v52  ;;  %v8823_v19 = vor.u32 %v11272_v53, %v8820_v25  ;;  %v2307_v22 = vadd.f32 %v2306_v54, %v13322_v50  ;;  %v2270_v58 = vpop.f32.mrf.mxu0  ;;  %v2289_v13 = vpop.f32.mrf.mxu1 }
 0x3b7   :  { %v11200_v34 = vld [vmem:[%s18552_s18 + $0x44] sm:$0xf]  ;;  %v8532_v32 = vld [vmem:[%s18552_s18 + $0x50] sm:$0xf0]  ;;  %v13540_v36 = vadd.f32 %v2325_v27, %v13346_v59  ;;  %v8951_v48 = vor.u32 %v11304_v41, %v8948_v46  ;;  %v2271_v54 = vadd.f32 %v2270_v58, %v13252_v2  ;;  %v2290_v27 = vadd.f32 %v2289_v13, %v13260_v49 }
 0x3b8   :  { %v11232_v24 = vld [vmem:[%s18552_s18 + $0x144] sm:$0xf]  ;;  %v8660_v53 = vld [vmem:[%s18552_s18 + $0x150] sm:$0xf0]  ;;  %4411 = vmatpush.bf16.msrb.mxu0 %v8551_v12  ;;  %v8535_v56 = vor.u32 %v11200_v34, %v8532_v32  ;;  %vm2341_vm5 = vcmp.ge.f32.partialorder %v2307_v22, 0.0  ;;  %4430 = vmatpush.bf16.msrb.mxu1 %v8679_v43  ;;  %v2403_v13 = vsel %vm2339_vm3, %v13471_v44, %v13487_v23  ;;  %v2404_v43 = vsel %vm2340_vm4, %v13474_v18, %v2372_v30 }
 0x3b9   :  { %v11268_v25 = vld [vmem:[%s18552_s18 + $0x264] sm:$0xf]  ;;  %v8804_v15 = vld [vmem:[%s18552_s18 + $0x270] sm:$0xf0]  ;;  %v8663_v57 = vor.u32 %v11232_v24, %v8660_v53  ;;  %v2373_v55 = vmul.f32 0.01, %v2307_v22  ;;  %4448 = vmatpush.bf16.msrb.mxu2 %v8823_v19  ;;  %v13564_v24 = vsub.f32 %v12848_v42, %v1322_v40  ;;  %4467 = vmatpush.bf16.msrb.mxu3 %v8951_v48  ;;  %vm1127_vm4 = vweird.f32 %v13093_v11 }
 0x3ba   :  { %v11300_v41 = vld [vmem:[%s18552_s18 + $0x364] sm:$0xf]  ;;  %v8932_v46 = vld [vmem:[%s18552_s18 + $0x370] sm:$0xf0]  ;;  %vm2342_vm6 = vcmp.ge.f32.partialorder %v13540_v36, 0.0  ;;  %v8807_v58 = vor.u32 %v11268_v25, %v8804_v15  ;;  %vm2347_vm7 = vcmp.ge.f32.partialorder %v2271_v54, 0.0 }
 0x3bb   :  { %v11196_v12 = vld [vmem:[%s18552_s18 + $0x24] sm:$0xf]  ;;  %v2379_v34 = vmul.f32 0.01, %v2271_v54  ;;  %vm2348_vm8 = vcmp.ge.f32.partialorder %v2290_v27, 0.0  ;;  %18714 = vst [vmem:[#allocation39_spill] sm:$0xff] %v13564_v24  ;;  %v8935_v19 = vor.u32 %v11300_v41, %v8932_v46 }
 0x3bc   :  { %v2380_v32 = vmul.f32 0.01, %v2290_v27  ;;  %v8516_v53 = vld [vmem:[%s18552_s18 + $0x30] sm:$0xf0]  ;;  %v11228_v42 = vld [vmem:[%s18552_s18 + $0x124] sm:$0xf]  ;;  %4412 = vmatpush.bf16.msrb.mxu0 %v8535_v56  ;;  %4431 = vmatpush.bf16.msrb.mxu1 %v8663_v57 }
 0x3bd   :  { %v8644_v25 = vld [vmem:[%s18552_s18 + $0x130] sm:$0xf0]  ;;  %v2411_v15 = vsel %vm2347_vm7, %v2271_v54, %v2379_v34  ;;  %v8519_v23 = vor.u32 %v11196_v12, %v8516_v53  ;;  %v11264_v18 = vld [vmem:[%s18552_s18 + $0x244] sm:$0xf]  ;;  %4449 = vmatpush.bf16.msrb.mxu2 %v8807_v58  ;;  %v13605_v34 = vsub.f32 %v12858_v5, %v1322_v40  ;;  %v2374_v57 = vmul.f32 0.01, %v13540_v36  ;;  %v2308_v58 = vpop.f32.mrf.mxu2  ;;  %4468 = vmatpush.bf16.msrb.mxu3 %v8935_v19 }
 0x3be   :  { %v2412_v44 = vsel %vm2348_vm8, %v2290_v27, %v2380_v32  ;;  %v8647_v16 = vor.u32 %v11228_v42, %v8644_v25  ;;  %v8788_v30 = vld [vmem:[%s18552_s18 + $0x250] sm:$0xf0]  ;;  %v11296_v48 = vld [vmem:[%s18552_s18 + $0x344] sm:$0xf]  ;;  %v13591_v41 = vpack.c.bf16 %v2411_v15, %v2403_v13  ;;  %v2405_v32 = vsel %vm2341_vm5, %v2307_v22, %v2373_v55  ;;  %v2327_v13 = vpop.f32.mrf.mxu3  ;;  %v2273_v40 = vpop.f32.mrf.mxu0 }
 0x3bf   :  { %v13593_v46 = vpack.c.bf16 %v2412_v44, %v2404_v43  ;;  %v8791_v56 = vor.u32 %v11264_v18, %v8788_v30  ;;  %v8916_v54 = vld [vmem:[%s18552_s18 + $0x350] sm:$0xf0]  ;;  %v11192_v27 = vld [vmem:[%s18552_s18 + $0x4] sm:$0xf]  ;;  %18717 = vst [vmem:[#allocation42_spill] sm:$0xff] %v13605_v34  ;;  %v2309_v25 = vadd.f32 %v2308_v58, %v13322_v50  ;;  %v2328_v5 = vadd.f32 %v2327_v13, %v13346_v59  ;;  %v2292_v15 = vpop.f32.mrf.mxu1 }
 0x3c0   :  { %18715 = vst [vmem:[#allocation40_spill] sm:$0xff] %v13591_v41  ;;  %v8500_v12 = vld [vmem:[%s18552_s18 + $0x10] sm:$0xf0]  ;;  %v8919_v43 = vor.u32 %v11296_v48, %v8916_v54  ;;  %v11224_v53 = vld [vmem:[%s18552_s18 + $0x104] sm:$0xf]  ;;  %4339 = vmatmul.bf16.vlgmr.msra.gmra.mxu0 %v13591_v41  ;;  %v13631_v30 = vadd.f32 %v2273_v40, %v13252_v2  ;;  %v13634_v48 = vadd.f32 %v2292_v15, %v13260_v49  ;;  %vm1137_vm7 = vweird.f32 %v13171_v4 }
 0x3c1   :  { %18716 = vst [vmem:[#allocation41_spill] sm:$0xff] %v13593_v46  ;;  %v8628_v42 = vld [vmem:[%s18552_s18 + $0x110] sm:$0xf0]  ;;  %4358 = vmatmul.bf16.vlgmr.msra.gmra.mxu1 %v13593_v46  ;;  %v8503_v55 = vor.u32 %v11192_v27, %v8500_v12  ;;  %v11260_v22 = vld [vmem:[%s18552_s18 + $0x224] sm:$0xf]  ;;  %4413 = vmatpush.bf16.msrb.mxu0 %v8519_v23  ;;  %vm2349_vm9 = vcmp.ge.f32.partialorder %v2309_v25, 0.0  ;;  %v2406_v19 = vsel %vm2342_vm6, %v13540_v36, %v2374_v57 }
 0x3c2   :  { %v8772_v44 = vld [vmem:[%s18552_s18 + $0x230] sm:$0xf0]  ;;  %v13628_v18 = vld [vmem:[%s18552_s18 + $0x324] sm:$0xf]  ;;  %v8631_v54 = vor.u32 %v11224_v53, %v8628_v42  ;;  %v2381_v13 = vmul.f32 0.01, %v2309_v25  ;;  %4432 = vmatpush.bf16.msrb.mxu1 %v8647_v16  ;;  %4450 = vmatpush.bf16.msrb.mxu2 %v8791_v56 }
 0x3c3   :  { %v8900_v27 = vld [vmem:[%s18552_s18 + $0x330] sm:$0xf0]  ;;  %v11348_v12 = vld [vmem:[%s18552_s18 + $0x4e4] sm:$0xf]  ;;  %vm2350_vm10 = vcmp.ge.f32.partialorder %v2328_v5, 0.0  ;;  %vm2355_vm11 = vcmp.ge.f32.partialorder %v13631_v30, 0.0  ;;  %v8775_v46 = vor.u32 %v11260_v22, %v8772_v44  ;;  %4469 = vmatpush.bf16.msrb.mxu3 %v8919_v43 }
 0x3c4   :  { %v9124_v58 = vld [vmem:[%s18552_s18 + $0x4f0] sm:$0xf0]  ;;  %v2382_v40 = vmul.f32 0.01, %v2328_v5  ;;  %v13650_v23 = vmul.f32 0.01, %v13631_v30  ;;  %v2413_v42 = vsel %vm2349_vm9, %v2309_v25, %v2381_v13  ;;  %v8903_v25 = vor.u32 %v13628_v18, %v8900_v27 }
 0x3c5   :  { %vm2356_vm12 = vcmp.ge.f32.partialorder %v13634_v48, 0.0  ;;  %v11380_v53 = vld [vmem:[%s18552_s18 + $0x5e4] sm:$0xf]  ;;  %v9127_v16 = vor.u32 %v11348_v12, %v9124_v58  ;;  %v9252_v56 = vld [vmem:[%s18552_s18 + $0x5f0] sm:$0xf0]  ;;  %v13665_v41 = vpack.c.bf16 %v2413_v42, %v2405_v32  ;;  %v13681_v32 = vmul.f32 %v13564_v24, %v13564_v24  ;;  %4414 = vmatpush.bf16.msrb.mxu0 %v8503_v55 }
 0x3c6   :  { %v2414_v15 = vsel %vm2350_vm10, %v2328_v5, %v2382_v40  ;;  %v11256_v36 = vld [vmem:[%s18552_s18 + $0x204] sm:$0xf]  ;;  %v8756_v57 = vld [vmem:[%s18552_s18 + $0x210] sm:$0xf0]  ;;  %4433 = vmatpush.bf16.msrb.mxu1 %v8631_v54  ;;  %v9255_v43 = vor.u32 %v11380_v53, %v9252_v56  ;;  %v13695_v58 = vmul.f32 %v13605_v34, %v13605_v34  ;;  %v13699_v55 = vadd.f32 %v12922_v63, %v12888_v0  ;;  %v2311_v54 = vpop.f32.mrf.mxu2  ;;  %v2330_v13 = vpop.f32.mrf.mxu3 }
 0x3c7   :  { %v13667_v20 = vpack.c.bf16 %v2414_v15, %v2406_v19  ;;  %v11288_v5 = vld [vmem:[%s18552_s18 + $0x304] sm:$0xf]  ;;  %v8884_v22 = vld [vmem:[%s18552_s18 + $0x310] sm:$0xf0]  ;;  %4377 = vmatmul.bf16.vlgmr.msra.gmra.mxu2 %v13665_v41  ;;  %v8759_v40 = vor.u32 %v11256_v36, %v8756_v57  ;;  %v2388_v15 = vmul.f32 0.01, %v13634_v48  ;;  %v13714_v56 = vadd.f32 %v2311_v54, %v13322_v50  ;;  %v2275_v34 = vpop.f32.mrf.mxu0  ;;  %v2294_v24 = vpop.f32.mrf.mxu1  ;;  %4470 = vmatpush.bf16.msrb.mxu3 %v8903_v25 }
 0x3c8   :  { %v11344_v44 = vld [vmem:[%s18552_s18 + $0x4c4] sm:$0xf]  ;;  %v9108_v18 = vld [vmem:[%s18552_s18 + $0x4d0] sm:$0xf0]  ;;  %4451 = vmatpush.bf16.msrb.mxu2 %v8775_v46  ;;  %v8887_v36 = vor.u32 %v11288_v5, %v8884_v22  ;;  %v2276_v0 = vadd.f32 %v2275_v34, %v13252_v2  ;;  %v13735_v2 = vadd.f32 %v2330_v13, %v13346_v59  ;;  %vm1107_vm9 = vweird.f32 %v13179_v9 }
 0x3c9   :  { %18718 = vst [vmem:[#allocation43_spill] sm:$0xff] %v13667_v20  ;;  %v11376_v27 = vld [vmem:[%s18552_s18 + $0x5c4] sm:$0xf]  ;;  %v9236_v12 = vld [vmem:[%s18552_s18 + $0x5d0] sm:$0xf0]  ;;  %4396 = vmatmul.bf16.vlgmr.msra.gmra.mxu3 %v13667_v20  ;;  %4483 = vmatpush.bf16.msra.mxu0 %v9127_v16  ;;  %v9111_v57 = vor.u32 %v11344_v44, %v9108_v18  ;;  %v2295_v20 = vadd.f32 %v2294_v24, %v13260_v49  ;;  %vm2357_vm2 = vcmp.ge.f32.partialorder %v13714_v56, 0.0 }
 0x3ca   :  { %v11412_v19 = vld [vmem:[%s18552_s18 + $0x6e4] sm:$0xf]  ;;  %v9380_v53 = vld [vmem:[%s18552_s18 + $0x6f0] sm:$0xf0]  ;;  %4502 = vmatpush.bf16.msra.mxu1 %v9255_v43  ;;  %v9239_v54 = vor.u32 %v11376_v27, %v9236_v12  ;;  %v13732_v22 = vmul.f32 0.01, %v13714_v56  ;;  %v2419_v18 = vsel %vm2355_vm11, %v13631_v30, %v13650_v23  ;;  %v13759_v30 = vpop.eup %11534 }
 0x3cb   :  { %v11444_v42 = vld [vmem:[%s18552_s18 + $0x7e4] sm:$0xf]  ;;  %v9508_v63 = vld [vmem:[%s18552_s18 + $0x7f0] sm:$0xf0]  ;;  %v9383_v49 = vor.u32 %v11412_v19, %v9380_v53  ;;  %vm2363_vm13 = vcmp.ge.f32.partialorder %v2276_v0, 0.0  ;;  %vm2364_vm14 = vcmp.ge.f32.partialorder %v2295_v20, 0.0  ;;  %4471 = vmatpush.bf16.msrb.mxu3 %v8887_v36  ;;  %vm1128_vm3 = vweird.f32 %v13759_v30 }
 0x3cc   :  { %v11340_v46 = vld [vmem:[%s18552_s18 + $0x4a4] sm:$0xf]  ;;  %v9092_v16 = vld [vmem:[%s18552_s18 + $0x4b0] sm:$0xf0]  ;;  %v9511_v24 = vor.u32 %v11444_v42, %v9508_v63  ;;  %v2395_v44 = vmul.f32 0.01, %v2276_v0  ;;  %v2420_v63 = vsel %vm2356_vm12, %v13634_v48, %v2388_v15  ;;  %4452 = vmatpush.bf16.msrb.mxu2 %v8759_v40  ;;  %vm13984_vm6 = vmor %vm1127_vm4, %vm1128_vm3  ;;  %vm1117_vm12 = vweird.f32 %v13198_v7 }
 0x3cd   :  { %v11372_v5 = vld [vmem:[%s18552_s18 + $0x5a4] sm:$0xf]  ;;  %v9220_v34 = vld [vmem:[%s18552_s18 + $0x5b0] sm:$0xf0]  ;;  %v2396_v43 = vmul.f32 0.01, %v2295_v20  ;;  %4484 = vmatpush.bf16.msra.mxu0 %v9111_v57  ;;  %v9095_v27 = vor.u32 %v11340_v46, %v9092_v16  ;;  %v13783_v16 = vpop.eup %11536 }
 0x3ce   :  { %v11408_v25 = vld [vmem:[%s18552_s18 + $0x6c4] sm:$0xf]  ;;  %v9364_v12 = vld [vmem:[%s18552_s18 + $0x6d0] sm:$0xf0]  ;;  %v2427_v23 = vsel %vm2363_vm13, %v2276_v0, %v2395_v44  ;;  %4503 = vmatpush.bf16.msra.mxu1 %v9239_v54  ;;  %v9223_v48 = vor.u32 %v11372_v5, %v9220_v34  ;;  %v13787_v5 = vadd.f32 %v13695_v58, %v13681_v32  ;;  %vm2358_vm15 = vcmp.ge.f32.partialorder %v13735_v2, 0.0 }
 0x3cf   :  { %v11440_v13 = vld [vmem:[%s18552_s18 + $0x7c4] sm:$0xf]  ;;  %v9492_v19 = vld [vmem:[%s18552_s18 + $0x7d0] sm:$0xf0]  ;;  %v2428_v53 = vsel %vm2364_vm14, %v2295_v20, %v2396_v43  ;;  %v13770_v57 = vpack.c.bf16 %v2427_v23, %v2419_v18  ;;  %4540 = vmatpush.bf16.msra.mxu3 %v9511_v24  ;;  %v9367_v20 = vor.u32 %v11408_v25, %v9364_v12  ;;  %v2332_v24 = vpop.f32.mrf.mxu3  ;;  %v2390_v43 = vmul.f32 0.01, %v13735_v2 }
 0x3d0   :  { %v11336_v40 = vld [vmem:[%s18552_s18 + $0x484] sm:$0xf]  ;;  %v9076_v42 = vld [vmem:[%s18552_s18 + $0x490] sm:$0xf0]  ;;  %v13772_v46 = vpack.c.bf16 %v2428_v53, %v2420_v63  ;;  %4521 = vmatpush.bf16.msra.mxu2 %v9383_v49  ;;  %v2313_v49 = vpop.f32.mrf.mxu2  ;;  %v9495_v34 = vor.u32 %v11440_v13, %v9492_v19  ;;  %v2333_v58 = vadd.f32 %v2332_v24, %v13346_v59  ;;  %vm1138_vm5 = vweird.f32 %v13783_v16 }
 0x3d1   :  { %v11368_v15 = vld [vmem:[%s18552_s18 + $0x584] sm:$0xf]  ;;  %18719 = vst [vmem:[#allocation44_spill] sm:$0xff] %v13770_v57  ;;  %v9204_v0 = vld [vmem:[%s18552_s18 + $0x590] sm:$0xf0]  ;;  %v2314_v32 = vadd.f32 %v2313_v49, %v13322_v50  ;;  %4344 = vmatmul.bf16.gmra.mxu0 %v13770_v57  ;;  %v9079_v18 = vor.u32 %v11336_v40, %v9076_v42  ;;  %v1132_v42 = vmul.f32 %v13783_v16, %v13171_v4  ;;  %vm14009_vm8 = vmor %vm1137_vm7, %vm1138_vm5 }
 0x3d2   :  { %18720 = vst [vmem:[#allocation45_spill] sm:$0xff] %v13772_v46  ;;  %v11404_v36 = vld [vmem:[%s18552_s18 + $0x6a4] sm:$0xf]  ;;  %v9348_v54 = vld [vmem:[%s18552_s18 + $0x6b0] sm:$0xf0]  ;;  %4363 = vmatmul.bf16.gmra.mxu1 %v13772_v46  ;;  %4485 = vmatpush.bf16.msra.mxu0 %v9095_v27  ;;  %v9207_v13 = vor.u32 %v11368_v15, %v9204_v0  ;;  %vm2366_vm1 = vcmp.ge.f32.partialorder %v2333_v58, 0.0 }
 0x3d3   :  { %v11436_v25 = vld [vmem:[%s18552_s18 + $0x7a4] sm:$0xf]  ;;  %v9476_v44 = vld [vmem:[%s18552_s18 + $0x7b0] sm:$0xf0]  ;;  %4504 = vmatpush.bf16.msra.mxu1 %v9223_v48  ;;  %v9351_v19 = vor.u32 %v11404_v36, %v9348_v54  ;;  %vm2365_vm0 = vcmp.ge.f32.partialorder %v2314_v32, 0.0  ;;  %4541 = vmatpush.bf16.msra.mxu3 %v9495_v34  ;;  %v1122_v48 = vmul.f32 %v13759_v30, %v13093_v11  ;;  %v18721_v15 = vrot.slane %v13125_v51, 2 }
 0x3d4   :  { %v11332_v63 = vld [vmem:[%s18552_s18 + $0x464] sm:$0xf]  ;;  %v9060_v12 = vld [vmem:[%s18552_s18 + $0x470] sm:$0xf0]  ;;  %v9479_v50 = vor.u32 %v11436_v25, %v9476_v44  ;;  %v2397_v40 = vmul.f32 0.01, %v2314_v32  ;;  %4522 = vmatpush.bf16.msra.mxu2 %v9367_v20  ;;  %v2421_v36 = vsel %vm2357_vm2, %v13714_v56, %v13732_v22 }
 0x3d5   :  { %v11364_v59 = vld [vmem:[%s18552_s18 + $0x564] sm:$0xf]  ;;  %v9188_v23 = vld [vmem:[%s18552_s18 + $0x570] sm:$0xf0]  ;;  %v2398_v27 = vmul.f32 0.01, %v2333_v58  ;;  %v1267_v0 = vadd.f32 %v18721_v15, %v13125_v51  ;;  %v2422_v51 = vsel %vm2358_vm15, %v13735_v2, %v2390_v43  ;;  %v9063_v25 = vor.u32 %v11332_v63, %v9060_v12 }
 0x3d6   :  { %v11400_v53 = vld [vmem:[%s18552_s18 + $0x684] sm:$0xf]  ;;  %v9332_v20 = vld [vmem:[%s18552_s18 + $0x690] sm:$0xf0]  ;;  %v2429_v24 = vsel %vm2365_vm0, %v2314_v32, %v2397_v40  ;;  %4486 = vmatpush.bf16.msra.mxu0 %v9079_v18  ;;  %v9191_v44 = vor.u32 %v11364_v59, %v9188_v23  ;;  %v18722_v18 = vrot.slane %v13129_v14, 4  ;;  %v1381_v23 = vrot.slane %v13787_v5, 4 }
 0x3d7   :  { %v11432_v54 = vld [vmem:[%s18552_s18 + $0x784] sm:$0xf]  ;;  %v9460_v49 = vld [vmem:[%s18552_s18 + $0x790] sm:$0xf0]  ;;  %v2430_v34 = vsel %vm2366_vm1, %v2333_v58, %v2398_v27  ;;  %v13841_v56 = vpack.c.bf16 %v2429_v24, %v2421_v36  ;;  %4505 = vmatpush.bf16.msra.mxu1 %v9207_v13  ;;  %4542 = vmatpush.bf16.msra.mxu3 %v9479_v50  ;;  %v9335_v46 = vor.u32 %v11400_v53, %v9332_v20  ;;  %v976_v53 = vrot.slane %v13699_v55, 4 }
 0x3d8   :  { %v13843_v22 = vpack.c.bf16 %v2430_v34, %v2422_v51  ;;  %v11328_v15 = vld [vmem:[%s18552_s18 + $0x444] sm:$0xf]  ;;  %4523 = vmatpush.bf16.msra.mxu2 %v9351_v19  ;;  %v9463_v2 = vor.u32 %v11432_v54, %v9460_v49  ;;  %v9044_v43 = vld [vmem:[%s18552_s18 + $0x450] sm:$0xf0]  ;;  %v13860_v63 = vadd.f32 %v18722_v18, %v13129_v14  ;;  %v1123_v50 = vmul.f32 %v13759_v30, %v1122_v48  ;;  %v11279_v4 = vld [vmem:[%s18552_s18 + $0x2b4] sm:$0xf0] }
 0x3d9   :  { %v11360_v32 = vld [vmem:[%s18552_s18 + $0x544] sm:$0xf]  ;;  %v9172_v58 = vld [vmem:[%s18552_s18 + $0x550] sm:$0xf0]  ;;  %4382 = vmatmul.bf16.gmra.mxu2 %v13841_v56  ;;  %v18723_v14 = vrot.slane %v13160_v35, 4  ;;  %v1133_v27 = vmul.f32 %v13783_v16, %v1132_v42  ;;  %v1268_v36 = vrot.slane %v1267_v0, 1  ;;  %v9047_v20 = vor.u32 %v11328_v15, %v9044_v43 }
 0x3da   :  { %4401 = vmatmul.bf16.gmra.mxu3 %v13843_v22  ;;  %v11396_v12 = vld [vmem:[%s18552_s18 + $0x664] sm:$0xf]  ;;  %v9316_v13 = vld [vmem:[%s18552_s18 + $0x670] sm:$0xf0]  ;;  %4487 = vmatpush.bf16.msra.mxu0 %v9063_v25  ;;  %v9175_v54 = vor.u32 %v11360_v32, %v9172_v58  ;;  %v13898_v25 = vpop.eup %11538  ;;  %v1273_v32 = vrot.slane %v13860_v63, 2  ;;  %v13911_v58 = vadd.f32 %v976_v53, %v13699_v55 }
 0x3db   :  { %v11428_v19 = vld [vmem:[%s18552_s18 + $0x764] sm:$0xf]  ;;  %v1375_v59 = vadd.f32 %v18723_v14, %v13160_v35  ;;  %v9444_v40 = vld [vmem:[%s18552_s18 + $0x770] sm:$0xf0]  ;;  %4506 = vmatpush.bf16.msra.mxu1 %v9191_v44  ;;  %4543 = vmatpush.bf16.msra.mxu3 %v9463_v2  ;;  %v9319_v49 = vor.u32 %v11396_v12, %v9316_v13  ;;  %v1124_v2 = vmul.f32 0.5, %v1123_v50  ;;  %v13913_v18 = vmul.f32 0.5, %v1133_v27 }
 0x3dc   :  { %v11324_v48 = vld [vmem:[%s18552_s18 + $0x424] sm:$0xf]  ;;  %v9028_v35 = vld [vmem:[%s18552_s18 + $0x430] sm:$0xf0]  ;;  %4524 = vmatpush.bf16.msra.mxu2 %v9335_v46  ;;  %v9447_v51 = vor.u32 %v11428_v19, %v9444_v40  ;;  %v1269_v12 = vadd.f32 %v1268_v36, %v1267_v0  ;;  %v1102_v40 = vmul.f32 %v13898_v25, %v13179_v9  ;;  %vm1108_vm10 = vweird.f32 %v13898_v25  ;;  %v11203_v9 = vld [vmem:[%s18552_s18 + $0x54] sm:$0xf0] }
 0x3dd   :  { %v11356_v42 = vld [vmem:[%s18552_s18 + $0x524] sm:$0xf]  ;;  %v9156_v24 = vld [vmem:[%s18552_s18 + $0x530] sm:$0xf0]  ;;  %v1376_v43 = vrot.slane %v1375_v59, 2  ;;  %v9031_v13 = vor.u32 %v11324_v48, %v9028_v35  ;;  %v1125_v35 = vsub.f32 1.5, %v1124_v2  ;;  %vm1109_vm11 = vmor %vm1107_vm9, %vm1108_vm10 }
 0x3de   :  { %v11392_v34 = vld [vmem:[%s18552_s18 + $0x644] sm:$0xf]  ;;  %v9300_v46 = vld [vmem:[%s18552_s18 + $0x650] sm:$0xf0]  ;;  %4488 = vmatpush.bf16.msra.mxu0 %v9047_v20  ;;  %v9159_v19 = vor.u32 %v11356_v42, %v9156_v24  ;;  %v978_v42 = vrot.slane %v13911_v58, 2  ;;  %v1103_v2 = vmul.f32 %v13898_v25, %v1102_v40 }
 0x3df   :  { %v11424_v44 = vld [vmem:[%s18552_s18 + $0x744] sm:$0xf]  ;;  %v9428_v15 = vld [vmem:[%s18552_s18 + $0x750] sm:$0xf0]  ;;  %4507 = vmatpush.bf16.msra.mxu1 %v9175_v54  ;;  %4544 = vmatpush.bf16.msra.mxu3 %v9447_v51  ;;  %v9303_v55 = vor.u32 %v11392_v34, %v9300_v46  ;;  %v13945_v51 = vadd.f32 %v1381_v23, %v13787_v5  ;;  %v8618_v24 = vld [vmem:[%s18552_s18 + $0xe8] sm:$0xf]  ;;  %v1319_v34 = vmul.f32 %v1269_v12, %v11781_v26 }
 0x3e0   :  { %v11320_v14 = vld [vmem:[%s18552_s18 + $0x404] sm:$0xf]  ;;  %v9012_v50 = vld [vmem:[%s18552_s18 + $0x410] sm:$0xf0]  ;;  %4525 = vmatpush.bf16.msra.mxu2 %v9319_v49  ;;  %v9431_v0 = vor.u32 %v11424_v44, %v9428_v15  ;;  %v13942_v49 = vadd.f32 %v1376_v43, %v1375_v59  ;;  %v11223_v5 = vld [vmem:[%s18552_s18 + $0xf4] sm:$0xf0] }
 0x3e1   :  { %v11352_v53 = vld [vmem:[%s18552_s18 + $0x504] sm:$0xf]  ;;  %v9140_v27 = vld [vmem:[%s18552_s18 + $0x510] sm:$0xf0]  ;;  %4415 = vmatmul.bf16.vlgmr.msrb.gmra.mxu0 %v13294_v45  ;;  %v9015_v59 = vor.u32 %v11320_v14, %v9012_v50  ;;  %v8746_v23 = vld [vmem:[%s18552_s18 + $0x1e8] sm:$0xf]  ;;  %v13980_v50 = vpop.eup %11540 }
 0x3e2   :  { %v11388_v36 = vld [vmem:[%s18552_s18 + $0x624] sm:$0xf]  ;;  %v9284_v20 = vld [vmem:[%s18552_s18 + $0x630] sm:$0xf0]  ;;  %4434 = vmatmul.bf16.vlgmr.msrb.gmra.mxu1 %v13296_v17  ;;  %4489 = vmatpush.bf16.msra.mxu0 %v9031_v13  ;;  %v9143_v46 = vor.u32 %v11352_v53, %v9140_v27  ;;  %v11255_v44 = vld [vmem:[%s18552_s18 + $0x1f4] sm:$0xf0]  ;;  %vm1118_vm13 = vweird.f32 %v13980_v50 }
 0x3e3   :  { %v11420_v54 = vld [vmem:[%s18552_s18 + $0x724] sm:$0xf]  ;;  %v9412_v48 = vld [vmem:[%s18552_s18 + $0x730] sm:$0xf0]  ;;  %4508 = vmatpush.bf16.msra.mxu1 %v9159_v19  ;;  %v1135_v15 = vsub.f32 1.5, %v13913_v18  ;;  %4545 = vmatpush.bf16.msra.mxu3 %v9431_v0  ;;  %v9287_v43 = vor.u32 %v11388_v36, %v9284_v20  ;;  %v1378_v40 = vrot.slane %v13942_v49, 1  ;;  %v8619_v0 = vor.u32 %v11223_v5, %v8618_v24  ;;  %vm1119_vm14 = vmor %vm1117_vm12, %vm1118_vm13 }
 0x3e4   :  { %4526 = vmatpush.bf16.msra.mxu2 %v9303_v55  ;;  %v9415_v12 = vor.u32 %v11420_v54, %v9412_v48  ;;  %v11384_v13 = vld [vmem:[%s18552_s18 + $0x604] sm:$0xf]  ;;  %v9268_v19 = vld [vmem:[%s18552_s18 + $0x610] sm:$0xf0]  ;;  %v1383_v55 = vrot.slane %v13945_v51, 2  ;;  %v8747_v53 = vor.u32 %v11255_v44, %v8746_v23  ;;  %v1126_v36 = vmul.f32 %v13759_v30, %v1125_v35 }
 0x3e5   :  { %v11416_v18 = vld [vmem:[%s18552_s18 + $0x704] sm:$0xf]  ;;  %v9396_v14 = vld [vmem:[%s18552_s18 + $0x710] sm:$0xf0]  ;;  %v8602_v27 = vld [vmem:[%s18552_s18 + $0xc8] sm:$0xf]  ;;  %v13996_v20 = vsub.f32 %v12299_v28, %v1319_v34  ;;  %v14016_v35 = vsub.f32 %v12301_v29, %v1319_v34  ;;  %v1136_v5 = vmul.f32 %v13783_v16, %v1135_v15  ;;  %v1112_v23 = vmul.f32 %v13980_v50, %v13198_v7 }
 0x3e6   :  { %4490 = vmatpush.bf16.msra.mxu0 %v9015_v59  ;;  %v11219_v54 = vld [vmem:[%s18552_s18 + $0xd4] sm:$0xf0]  ;;  %v8730_v48 = vld [vmem:[%s18552_s18 + $0x1c8] sm:$0xf]  ;;  %v14013_v28 = vmul.f32 0.5, %v1103_v2  ;;  %v9271_v59 = vor.u32 %v11384_v13, %v9268_v19  ;;  %v14023_v44 = vadd.f32 %v12924_v1, %v12890_v62 }
 0x3e7   :  { %18726 = vst [vmem:[#allocation46_spill] sm:$0xff] %v13996_v20  ;;  %4509 = vmatpush.bf16.msra.mxu1 %v9143_v46  ;;  %v11251_v24 = vld [vmem:[%s18552_s18 + $0x1d4] sm:$0xf0]  ;;  %4546 = vmatpush.bf16.msra.mxu3 %v9415_v12  ;;  %v9399_v46 = vor.u32 %v11416_v18, %v9396_v14  ;;  %v8874_v29 = vld [vmem:[%s18552_s18 + $0x2e8] sm:$0xf]  ;;  %v8603_v2 = vor.u32 %v11219_v54, %v8602_v27 }
 0x3e8   :  { %18729 = vst [vmem:[#allocation47_spill] sm:$0xff] %v14016_v35  ;;  %4527 = vmatpush.bf16.msra.mxu2 %v9287_v43  ;;  %v11287_v34 = vld [vmem:[%s18552_s18 + $0x2f4] sm:$0xf0]  ;;  %v9002_v15 = vld [vmem:[%s18552_s18 + $0x3e8] sm:$0xf]  ;;  %v8731_v43 = vor.u32 %v11251_v24, %v8730_v48  ;;  %v1130_v14 = vsel %vm13984_vm6, %v13759_v30, %v1126_v36  ;;  %v1379_v30 = vadd.f32 %v1378_v40, %v13942_v49  ;;  %v983_v24 = vrot.slane %v14023_v44, 4 }
 0x3e9   :  { %4453 = vmatmul.bf16.vlgmr.msrb.gmra.mxu2 %v13360_v37  ;;  %v8875_v12 = vor.u32 %v11287_v34, %v8874_v29  ;;  %v11319_v13 = vld [vmem:[%s18552_s18 + $0x3f4] sm:$0xf0]  ;;  %v8586_v19 = vld [vmem:[%s18552_s18 + $0xa8] sm:$0xf]  ;;  %v1343_v11 = vmul.f32 %v13996_v20, %v13996_v20  ;;  %v1140_v40 = vsel %vm14009_vm8, %v13783_v16, %v1136_v5  ;;  %v1183_v29 = vmul.f32 %v1130_v14, %v12851_v60 }
 0x3ea   :  { %4472 = vmatmul.bf16.vlgmr.msrb.gmra.mxu3 %v13362_v31  ;;  %4559 = vmatpush.bf16.msrb.mxu0 %v8619_v0  ;;  %v11215_v18 = vld [vmem:[%s18552_s18 + $0xb4] sm:$0xf0]  ;;  %v14051_v0 = vadd.f32 %v1273_v32, %v13860_v63  ;;  %v8714_v27 = vld [vmem:[%s18552_s18 + $0x1a8] sm:$0xf]  ;;  %v1351_v63 = vmul.f32 %v14016_v35, %v14016_v35  ;;  %v1105_v34 = vsub.f32 1.5, %v14013_v28  ;;  %v1191_v5 = vmul.f32 %v1130_v14, %v12853_v61 }
 0x3eb   :  { %4578 = vmatpush.bf16.msrb.mxu1 %v8747_v53  ;;  %v9003_v53 = vor.u32 %v11319_v13, %v9002_v15  ;;  %v11247_v54 = vld [vmem:[%s18552_s18 + $0x1b4] sm:$0xf0]  ;;  %v8858_v48 = vld [vmem:[%s18552_s18 + $0x2c8] sm:$0xf]  ;;  %4547 = vmatpush.bf16.msra.mxu3 %v9399_v46  ;;  %v1113_v15 = vmul.f32 %v13980_v50, %v1112_v23  ;;  %v14084_v13 = vadd.f32 %v1383_v55, %v13945_v51 }
 0x3ec   :  { %4528 = vmatpush.bf16.msra.mxu2 %v9271_v59  ;;  %v11283_v32 = vld [vmem:[%s18552_s18 + $0x2d4] sm:$0xf0]  ;;  %v8986_v36 = vld [vmem:[%s18552_s18 + $0x3c8] sm:$0xf]  ;;  %v8587_v60 = vor.u32 %v11215_v18, %v8586_v19  ;;  %v1184_v23 = vmul.f32 %v1140_v40, %v12864_v8  ;;  %v1417_v61 = vmul.f32 %v1379_v30, %v11781_v26  ;;  %v1359_v14 = vadd.f32 %v1351_v63, %v1343_v11 }
 0x3ed   :  { %v11315_v49 = vld [vmem:[%s18552_s18 + $0x3d4] sm:$0xf0]  ;;  %v8859_v59 = vor.u32 %v11283_v32, %v8858_v48  ;;  %v8842_v16 = vld [vmem:[%s18552_s18 + $0x2a8] sm:$0xf]  ;;  %v1385_v48 = vrot.slane %v14084_v13, 1  ;;  %v1224_v63 = vmul.f32 %v12908_v38, %v1191_v5 }
 0x3ee   :  { %v8987_v46 = vor.u32 %v11315_v49, %v8986_v36  ;;  %4560 = vmatpush.bf16.msrb.mxu0 %v8603_v2  ;;  %v8570_v28 = vld [vmem:[%s18552_s18 + $0x88] sm:$0xf]  ;;  %v11311_v55 = vld [vmem:[%s18552_s18 + $0x3b4] sm:$0xf0]  ;;  %v1192_v2 = vmul.f32 %v1140_v40, %v12866_v10  ;;  %v8843_v8 = vor.u32 %v11279_v4, %v8842_v16  ;;  %v1217_v4 = vmul.f32 %v12911_v39, %v1184_v23 }
 0x3ef   :  { %4616 = vmatpush.bf16.msrb.mxu3 %v9003_v53  ;;  %4579 = vmatpush.bf16.msrb.mxu1 %v8731_v43  ;;  %v8970_v51 = vld [vmem:[%s18552_s18 + $0x3a8] sm:$0xf]  ;;  %v11211_v43 = vld [vmem:[%s18552_s18 + $0x94] sm:$0xf0]  ;;  %v1275_v53 = vrot.slane %v14051_v0, 1 }
 0x3f0   :  { %4597 = vmatpush.bf16.msrb.mxu2 %v8875_v12  ;;  %v8715_v12 = vor.u32 %v11247_v54, %v8714_v27  ;;  %v8698_v19 = vld [vmem:[%s18552_s18 + $0x188] sm:$0xf]  ;;  %v11243_v18 = vld [vmem:[%s18552_s18 + $0x194] sm:$0xf0]  ;;  %v8971_v10 = vor.u32 %v11311_v55, %v8970_v51  ;;  %v1216_v27 = vmul.f32 %v12908_v38, %v1183_v29  ;;  %v14116_v54 = vmul.f32 0.5, %v1113_v15 }
 0x3f1   :  { %4420 = vmatmul.bf16.gmra.mxu0 %v13434_v3  ;;  %v8554_v30 = vld [vmem:[%s18552_s18 + $0x68] sm:$0xf]  ;;  %v11207_v11 = vld [vmem:[%s18552_s18 + $0x74] sm:$0xf0]  ;;  %v8571_v32 = vor.u32 %v11211_v43, %v8570_v28  ;;  %v8699_v36 = vor.u32 %v11243_v18, %v8698_v19  ;;  %v14151_v5 = vadd.f32 1e-05, %v1417_v61  ;;  %v1276_v28 = vadd.f32 %v1275_v53, %v14051_v0 }
 0x3f2   :  { %4439 = vmatmul.bf16.gmra.mxu1 %v13436_v21  ;;  %4561 = vmatpush.bf16.msrb.mxu0 %v8587_v60  ;;  %v8682_v49 = vld [vmem:[%s18552_s18 + $0x168] sm:$0xf]  ;;  %v11239_v29 = vld [vmem:[%s18552_s18 + $0x174] sm:$0xf0]  ;;  %v1360_v60 = vrot.slane %v1359_v14, 4  ;;  %v14158_v43 = vadd.f32 %v12968_v6, %v1224_v63  ;;  %v1115_v23 = vsub.f32 1.5, %v14116_v54  ;;  %v14172_v18 = vadd.f32 %v978_v42, %v13911_v58 }
 0x3f3   :  { %4617 = vmatpush.bf16.msrb.mxu3 %v8987_v46  ;;  %4580 = vmatpush.bf16.msrb.mxu1 %v8715_v12  ;;  %v8826_v40 = vld [vmem:[%s18552_s18 + $0x288] sm:$0xf]  ;;  %v1106_v46 = vmul.f32 %v13898_v25, %v1105_v34  ;;  %v11307_v16 = vld [vmem:[%s18552_s18 + $0x394] sm:$0xf0]  ;;  %v1225_v34 = vmul.f32 %v12911_v39, %v1192_v2  ;;  %v14154_v12 = vadd.f32 %v12968_v6, %v1216_v27  ;;  %11542 = vrsqrt.f32 %v14151_v5 }
 0x3f4   :  { %4598 = vmatpush.bf16.msrb.mxu2 %v8859_v59  ;;  %v11275_v59 = vld [vmem:[%s18552_s18 + $0x294] sm:$0xf0]  ;;  %v8954_v15 = vld [vmem:[%s18552_s18 + $0x388] sm:$0xf]  ;;  %18731 = vst [vmem:[#allocation49_spill] sm:$0xff] %v14158_v43  ;;  %v8555_v2 = vor.u32 %v11207_v11, %v8554_v30  ;;  %v8683_v61 = vor.u32 %v11239_v29, %v8682_v49  ;;  %v14190_v58 = vadd.f32 %v1360_v60, %v1359_v14  ;;  %vm1457_vm15 = vweird.f32 %v14151_v5 }
 0x3f5   :  { %18730 = vst [vmem:[#allocation48_spill] sm:$0xff] %v14154_v12  ;;  %v8827_v51 = vor.u32 %v11275_v59, %v8826_v40  ;;  %v8955_v55 = vor.u32 %v11307_v16, %v8954_v15  ;;  %v8538_v0 = vld [vmem:[%s18552_s18 + $0x48] sm:$0xf]  ;;  %v1110_v19 = vsel %vm1109_vm11, %v13898_v25, %v1106_v46  ;;  %v14187_v25 = vadd.f32 %v12971_v33, %v1225_v34  ;;  %v11271_v27 = vld [vmem:[%s18552_s18 + $0x274] sm:$0xf0] }
 0x3f6   :  { %4562 = vmatpush.bf16.msrb.mxu0 %v8571_v32  ;;  %v8666_v53 = vld [vmem:[%s18552_s18 + $0x148] sm:$0xf]  ;;  %v14204_v30 = vmul.f32 0.01, %v14154_v12  ;;  %v1320_v14 = vmul.f32 %v1276_v28, %v11781_v26  ;;  %v14210_v11 = vadd.f32 %v983_v24, %v14023_v44  ;;  %v11303_v32 = vld [vmem:[%s18552_s18 + $0x374] sm:$0xf0]  ;;  %v8539_v49 = vor.u32 %v11203_v9, %v8538_v0 }
 0x3f7   :  { %4618 = vmatpush.bf16.msrb.mxu3 %v8971_v10  ;;  %4581 = vmatpush.bf16.msrb.mxu1 %v8699_v36  ;;  %v14184_v10 = vadd.f32 %v12971_v33, %v1217_v4  ;;  %18733 = vst [vmem:[#allocation51_spill] sm:$0xff] %v14187_v25  ;;  %v8810_v42 = vld [vmem:[%s18552_s18 + $0x268] sm:$0xf]  ;;  %v14216_v36 = vmul.f32 0.01, %v14158_v43  ;;  %v1116_v28 = vmul.f32 %v13980_v50, %v1115_v23  ;;  %v18740_v9 = vld [vmem:[#allocation11_spill] sm:$0xff] }
 0x3f8   :  { %4599 = vmatpush.bf16.msrb.mxu2 %v8843_v8  ;;  %v11235_v8 = vld [vmem:[%s18552_s18 + $0x154] sm:$0xf0]  ;;  %v8938_v54 = vld [vmem:[%s18552_s18 + $0x368] sm:$0xf]  ;;  %18734 = vst [vmem:[#allocation52_spill] sm:$0xff] %v14204_v30  ;;  %v8811_v63 = vor.u32 %v11271_v27, %v8810_v42 }
 0x3f9   :  { %18732 = vst [vmem:[#allocation50_spill] sm:$0xff] %v14184_v10  ;;  %4458 = vmatmul.bf16.gmra.mxu2 %v13503_v47  ;;  %v8667_v40 = vor.u32 %v11235_v8, %v8666_v53  ;;  %v8939_v59 = vor.u32 %v11303_v32, %v8938_v54  ;;  %v8522_v44 = vld [vmem:[%s18552_s18 + $0x28] sm:$0xf]  ;;  %v11199_v24 = vld [vmem:[%s18552_s18 + $0x34] sm:$0xf0]  ;;  %v14265_v53 = vsub.f32 %v18740_v9, %v1320_v14  ;;  %v985_v8 = vrot.slane %v14210_v11, 2 }
 0x3fa   :  { %4477 = vmatmul.bf16.gmra.mxu3 %v13505_v52  ;;  %18735 = vst [vmem:[#allocation53_spill] sm:$0xff] %v14216_v36  ;;  %4563 = vmatpush.bf16.msrb.mxu0 %v8555_v2  ;;  %v8650_v46 = vld [vmem:[%s18552_s18 + $0x128] sm:$0xf]  ;;  %v11231_v29 = vld [vmem:[%s18552_s18 + $0x134] sm:$0xf0]  ;;  %v8523_v42 = vor.u32 %v11199_v24, %v8522_v44 }
 0x3fb   :  { %4619 = vmatpush.bf16.msrb.mxu3 %v8955_v55  ;;  %4582 = vmatpush.bf16.msrb.mxu1 %v8683_v61  ;;  %v8794_v15 = vld [vmem:[%s18552_s18 + $0x248] sm:$0xf]  ;;  %v11267_v55 = vld [vmem:[%s18552_s18 + $0x254] sm:$0xf0]  ;;  %v14251_v0 = vmul.f32 0.01, %v14184_v10  ;;  %v8651_v27 = vor.u32 %v11231_v29, %v8650_v46 }
 0x3fc   :  { %4600 = vmatpush.bf16.msrb.mxu2 %v8827_v51  ;;  %v18736_v16 = vld [vmem:[#allocation17_spill] sm:$0xff]  ;;  %v18737_v34 = vld [vmem:[#allocation18_spill] sm:$0xff]  ;;  %v1386_v51 = vadd.f32 %v1385_v48, %v14084_v13  ;;  %v11299_v61 = vld [vmem:[%s18552_s18 + $0x354] sm:$0xf0]  ;;  %v14254_v23 = vmul.f32 0.01, %v14187_v25 }
 0x3fd   :  { %v1181_v4 = vmul.f32 %v1110_v19, %v18736_v16  ;;  %v1189_v60 = vmul.f32 %v1110_v19, %v18737_v34  ;;  %v8922_v2 = vld [vmem:[%s18552_s18 + $0x348] sm:$0xf]  ;;  %18738 = vst [vmem:[#allocation17_spill] sm:$0xff] %v14251_v0  ;;  %v1362_v13 = vrot.slane %v14190_v58, 2  ;;  %v980_v48 = vrot.slane %v14172_v18, 1  ;;  %v14258_v19 = vpop.eup %11542  ;;  %v18742_v54 = vld [vmem:[#allocation12_spill] sm:$0xff] }
 0x3fe   :  { %18739 = vst [vmem:[#allocation18_spill] sm:$0xff] %v14254_v23  ;;  %4564 = vmatpush.bf16.msrb.mxu0 %v8539_v49  ;;  %v14269_v32 = vsub.f32 %v18742_v54, %v1320_v14  ;;  %v8795_v34 = vor.u32 %v11267_v55, %v8794_v15  ;;  %v8923_v0 = vor.u32 %v11299_v61, %v8922_v2  ;;  %v8506_v7 = vld [vmem:[%s18552_s18 + $0x8] sm:$0xf]  ;;  %v11195_v9 = vld [vmem:[%s18552_s18 + $0x14] sm:$0xf0]  ;;  %vm1458_vm2 = vweird.f32 %v14258_v19 }
 0x3ff   :  { %4620 = vmatpush.bf16.msrb.mxu3 %v8939_v59  ;;  %18741 = vst [vmem:[#allocation11_spill] sm:$0xff] %v14265_v53  ;;  %4583 = vmatpush.bf16.msrb.mxu1 %v8667_v40  ;;  %v18745_v59 = vld [vmem:[#allocation8_spill] sm:$0xff]  ;;  %v8634_v49 = vld [vmem:[%s18552_s18 + $0x108] sm:$0xf]  ;;  %v1120_v14 = vsel %vm1119_vm14, %v13980_v50, %v1116_v28  ;;  %v1418_v40 = vmul.f32 %v1386_v51, %v11781_v26  ;;  %vm1459_vm0 = vmor %vm1457_vm15, %vm1458_vm2 }
 0x400   :  { %4601 = vmatpush.bf16.msrb.mxu2 %v8811_v63  ;;  %18743 = vst [vmem:[#allocation12_spill] sm:$0xff] %v14269_v32  ;;  %v18744_v63 = vld [vmem:[#allocation7_spill] sm:$0xff]  ;;  %v8778_v24 = vld [vmem:[%s18552_s18 + $0x228] sm:$0xf]  ;;  %v1452_v50 = vmul.f32 %v14258_v19, %v14151_v5  ;;  %v18747_v28 = vld [vmem:[#allocation40_spill] sm:$0xff]  ;;  %v8507_v54 = vor.u32 %v11195_v9, %v8506_v7  ;;  %v1352_v12 = vmul.f32 %v14269_v32, %v14269_v32 }
 0x401   :  { %v961_v16 = vadd.f32 %v18745_v59, %v18744_v63  ;;  %v11227_v44 = vld [vmem:[%s18552_s18 + $0x114] sm:$0xf0]  ;;  %v18746_v29 = vld [vmem:[#allocation25_spill] sm:$0xff]  ;;  %4491 = vmatmul.bf16.vlgmr.msra.gmra.mxu0 %v18747_v28 }
 0x402   :  { %v11263_v46 = vld [vmem:[%s18552_s18 + $0x234] sm:$0xf0]  ;;  %v1214_v15 = vmul.f32 %v18746_v29, %v1181_v4  ;;  %v1222_v55 = vmul.f32 %v18746_v29, %v1189_v60  ;;  %v18748_v51 = vld [vmem:[#allocation41_spill] sm:$0xff]  ;;  %v1344_v60 = vmul.f32 %v14265_v53, %v14265_v53  ;;  %4565 = vmatpush.bf16.msrb.mxu0 %v8523_v42  ;;  %v8635_v30 = vor.u32 %v11227_v44, %v8634_v49 }
 0x403   :  { %4510 = vmatmul.bf16.vlgmr.msra.gmra.mxu1 %v18748_v51  ;;  %v8906_v2 = vld [vmem:[%s18552_s18 + $0x328] sm:$0xf]  ;;  %v11295_v61 = vld [vmem:[%s18552_s18 + $0x334] sm:$0xf0]  ;;  %v962_v25 = vrot.slane %v961_v16, 4  ;;  %4621 = vmatpush.bf16.msrb.mxu3 %v8923_v0  ;;  %v8779_v42 = vor.u32 %v11263_v46, %v8778_v24  ;;  %v981_v53 = vadd.f32 %v980_v48, %v14172_v18  ;;  %v1453_v48 = vmul.f32 %v14258_v19, %v1452_v50 }
 0x404   :  { %v9130_v4 = vld [vmem:[%s18552_s18 + $0x4e8] sm:$0xf]  ;;  %4584 = vmatpush.bf16.msrb.mxu1 %v8651_v27  ;;  %v11351_v23 = vld [vmem:[%s18552_s18 + $0x4f4] sm:$0xf0]  ;;  %4602 = vmatpush.bf16.msrb.mxu2 %v8795_v34  ;;  %v8907_v27 = vor.u32 %v11295_v61, %v8906_v2  ;;  %v986_v2 = vadd.f32 %v985_v8, %v14210_v11  ;;  %v1366_v32 = vadd.f32 %v1352_v12, %v1344_v60 }
 0x405   :  { %v9258_v36 = vld [vmem:[%s18552_s18 + $0x5e8] sm:$0xf]  ;;  %v11383_v10 = vld [vmem:[%s18552_s18 + $0x5f4] sm:$0xf0] }
 0x406   :  { %v8762_v7 = vld [vmem:[%s18552_s18 + $0x208] sm:$0xf]  ;;  %v18749_v9 = vld [vmem:[#allocation19_spill] sm:$0xff]  ;;  %v18750_v44 = vld [vmem:[#allocation20_spill] sm:$0xff]  ;;  %v9259_v61 = vor.u32 %v11383_v10, %v9258_v36  ;;  %4566 = vmatpush.bf16.msrb.mxu0 %v8507_v54  ;;  %v995_v36 = vmul.f32 %v981_v53, %v11781_v26 }
 0x407   :  { %v1182_v49 = vmul.f32 %v1120_v14, %v18749_v9  ;;  %v1190_v43 = vmul.f32 %v1120_v14, %v18750_v44  ;;  %v11259_v29 = vld [vmem:[%s18552_s18 + $0x214] sm:$0xf0]  ;;  %v8890_v0 = vld [vmem:[%s18552_s18 + $0x308] sm:$0xf]  ;;  %v9131_v14 = vor.u32 %v11351_v23, %v9130_v4  ;;  %v14344_v9 = vadd.f32 1e-05, %v1418_v40  ;;  %4622 = vmatpush.bf16.msrb.mxu3 %v8907_v27 }
 0x408   :  { %v11291_v34 = vld [vmem:[%s18552_s18 + $0x314] sm:$0xf0]  ;;  %v14347_v44 = vadd.f32 %v1362_v13, %v14190_v58  ;;  %4585 = vmatpush.bf16.msrb.mxu1 %v8635_v30  ;;  %4603 = vmatpush.bf16.msrb.mxu2 %v8779_v42  ;;  %v9114_v10 = vld [vmem:[%s18552_s18 + $0x4c8] sm:$0xf]  ;;  %v963_v30 = vadd.f32 %v962_v25, %v961_v16  ;;  %v987_v25 = vrot.slane %v986_v2, 1 }
 0x409   :  { %v18751_v24 = vld [vmem:[#allocation28_spill] sm:$0xff]  ;;  %v8891_v35 = vor.u32 %v11291_v34, %v8890_v0  ;;  %v9242_v58 = vld [vmem:[%s18552_s18 + $0x5c8] sm:$0xf]  ;;  %4529 = vmatmul.bf16.vlgmr.msra.gmra.mxu2 %v13665_v41  ;;  %v18756_v8 = vld [vmem:[#allocation43_spill] sm:$0xff]  ;;  %11544 = vrsqrt.f32 %v14344_v9  ;;  %vm1467_vm1 = vweird.f32 %v14344_v9 }
 0x40a   :  { %v14337_v46 = vadd.f32 %v18751_v24, %v1214_v15  ;;  %v14341_v18 = vadd.f32 %v18751_v24, %v1222_v55  ;;  %v8763_v15 = vor.u32 %v11259_v29, %v8762_v7  ;;  %v11347_v11 = vld [vmem:[%s18552_s18 + $0x4d4] sm:$0xf0]  ;;  %v18754_v12 = vld [vmem:[#allocation13_spill] sm:$0xff]  ;;  %v18755_v23 = vld [vmem:[#allocation14_spill] sm:$0xff]  ;;  %4548 = vmatmul.bf16.vlgmr.msra.gmra.mxu3 %v18756_v8  ;;  %4635 = vmatpush.bf16.msra.mxu0 %v9131_v14  ;;  %v14387_v14 = vmul.f32 0.5, %v1453_v48 }
 0x40b   :  { %v968_v13 = vadd.f32 %v18755_v23, %v18754_v12  ;;  %v11379_v40 = vld [vmem:[%s18552_s18 + $0x5d4] sm:$0xf0]  ;;  %v9386_v29 = vld [vmem:[%s18552_s18 + $0x6e8] sm:$0xf]  ;;  %v9115_v16 = vor.u32 %v11347_v11, %v9114_v10  ;;  %4623 = vmatpush.bf16.msrb.mxu3 %v8891_v35 }
 0x40c   :  { %18752 = vst [vmem:[#allocation7_spill] sm:$0xff] %v14337_v46  ;;  %v11415_v53 = vld [vmem:[%s18552_s18 + $0x6f4] sm:$0xf0]  ;;  %4654 = vmatpush.bf16.msra.mxu1 %v9259_v61  ;;  %v9243_v55 = vor.u32 %v11379_v40, %v9242_v58  ;;  %v9514_v4 = vld [vmem:[%s18552_s18 + $0x7e8] sm:$0xf]  ;;  %v1367_v61 = vrot.slane %v1366_v32, 4  ;;  %4604 = vmatpush.bf16.msrb.mxu2 %v8763_v15  ;;  %v988_v40 = vadd.f32 %v987_v25, %v986_v2 }
 0x40d   :  { %18753 = vst [vmem:[#allocation8_spill] sm:$0xff] %v14341_v18  ;;  %v9387_v50 = vor.u32 %v11415_v53, %v9386_v29  ;;  %v11447_v60 = vld [vmem:[%s18552_s18 + $0x7f4] sm:$0xf0]  ;;  %v18757_v54 = vld [vmem:[#allocation29_spill] sm:$0xff]  ;;  %v14382_v0 = vmul.f32 0.01, %v14337_v46 }
 0x40e   :  { %v1215_v42 = vmul.f32 %v18757_v54, %v1182_v49  ;;  %v1223_v27 = vmul.f32 %v18757_v54, %v1190_v43  ;;  %v9515_v7 = vor.u32 %v11447_v60, %v9514_v4  ;;  %v14385_v34 = vmul.f32 0.01, %v14341_v18  ;;  %v18760_v10 = vld [vmem:[#allocation21_spill] sm:$0xff]  ;;  %v18762_v49 = vld [vmem:[#allocation22_spill] sm:$0xff]  ;;  %v11343_v48 = vld [vmem:[%s18552_s18 + $0x4b4] sm:$0xf0]  ;;  %4636 = vmatpush.bf16.msra.mxu0 %v9115_v16 }
 0x40f   :  { %18758 = vst [vmem:[#allocation40_spill] sm:$0xff] %v14382_v0  ;;  %v14390_v11 = vsub.f32 %v18760_v10, %v995_v36  ;;  %v14393_v58 = vsub.f32 %v18762_v49, %v995_v36  ;;  %v9098_v43 = vld [vmem:[%s18552_s18 + $0x4a8] sm:$0xf]  ;;  %v1364_v15 = vrot.slane %v14347_v44, 1  ;;  %v964_v29 = vrot.slane %v963_v30, 2 }
 0x410   :  { %18759 = vst [vmem:[#allocation41_spill] sm:$0xff] %v14385_v34  ;;  %4673 = vmatpush.bf16.msra.mxu2 %v9387_v50  ;;  %4692 = vmatpush.bf16.msra.mxu3 %v9515_v7  ;;  %v9226_v35 = vld [vmem:[%s18552_s18 + $0x5a8] sm:$0xf]  ;;  %v969_v36 = vrot.slane %v968_v13, 4  ;;  %v11375_v53 = vld [vmem:[%s18552_s18 + $0x5b4] sm:$0xf0]  ;;  %v9099_v7 = vor.u32 %v11343_v48, %v9098_v43  ;;  %v14432_v43 = vpop.eup %11544  ;;  %v14434_v48 = vadd.f32 %v1367_v61, %v1366_v32 }
 0x411   :  { %18761 = vst [vmem:[#allocation19_spill] sm:$0xff] %v14390_v11  ;;  %4655 = vmatpush.bf16.msra.mxu1 %v9243_v55  ;;  %v18764_v50 = vld [vmem:[#allocation30_spill] sm:$0xff]  ;;  %v9227_v10 = vor.u32 %v11375_v53, %v9226_v35  ;;  %v11411_v25 = vld [vmem:[%s18552_s18 + $0x6d4] sm:$0xf0]  ;;  %v1019_v35 = vmul.f32 %v14390_v11, %v14390_v11  ;;  %v1027_v53 = vmul.f32 %v14393_v58, %v14393_v58  ;;  %vm1468_vm3 = vweird.f32 %v14432_v43 }
 0x412   :  { %18763 = vst [vmem:[#allocation20_spill] sm:$0xff] %v14393_v58  ;;  %v14409_v4 = vadd.f32 %v18764_v50, %v1215_v42  ;;  %v14412_v60 = vadd.f32 %v18764_v50, %v1223_v27  ;;  %v9370_v2 = vld [vmem:[%s18552_s18 + $0x6c8] sm:$0xf]  ;;  %v11443_v42 = vld [vmem:[%s18552_s18 + $0x7d4] sm:$0xf0]  ;;  %v996_v61 = vmul.f32 %v988_v40, %v11781_v26  ;;  %v965_v0 = vadd.f32 %v964_v29, %v963_v30  ;;  %vm1469_vm4 = vmor %vm1467_vm1, %vm1468_vm3 }
 0x413   :  { %v9498_v16 = vld [vmem:[%s18552_s18 + $0x7c8] sm:$0xf]  ;;  %v9371_v55 = vor.u32 %v11411_v25, %v9370_v2  ;;  %v11339_v49 = vld [vmem:[%s18552_s18 + $0x494] sm:$0xf0]  ;;  %v14450_v50 = vadd.f32 %v969_v36, %v968_v13  ;;  %4496 = vmatmul.bf16.gmra.mxu0 %v13770_v57  ;;  %v1462_v54 = vmul.f32 %v14432_v43, %v14344_v9  ;;  %v1365_v24 = vadd.f32 %v1364_v15, %v14347_v44 }
 0x414   :  { %18765 = vst [vmem:[#allocation13_spill] sm:$0xff] %v14409_v4  ;;  %v9082_v27 = vld [vmem:[%s18552_s18 + $0x488] sm:$0xf]  ;;  %v9499_v2 = vor.u32 %v11443_v42, %v9498_v16  ;;  %v11371_v34 = vld [vmem:[%s18552_s18 + $0x594] sm:$0xf0]  ;;  %4637 = vmatpush.bf16.msra.mxu0 %v9099_v7  ;;  %v14491_v15 = vsub.f32 %v12924_v1, %v996_v61 }
 0x415   :  { %18766 = vst [vmem:[#allocation14_spill] sm:$0xff] %v14412_v60  ;;  %v9210_v25 = vld [vmem:[%s18552_s18 + $0x588] sm:$0xf]  ;;  %v11407_v42 = vld [vmem:[%s18552_s18 + $0x6b4] sm:$0xf0]  ;;  %4656 = vmatpush.bf16.msra.mxu1 %v9227_v10  ;;  %v9083_v40 = vor.u32 %v11339_v49, %v9082_v27  ;;  %4674 = vmatpush.bf16.msra.mxu2 %v9371_v55  ;;  %v1369_v10 = vrot.slane %v14434_v48, 2  ;;  %v14484_v55 = vsub.f32 %v12890_v62, %v996_v61 }
 0x416   :  { %v9354_v32 = vld [vmem:[%s18552_s18 + $0x6a8] sm:$0xf]  ;;  %v11439_v18 = vld [vmem:[%s18552_s18 + $0x7b4] sm:$0xf0]  ;;  %v14464_v30 = vmul.f32 0.01, %v14409_v4  ;;  %v9211_v29 = vor.u32 %v11371_v34, %v9210_v25  ;;  %4693 = vmatpush.bf16.msra.mxu3 %v9499_v2  ;;  %v1071_v4 = vadd.f32 %v1027_v53, %v1019_v35  ;;  %v1463_v2 = vmul.f32 %v14432_v43, %v1462_v54 }
 0x417   :  { %v18767_v16 = vld [vmem:[#allocation45_spill] sm:$0xff]  ;;  %v14467_v13 = vmul.f32 0.01, %v14412_v60  ;;  %v9355_v58 = vor.u32 %v11407_v42, %v9354_v32  ;;  %v11335_v34 = vld [vmem:[%s18552_s18 + $0x474] sm:$0xf0]  ;;  %18770 = vst [vmem:[#allocation22_spill] sm:$0xff] %v14484_v55 }
 0x418   :  { %4515 = vmatmul.bf16.gmra.mxu1 %v18767_v16  ;;  %v9482_v46 = vld [vmem:[%s18552_s18 + $0x7a8] sm:$0xf]  ;;  %18768 = vst [vmem:[#allocation43_spill] sm:$0xff] %v14464_v30  ;;  %v11367_v44 = vld [vmem:[%s18552_s18 + $0x574] sm:$0xf0]  ;;  %4638 = vmatpush.bf16.msra.mxu0 %v9083_v40  ;;  %v1020_v40 = vmul.f32 %v14484_v55, %v14484_v55  ;;  %v14539_v36 = vmul.f32 0.5, %v1463_v2 }
 0x419   :  { %18769 = vst [vmem:[#allocation21_spill] sm:$0xff] %v14467_v13  ;;  %v9483_v11 = vor.u32 %v11439_v18, %v9482_v46  ;;  %v9066_v13 = vld [vmem:[%s18552_s18 + $0x468] sm:$0xf]  ;;  %v966_v46 = vrot.slane %v965_v0, 1  ;;  %v971_v18 = vrot.slane %v14450_v50, 2  ;;  %4657 = vmatpush.bf16.msra.mxu1 %v9211_v29  ;;  %4675 = vmatpush.bf16.msra.mxu2 %v9355_v58 }
 0x41a   :  { %v9194_v7 = vld [vmem:[%s18552_s18 + $0x568] sm:$0xf]  ;;  %18771 = vst [vmem:[#allocation54_spill] sm:$0xff] %v14491_v15  ;;  %v9067_v27 = vor.u32 %v11335_v34, %v9066_v13  ;;  %v11403_v62 = vld [vmem:[%s18552_s18 + $0x694] sm:$0xf0]  ;;  %4534 = vmatmul.bf16.gmra.mxu2 %v13841_v56  ;;  %4553 = vmatmul.bf16.gmra.mxu3 %v13843_v22  ;;  %v1415_v13 = vmul.f32 %v1365_v24, %v11781_v26  ;;  %v1072_v24 = vrot.slane %v1071_v4, 4 }
 0x41b   :  { %v9195_v49 = vor.u32 %v11367_v44, %v9194_v7  ;;  %v9338_v35 = vld [vmem:[%s18552_s18 + $0x688] sm:$0xf]  ;;  %4694 = vmatpush.bf16.msra.mxu3 %v9483_v11  ;;  %v11435_v25 = vld [vmem:[%s18552_s18 + $0x794] sm:$0xf0]  ;;  %v967_v29 = vadd.f32 %v966_v46, %v965_v0  ;;  %v972_v30 = vadd.f32 %v971_v18, %v14450_v50  ;;  %v14554_v50 = vadd.f32 %v1369_v10, %v14434_v48 }
 0x41c   :  { %v9466_v53 = vld [vmem:[%s18552_s18 + $0x788] sm:$0xf]  ;;  %v9339_v1 = vor.u32 %v11403_v62, %v9338_v35  ;;  %v11331_v61 = vld [vmem:[%s18552_s18 + $0x454] sm:$0xf0]  ;;  %4639 = vmatpush.bf16.msra.mxu0 %v9067_v27 }
 0x41d   :  { %v9050_v32 = vld [vmem:[%s18552_s18 + $0x448] sm:$0xf]  ;;  %v9467_v54 = vor.u32 %v11435_v25, %v9466_v53  ;;  %v11363_v58 = vld [vmem:[%s18552_s18 + $0x554] sm:$0xf0]  ;;  %v1028_v25 = vmul.f32 %v14491_v15, %v14491_v15  ;;  %4658 = vmatpush.bf16.msra.mxu1 %v9195_v49  ;;  %v14551_v49 = vadd.f32 1e-05, %v1415_v13  ;;  %v993_v18 = vmul.f32 %v967_v29, %v11781_v26 }
 0x41e   :  { %v9178_v11 = vld [vmem:[%s18552_s18 + $0x548] sm:$0xf]  ;;  %v18772_v34 = vld [vmem:[#allocation23_spill] sm:$0xff]  ;;  %v9051_v0 = vor.u32 %v11331_v61, %v9050_v32  ;;  %4676 = vmatpush.bf16.msra.mxu2 %v9339_v1  ;;  %v1073_v32 = vadd.f32 %v1072_v24, %v1071_v4  ;;  %v4264_v61 = vpop.f32.mrf.mxu0  ;;  %v973_v4 = vrot.slane %v972_v30, 1 }
 0x41f   :  { %v9322_v42 = vld [vmem:[%s18552_s18 + $0x668] sm:$0xf]  ;;  %v18773_v7 = vld [vmem:[#allocation31_spill] sm:$0xff]  ;;  %v9179_v46 = vor.u32 %v11363_v58, %v9178_v11  ;;  %4695 = vmatpush.bf16.msra.mxu3 %v9467_v54  ;;  %v4283_v54 = vpop.f32.mrf.mxu1  ;;  %v1078_v13 = vadd.f32 %v1028_v25, %v1020_v40  ;;  %11546 = vrsqrt.f32 %v14551_v49  ;;  %vm1437_vm5 = vweird.f32 %v14551_v49 }
 0x420   :  { %v1305_v44 = vadd.f32 %v18773_v7, %v18772_v34  ;;  %v11399_v35 = vld [vmem:[%s18552_s18 + $0x674] sm:$0xf0]  ;;  %v9450_v62 = vld [vmem:[%s18552_s18 + $0x768] sm:$0xf]  ;;  %4640 = vmatpush.bf16.msra.mxu0 %v9051_v0  ;;  %v14569_v29 = vadd.f32 %v4283_v54, %v4264_v61  ;;  %v974_v61 = vadd.f32 %v973_v4, %v972_v30 }
 0x421   :  { %v11431_v53 = vld [vmem:[%s18552_s18 + $0x774] sm:$0xf0]  ;;  %v9323_v60 = vor.u32 %v11399_v35, %v9322_v42  ;;  %v9034_v20 = vld [vmem:[%s18552_s18 + $0x428] sm:$0xf]  ;;  %4659 = vmatpush.bf16.msra.mxu1 %v9179_v46  ;;  %v1074_v46 = vrot.slane %v1073_v32, 2 }
 0x422   :  { %v9451_v55 = vor.u32 %v11431_v53, %v9450_v62  ;;  %v11327_v15 = vld [vmem:[%s18552_s18 + $0x434] sm:$0xf0]  ;;  %v9162_v27 = vld [vmem:[%s18552_s18 + $0x528] sm:$0xf]  ;;  %v1306_v2 = vrot.slane %v1305_v44, 4 }
 0x423   :  { %v11359_v1 = vld [vmem:[%s18552_s18 + $0x534] sm:$0xf0]  ;;  %v9035_v11 = vor.u32 %v11327_v15, %v9034_v20  ;;  %v9306_v42 = vld [vmem:[%s18552_s18 + $0x648] sm:$0xf]  ;;  %4677 = vmatpush.bf16.msra.mxu2 %v9323_v60  ;;  %v14584_v60 = vsub.f32 %v18744_v63, %v993_v18  ;;  %4567 = vmatmul.bf16.vlgmr.msrb.gmra.mxu0 %v13294_v45 }
 0x424   :  { %v9163_v58 = vor.u32 %v11359_v1, %v9162_v27  ;;  %v11395_v48 = vld [vmem:[%s18552_s18 + $0x654] sm:$0xf0]  ;;  %v9434_v10 = vld [vmem:[%s18552_s18 + $0x748] sm:$0xf]  ;;  %4696 = vmatpush.bf16.msra.mxu3 %v9451_v55  ;;  %v14587_v55 = vsub.f32 %v18745_v59, %v993_v18  ;;  %v1307_v24 = vadd.f32 %v1306_v2, %v1305_v44  ;;  %v1371_v59 = vrot.slane %v14554_v50, 1 }
 0x425   :  { %v9307_v20 = vor.u32 %v11395_v48, %v9306_v42  ;;  %v11427_v15 = vld [vmem:[%s18552_s18 + $0x754] sm:$0xf0]  ;;  %v9018_v62 = vld [vmem:[%s18552_s18 + $0x408] sm:$0xf]  ;;  %18774 = vst [vmem:[#allocation23_spill] sm:$0xff] %v14584_v60  ;;  %4641 = vmatpush.bf16.msra.mxu0 %v9035_v11  ;;  %v1079_v1 = vrot.slane %v1078_v13, 4 }
 0x426   :  { %v9435_v35 = vor.u32 %v11427_v15, %v9434_v10  ;;  %v11323_v53 = vld [vmem:[%s18552_s18 + $0x414] sm:$0xf0]  ;;  %v9146_v40 = vld [vmem:[%s18552_s18 + $0x508] sm:$0xf]  ;;  %18775 = vst [vmem:[#allocation31_spill] sm:$0xff] %v14587_v55  ;;  %4660 = vmatpush.bf16.msra.mxu1 %v9163_v58  ;;  %v1017_v10 = vmul.f32 %v14584_v60, %v14584_v60  ;;  %v1025_v30 = vmul.f32 %v14587_v55, %v14587_v55  ;;  %v1308_v4 = vrot.slane %v1307_v24, 2 }
 0x427   :  { %v11355_v25 = vld [vmem:[%s18552_s18 + $0x514] sm:$0xf0]  ;;  %v9290_v0 = vld [vmem:[%s18552_s18 + $0x628] sm:$0xf]  ;;  %v9019_v44 = vor.u32 %v11323_v53, %v9018_v62  ;;  %4678 = vmatpush.bf16.msra.mxu2 %v9307_v20  ;;  %v11221_v11 = vld [vmem:[%s18552_s18 + $0xec] sm:$0xf] }
 0x428   :  { %4586 = vmatmul.bf16.vlgmr.msrb.gmra.mxu1 %v13296_v17  ;;  %v11391_v63 = vld [vmem:[%s18552_s18 + $0x634] sm:$0xf0]  ;;  %v9147_v27 = vor.u32 %v11355_v25, %v9146_v40  ;;  %v9418_v18 = vld [vmem:[%s18552_s18 + $0x728] sm:$0xf]  ;;  %4697 = vmatpush.bf16.msra.mxu3 %v9435_v35  ;;  %v8620_v58 = vld [vmem:[%s18552_s18 + $0xf8] sm:$0xf0]  ;;  %v14623_v35 = vadd.f32 %v1074_v46, %v1073_v32  ;;  %v4266_v25 = vpop.f32.mrf.mxu0  ;;  %v994_v46 = vmul.f32 %v974_v61, %v11781_v26 }
 0x429   :  { %v11423_v2 = vld [vmem:[%s18552_s18 + $0x734] sm:$0xf0]  ;;  %v9291_v54 = vor.u32 %v11391_v63, %v9290_v0  ;;  %v11253_v48 = vld [vmem:[%s18552_s18 + $0x1ec] sm:$0xf]  ;;  %v8623_v20 = vor.u32 %v11221_v11, %v8620_v58  ;;  %v8748_v15 = vld [vmem:[%s18552_s18 + $0x1f8] sm:$0xf0]  ;;  %v4285_v0 = vpop.f32.mrf.mxu1  ;;  %4642 = vmatpush.bf16.msra.mxu0 %v9019_v44  ;;  %v1372_v58 = vadd.f32 %v1371_v59, %v14554_v50  ;;  %v14659_v50 = vadd.f32 %v1025_v30, %v1017_v10 }
 0x42a   :  { %v9419_v42 = vor.u32 %v11423_v2, %v9418_v18  ;;  %v18776_v62 = vld [vmem:[#allocation24_spill] sm:$0xff]  ;;  %4661 = vmatpush.bf16.msra.mxu1 %v9147_v27  ;;  %v8751_v63 = vor.u32 %v11253_v48, %v8748_v15  ;;  %v9274_v18 = vld [vmem:[%s18552_s18 + $0x608] sm:$0xf]  ;;  %v14640_v11 = vadd.f32 %v4285_v0, %v4266_v25  ;;  %v14646_v48 = vadd.f32 %v1079_v1, %v1078_v13  ;;  %v11217_v61 = vld [vmem:[%s18552_s18 + $0xcc] sm:$0xf] }
 0x42b   :  { %v18777_v53 = vld [vmem:[#allocation32_spill] sm:$0xff]  ;;  %v9402_v32 = vld [vmem:[%s18552_s18 + $0x708] sm:$0xf]  ;;  %4679 = vmatpush.bf16.msra.mxu2 %v9291_v54  ;;  %4624 = vmatmul.bf16.vlgmr.msrb.gmra.mxu3 %v13362_v31  ;;  %v14661_v13 = vadd.f32 %v1308_v4, %v1307_v24  ;;  %v11285_v25 = vld [vmem:[%s18552_s18 + $0x2ec] sm:$0xf] }
 0x42c   :  { %v14627_v40 = vadd.f32 %v18777_v53, %v18776_v62  ;;  %v11387_v2 = vld [vmem:[%s18552_s18 + $0x614] sm:$0xf0]  ;;  %4698 = vmatpush.bf16.msra.mxu3 %v9419_v42  ;;  %4605 = vmatmul.bf16.vlgmr.msrb.gmra.mxu2 %v13360_v37  ;;  %v8604_v54 = vld [vmem:[%s18552_s18 + $0xd8] sm:$0xf0]  ;;  %v11249_v42 = vld [vmem:[%s18552_s18 + $0x1cc] sm:$0xf] }
 0x42d   :  { %v9275_v44 = vor.u32 %v11387_v2, %v9274_v18  ;;  %v11419_v27 = vld [vmem:[%s18552_s18 + $0x714] sm:$0xf0]  ;;  %4711 = vmatpush.bf16.msrb.mxu0 %v8623_v20  ;;  %v8607_v59 = vor.u32 %v11217_v61, %v8604_v54  ;;  %v8732_v1 = vld [vmem:[%s18552_s18 + $0x1d8] sm:$0xf0]  ;;  %v14676_v24 = vld [vmem:[%s18694_s30] sm:$0xff]  ;;  %v4302_v61 = vpop.f32.mrf.mxu2  ;;  %v4321_v54 = vpop.f32.mrf.mxu3 }
 0x42e   :  { %v9403_v15 = vor.u32 %v11419_v27, %v9402_v32  ;;  %4730 = vmatpush.bf16.msrb.mxu1 %v8751_v63  ;;  %v8876_v0 = vld [vmem:[%s18552_s18 + $0x2f8] sm:$0xf0]  ;;  %v14679_v30 = vperm.slane %v14676_v24, 6  ;;  %v8735_v4 = vor.u32 %v11249_v42, %v8732_v1  ;;  %v11317_v63 = vld [vmem:[%s18552_s18 + $0x3ec] sm:$0xf]  ;;  %v14689_v32 = vsub.f32 %v18754_v12, %v994_v46 }
 0x42f   :  { %v8879_v20 = vor.u32 %v11285_v25, %v8876_v0  ;;  %v9004_v18 = vld [vmem:[%s18552_s18 + $0x3f8] sm:$0xf0]  ;;  %v14692_v27 = vsub.f32 %v18755_v23, %v994_v46  ;;  %4680 = vmatpush.bf16.msra.mxu2 %v9275_v44  ;;  %v1416_v1 = vmul.f32 %v1372_v58, %v11781_v26  ;;  %v4303_v25 = vadd.f32 %v4302_v61, %v14569_v29  ;;  %v11213_v0 = vld [vmem:[%s18552_s18 + $0xac] sm:$0xf]  ;;  %v14705_v46 = vpop.eup %11546 }
 0x430   :  { %18778 = vst [vmem:[#allocation24_spill] sm:$0xff] %v14679_v30  ;;  %4699 = vmatpush.bf16.msra.mxu3 %v9403_v15  ;;  %v9007_v42 = vor.u32 %v11317_v63, %v9004_v18  ;;  %v8588_v12 = vld [vmem:[%s18552_s18 + $0xb8] sm:$0xf0]  ;;  %v11245_v23 = vld [vmem:[%s18552_s18 + $0x1ac] sm:$0xf]  ;;  %v1081_v44 = vrot.slane %v14646_v48, 2  ;;  %v4269_v2 = vpop.f32.mrf.mxu0  ;;  %v1432_v37 = vmul.f32 %v14705_v46, %v14551_v49  ;;  %vm1438_vm6 = vweird.f32 %v14705_v46 }
 0x431   :  { %18779 = vst [vmem:[#allocation32_spill] sm:$0xff] %v14689_v32  ;;  %v1058_v58 = vrot.slane %v14659_v50, 4  ;;  %v1310_v29 = vrot.slane %v14661_v13, 1  ;;  %v1313_v15 = vrot.slane %v14627_v40, 4  ;;  %4712 = vmatpush.bf16.msrb.mxu0 %v8607_v59  ;;  %v18781_v63 = vld [vmem:[#allocation9_spill] sm:$0xff]  ;;  %v18782_v18 = vld [vmem:[#allocation10_spill] sm:$0xff]  ;;  %v14718_v10 = vadd.f32 %v4321_v54, %v4303_v25  ;;  %v4288_v55 = vpop.f32.mrf.mxu1  ;;  %vm1439_vm7 = vmor %vm1437_vm5, %vm1438_vm6 }
 0x432   :  { %18780 = vst [vmem:[#allocation55_spill] sm:$0xff] %v14692_v27  ;;  %4731 = vmatpush.bf16.msrb.mxu1 %v8735_v4  ;;  %v14716_v61 = vadd.f32 %v18782_v18, %v18781_v63  ;;  %v8591_v60 = vor.u32 %v11213_v0, %v8588_v12  ;;  %v11281_v59 = vld [vmem:[%s18552_s18 + $0x2cc] sm:$0xf]  ;;  %v8860_v4 = vld [vmem:[%s18552_s18 + $0x2d8] sm:$0xf0]  ;;  %v1018_v54 = vmul.f32 %v14689_v32, %v14689_v32 }
 0x433   :  { %4749 = vmatpush.bf16.msrb.mxu2 %v8879_v20  ;;  %v8716_v20 = vld [vmem:[%s18552_s18 + $0x1b8] sm:$0xf0]  ;;  %v11313_v31 = vld [vmem:[%s18552_s18 + $0x3cc] sm:$0xf]  ;;  %v14733_v25 = vadd.f32 %v4288_v55, %v4269_v2  ;;  %v8863_v0 = vor.u32 %v11281_v59, %v8860_v4  ;;  %v1314_v59 = vadd.f32 %v1313_v15, %v14627_v40  ;;  %4572 = vmatmul.bf16.gmra.mxu0 %v13434_v3 }
 0x434   :  { %4768 = vmatpush.bf16.msrb.mxu3 %v9007_v42  ;;  %v8719_v30 = vor.u32 %v11245_v23, %v8716_v20  ;;  %v1026_v42 = vmul.f32 %v14692_v27, %v14692_v27  ;;  %v8988_v12 = vld [vmem:[%s18552_s18 + $0x3d8] sm:$0xf0]  ;;  %v18783_v23 = vsub.f32 1.5, %v14387_v14  ;;  %v11209_v55 = vld [vmem:[%s18552_s18 + $0x8c] sm:$0xf]  ;;  %v1292_v5 = vrot.slane %v14716_v61, 4 }
 0x435   :  { %v8991_v32 = vor.u32 %v11313_v31, %v8988_v12  ;;  %v8572_v2 = vld [vmem:[%s18552_s18 + $0x98] sm:$0xf0]  ;;  %v11241_v14 = vld [vmem:[%s18552_s18 + $0x18c] sm:$0xf]  ;;  %4713 = vmatpush.bf16.msrb.mxu0 %v8591_v60  ;;  %v4323_v60 = vpop.f32.mrf.mxu3 }
 0x436   :  { %v1456_v20 = vmul.f32 %v14258_v19, %v18783_v23  ;;  %v8700_v31 = vld [vmem:[%s18552_s18 + $0x198] sm:$0xf0]  ;;  %v11277_v4 = vld [vmem:[%s18552_s18 + $0x2ac] sm:$0xf]  ;;  %v14766_v23 = vadd.f32 1e-05, %v1416_v1  ;;  %4732 = vmatpush.bf16.msrb.mxu1 %v8719_v30  ;;  %v8575_v40 = vor.u32 %v11209_v55, %v8572_v2  ;;  %v14776_v3 = vadd.f32 %v1026_v42, %v1018_v54  ;;  %v4304_v1 = vpop.f32.mrf.mxu2 }
 0x437   :  { %v8844_v12 = vld [vmem:[%s18552_s18 + $0x2b8] sm:$0xf0]  ;;  %v8703_v15 = vor.u32 %v11241_v14, %v8700_v31  ;;  %v11309_v27 = vld [vmem:[%s18552_s18 + $0x3ac] sm:$0xf]  ;;  %4750 = vmatpush.bf16.msrb.mxu2 %v8863_v0  ;;  %v1433_v14 = vmul.f32 %v14705_v46, %v1432_v37  ;;  %v4305_v31 = vadd.f32 %v4304_v1, %v14640_v11  ;;  %v1311_v37 = vadd.f32 %v1310_v29, %v14661_v13 }
 0x438   :  { %4591 = vmatmul.bf16.gmra.mxu1 %v13436_v21  ;;  %v8972_v21 = vld [vmem:[%s18552_s18 + $0x3b8] sm:$0xf0]  ;;  %4769 = vmatpush.bf16.msrb.mxu3 %v8991_v32  ;;  %v8847_v30 = vor.u32 %v11277_v4, %v8844_v12  ;;  %v1460_v2 = vsel %vm1459_vm0, %v14258_v19, %v1456_v20  ;;  %v11205_v17 = vld [vmem:[%s18552_s18 + $0x6c] sm:$0xf]  ;;  %v14795_v19 = vadd.f32 %v1058_v58, %v14659_v50  ;;  %v1315_v11 = vrot.slane %v1314_v59, 2  ;;  %v4271_v0 = vpop.f32.mrf.mxu0 }
 0x439   :  { %v8975_v55 = vor.u32 %v11309_v27, %v8972_v21  ;;  %v8556_v54 = vld [vmem:[%s18552_s18 + $0x78] sm:$0xf0]  ;;  %v11237_v32 = vld [vmem:[%s18552_s18 + $0x16c] sm:$0xf]  ;;  %v14792_v21 = vadd.f32 %v1081_v44, %v14646_v48  ;;  %v14801_v42 = vadd.f32 %v4323_v60, %v4305_v31  ;;  %v4290_v20 = vpop.f32.mrf.mxu1  ;;  %4714 = vmatpush.bf16.msrb.mxu0 %v8575_v40  ;;  %v1065_v44 = vrot.slane %v14776_v3, 4 }
 0x43a   :  { %v8684_v27 = vld [vmem:[%s18552_s18 + $0x178] sm:$0xf0]  ;;  %4733 = vmatpush.bf16.msrb.mxu1 %v8703_v15  ;;  %v8559_v4 = vor.u32 %v11205_v17, %v8556_v54  ;;  %v11273_v48 = vld [vmem:[%s18552_s18 + $0x28c] sm:$0xf]  ;;  %v1293_v58 = vadd.f32 %v1292_v5, %v14716_v61  ;;  %v14814_v29 = vadd.f32 %v4290_v20, %v4271_v0  ;;  %v18785_v60 = vrot.slane %v14623_v35, 1 }
 0x43b   :  { %v8687_v12 = vor.u32 %v11237_v32, %v8684_v27  ;;  %v8828_v50 = vld [vmem:[%s18552_s18 + $0x298] sm:$0xf0]  ;;  %v11305_v13 = vld [vmem:[%s18552_s18 + $0x38c] sm:$0xf]  ;;  %4751 = vmatpush.bf16.msrb.mxu2 %v8847_v30  ;;  %4629 = vmatmul.bf16.gmra.mxu3 %v13505_v52  ;;  %v1325_v54 = vmul.f32 %v1311_v37, %v11781_v26  ;;  %v14846_v20 = vmul.f32 0.5, %v1433_v14  ;;  %11548 = vrsqrt.f32 %v14766_v23 }
 0x43c   :  { %4770 = vmatpush.bf16.msrb.mxu3 %v8975_v55  ;;  %v8831_v17 = vor.u32 %v11273_v48, %v8828_v50  ;;  %v8956_v40 = vld [vmem:[%s18552_s18 + $0x398] sm:$0xf0]  ;;  %v18784_v15 = vld [vmem:[#allocation26_spill] sm:$0xff]  ;;  %v1077_v31 = vadd.f32 %v18785_v60, %v14623_v35  ;;  %4610 = vmatmul.bf16.gmra.mxu2 %v13503_v47  ;;  %v14835_v35 = vadd.f32 %v1315_v11, %v1314_v59  ;;  %v1083_v48 = vrot.slane %v14792_v21, 1 }
 0x43d   :  { %v1513_v1 = vmul.f32 %v1460_v2, %v18784_v15  ;;  %v8959_v61 = vor.u32 %v11305_v13, %v8956_v40  ;;  %v11201_v5 = vld [vmem:[%s18552_s18 + $0x4c] sm:$0xf]  ;;  %v8540_v30 = vld [vmem:[%s18552_s18 + $0x58] sm:$0xf0]  ;;  %4715 = vmatpush.bf16.msrb.mxu0 %v8559_v4  ;;  %v1060_v13 = vrot.slane %v14795_v19, 2  ;;  %v1294_v40 = vrot.slane %v1293_v58, 2  ;;  %v4326_v14 = vpop.f32.mrf.mxu3 }
 0x43e   :  { %v11233_v55 = vld [vmem:[%s18552_s18 + $0x14c] sm:$0xf]  ;;  %v8668_v32 = vld [vmem:[%s18552_s18 + $0x158] sm:$0xf0]  ;;  %4734 = vmatpush.bf16.msrb.mxu1 %v8687_v12  ;;  %v8543_v59 = vor.u32 %v11201_v5, %v8540_v30  ;;  %v4307_v15 = vpop.f32.mrf.mxu2  ;;  %v18786_v12 = vld [vmem:[#allocation27_spill] sm:$0xff]  ;;  %vm1447_vm8 = vweird.f32 %v14766_v23 }
 0x43f   :  { %v11269_v27 = vld [vmem:[%s18552_s18 + $0x26c] sm:$0xf]  ;;  %v8812_v0 = vld [vmem:[%s18552_s18 + $0x278] sm:$0xf0]  ;;  %v8671_v37 = vor.u32 %v11233_v55, %v8668_v32  ;;  %4752 = vmatpush.bf16.msrb.mxu2 %v8831_v17  ;;  %v14857_v5 = vmul.f32 %v1460_v2, %v18786_v12  ;;  %v14860_v30 = vmul.f32 %v1513_v1, %v12908_v38  ;;  %v1091_v55 = vmul.f32 %v1077_v31, %v11781_v26 }
 0x440   :  { %v11301_v11 = vld [vmem:[%s18552_s18 + $0x36c] sm:$0xf]  ;;  %v8940_v50 = vld [vmem:[%s18552_s18 + $0x378] sm:$0xf0]  ;;  %4771 = vmatpush.bf16.msrb.mxu3 %v8959_v61  ;;  %v8815_v60 = vor.u32 %v11269_v27, %v8812_v0  ;;  %v4308_v32 = vadd.f32 %v4307_v15, %v14733_v25  ;;  %v14874_v61 = vadd.f32 %v1065_v44, %v14776_v3  ;;  %v14877_v1 = vsub.f32 %v18772_v34, %v1325_v54 }
 0x441   :  { %v8943_v4 = vor.u32 %v11301_v11, %v8940_v50  ;;  %v11197_v52 = vld [vmem:[%s18552_s18 + $0x2c] sm:$0xf]  ;;  %v8524_v17 = vld [vmem:[%s18552_s18 + $0x38] sm:$0xf0]  ;;  %v14880_v25 = vsub.f32 %v18773_v7, %v1325_v54  ;;  %v1317_v31 = vrot.slane %v14835_v35, 1  ;;  %v4340_v11 = vpop.f32.mrf.mxu0  ;;  %v4359_v50 = vpop.f32.mrf.mxu1  ;;  %4716 = vmatpush.bf16.msrb.mxu0 %v8543_v59  ;;  %v14899_v15 = vadd.f32 %v1294_v40, %v1293_v58 }
 0x442   :  { %v11229_v2 = vld [vmem:[%s18552_s18 + $0x12c] sm:$0xf]  ;;  %18787 = vst [vmem:[#allocation9_spill] sm:$0xff] %v14877_v1  ;;  %v8652_v27 = vld [vmem:[%s18552_s18 + $0x138] sm:$0xf0]  ;;  %v14887_v0 = vadd.f32 %v4326_v14, %v4308_v32  ;;  %4735 = vmatpush.bf16.msrb.mxu1 %v8671_v37  ;;  %v8527_v3 = vor.u32 %v11197_v52, %v8524_v17  ;;  %v4341_v59 = vadd.f32 %v4340_v11, %v14718_v10  ;;  %v18789_v58 = vsub.f32 1.5, %v14539_v36 }
 0x443   :  { %18788 = vst [vmem:[#allocation10_spill] sm:$0xff] %v14880_v25  ;;  %v8655_v34 = vor.u32 %v11229_v2, %v8652_v27  ;;  %v11265_v7 = vld [vmem:[%s18552_s18 + $0x24c] sm:$0xf]  ;;  %v8796_v44 = vld [vmem:[%s18552_s18 + $0x258] sm:$0xf0]  ;;  %4753 = vmatpush.bf16.msrb.mxu2 %v8815_v60  ;;  %v1084_v10 = vadd.f32 %v1083_v48, %v14792_v21  ;;  %v14916_v60 = vadd.f32 %v1060_v13, %v14795_v19 }
 0x444   :  { %v11297_v54 = vld [vmem:[%s18552_s18 + $0x34c] sm:$0xf]  ;;  %4772 = vmatpush.bf16.msrb.mxu3 %v8943_v4  ;;  %v8799_v52 = vor.u32 %v11265_v7, %v8796_v44  ;;  %v8924_v37 = vld [vmem:[%s18552_s18 + $0x358] sm:$0xf0]  ;;  %v1466_v40 = vmul.f32 %v14432_v43, %v18789_v58  ;;  %v1349_v21 = vmul.f32 %v14877_v1, %v14877_v1  ;;  %v1357_v19 = vmul.f32 %v14880_v25, %v14880_v25 }
 0x445   :  { %v11193_v14 = vld [vmem:[%s18552_s18 + $0xc] sm:$0xf]  ;;  %v8508_v12 = vld [vmem:[%s18552_s18 + $0x18] sm:$0xf0]  ;;  %v8927_v4 = vor.u32 %v11297_v54, %v8924_v37  ;;  %v14932_v48 = vadd.f32 %v4359_v50, %v4341_v59  ;;  %4643 = vmatmul.bf16.vlgmr.msra.gmra.mxu0 %v18747_v28  ;;  %v14945_v11 = vadd.f32 1e-05, %v1091_v55  ;;  %v1318_v54 = vadd.f32 %v1317_v31, %v14835_v35  ;;  %v4328_v58 = vpop.f32.mrf.mxu3 }
 0x446   :  { %v11225_v32 = vld [vmem:[%s18552_s18 + $0x10c] sm:$0xf]  ;;  %v8636_v17 = vld [vmem:[%s18552_s18 + $0x118] sm:$0xf0]  ;;  %v1067_v50 = vrot.slane %v14874_v61, 2  ;;  %4717 = vmatpush.bf16.msrb.mxu0 %v8527_v3  ;;  %4736 = vmatpush.bf16.msrb.mxu1 %v8655_v34  ;;  %v8511_v7 = vor.u32 %v11193_v14, %v8508_v12  ;;  %v1296_v59 = vrot.slane %v14899_v15, 1  ;;  %v4309_v37 = vpop.f32.mrf.mxu2  ;;  %v14956_v3 = vmul.f32 %v14857_v5, %v12908_v38 }
 0x447   :  { %v11261_v36 = vld [vmem:[%s18552_s18 + $0x22c] sm:$0xf]  ;;  %v8780_v13 = vld [vmem:[%s18552_s18 + $0x238] sm:$0xf0]  ;;  %v8639_v44 = vor.u32 %v11225_v32, %v8636_v17  ;;  %4754 = vmatpush.bf16.msrb.mxu2 %v8799_v52  ;;  %v14960_v34 = vadd.f32 %v14860_v30, %v12968_v6  ;;  %v14963_v9 = vsel %vm1469_vm4, %v14432_v43, %v1466_v40  ;;  %v4310_v35 = vadd.f32 %v4309_v37, %v14814_v29 }
 0x448   :  { %4662 = vmatmul.bf16.vlgmr.msra.gmra.mxu1 %v18748_v51  ;;  %v11293_v2 = vld [vmem:[%s18552_s18 + $0x32c] sm:$0xf]  ;;  %v8908_v27 = vld [vmem:[%s18552_s18 + $0x338] sm:$0xf0]  ;;  %4773 = vmatpush.bf16.msrb.mxu3 %v8927_v4  ;;  %v8783_v55 = vor.u32 %v11261_v36, %v8780_v13  ;;  %v1092_v5 = vmul.f32 %v1084_v10, %v11781_v26  ;;  %v1062_v30 = vrot.slane %v14916_v60, 1  ;;  %v14977_v43 = vadd.f32 %v1357_v19, %v1349_v21  ;;  %v14997_v21 = vpop.eup %11548 }
 0x449   :  { %v8911_v25 = vor.u32 %v11293_v2, %v8908_v27  ;;  %18790 = vst [vmem:[#allocation26_spill] sm:$0xff] %v14960_v34  ;;  %v11349_v31 = vld [vmem:[%s18552_s18 + $0x4ec] sm:$0xf]  ;;  %v9132_v52 = vld [vmem:[%s18552_s18 + $0x4f8] sm:$0xf0]  ;;  %11550 = vrsqrt.f32 %v14945_v11  ;;  %v14984_v12 = vadd.f32 %v1067_v50, %v14874_v61  ;;  %v14986_v40 = vadd.f32 %v4328_v58, %v4310_v35  ;;  %v4342_v4 = vpop.f32.mrf.mxu0  ;;  %v4361_v32 = vpop.f32.mrf.mxu1 }
 0x44a   :  { %v11381_v38 = vld [vmem:[%s18552_s18 + $0x5ec] sm:$0xf]  ;;  %v9135_v14 = vor.u32 %v11349_v31, %v9132_v52  ;;  %v9260_v29 = vld [vmem:[%s18552_s18 + $0x5f8] sm:$0xf0]  ;;  %4718 = vmatpush.bf16.msrb.mxu0 %v8511_v7  ;;  %4737 = vmatpush.bf16.msrb.mxu1 %v8639_v44  ;;  %v1326_v19 = vmul.f32 %v1318_v54, %v11781_v26  ;;  %v4343_v13 = vadd.f32 %v4342_v4, %v14801_v42  ;;  %v18791_v54 = vld [vmem:[#allocation15_spill] sm:$0xff]  ;;  %vm1448_vm9 = vweird.f32 %v14997_v21 }
 0x44b   :  { %v9263_v10 = vor.u32 %v11381_v38, %v9260_v29  ;;  %v11257_v17 = vld [vmem:[%s18552_s18 + $0x20c] sm:$0xf]  ;;  %v8764_v36 = vld [vmem:[%s18552_s18 + $0x218] sm:$0xf0]  ;;  %4755 = vmatpush.bf16.msrb.mxu2 %v8783_v55  ;;  %v1297_v44 = vadd.f32 %v1296_v59, %v14899_v15  ;;  %4700 = vmatmul.bf16.vlgmr.msra.gmra.mxu3 %v18756_v8  ;;  %v1442_v4 = vmul.f32 %v14997_v21, %v14766_v23  ;;  %vm1167_vm10 = vweird.f32 %v14945_v11  ;;  %vm1449_vm11 = vmor %vm1447_vm8, %vm1448_vm9 }
 0x44c   :  { %v11289_v61 = vld [vmem:[%s18552_s18 + $0x30c] sm:$0xf]  ;;  %4774 = vmatpush.bf16.msrb.mxu3 %v8911_v25  ;;  %v8767_v2 = vor.u32 %v11257_v17, %v8764_v36  ;;  %v8892_v27 = vld [vmem:[%s18552_s18 + $0x318] sm:$0xf0]  ;;  %4681 = vmatmul.bf16.vlgmr.msra.gmra.mxu2 %v13665_v41  ;;  %v15026_v59 = vadd.f32 %v4361_v32, %v4343_v13  ;;  %v1063_v13 = vadd.f32 %v1062_v30, %v14916_v60  ;;  %v15071_v30 = vadd.f32 1e-05, %v1092_v5 }
 0x44d   :  { %v11345_v50 = vld [vmem:[%s18552_s18 + $0x4cc] sm:$0xf]  ;;  %v9116_v7 = vld [vmem:[%s18552_s18 + $0x4d8] sm:$0xf0]  ;;  %v8895_v25 = vor.u32 %v11289_v61, %v8892_v27  ;;  %v15049_v61 = vperm.slane %v14676_v24, 7  ;;  %v1402_v27 = vrot.slane %v14977_v43, 4 }
 0x44e   :  { %v18792_v37 = vld [vmem:[#allocation16_spill] sm:$0xff]  ;;  %v11377_v58 = vld [vmem:[%s18552_s18 + $0x5cc] sm:$0xf]  ;;  %4787 = vmatpush.bf16.msra.mxu0 %v9135_v14  ;;  %4806 = vmatpush.bf16.msra.mxu1 %v9263_v10  ;;  %v9119_v35 = vor.u32 %v11345_v50, %v9116_v7  ;;  %v4378_v50 = vpop.f32.mrf.mxu2  ;;  %v4397_v7 = vpop.f32.mrf.mxu3  ;;  %11552 = vrsqrt.f32 %v15071_v30  ;;  %vm1177_vm2 = vweird.f32 %v15071_v30 }
 0x44f   :  { %v15013_v42 = vadd.f32 %v18792_v37, %v18791_v54  ;;  %v9244_v55 = vld [vmem:[%s18552_s18 + $0x5d8] sm:$0xf0]  ;;  %v11413_v15 = vld [vmem:[%s18552_s18 + $0x6ec] sm:$0xf]  ;;  %v15042_v14 = vld [vmem:[%s18696_s7] sm:$0xff]  ;;  %4756 = vmatpush.bf16.msrb.mxu2 %v8767_v2 }
 0x450   :  { %v9247_v31 = vor.u32 %v11377_v58, %v9244_v55  ;;  %v9388_v52 = vld [vmem:[%s18552_s18 + $0x6f8] sm:$0xf0]  ;;  %v11445_v38 = vld [vmem:[%s18552_s18 + $0x7ec] sm:$0xf]  ;;  %v15045_v32 = vperm.slane %v15042_v14, 6  ;;  %4775 = vmatpush.bf16.msrb.mxu3 %v8895_v25  ;;  %v15053_v58 = vpop.eup %11550  ;;  %v15056_v55 = vsub.f32 %v18776_v62, %v1326_v19  ;;  %v1443_v25 = vmul.f32 %v14997_v21, %v1442_v4 }
 0x451   :  { %v9516_v29 = vld [vmem:[%s18552_s18 + $0x7f8] sm:$0xf0]  ;;  %v9391_v10 = vor.u32 %v11413_v15, %v9388_v52  ;;  %v15059_v15 = vsub.f32 %v18777_v53, %v1326_v19  ;;  %v4379_v52 = vadd.f32 %v4378_v50, %v14932_v48  ;;  %v11341_v24 = vld [vmem:[%s18552_s18 + $0x4ac] sm:$0xf]  ;;  %v1069_v53 = vrot.slane %v14984_v12, 1 }
 0x452   :  { %v9519_v17 = vor.u32 %v11445_v38, %v9516_v29  ;;  %18793 = vst [vmem:[#allocation27_spill] sm:$0xff] %v15056_v55  ;;  %v9100_v60 = vld [vmem:[%s18552_s18 + $0x4b8] sm:$0xf0]  ;;  %v11373_v62 = vld [vmem:[%s18552_s18 + $0x5ac] sm:$0xf]  ;;  %v1323_v48 = vmul.f32 %v1297_v44, %v11781_v26  ;;  %v1299_v19 = vrot.slane %v15013_v42, 4  ;;  %4788 = vmatpush.bf16.msra.mxu0 %v9119_v35  ;;  %4807 = vmatpush.bf16.msra.mxu1 %v9247_v31  ;;  %v4345_v29 = vpop.f32.mrf.mxu0  ;;  %vm1168_vm12 = vweird.f32 %v15053_v58 }
 0x453   :  { %18794 = vst [vmem:[#allocation15_spill] sm:$0xff] %v15059_v15  ;;  %4825 = vmatpush.bf16.msra.mxu2 %v9391_v10  ;;  %v9228_v2 = vld [vmem:[%s18552_s18 + $0x5b8] sm:$0xf0]  ;;  %v15080_v38 = vadd.f32 %v4397_v7, %v4379_v52  ;;  %v4364_v10 = vpop.f32.mrf.mxu1  ;;  %v9103_v5 = vor.u32 %v11341_v24, %v9100_v60  ;;  %v11409_v44 = vld [vmem:[%s18552_s18 + $0x6cc] sm:$0xf]  ;;  %v1162_v4 = vmul.f32 %v15053_v58, %v14945_v11  ;;  %vm1169_vm13 = vmor %vm1167_vm10, %vm1168_vm12 }
 0x454   :  { %4844 = vmatpush.bf16.msra.mxu3 %v9519_v17  ;;  %v9231_v17 = vor.u32 %v11373_v62, %v9228_v2  ;;  %v9372_v35 = vld [vmem:[%s18552_s18 + $0x6d8] sm:$0xf0]  ;;  %v11441_v31 = vld [vmem:[%s18552_s18 + $0x7cc] sm:$0xf]  ;;  %v1089_v50 = vmul.f32 %v1063_v13, %v11781_v26  ;;  %v4346_v7 = vadd.f32 %v4345_v29, %v14887_v0  ;;  %v15105_v2 = vadd.f32 %v1402_v27, %v14977_v43 }
 0x455   :  { %18795 = vst [vmem:[#allocation16_spill] sm:$0xff] %v15080_v38  ;;  %v9375_v52 = vor.u32 %v11409_v44, %v9372_v35  ;;  %v9500_v24 = vld [vmem:[%s18552_s18 + $0x7d8] sm:$0xf0]  ;;  %v11337_v60 = vld [vmem:[%s18552_s18 + $0x48c] sm:$0xf]  ;;  %v1350_v13 = vmul.f32 %v15056_v55, %v15056_v55  ;;  %v1358_v0 = vmul.f32 %v15059_v15, %v15059_v15  ;;  %v15121_v27 = vsub.f32 %v18781_v63, %v1323_v48 }
 0x456   :  { %v9084_v62 = vld [vmem:[%s18552_s18 + $0x498] sm:$0xf0]  ;;  %v9503_v29 = vor.u32 %v11441_v31, %v9500_v24  ;;  %v11369_v44 = vld [vmem:[%s18552_s18 + $0x58c] sm:$0xf]  ;;  %v15124_v36 = vadd.f32 %v1299_v19, %v15013_v42  ;;  %v15126_v38 = vadd.f32 %v4364_v10, %v4346_v7  ;;  %4648 = vmatmul.bf16.gmra.mxu0 %v13770_v57  ;;  %v15139_v42 = vmul.f32 0.5, %v1443_v25  ;;  %4808 = vmatpush.bf16.msra.mxu1 %v9231_v17  ;;  %v4380_v55 = vpop.f32.mrf.mxu2  ;;  %v4399_v1 = vpop.f32.mrf.mxu3 }
 0x457   :  { %v9212_v35 = vld [vmem:[%s18552_s18 + $0x598] sm:$0xf0]  ;;  %v11405_v43 = vld [vmem:[%s18552_s18 + $0x6ac] sm:$0xf]  ;;  %v15142_v19 = vperm.slane %v15042_v14, 7  ;;  %4789 = vmatpush.bf16.msra.mxu0 %v9103_v5  ;;  %v9087_v10 = vor.u32 %v11337_v60, %v9084_v62  ;;  %v15147_v34 = vsub.f32 %v18782_v18, %v1323_v48  ;;  %4826 = vmatpush.bf16.msra.mxu2 %v9375_v52  ;;  %v1163_v25 = vmul.f32 %v15053_v58, %v1162_v4 }
 0x458   :  { %4667 = vmatmul.bf16.gmra.mxu1 %v18767_v16  ;;  %v9356_v31 = vld [vmem:[%s18552_s18 + $0x6b8] sm:$0xf0]  ;;  %v11437_v24 = vld [vmem:[%s18552_s18 + $0x7ac] sm:$0xf]  ;;  %v9215_v7 = vor.u32 %v11369_v44, %v9212_v35  ;;  %v15144_v15 = vadd.f32 1e-05, %v1089_v50  ;;  %4845 = vmatpush.bf16.msra.mxu3 %v9503_v29  ;;  %v1070_v5 = vadd.f32 %v1069_v53, %v14984_v12  ;;  %v4381_v17 = vadd.f32 %v4380_v55, %v15026_v59 }
 0x459   :  { %v9484_v63 = vld [vmem:[%s18552_s18 + $0x7b8] sm:$0xf0]  ;;  %18796 = vst [vmem:[#allocation56_spill] sm:$0xff] %v15142_v19  ;;  %v9359_v16 = vor.u32 %v11405_v43, %v9356_v31  ;;  %v11333_v50 = vld [vmem:[%s18552_s18 + $0x46c] sm:$0xf]  ;;  %v1404_v4 = vrot.slane %v15105_v2, 2  ;;  %v15163_v52 = vadd.f32 %v1358_v0, %v1350_v13  ;;  %v1347_v12 = vmul.f32 %v15121_v27, %v15121_v27 }
 0x45a   :  { %v9487_v57 = vor.u32 %v11437_v24, %v9484_v63  ;;  %v9068_v18 = vld [vmem:[%s18552_s18 + $0x478] sm:$0xf0]  ;;  %v11365_v48 = vld [vmem:[%s18552_s18 + $0x56c] sm:$0xf]  ;;  %v1301_v59 = vrot.slane %v15124_v36, 2  ;;  %v15171_v53 = vadd.f32 %v4399_v1, %v4381_v17  ;;  %v4347_v60 = vpop.f32.mrf.mxu0  ;;  %4809 = vmatpush.bf16.msra.mxu1 %v9215_v7  ;;  %v1355_v1 = vmul.f32 %v15147_v34, %v15147_v34  ;;  %v18798_v7 = vld [vmem:[#allocation39_spill] sm:$0xff] }
 0x45b   :  { %v9196_v55 = vld [vmem:[%s18552_s18 + $0x578] sm:$0xf0]  ;;  %v4366_v62 = vpop.f32.mrf.mxu1  ;;  %4790 = vmatpush.bf16.msra.mxu0 %v9087_v10  ;;  %v9071_v29 = vor.u32 %v11333_v50, %v9068_v18  ;;  %v11401_v13 = vld [vmem:[%s18552_s18 + $0x68c] sm:$0xf]  ;;  %v4348_v43 = vadd.f32 %v4347_v60, %v14986_v40  ;;  %4827 = vmatpush.bf16.msra.mxu2 %v9359_v16  ;;  %v1514_v17 = vmul.f32 %v14963_v9, %v18798_v7  ;;  %v18799_v40 = vsub.f32 1.5, %v14846_v20 }
 0x45c   :  { %18797 = vst [vmem:[#allocation57_spill] sm:$0xff] %v15171_v53  ;;  %v9199_v44 = vor.u32 %v11365_v48, %v9196_v55  ;;  %v9340_v0 = vld [vmem:[%s18552_s18 + $0x698] sm:$0xf0]  ;;  %v11433_v35 = vld [vmem:[%s18552_s18 + $0x78c] sm:$0xf]  ;;  %4846 = vmatpush.bf16.msra.mxu3 %v9487_v57  ;;  %4686 = vmatmul.bf16.gmra.mxu2 %v13841_v56  ;;  %v1090_v48 = vmul.f32 %v1070_v5, %v11781_v26  ;;  %v15228_v5 = vpop.eup %11552  ;;  %11554 = vrsqrt.f32 %v15144_v15  ;;  %vm1147_vm1 = vweird.f32 %v15144_v15 }
 0x45d   :  { %v9343_v31 = vor.u32 %v11401_v13, %v9340_v0  ;;  %v9468_v24 = vld [vmem:[%s18552_s18 + $0x798] sm:$0xf0]  ;;  %v11329_v63 = vld [vmem:[%s18552_s18 + $0x44c] sm:$0xf]  ;;  %v1436_v57 = vmul.f32 %v14705_v46, %v18799_v40  ;;  %4705 = vmatmul.bf16.gmra.mxu3 %v13843_v22  ;;  %v15214_v55 = vadd.f32 %v1404_v4, %v15105_v2  ;;  %v1302_v60 = vadd.f32 %v1301_v59, %v15124_v36 }
 0x45e   :  { %v9052_v10 = vld [vmem:[%s18552_s18 + $0x458] sm:$0xf0]  ;;  %v9471_v16 = vor.u32 %v11433_v35, %v9468_v24  ;;  %v11361_v50 = vld [vmem:[%s18552_s18 + $0x54c] sm:$0xf]  ;;  %v15217_v13 = vadd.f32 %v4366_v62, %v4348_v43  ;;  %v15230_v2 = vmul.f32 0.5, %v1163_v25  ;;  %4810 = vmatpush.bf16.msra.mxu1 %v9199_v44  ;;  %v1409_v59 = vrot.slane %v15163_v52, 4  ;;  %v4383_v43 = vpop.f32.mrf.mxu2  ;;  %v4402_v7 = vpop.f32.mrf.mxu3 }
 0x45f   :  { %v9180_v18 = vld [vmem:[%s18552_s18 + $0x558] sm:$0xf0]  ;;  %v11397_v20 = vld [vmem:[%s18552_s18 + $0x66c] sm:$0xf]  ;;  %4791 = vmatpush.bf16.msra.mxu0 %v9071_v29  ;;  %v9055_v36 = vor.u32 %v11329_v63, %v9052_v10  ;;  %v1387_v62 = vadd.f32 %v1355_v1, %v1347_v12  ;;  %4828 = vmatpush.bf16.msra.mxu2 %v9343_v31  ;;  %v1530_v44 = vmul.f32 %v1514_v17, %v12911_v39  ;;  %vm1178_vm14 = vweird.f32 %v15228_v5 }
 0x460   :  { %v9324_v0 = vld [vmem:[%s18552_s18 + $0x678] sm:$0xf0]  ;;  %v11429_v35 = vld [vmem:[%s18552_s18 + $0x76c] sm:$0xf]  ;;  %v9183_v4 = vor.u32 %v11361_v50, %v9180_v18  ;;  %4847 = vmatpush.bf16.msra.mxu3 %v9471_v16  ;;  %v1440_v63 = vsel %vm1439_vm7, %v14705_v46, %v1436_v57  ;;  %v4384_v10 = vadd.f32 %v4383_v43, %v15126_v38  ;;  %v1406_v46 = vrot.slane %v15214_v55, 1  ;;  %vm15559_vm15 = vmor %vm1177_vm2, %vm1178_vm14 }
 0x461   :  { %v9452_v24 = vld [vmem:[%s18552_s18 + $0x778] sm:$0xf0]  ;;  %v9327_v25 = vor.u32 %v11397_v20, %v9324_v0  ;;  %v18800_v53 = vld [vmem:[#allocation42_spill] sm:$0xff]  ;;  %v1303_v38 = vrot.slane %v1302_v60, 1 }
 0x462   :  { %v9455_v40 = vor.u32 %v11429_v35, %v9452_v24  ;;  %v1522_v29 = vmul.f32 %v14963_v9, %v18800_v53  ;;  %v11325_v49 = vld [vmem:[%s18552_s18 + $0x42c] sm:$0xf]  ;;  %v9036_v12 = vld [vmem:[%s18552_s18 + $0x438] sm:$0xf0]  ;;  %v1172_v9 = vmul.f32 %v15228_v5, %v15071_v30  ;;  %v15254_v53 = vadd.f32 1e-05, %v1090_v48  ;;  %v4416_v57 = vpop.f32.mrf.mxu0  ;;  %4811 = vmatpush.bf16.msra.mxu1 %v9183_v4 }
 0x463   :  { %v11357_v1 = vld [vmem:[%s18552_s18 + $0x52c] sm:$0xf]  ;;  %v9164_v31 = vld [vmem:[%s18552_s18 + $0x538] sm:$0xf0]  ;;  %v15260_v17 = vadd.f32 %v4402_v7, %v4384_v10  ;;  %v4435_v16 = vpop.f32.mrf.mxu1  ;;  %4792 = vmatpush.bf16.msra.mxu0 %v9055_v36  ;;  %v9039_v50 = vor.u32 %v11325_v49, %v9036_v12  ;;  %v1410_v35 = vadd.f32 %v1409_v59, %v15163_v52  ;;  %v1388_v24 = vrot.slane %v1387_v62, 4  ;;  %4829 = vmatpush.bf16.msra.mxu2 %v9327_v25  ;;  %v15277_v7 = vpop.eup %11554 }
 0x464   :  { %v9167_v18 = vor.u32 %v11357_v1, %v9164_v31  ;;  %v11393_v20 = vld [vmem:[%s18552_s18 + $0x64c] sm:$0xf]  ;;  %v9308_v48 = vld [vmem:[%s18552_s18 + $0x658] sm:$0xf0]  ;;  %v15272_v43 = vadd.f32 %v4435_v16, %v4416_v57  ;;  %4848 = vmatpush.bf16.msra.mxu3 %v9455_v40  ;;  %v15281_v10 = vadd.f32 %v14956_v3, %v12968_v6  ;;  %v15284_v49 = vmul.f32 %v1522_v29, %v12911_v39  ;;  %v9970_v30 = vld [vmem:[%s18551_s17 + $0x380] sm:$0xf] }
 0x465   :  { %18801 = vst [vmem:[#allocation39_spill] sm:$0xff] %v15260_v17  ;;  %v11425_v0 = vld [vmem:[%s18552_s18 + $0x74c] sm:$0xf]  ;;  %v9311_v36 = vor.u32 %v11393_v20, %v9308_v48  ;;  %v9436_v4 = vld [vmem:[%s18552_s18 + $0x758] sm:$0xf0]  ;;  %v15287_v52 = vadd.f32 %v1530_v44, %v12971_v33  ;;  %v1173_v39 = vmul.f32 %v15228_v5, %v1172_v9  ;;  %v1304_v29 = vadd.f32 %v1303_v38, %v1302_v60  ;;  %v18803_v44 = vld [vmem:[#allocation33_spill] sm:$0xff] }
 0x466   :  { %v9439_v59 = vor.u32 %v11425_v0, %v9436_v4  ;;  %v11321_v25 = vld [vmem:[%s18552_s18 + $0x40c] sm:$0xf]  ;;  %v9020_v40 = vld [vmem:[%s18552_s18 + $0x418] sm:$0xf0]  ;;  %4719 = vmatmul.bf16.vlgmr.msrb.gmra.mxu0 %v13294_v45  ;;  %v1445_v16 = vsub.f32 1.5, %v15139_v42  ;;  %v1165_v60 = vsub.f32 1.5, %v15230_v2  ;;  %4812 = vmatpush.bf16.msra.mxu1 %v9167_v18  ;;  %v15321_v0 = vadd.f32 %v1388_v24, %v1387_v62  ;;  %v4385_v4 = vpop.f32.mrf.mxu2 }
 0x467   :  { %v11353_v6 = vld [vmem:[%s18552_s18 + $0x50c] sm:$0xf]  ;;  %v9148_v1 = vld [vmem:[%s18552_s18 + $0x518] sm:$0xf0]  ;;  %4793 = vmatpush.bf16.msra.mxu0 %v9039_v50  ;;  %v9023_v45 = vor.u32 %v11321_v25, %v9020_v40  ;;  %v1411_v48 = vrot.slane %v1410_v35, 2  ;;  %4830 = vmatpush.bf16.msra.mxu2 %v9311_v36  ;;  %v18804_v18 = vld [vmem:[#allocation47_spill] sm:$0xff]  ;;  %v1142_v40 = vmul.f32 %v15277_v7, %v15144_v15  ;;  %11556 = vrsqrt.f32 %v15254_v53 }
 0x468   :  { %v18802_v3 = vld [vmem:[#allocation46_spill] sm:$0xff]  ;;  %4738 = vmatmul.bf16.vlgmr.msrb.gmra.mxu1 %v18803_v44  ;;  %v9292_v57 = vld [vmem:[%s18552_s18 + $0x638] sm:$0xf0]  ;;  %v9151_v9 = vor.u32 %v11353_v6, %v9148_v1  ;;  %4849 = vmatpush.bf16.msra.mxu3 %v9439_v59  ;;  %v1519_v25 = vmul.f32 %v1440_v63, %v18804_v18  ;;  %v1407_v6 = vadd.f32 %v1406_v46, %v15214_v55  ;;  %v9634_v62 = vld [vmem:[%s18551_s17 + $0xe0] sm:$0xf]  ;;  %vm1148_vm0 = vweird.f32 %v15277_v7 }
 0x469   :  { %v15299_v12 = vmul.f32 %v1440_v63, %v18802_v3  ;;  %v11389_v31 = vld [vmem:[%s18552_s18 + $0x62c] sm:$0xf]  ;;  %v9420_v20 = vld [vmem:[%s18552_s18 + $0x738] sm:$0xf0]  ;;  %v4404_v3 = vpop.f32.mrf.mxu3  ;;  %v4386_v44 = vadd.f32 %v4385_v4, %v15217_v13  ;;  %v10966_v24 = vld [vmem:[%s18551_s17 + $0xec] sm:$0xf0]  ;;  %v1324_v55 = vmul.f32 %v1304_v29, %v11781_v26  ;;  %v1446_v59 = vmul.f32 %v14997_v21, %v1445_v16 }
 0x46a   :  { %v11421_v38 = vld [vmem:[%s18552_s18 + $0x72c] sm:$0xf]  ;;  %v9295_v42 = vor.u32 %v11389_v31, %v9292_v57  ;;  %v9762_v36 = vld [vmem:[%s18551_s17 + $0x1e0] sm:$0xf]  ;;  %v15337_v63 = vmul.f32 0.5, %v1173_v39  ;;  %v9635_v46 = vor.u32 %v10966_v24, %v9634_v62  ;;  %v4418_v31 = vpop.f32.mrf.mxu0  ;;  %4813 = vmatpush.bf16.msra.mxu1 %v9151_v9  ;;  %v1390_v4 = vrot.slane %v15321_v0, 2  ;;  %vm1149_vm3 = vmor %vm1147_vm1, %vm1148_vm0 }
 0x46b   :  { %v9423_v50 = vor.u32 %v11421_v38, %v9420_v20  ;;  %v10998_v13 = vld [vmem:[%s18551_s17 + $0x1ec] sm:$0xf0]  ;;  %v15346_v1 = vadd.f32 %v4404_v3, %v4386_v44  ;;  %v4437_v57 = vpop.f32.mrf.mxu1  ;;  %4794 = vmatpush.bf16.msra.mxu0 %v9023_v45  ;;  %v11385_v29 = vld [vmem:[%s18552_s18 + $0x60c] sm:$0xf]  ;;  %v9276_v38 = vld [vmem:[%s18552_s18 + $0x618] sm:$0xf0]  ;;  %v15357_v20 = vadd.f32 %v1411_v48, %v1410_v35  ;;  %v1143_v18 = vmul.f32 %v15277_v7, %v1142_v40 }
 0x46c   :  { %v9763_v39 = vor.u32 %v10998_v13, %v9762_v36  ;;  %v11417_v16 = vld [vmem:[%s18552_s18 + $0x70c] sm:$0xf]  ;;  %v15360_v3 = vadd.f32 %v4437_v57, %v4418_v31  ;;  %4831 = vmatpush.bf16.msra.mxu2 %v9295_v42  ;;  %v9279_v45 = vor.u32 %v11385_v29, %v9276_v38  ;;  %v9404_v9 = vld [vmem:[%s18552_s18 + $0x718] sm:$0xf0]  ;;  %v1421_v44 = vmul.f32 %v1407_v6, %v11781_v26  ;;  %v18807_v35 = vld [vmem:[#allocation35_spill] sm:$0xff] }
 0x46d   :  { %18805 = vst [vmem:[#allocation42_spill] sm:$0xff] %v15346_v1  ;;  %4850 = vmatpush.bf16.msra.mxu3 %v9423_v50  ;;  %v18806_v62 = vld [vmem:[#allocation34_spill] sm:$0xff]  ;;  %v9407_v48 = vor.u32 %v11417_v16, %v9404_v9  ;;  %v9618_v42 = vld [vmem:[%s18551_s17 + $0xc0] sm:$0xf]  ;;  %v15381_v40 = vsub.f32 %v18791_v54, %v1324_v55  ;;  %v15384_v6 = vsub.f32 %v18792_v37, %v1324_v55  ;;  %v15404_v16 = vpop.eup %11556  ;;  %v15432_v2 = vmul.f32 0.5, %v1143_v18 }
 0x46e   :  { %4757 = vmatmul.bf16.vlgmr.msrb.gmra.mxu2 %v18806_v62  ;;  %4776 = vmatmul.bf16.vlgmr.msrb.gmra.mxu3 %v18807_v35  ;;  %v10962_v50 = vld [vmem:[%s18551_s17 + $0xcc] sm:$0xf0]  ;;  %v9746_v24 = vld [vmem:[%s18551_s17 + $0x1c0] sm:$0xf]  ;;  %v15413_v9 = vadd.f32 %v1390_v4, %v15321_v0  ;;  %v4454_v62 = vpop.f32.mrf.mxu2  ;;  %v1166_v23 = vmul.f32 %v15053_v58, %v1165_v60  ;;  %v15434_v60 = vadd.f32 1e-05, %v1421_v44  ;;  %vm1158_vm4 = vweird.f32 %v15404_v16 }
 0x46f   :  { %18808 = vst [vmem:[#allocation46_spill] sm:$0xff] %v15384_v6  ;;  %6143 = vmatpush.bf16.msrb.mxu0 %v9635_v46  ;;  %6162 = vmatpush.bf16.msrb.mxu1 %v9763_v39  ;;  %v9619_v36 = vor.u32 %v10962_v50, %v9618_v42  ;;  %v10994_v13 = vld [vmem:[%s18551_s17 + $0x1cc] sm:$0xf0]  ;;  %v9890_v31 = vld [vmem:[%s18551_s17 + $0x2e0] sm:$0xf]  ;;  %v15416_v50 = vsel %vm1449_vm11, %v14997_v21, %v1446_v59  ;;  %vm1157_vm5 = vweird.f32 %v15254_v53 }
 0x470   :  { %v11030_v57 = vld [vmem:[%s18551_s17 + $0x2ec] sm:$0xf0]  ;;  %v18809_v54 = vld [vmem:[#allocation25_spill] sm:$0xff]  ;;  %v9747_v55 = vor.u32 %v10994_v13, %v9746_v24  ;;  %4832 = vmatpush.bf16.msra.mxu2 %v9279_v45  ;;  %v4455_v24 = vadd.f32 %v4454_v62, %v15272_v43  ;;  %v1348_v43 = vmul.f32 %v15381_v40, %v15381_v40  ;;  %v1356_v59 = vmul.f32 %v15384_v6, %v15384_v6  ;;  %vm1159_vm6 = vmor %vm1157_vm5, %vm1158_vm4 }
 0x471   :  { %v1527_v29 = vmul.f32 %v15299_v12, %v18809_v54  ;;  %v1535_v37 = vmul.f32 %v1519_v25, %v18809_v54  ;;  %v9891_v46 = vor.u32 %v11030_v57, %v9890_v31  ;;  %v10018_v39 = vld [vmem:[%s18551_s17 + $0x3e0] sm:$0xf]  ;;  %v11062_v38 = vld [vmem:[%s18551_s17 + $0x3ec] sm:$0xf0]  ;;  %v1413_v25 = vrot.slane %v15357_v20, 1  ;;  %v4473_v35 = vpop.f32.mrf.mxu3  ;;  %4851 = vmatpush.bf16.msra.mxu3 %v9407_v48 }
 0x472   :  { %v10019_v42 = vor.u32 %v11062_v38, %v10018_v39  ;;  %v9602_v0 = vld [vmem:[%s18551_s17 + $0xa0] sm:$0xf]  ;;  %v10958_v4 = vld [vmem:[%s18551_s17 + $0xac] sm:$0xf0]  ;;  %v1152_v48 = vmul.f32 %v15404_v16, %v15254_v53  ;;  %v15445_v13 = vadd.f32 %v4473_v35, %v4455_v24  ;;  %v4421_v18 = vpop.f32.mrf.mxu0  ;;  %v1392_v39 = vrot.slane %v15413_v9, 1 }
 0x473   :  { %v9730_v21 = vld [vmem:[%s18551_s17 + $0x1a0] sm:$0xf]  ;;  %6144 = vmatpush.bf16.msrb.mxu0 %v9619_v36  ;;  %6163 = vmatpush.bf16.msrb.mxu1 %v9747_v55  ;;  %v10990_v45 = vld [vmem:[%s18551_s17 + $0x1ac] sm:$0xf0]  ;;  %v4440_v44 = vpop.f32.mrf.mxu1  ;;  %v9603_v31 = vor.u32 %v10958_v4, %v9602_v0  ;;  %11558 = vrsqrt.f32 %v15434_v60  ;;  %vm1497_vm8 = vweird.f32 %v15434_v60 }
 0x474   :  { %6181 = vmatpush.bf16.msrb.mxu2 %v9891_v46  ;;  %v9731_v57 = vor.u32 %v10990_v45, %v9730_v21  ;;  %v9874_v54 = vld [vmem:[%s18551_s17 + $0x2c0] sm:$0xf]  ;;  %v11026_v36 = vld [vmem:[%s18551_s17 + $0x2cc] sm:$0xf0]  ;;  %v1414_v46 = vadd.f32 %v1413_v25, %v15357_v20  ;;  %v15462_v38 = vadd.f32 %v4440_v44, %v4421_v18  ;;  %v15491_v21 = vadd.f32 %v1356_v59, %v1348_v43 }
 0x475   :  { %6200 = vmatpush.bf16.msrb.mxu3 %v10019_v42  ;;  %v10002_v55 = vld [vmem:[%s18551_s17 + $0x3c0] sm:$0xf]  ;;  %v9875_v62 = vor.u32 %v11026_v36, %v9874_v54  ;;  %v11058_v35 = vld [vmem:[%s18551_s17 + $0x3cc] sm:$0xf0]  ;;  %v15469_v42 = vadd.f32 %v15284_v49, %v12971_v33  ;;  %v1153_v43 = vmul.f32 %v15404_v16, %v1152_v48 }
 0x476   :  { %v18810_v24 = vld [vmem:[#allocation28_spill] sm:$0xff]  ;;  %v10003_v20 = vor.u32 %v11058_v35, %v10002_v55  ;;  %v10954_v4 = vld [vmem:[%s18551_s17 + $0x8c] sm:$0xf0]  ;;  %v18813_v18 = vld [vmem:[#allocation37_spill] sm:$0xff] }
 0x477   :  { %v15472_v0 = vadd.f32 %v1527_v29, %v18810_v24  ;;  %v15475_v11 = vadd.f32 %v1535_v37, %v18810_v24  ;;  %v9586_v25 = vld [vmem:[%s18551_s17 + $0x80] sm:$0xf]  ;;  %v18811_v49 = vld [vmem:[#allocation11_spill] sm:$0xff]  ;;  %v1170_v37 = vsel %vm1169_vm13, %v15053_v58, %v1166_v23  ;;  %6145 = vmatpush.bf16.msrb.mxu0 %v9603_v31  ;;  %6164 = vmatpush.bf16.msrb.mxu1 %v9731_v57 }
 0x478   :  { %v9714_v33 = vld [vmem:[%s18551_s17 + $0x180] sm:$0xf]  ;;  %v15488_v29 = vmul.f32 %v15416_v50, %v18811_v49  ;;  %4743 = vmatmul.bf16.gmra.mxu1 %v18813_v18  ;;  %v10986_v44 = vld [vmem:[%s18551_s17 + $0x18c] sm:$0xf0]  ;;  %v9587_v59 = vor.u32 %v10954_v4, %v9586_v25  ;;  %v15520_v49 = vperm.slane %v15042_v14, 4  ;;  %v4456_v18 = vpop.f32.mrf.mxu2  ;;  %6182 = vmatpush.bf16.msrb.mxu2 %v9875_v62 }
 0x479   :  { %v18812_v45 = vld [vmem:[#allocation36_spill] sm:$0xff]  ;;  %v11022_v36 = vld [vmem:[%s18551_s17 + $0x2ac] sm:$0xf0]  ;;  %v9715_v55 = vor.u32 %v10986_v44, %v9714_v33  ;;  %v4475_v12 = vpop.f32.mrf.mxu3  ;;  %6201 = vmatpush.bf16.msrb.mxu3 %v10003_v20  ;;  %v4457_v4 = vadd.f32 %v4456_v18, %v15360_v3  ;;  %v18815_v20 = vsub.f32 1.5, %v15337_v63  ;;  %v1393_v3 = vadd.f32 %v1392_v39, %v15413_v9 }
 0x47a   :  { %4724 = vmatmul.bf16.gmra.mxu0 %v18812_v45  ;;  %v9858_v54 = vld [vmem:[%s18551_s17 + $0x2a0] sm:$0xf]  ;;  %v11054_v24 = vld [vmem:[%s18551_s17 + $0x3ac] sm:$0xf0]  ;;  %v1422_v45 = vmul.f32 %v1414_v46, %v11781_v26  ;;  %v4423_v18 = vpop.f32.mrf.mxu0  ;;  %v15563_v39 = vmul.f32 0.5, %v1153_v43 }
 0x47b   :  { %v15507_v58 = vld [vmem:[%s18694_s30] sm:$0xff]  ;;  %v9859_v48 = vor.u32 %v11022_v36, %v9858_v54  ;;  %v18814_v57 = vld [vmem:[#allocation19_spill] sm:$0xff]  ;;  %v1176_v44 = vmul.f32 %v15228_v5, %v18815_v20  ;;  %v1145_v54 = vsub.f32 1.5, %v15432_v2  ;;  %v1395_v36 = vrot.slane %v15491_v21, 4  ;;  %6146 = vmatpush.bf16.msrb.mxu0 %v9587_v59  ;;  %6165 = vmatpush.bf16.msrb.mxu1 %v9715_v55  ;;  %v18820_v43 = vld [vmem:[#allocation38_spill] sm:$0xff] }
 0x47c   :  { %v15510_v23 = vperm.slane %v15507_v58, 4  ;;  %v9986_v35 = vld [vmem:[%s18551_s17 + $0x3a0] sm:$0xf]  ;;  %v1187_v25 = vmul.f32 %v1170_v37, %v18814_v57  ;;  %v10950_v46 = vld [vmem:[%s18551_s17 + $0x6c] sm:$0xf0]  ;;  %v4442_v57 = vpop.f32.mrf.mxu1  ;;  %v1155_v15 = vsub.f32 1.5, %v15563_v39 }
 0x47d   :  { %v9987_v31 = vor.u32 %v11054_v24, %v9986_v35  ;;  %v9570_v33 = vld [vmem:[%s18551_s17 + $0x60] sm:$0xf]  ;;  %v10982_v35 = vld [vmem:[%s18551_s17 + $0x16c] sm:$0xf0]  ;;  %v15546_v24 = vadd.f32 %v4475_v12, %v4457_v4  ;;  %v15565_v59 = vadd.f32 1e-05, %v1422_v45  ;;  %v15567_v55 = vadd.f32 %v4442_v57, %v4423_v18  ;;  %6183 = vmatpush.bf16.msrb.mxu2 %v9859_v48 }
 0x47e   :  { %v9698_v62 = vld [vmem:[%s18551_s17 + $0x160] sm:$0xf]  ;;  %v9571_v63 = vor.u32 %v10950_v46, %v9570_v33  ;;  %v11018_v2 = vld [vmem:[%s18551_s17 + $0x28c] sm:$0xf0]  ;;  %4762 = vmatmul.bf16.gmra.mxu2 %v13503_v47  ;;  %4781 = vmatmul.bf16.gmra.mxu3 %v18820_v43  ;;  %v1146_v47 = vmul.f32 %v15277_v7, %v1145_v54  ;;  %v1419_v18 = vmul.f32 %v1393_v3, %v11781_v26 }
 0x47f   :  { %v9699_v20 = vor.u32 %v10982_v35, %v9698_v62  ;;  %v9842_v9 = vld [vmem:[%s18551_s17 + $0x280] sm:$0xf]  ;;  %6202 = vmatpush.bf16.msrb.mxu3 %v9987_v31  ;;  %v11050_v33 = vld [vmem:[%s18551_s17 + $0x38c] sm:$0xf0]  ;;  %v1396_v57 = vadd.f32 %v1395_v36, %v15491_v21  ;;  %11560 = vrsqrt.f32 %v15565_v59  ;;  %vm1507_vm4 = vweird.f32 %v15565_v59 }
 0x480   :  { %v9843_v4 = vor.u32 %v11018_v2, %v9842_v9  ;;  %v18818_v46 = vld [vmem:[#allocation12_spill] sm:$0xff]  ;;  %v9971_v45 = vor.u32 %v11050_v33, %v9970_v30  ;;  %v10946_v31 = vld [vmem:[%s18551_s17 + $0x4c] sm:$0xf0]  ;;  %6147 = vmatpush.bf16.msrb.mxu0 %v9571_v63 }
 0x481   :  { %v15574_v62 = vmul.f32 %v15416_v50, %v18818_v46  ;;  %v18819_v35 = vld [vmem:[#allocation20_spill] sm:$0xff]  ;;  %v10978_v9 = vld [vmem:[%s18551_s17 + $0x14c] sm:$0xf0]  ;;  %6166 = vmatpush.bf16.msrb.mxu1 %v9699_v20  ;;  %v4478_v63 = vpop.f32.mrf.mxu3 }
 0x482   :  { %v1195_v1 = vmul.f32 %v1170_v37, %v18819_v35  ;;  %v9554_v48 = vld [vmem:[%s18551_s17 + $0x40] sm:$0xf]  ;;  %v15592_v37 = vsel %vm15559_vm15, %v15228_v5, %v1176_v44  ;;  %v11014_v30 = vld [vmem:[%s18551_s17 + $0x26c] sm:$0xf0]  ;;  %v15606_v5 = vpop.eup %11558  ;;  %v15610_v44 = vperm.slane %v15507_v58, 5  ;;  %v4459_v58 = vpop.f32.mrf.mxu2  ;;  %6184 = vmatpush.bf16.msrb.mxu2 %v9843_v4 }
 0x483   :  { %v9682_v50 = vld [vmem:[%s18551_s17 + $0x140] sm:$0xf]  ;;  %v9555_v21 = vor.u32 %v10946_v31, %v9554_v48  ;;  %v11046_v36 = vld [vmem:[%s18551_s17 + $0x36c] sm:$0xf0]  ;;  %6203 = vmatpush.bf16.msrb.mxu3 %v9971_v45  ;;  %v1492_v45 = vmul.f32 %v15606_v5, %v15434_v60  ;;  %vm1498_vm7 = vweird.f32 %v15606_v5 }
 0x484   :  { %v9826_v2 = vld [vmem:[%s18551_s17 + $0x260] sm:$0xf]  ;;  %v9683_v54 = vor.u32 %v10978_v9, %v9682_v50  ;;  %v18822_v43 = vld [vmem:[#allocation22_spill] sm:$0xff]  ;;  %v15641_v50 = vadd.f32 1e-05, %v1419_v18  ;;  %vm15819_vm9 = vmor %vm1497_vm8, %vm1498_vm7 }
 0x485   :  { %v9954_v3 = vld [vmem:[%s18551_s17 + $0x360] sm:$0xf]  ;;  %v9827_v20 = vor.u32 %v11014_v30, %v9826_v2  ;;  %v1188_v48 = vmul.f32 %v15592_v37, %v18822_v43  ;;  %v10942_v39 = vld [vmem:[%s18551_s17 + $0x2c] sm:$0xf0]  ;;  %v4492_v30 = vpop.f32.mrf.mxu0  ;;  %6148 = vmatpush.bf16.msrb.mxu0 %v9555_v21 }
 0x486   :  { %v18821_v12 = vld [vmem:[#allocation24_spill] sm:$0xff]  ;;  %v9955_v46 = vor.u32 %v11046_v36, %v9954_v3  ;;  %v10974_v9 = vld [vmem:[%s18551_s17 + $0x12c] sm:$0xf0]  ;;  %v4511_v3 = vpop.f32.mrf.mxu1  ;;  %6167 = vmatpush.bf16.msrb.mxu1 %v9683_v54  ;;  %v4493_v21 = vadd.f32 %v4492_v30, %v15445_v13  ;;  %11562 = vrsqrt.f32 %v15641_v50 }
 0x487   :  { %v1220_v33 = vmul.f32 %v18821_v12, %v1187_v25  ;;  %v1228_v35 = vmul.f32 %v18821_v12, %v1195_v1  ;;  %v4460_v25 = vadd.f32 %v4459_v58, %v15462_v38  ;;  %v9538_v31 = vld [vmem:[%s18551_s17 + $0x20] sm:$0xf]  ;;  %v15637_v1 = vsel %vm1149_vm3, %v15277_v7, %v1146_v47  ;;  %v11010_v47 = vld [vmem:[%s18551_s17 + $0x24c] sm:$0xf0]  ;;  %6185 = vmatpush.bf16.msrb.mxu2 %v9827_v20 }
 0x488   :  { %v9666_v4 = vld [vmem:[%s18551_s17 + $0x120] sm:$0xf]  ;;  %v1397_v38 = vrot.slane %v1396_v57, 2  ;;  %v9539_v36 = vor.u32 %v10942_v39, %v9538_v31  ;;  %6204 = vmatpush.bf16.msrb.mxu3 %v9955_v46  ;;  %v11042_v43 = vld [vmem:[%s18551_s17 + $0x34c] sm:$0xf0]  ;;  %v1156_v20 = vmul.f32 %v15404_v16, %v1155_v15  ;;  %v15689_v15 = vadd.f32 %v4511_v3, %v4493_v21  ;;  %4814 = vmatmul.bf16.vlgmr.msra.gmra.mxu1 %v18748_v51 }
 0x489   :  { %v15646_v2 = vadd.f32 %v4478_v63, %v4460_v25  ;;  %v9667_v58 = vor.u32 %v10974_v9, %v9666_v4  ;;  %v9810_v7 = vld [vmem:[%s18551_s17 + $0x240] sm:$0xf]  ;;  %v15658_v63 = vadd.f32 %v15045_v32, %v1220_v33  ;;  %v10938_v31 = vld [vmem:[%s18551_s17 + $0xc] sm:$0xf0]  ;;  %v15671_v33 = vadd.f32 %v15045_v32, %v1228_v35 }
 0x48a   :  { %v9938_v18 = vld [vmem:[%s18551_s17 + $0x340] sm:$0xf]  ;;  %v9811_v54 = vor.u32 %v11010_v47, %v9810_v7  ;;  %v18823_v39 = vld [vmem:[#allocation23_spill] sm:$0xff]  ;;  %v1493_v35 = vmul.f32 %v15606_v5, %v1492_v45  ;;  %v15687_v7 = vadd.f32 %v1397_v38, %v1396_v57  ;;  %4795 = vmatmul.bf16.vlgmr.msra.gmra.mxu0 %v18747_v28  ;;  %v15702_v57 = vpop.eup %11560  ;;  %v1221_v38 = vmul.f32 %v15049_v61, %v1188_v48 }
 0x48b   :  { %v9522_v25 = vld [vmem:[%s18551_s17] sm:$0xf]  ;;  %v1185_v13 = vmul.f32 %v15637_v1, %v18823_v39  ;;  %v9939_v46 = vor.u32 %v11042_v43, %v9938_v18  ;;  %v10970_v9 = vld [vmem:[%s18551_s17 + $0x10c] sm:$0xf0]  ;;  %v15706_v28 = vperm.slane %v15042_v14, 5  ;;  %6149 = vmatpush.bf16.msrb.mxu0 %v9539_v36  ;;  %6168 = vmatpush.bf16.msrb.mxu1 %v9667_v58  ;;  %v4461_v43 = vpop.f32.mrf.mxu2  ;;  %v4480_v39 = vpop.f32.mrf.mxu3  ;;  %v15721_v53 = vsel %vm1159_vm6, %v15404_v16, %v1156_v20 }
 0x48c   :  { %v9650_v4 = vld [vmem:[%s18551_s17 + $0x100] sm:$0xf]  ;;  %v11006_v47 = vld [vmem:[%s18551_s17 + $0x22c] sm:$0xf0]  ;;  %v9523_v51 = vor.u32 %v10938_v31, %v9522_v25  ;;  %v15709_v21 = vmul.f32 0.01, %v15658_v63  ;;  %6186 = vmatpush.bf16.msrb.mxu2 %v9811_v54  ;;  %v4462_v36 = vadd.f32 %v4461_v43, %v15567_v55  ;;  %v1502_v54 = vmul.f32 %v15702_v57, %v15565_v59 }
 0x48d   :  { %v9794_v30 = vld [vmem:[%s18551_s17 + $0x220] sm:$0xf]  ;;  %v11038_v45 = vld [vmem:[%s18551_s17 + $0x32c] sm:$0xf0]  ;;  %18824 = vst [vmem:[#allocation33_spill] sm:$0xff] %v15706_v28  ;;  %v9651_v3 = vor.u32 %v10970_v9, %v9650_v4  ;;  %6205 = vmatpush.bf16.msrb.mxu3 %v9939_v46  ;;  %v1218_v14 = vmul.f32 %v15510_v23, %v1185_v13  ;;  %v15723_v58 = vmul.f32 0.5, %v1493_v35  ;;  %v15733_v46 = vadd.f32 %v15142_v19, %v1221_v38  ;;  %v4494_v55 = vpop.f32.mrf.mxu0 }
 0x48e   :  { %v9922_v18 = vld [vmem:[%s18551_s17 + $0x320] sm:$0xf]  ;;  %18825 = vst [vmem:[#allocation47_spill] sm:$0xff] %v15709_v21  ;;  %v9795_v17 = vor.u32 %v11006_v47, %v9794_v30  ;;  %v15713_v48 = vmul.f32 0.01, %v15671_v33  ;;  %v1399_v25 = vrot.slane %v15687_v7, 1  ;;  %v15735_v4 = vadd.f32 %v4480_v39, %v4462_v36  ;;  %v4513_v9 = vpop.f32.mrf.mxu1  ;;  %4833 = vmatmul.bf16.vlgmr.msra.gmra.mxu2 %v13665_v41  ;;  %4852 = vmatmul.bf16.vlgmr.msra.gmra.mxu3 %v18756_v8 }
 0x48f   :  { %v9923_v6 = vor.u32 %v11038_v45, %v9922_v18  ;;  %v18827_v31 = vld [vmem:[#allocation29_spill] sm:$0xff]  ;;  %6150 = vmatpush.bf16.msrb.mxu0 %v9523_v51  ;;  %6169 = vmatpush.bf16.msrb.mxu1 %v9651_v3  ;;  %v11094_v20 = vld [vmem:[%s18551_s17 + $0x4ec] sm:$0xf0]  ;;  %v4495_v47 = vadd.f32 %v4494_v55, %v15546_v24  ;;  %v18829_v3 = vld [vmem:[#allocation32_spill] sm:$0xff]  ;;  %v15772_v36 = vadd.f32 %v15520_v49, %v1218_v14  ;;  %v15786_v14 = vpop.eup %11562  ;;  %v15812_v60 = vmul.f32 0.01, %v15733_v46 }
 0x490   :  { %18826 = vst [vmem:[#allocation34_spill] sm:$0xff] %v15713_v48  ;;  %v15730_v13 = vmul.f32 %v15488_v29, %v18827_v31  ;;  %v10146_v16 = vld [vmem:[%s18551_s17 + $0x4e0] sm:$0xf]  ;;  %v18828_v30 = vld [vmem:[#allocation31_spill] sm:$0xff]  ;;  %6187 = vmatpush.bf16.msrb.mxu2 %v9795_v17  ;;  %v1503_v41 = vmul.f32 %v15702_v57, %v1502_v54  ;;  %v15790_v54 = vmul.f32 %v15574_v62, %v18827_v31  ;;  %v1495_v62 = vsub.f32 1.5, %v15723_v58 }
 0x491   :  { %v10274_v29 = vld [vmem:[%s18551_s17 + $0x5e0] sm:$0xf]  ;;  %v1193_v35 = vmul.f32 %v15637_v1, %v18828_v30  ;;  %6206 = vmatpush.bf16.msrb.mxu3 %v9923_v6  ;;  %v10147_v18 = vor.u32 %v11094_v20, %v10146_v16  ;;  %v11126_v45 = vld [vmem:[%s18551_s17 + $0x5ec] sm:$0xf0]  ;;  %v1186_v1 = vmul.f32 %v15721_v53, %v18829_v3  ;;  %v15775_v8 = vadd.f32 %v4513_v9, %v4495_v47 }
 0x492   :  { %v9778_v38 = vld [vmem:[%s18551_s17 + $0x200] sm:$0xf]  ;;  %v11002_v51 = vld [vmem:[%s18551_s17 + $0x20c] sm:$0xf0]  ;;  %v10275_v17 = vor.u32 %v11126_v45, %v10274_v29  ;;  %v1400_v31 = vadd.f32 %v1399_v25, %v15687_v7  ;;  %18830 = vst [vmem:[#allocation35_spill] sm:$0xff] %v15812_v60  ;;  %vm1508_vm15 = vweird.f32 %v15702_v57  ;;  %vm1575_vm3 = vcmp.ge.f32.partialorder %v15472_v0, 0.0 }
 0x493   :  { %v9779_v6 = vor.u32 %v11002_v51, %v9778_v38  ;;  %v9906_v24 = vld [vmem:[%s18551_s17 + $0x300] sm:$0xf]  ;;  %v11034_v43 = vld [vmem:[%s18551_s17 + $0x30c] sm:$0xf0]  ;;  %6219 = vmatpush.bf16.msra.mxu0 %v10147_v18  ;;  %v4530_v38 = vpop.f32.mrf.mxu2  ;;  %v4549_v51 = vpop.f32.mrf.mxu3  ;;  %v15815_v7 = vmul.f32 0.01, %v15772_v36  ;;  %vm1509_vm5 = vmor %vm1507_vm4, %vm1508_vm15  ;;  %vm1478_vm7 = vweird.f32 %v15786_v14 }
 0x494   :  { %v10130_v39 = vld [vmem:[%s18551_s17 + $0x4c0] sm:$0xf]  ;;  %v9907_v55 = vor.u32 %v11034_v43, %v9906_v24  ;;  %v11090_v16 = vld [vmem:[%s18551_s17 + $0x4cc] sm:$0xf0]  ;;  %6238 = vmatpush.bf16.msra.mxu1 %v10275_v17  ;;  %v1226_v24 = vmul.f32 %v15510_v23, %v1193_v35  ;;  %v1219_v43 = vmul.f32 %v15610_v44, %v1186_v1  ;;  %v1472_v35 = vmul.f32 %v15786_v14, %v15641_v50 }
 0x495   :  { %v10258_v20 = vld [vmem:[%s18551_s17 + $0x5c0] sm:$0xf]  ;;  %v11122_v29 = vld [vmem:[%s18551_s17 + $0x5cc] sm:$0xf0]  ;;  %v10131_v9 = vor.u32 %v11090_v16, %v10130_v39  ;;  %6188 = vmatpush.bf16.msrb.mxu2 %v9779_v6  ;;  %v4531_v39 = vadd.f32 %v4530_v38, %v15689_v15  ;;  %v15823_v6 = vmul.f32 0.5, %v1503_v41  ;;  %vm1583_vm6 = vcmp.ge.f32.partialorder %v15475_v11, 0.0 }
 0x496   :  { %v10259_v30 = vor.u32 %v11122_v29, %v10258_v20  ;;  %v10402_v47 = vld [vmem:[%s18551_s17 + $0x6e0] sm:$0xf]  ;;  %v11158_v18 = vld [vmem:[%s18551_s17 + $0x6ec] sm:$0xf0]  ;;  %6207 = vmatpush.bf16.msrb.mxu3 %v9907_v55  ;;  %v4497_v29 = vpop.f32.mrf.mxu0 }
 0x497   :  { %v10530_v45 = vld [vmem:[%s18551_s17 + $0x7e0] sm:$0xf]  ;;  %v10403_v3 = vor.u32 %v11158_v18, %v10402_v47  ;;  %v11190_v17 = vld [vmem:[%s18551_s17 + $0x7ec] sm:$0xf0]  ;;  %6220 = vmatpush.bf16.msra.mxu0 %v10131_v9  ;;  %v15831_v20 = vadd.f32 %v4549_v51, %v4531_v39  ;;  %v4516_v47 = vpop.f32.mrf.mxu1  ;;  %v1420_v18 = vmul.f32 %v1400_v31, %v11781_v26 }
 0x498   :  { %v10531_v58 = vor.u32 %v11190_v17, %v10530_v45  ;;  %v18833_v15 = vld [vmem:[#allocation54_spill] sm:$0xff]  ;;  %v18834_v55 = vld [vmem:[#allocation55_spill] sm:$0xff]  ;;  %6239 = vmatpush.bf16.msra.mxu1 %v10259_v30  ;;  %v10114_v41 = vld [vmem:[%s18551_s17 + $0x4a0] sm:$0xf]  ;;  %v4498_v45 = vadd.f32 %v4497_v29, %v15646_v2  ;;  %v15859_v2 = vadd.f32 %v15706_v28, %v1219_v43 }
 0x499   :  { %6257 = vmatpush.bf16.msra.mxu2 %v10403_v3  ;;  %v1196_v1 = vmul.f32 %v15592_v37, %v18833_v15  ;;  %v1194_v16 = vmul.f32 %v15721_v53, %v18834_v55  ;;  %18835 = vst [vmem:[#allocation25_spill] sm:$0xff] %v15831_v20  ;;  %v11086_v9 = vld [vmem:[%s18551_s17 + $0x4ac] sm:$0xf0]  ;;  %v10242_v37 = vld [vmem:[%s18551_s17 + $0x5a0] sm:$0xf]  ;;  %v1496_v53 = vmul.f32 %v15606_v5, %v1495_v62 }
 0x49a   :  { %6276 = vmatpush.bf16.msra.mxu3 %v10531_v58  ;;  %v10115_v30 = vor.u32 %v11086_v9, %v10114_v41  ;;  %v11118_v38 = vld [vmem:[%s18551_s17 + $0x5ac] sm:$0xf0]  ;;  %v10386_v51 = vld [vmem:[%s18551_s17 + $0x6c0] sm:$0xf]  ;;  %v15856_v62 = vadd.f32 %v15520_v49, %v1226_v24  ;;  %v1473_v24 = vmul.f32 %v15786_v14, %v1472_v35  ;;  %v15872_v43 = vadd.f32 %v4516_v47, %v4498_v45 }
 0x49b   :  { %v11154_v3 = vld [vmem:[%s18551_s17 + $0x6cc] sm:$0xf0]  ;;  %v18836_v17 = vld [vmem:[#allocation8_spill] sm:$0xff]  ;;  %v10243_v31 = vor.u32 %v11118_v38, %v10242_v37  ;;  %v18839_v9 = vld [vmem:[#allocation45_spill] sm:$0xff]  ;;  %v1229_v35 = vmul.f32 %v15049_v61, %v1196_v1  ;;  %v1227_v1 = vmul.f32 %v15610_v44, %v1194_v16 }
 0x49c   :  { %vm1567_vm10 = vcmp.ge.f32.partialorder %v18836_v17, 0.0  ;;  %v10387_v39 = vor.u32 %v11154_v3, %v10386_v51  ;;  %v10514_v58 = vld [vmem:[%s18551_s17 + $0x7c0] sm:$0xf]  ;;  %v11186_v15 = vld [vmem:[%s18551_s17 + $0x7cc] sm:$0xf0]  ;;  %4819 = vmatmul.bf16.gmra.mxu1 %v18839_v9  ;;  %6221 = vmatpush.bf16.msra.mxu0 %v10115_v30  ;;  %v1500_v30 = vsel %vm15819_vm9, %v15606_v5, %v1496_v53  ;;  %v1505_v53 = vsub.f32 1.5, %v15823_v6 }
 0x49d   :  { %v10098_v55 = vld [vmem:[%s18551_s17 + $0x480] sm:$0xf]  ;;  %v18837_v29 = vld [vmem:[#allocation14_spill] sm:$0xff]  ;;  %v10515_v37 = vor.u32 %v11186_v15, %v10514_v58  ;;  %6240 = vmatpush.bf16.msra.mxu1 %v10243_v31  ;;  %v15900_v31 = vadd.f32 1e-05, %v1420_v18  ;;  %v18841_v26 = vld [vmem:[#allocation7_spill] sm:$0xff] }
 0x49e   :  { %vm1568_vm11 = vcmp.ge.f32.partialorder %v18837_v29, 0.0  ;;  %v18838_v41 = vld [vmem:[#allocation44_spill] sm:$0xff]  ;;  %v11082_v38 = vld [vmem:[%s18551_s17 + $0x48c] sm:$0xf0]  ;;  %v18840_v9 = vld [vmem:[#allocation49_spill] sm:$0xff]  ;;  %6258 = vmatpush.bf16.msra.mxu2 %v10387_v39  ;;  %vm1559_vm13 = vcmp.ge.f32.partialorder %v18841_v26, 0.0  ;;  %4857 = vmatmul.bf16.gmra.mxu3 %v13843_v22 }
 0x49f   :  { %4800 = vmatmul.bf16.gmra.mxu0 %v18838_v41  ;;  %v10226_v51 = vld [vmem:[%s18551_s17 + $0x580] sm:$0xf]  ;;  %v11114_v3 = vld [vmem:[%s18551_s17 + $0x58c] sm:$0xf0]  ;;  %v10099_v47 = vor.u32 %v11082_v38, %v10098_v55  ;;  %vm1569_vm12 = vcmp.ge.f32.partialorder %v18840_v9, 0.0  ;;  %v4532_v55 = vpop.f32.mrf.mxu2  ;;  %v4551_v38 = vpop.f32.mrf.mxu3  ;;  %6277 = vmatpush.bf16.msra.mxu3 %v10515_v37  ;;  %v15914_v18 = vmul.f32 0.5, %v1473_v24  ;;  %11564 = vrsqrt.f32 %v15900_v31 }
 0x4a0   :  { %v10227_v45 = vor.u32 %v11114_v3, %v10226_v51  ;;  %v10370_v58 = vld [vmem:[%s18551_s17 + $0x6a0] sm:$0xf]  ;;  %v11150_v15 = vld [vmem:[%s18551_s17 + $0x6ac] sm:$0xf0]  ;;  %v15906_v20 = vmul.f32 0.01, %v15856_v62  ;;  %v4533_v16 = vadd.f32 %v4532_v55, %v15775_v8  ;;  %4838 = vmatmul.bf16.gmra.mxu2 %v13841_v56  ;;  %vm1487_vm4 = vweird.f32 %v15900_v31 }
 0x4a1   :  { %v10498_v41 = vld [vmem:[%s18551_s17 + $0x7a0] sm:$0xf]  ;;  %v10371_v51 = vor.u32 %v11150_v15, %v10370_v58  ;;  %v11182_v3 = vld [vmem:[%s18551_s17 + $0x7ac] sm:$0xf0]  ;;  %v15911_v5 = vmul.f32 0.01, %v15859_v2  ;;  %6222 = vmatpush.bf16.msra.mxu0 %v10099_v47 }
 0x4a2   :  { %v10499_v25 = vor.u32 %v11182_v3, %v10498_v41  ;;  %v18842_v39 = vld [vmem:[#allocation13_spill] sm:$0xff]  ;;  %v18843_v37 = vld [vmem:[#allocation51_spill] sm:$0xff]  ;;  %v18844_v58 = vld [vmem:[#allocation30_spill] sm:$0xff]  ;;  %v15923_v55 = vadd.f32 %v4551_v38, %v4533_v16  ;;  %v4499_v41 = vpop.f32.mrf.mxu0  ;;  %v4518_v3 = vpop.f32.mrf.mxu1  ;;  %6241 = vmatpush.bf16.msra.mxu1 %v10227_v45 }
 0x4a3   :  { %vm1560_vm14 = vcmp.ge.f32.partialorder %v18842_v39, 0.0  ;;  %vm1570_vm2 = vcmp.ge.f32.partialorder %v18843_v37, 0.0  ;;  %v15920_v15 = vadd.f32 %v15730_v13, %v18844_v58  ;;  %v18845_v60 = vld [vmem:[#allocation9_spill] sm:$0xff]  ;;  %v11078_v24 = vld [vmem:[%s18551_s17 + $0x46c] sm:$0xf0]  ;;  %v4500_v47 = vadd.f32 %v4499_v41, %v15735_v4  ;;  %6259 = vmatpush.bf16.msra.mxu2 %v10371_v51 }
 0x4a4   :  { %v1517_v8 = vmul.f32 %v1500_v30, %v18845_v60  ;;  %18846 = vst [vmem:[#allocation28_spill] sm:$0xff] %v15923_v55  ;;  %v10082_v6 = vld [vmem:[%s18551_s17 + $0x460] sm:$0xf]  ;;  %v15935_v60 = vadd.f32 %v15706_v28, %v1227_v1  ;;  %6278 = vmatpush.bf16.msra.mxu3 %v10499_v25  ;;  %v11110_v38 = vld [vmem:[%s18551_s17 + $0x56c] sm:$0xf0]  ;;  %v15950_v55 = vadd.f32 %v15790_v54, %v18844_v58 }
 0x4a5   :  { %v10210_v13 = vld [vmem:[%s18551_s17 + $0x560] sm:$0xf]  ;;  %v10083_v45 = vor.u32 %v11078_v24, %v10082_v6  ;;  %v11146_v1 = vld [vmem:[%s18551_s17 + $0x68c] sm:$0xf0]  ;;  %v15964_v54 = vadd.f32 %v15142_v19, %v1229_v35  ;;  %v15969_v22 = vadd.f32 %v4518_v3, %v4500_v47  ;;  %vm1576_vm8 = vcmp.ge.f32.partialorder %v15920_v15, 0.0 }
 0x4a6   :  { %v10354_v16 = vld [vmem:[%s18551_s17 + $0x680] sm:$0xf]  ;;  %v10211_v4 = vor.u32 %v11110_v38, %v10210_v13  ;;  %v11178_v41 = vld [vmem:[%s18551_s17 + $0x78c] sm:$0xf0]  ;;  %v15981_v35 = vmul.f32 %v1517_v8, %v18821_v12  ;;  %v15994_v8 = vmul.f32 0.01, %v15935_v60 }
 0x4a7   :  { %v10355_v51 = vor.u32 %v11146_v1, %v10354_v16  ;;  %v10482_v25 = vld [vmem:[%s18551_s17 + $0x780] sm:$0xf]  ;;  %v18847_v56 = vld [vmem:[#allocation10_spill] sm:$0xff]  ;;  %6223 = vmatpush.bf16.msra.mxu0 %v10083_v45  ;;  %v4554_v45 = vpop.f32.mrf.mxu3  ;;  %v18850_v28 = vld [vmem:[#allocation43_spill] sm:$0xff]  ;;  %vm1584_vm9 = vcmp.ge.f32.partialorder %v15950_v55, 0.0  ;;  %vm1572_vm15 = vcmp.ge.f32.partialorder %v15935_v60, 0.0 }
 0x4a8   :  { %v10066_v6 = vld [vmem:[%s18551_s17 + $0x440] sm:$0xf]  ;;  %v15967_v58 = vmul.f32 %v1500_v30, %v18847_v56  ;;  %v10483_v24 = vor.u32 %v11178_v41, %v10482_v25  ;;  %v11074_v13 = vld [vmem:[%s18551_s17 + $0x44c] sm:$0xf0]  ;;  %6242 = vmatpush.bf16.msra.mxu1 %v10211_v4  ;;  %v4535_v41 = vpop.f32.mrf.mxu2  ;;  %v1624_v21 = vsel %vm1560_vm14, %v18842_v39, %v18850_v28  ;;  %vm1578_vm14 = vcmp.ge.f32.partialorder %v15287_v52, 0.0 }
 0x4a9   :  { %v10194_v38 = vld [vmem:[%s18551_s17 + $0x540] sm:$0xf]  ;;  %v11106_v16 = vld [vmem:[%s18551_s17 + $0x54c] sm:$0xf0]  ;;  %v10067_v30 = vor.u32 %v11074_v13, %v10066_v6  ;;  %6260 = vmatpush.bf16.msra.mxu2 %v10355_v51  ;;  %v4536_v19 = vadd.f32 %v4535_v41, %v15872_v43  ;;  %v16016_v51 = vpop.eup %11564 }
 0x4aa   :  { %v10195_v3 = vor.u32 %v11106_v16, %v10194_v38  ;;  %v10338_v47 = vld [vmem:[%s18551_s17 + $0x660] sm:$0xf]  ;;  %v11142_v1 = vld [vmem:[%s18551_s17 + $0x66c] sm:$0xf0]  ;;  %6279 = vmatpush.bf16.msra.mxu3 %v10483_v24  ;;  %v1506_v24 = vmul.f32 %v15702_v57, %v1505_v53  ;;  %v4587_v28 = vpop.f32.mrf.mxu1  ;;  %v1482_v59 = vmul.f32 %v16016_v51, %v15900_v31 }
 0x4ab   :  { %v10466_v25 = vld [vmem:[%s18551_s17 + $0x760] sm:$0xf]  ;;  %v10339_v38 = vor.u32 %v11142_v1, %v10338_v47  ;;  %v11174_v16 = vld [vmem:[%s18551_s17 + $0x76c] sm:$0xf0]  ;;  %v1475_v47 = vsub.f32 1.5, %v15914_v18  ;;  %v16022_v41 = vadd.f32 %v4554_v45, %v4536_v19  ;;  %6224 = vmatpush.bf16.msra.mxu0 %v10067_v30 }
 0x4ac   :  { %v18848_v4 = vld [vmem:[#allocation40_spill] sm:$0xff]  ;;  %v18849_v56 = vld [vmem:[#allocation41_spill] sm:$0xff]  ;;  %v18853_v43 = vld [vmem:[#allocation50_spill] sm:$0xff]  ;;  %6243 = vmatpush.bf16.msra.mxu1 %v10195_v3 }
 0x4ad   :  { %v1623_v6 = vsel %vm1559_vm13, %v18841_v26, %v18848_v4  ;;  %v1631_v13 = vsel %vm1567_vm10, %v18836_v17, %v18849_v56  ;;  %v18851_v26 = vld [vmem:[#allocation21_spill] sm:$0xff]  ;;  %v10467_v17 = vor.u32 %v11174_v16, %v10466_v25  ;;  %v18852_v1 = vld [vmem:[#allocation48_spill] sm:$0xff]  ;;  %vm1562_vm1 = vcmp.ge.f32.partialorder %v18853_v43, 0.0  ;;  %v4568_v56 = vpop.f32.mrf.mxu0  ;;  %v11070_v19 = vld [vmem:[%s18551_s17 + $0x42c] sm:$0xf0]  ;;  %6261 = vmatpush.bf16.msra.mxu2 %v10339_v38 }
 0x4ae   :  { %v1632_v4 = vsel %vm1568_vm11, %v18837_v29, %v18851_v26  ;;  %vm1561_vm0 = vcmp.ge.f32.partialorder %v18852_v1, 0.0  ;;  %v16024_v39 = vpack.c.bf16 %v1631_v13, %v1623_v6  ;;  %v18854_v48 = vld [vmem:[#allocation53_spill] sm:$0xff]  ;;  %v16041_v25 = vadd.f32 %v4587_v28, %v4568_v56  ;;  %v11102_v30 = vld [vmem:[%s18551_s17 + $0x52c] sm:$0xf0] }
 0x4af   :  { %v1633_v29 = vsel %vm1569_vm12, %v18840_v9, %v18854_v48  ;;  %v10050_v53 = vld [vmem:[%s18551_s17 + $0x420] sm:$0xf]  ;;  %v16043_v48 = vpack.c.bf16 %v1632_v4, %v1624_v21  ;;  %6280 = vmatpush.bf16.msra.mxu3 %v10467_v17  ;;  %v11138_v45 = vld [vmem:[%s18551_s17 + $0x64c] sm:$0xf0]  ;;  %v16066_v16 = vsel %vm1509_vm5, %v15702_v57, %v1506_v24  ;;  %v1476_v24 = vmul.f32 %v15786_v14, %v1475_v47 }
 0x4b0   :  { %v10178_v18 = vld [vmem:[%s18551_s17 + $0x520] sm:$0xf]  ;;  %v10051_v9 = vor.u32 %v11070_v19, %v10050_v53  ;;  %v11170_v38 = vld [vmem:[%s18551_s17 + $0x74c] sm:$0xf0]  ;;  %6151 = vmatmul.bf16.vlgmr.msrb.gmra.mxu0 %v16024_v39  ;;  %vm1477_vm10 = vweird.f32 %v15641_v50  ;;  %v16149_v50 = vadd.f32 %v15981_v35, %v15045_v32  ;;  %vm1585_vm13 = vcmp.ge.f32.partialorder %v15281_v10, 0.0 }
 0x4b1   :  { %v10322_v3 = vld [vmem:[%s18551_s17 + $0x640] sm:$0xf]  ;;  %v10179_v21 = vor.u32 %v11102_v30, %v10178_v18  ;;  %6170 = vmatmul.bf16.vlgmr.msrb.gmra.mxu1 %v16043_v48  ;;  %v18855_v26 = vld [vmem:[#allocation18_spill] sm:$0xff]  ;;  %vm1479_vm11 = vmor %vm1477_vm10, %vm1478_vm7  ;;  %vm1563_vm7 = vcmp.ge.f32.partialorder %v15772_v36, 0.0  ;;  %vm1566_vm10 = vcmp.ge.f32.partialorder %v15733_v46, 0.0 }
 0x4b2   :  { %v10323_v6 = vor.u32 %v11138_v45, %v10322_v3  ;;  %v10450_v13 = vld [vmem:[%s18551_s17 + $0x740] sm:$0xf]  ;;  %v1634_v4 = vsel %vm1570_vm2, %v18843_v37, %v18855_v26  ;;  %v11066_v28 = vld [vmem:[%s18551_s17 + $0x40c] sm:$0xf0]  ;;  %6225 = vmatpush.bf16.msra.mxu0 %v10051_v9  ;;  %v4537_v3 = vpop.f32.mrf.mxu2  ;;  %v4556_v45 = vpop.f32.mrf.mxu3  ;;  %v1607_v9 = vmul.f32 0.01, %v15472_v0 }
 0x4b3   :  { %v10451_v17 = vor.u32 %v11170_v38, %v10450_v13  ;;  %v10034_v56 = vld [vmem:[%s18551_s17 + $0x400] sm:$0xf]  ;;  %6244 = vmatpush.bf16.msra.mxu1 %v10179_v21  ;;  %v11098_v18 = vld [vmem:[%s18551_s17 + $0x50c] sm:$0xf0]  ;;  %vm1571_vm2 = vcmp.ge.f32.partialorder %v15856_v62, 0.0 }
 0x4b4   :  { %v10162_v57 = vld [vmem:[%s18551_s17 + $0x500] sm:$0xf]  ;;  %v10035_v19 = vor.u32 %v11066_v28, %v10034_v56  ;;  %v11134_v47 = vld [vmem:[%s18551_s17 + $0x62c] sm:$0xf0]  ;;  %6262 = vmatpush.bf16.msra.mxu2 %v10323_v6  ;;  %v1483_v28 = vmul.f32 %v16016_v51, %v1482_v59  ;;  %v1608_v6 = vmul.f32 0.01, %v15920_v15 }
 0x4b5   :  { %v18856_v53 = vld [vmem:[#allocation52_spill] sm:$0xff]  ;;  %v18857_v13 = vld [vmem:[#allocation17_spill] sm:$0xff]  ;;  %6281 = vmatpush.bf16.msra.mxu3 %v10451_v17  ;;  %v10163_v21 = vor.u32 %v11098_v18, %v10162_v57  ;;  %v11166_v56 = vld [vmem:[%s18551_s17 + $0x72c] sm:$0xf0]  ;;  %v1616_v17 = vmul.f32 0.01, %v15950_v55  ;;  %v4570_v18 = vpop.f32.mrf.mxu0 }
 0x4b6   :  { %v1625_v37 = vsel %vm1561_vm0, %v18852_v1, %v18856_v53  ;;  %v10306_v30 = vld [vmem:[%s18551_s17 + $0x620] sm:$0xf]  ;;  %v1626_v1 = vsel %vm1562_vm1, %v18853_v43, %v18857_v13  ;;  %v4538_v53 = vadd.f32 %v4537_v3, %v15969_v22  ;;  %v1615_v43 = vmul.f32 0.01, %v15475_v11  ;;  %6226 = vmatpush.bf16.msra.mxu0 %v10035_v19  ;;  %v10964_v22 = vld [vmem:[%s18551_s17 + $0xe4] sm:$0xf] }
 0x4b7   :  { %v10307_v38 = vor.u32 %v11134_v47, %v10306_v30  ;;  %v10434_v26 = vld [vmem:[%s18551_s17 + $0x720] sm:$0xf]  ;;  %v4589_v30 = vpop.f32.mrf.mxu1  ;;  %v16118_v47 = vpack.c.bf16 %v1633_v29, %v1625_v37  ;;  %v16120_v59 = vpack.c.bf16 %v1634_v4, %v1626_v1  ;;  %6245 = vmatpush.bf16.msra.mxu1 %v10163_v21  ;;  %v9636_v3 = vld [vmem:[%s18551_s17 + $0xf0] sm:$0xf0]  ;;  %v16133_v29 = vmul.f32 %v15967_v58, %v18821_v12  ;;  %v11130_v12 = vld [vmem:[%s18551_s17 + $0x60c] sm:$0xf0] }
 0x4b8   :  { %v10435_v13 = vor.u32 %v11166_v56, %v10434_v26  ;;  %v16116_v57 = vadd.f32 %v4556_v45, %v4538_v53  ;;  %v10996_v45 = vld [vmem:[%s18551_s17 + $0x1e4] sm:$0xf]  ;;  %v16136_v4 = vadd.f32 %v4589_v30, %v4570_v18  ;;  %v9639_v37 = vor.u32 %v10964_v22, %v9636_v3  ;;  %v9764_v19 = vld [vmem:[%s18551_s17 + $0x1f0] sm:$0xf0]  ;;  %v10290_v1 = vld [vmem:[%s18551_s17 + $0x600] sm:$0xf] }
 0x4b9   :  { %6263 = vmatpush.bf16.msra.mxu2 %v10307_v38  ;;  %v16153_v58 = vmul.f32 0.5, %v1483_v28  ;;  %6208 = vmatmul.bf16.vlgmr.msrb.gmra.mxu3 %v16120_v59  ;;  %v9767_v21 = vor.u32 %v10996_v45, %v9764_v19  ;;  %v10291_v38 = vor.u32 %v11130_v12, %v10290_v1  ;;  %v10418_v26 = vld [vmem:[%s18551_s17 + $0x700] sm:$0xf]  ;;  %v11162_v35 = vld [vmem:[%s18551_s17 + $0x70c] sm:$0xf0]  ;;  %v1480_v28 = vsel %vm1479_vm11, %v15786_v14, %v1476_v24 }
 0x4ba   :  { %6282 = vmatpush.bf16.msra.mxu3 %v10435_v13  ;;  %6189 = vmatmul.bf16.vlgmr.msrb.gmra.mxu2 %v16118_v47  ;;  %v18858_v56 = vld [vmem:[#allocation27_spill] sm:$0xff]  ;;  %v1639_v13 = vsel %vm1575_vm3, %v15472_v0, %v1607_v9  ;;  %v10419_v18 = vor.u32 %v11162_v35, %v10418_v26  ;;  %v10960_v30 = vld [vmem:[%s18551_s17 + $0xc4] sm:$0xf]  ;;  %v1647_v14 = vsel %vm1583_vm6, %v15475_v11, %v1615_v43  ;;  %v4606_v43 = vpop.f32.mrf.mxu2  ;;  %v1617_v26 = vmul.f32 0.01, %v15281_v10 }
 0x4bb   :  { %v16165_v53 = vmul.f32 %v16066_v16, %v18858_v56  ;;  %6295 = vmatpush.bf16.msrb.mxu0 %v9639_v37  ;;  %v9620_v22 = vld [vmem:[%s18551_s17 + $0xd0] sm:$0xf0]  ;;  %v10992_v3 = vld [vmem:[%s18551_s17 + $0x1c4] sm:$0xf]  ;;  %v1640_v0 = vsel %vm1576_vm8, %v15920_v15, %v1608_v6  ;;  %v1648_v24 = vsel %vm1584_vm9, %v15950_v55, %v1616_v17  ;;  %6314 = vmatpush.bf16.msrb.mxu1 %v9767_v21  ;;  %v4625_v15 = vpop.f32.mrf.mxu3  ;;  %v18859_v6 = vld [vmem:[#allocation26_spill] sm:$0xff]  ;;  %vm1586_vm0 = vcmp.ge.f32.partialorder %v15469_v42, 0.0 }
 0x4bc   :  { %v9623_v9 = vor.u32 %v10960_v30, %v9620_v22  ;;  %v9748_v45 = vld [vmem:[%s18551_s17 + $0x1d0] sm:$0xf0]  ;;  %v11028_v37 = vld [vmem:[%s18551_s17 + $0x2e4] sm:$0xf]  ;;  %vm1577_vm12 = vcmp.ge.f32.partialorder %v18859_v6, 0.0  ;;  %v4607_v12 = vadd.f32 %v4606_v43, %v16041_v25  ;;  %v1515_v25 = vmul.f32 %v1480_v28, %v15121_v27 }
 0x4bd   :  { %v9892_v11 = vld [vmem:[%s18551_s17 + $0x2f0] sm:$0xf0]  ;;  %6264 = vmatpush.bf16.msra.mxu2 %v10291_v38  ;;  %v9751_v55 = vor.u32 %v10992_v3, %v9748_v45  ;;  %v11060_v19 = vld [vmem:[%s18551_s17 + $0x3e4] sm:$0xf]  ;;  %v1609_v21 = vmul.f32 0.01, %v18859_v6  ;;  %v4573_v45 = vpop.f32.mrf.mxu0  ;;  %v16233_v43 = vpack.c.bf16 %v1648_v24, %v1640_v0  ;;  %vm1488_vm1 = vweird.f32 %v16016_v51 }
 0x4be   :  { %6283 = vmatpush.bf16.msra.mxu3 %v10419_v18  ;;  %v9895_v17 = vor.u32 %v11028_v37, %v9892_v11  ;;  %v10020_v1 = vld [vmem:[%s18551_s17 + $0x3f0] sm:$0xf0]  ;;  %v1485_v38 = vsub.f32 1.5, %v16153_v58  ;;  %v1610_v56 = vmul.f32 0.01, %v15287_v52  ;;  %v16216_v3 = vadd.f32 %v4625_v15, %v4607_v12  ;;  %vm1489_vm5 = vmor %vm1487_vm4, %vm1488_vm1 }
 0x4bf   :  { %v10023_v35 = vor.u32 %v11060_v19, %v10020_v1  ;;  %v1618_v18 = vmul.f32 0.01, %v15469_v42  ;;  %6296 = vmatpush.bf16.msrb.mxu0 %v9623_v9  ;;  %v18860_v30 = vld [vmem:[#allocation15_spill] sm:$0xff]  ;;  %v4592_v37 = vpop.f32.mrf.mxu1  ;;  %6315 = vmatpush.bf16.msrb.mxu1 %v9751_v55  ;;  %v10956_v58 = vld [vmem:[%s18551_s17 + $0xa4] sm:$0xf]  ;;  %v16231_v11 = vpack.c.bf16 %v1647_v14, %v1639_v13  ;;  %v1523_v1 = vmul.f32 %v1480_v28, %v15147_v34 }
 0x4c0   :  { %v1526_v22 = vmul.f32 %v16066_v16, %v18860_v30  ;;  %v9604_v9 = vld [vmem:[%s18551_s17 + $0xb0] sm:$0xf0]  ;;  %v10988_v16 = vld [vmem:[%s18551_s17 + $0x1a4] sm:$0xf]  ;;  %v16229_v27 = vadd.f32 %v4592_v37, %v4573_v45  ;;  %v1486_v12 = vmul.f32 %v16016_v51, %v1485_v38  ;;  %v1641_v34 = vsel %vm1577_vm12, %v18859_v6, %v1609_v21 }
 0x4c1   :  { %6333 = vmatpush.bf16.msrb.mxu2 %v9895_v17  ;;  %v9607_v15 = vor.u32 %v10956_v58, %v9604_v9  ;;  %v9732_v55 = vld [vmem:[%s18551_s17 + $0x1b0] sm:$0xf0]  ;;  %v11024_v17 = vld [vmem:[%s18551_s17 + $0x2c4] sm:$0xf]  ;;  %6156 = vmatmul.bf16.gmra.mxu0 %v16231_v11  ;;  %v1649_v45 = vsel %vm1585_vm13, %v15281_v10, %v1617_v26  ;;  %v1642_v6 = vsel %vm1578_vm14, %v15287_v52, %v1610_v56  ;;  %vm1573_vm3 = vcmp.ge.f32.partialorder %v15671_v33, 0.0 }
 0x4c2   :  { %6352 = vmatpush.bf16.msrb.mxu3 %v10023_v35  ;;  %v9876_v19 = vld [vmem:[%s18551_s17 + $0x2d0] sm:$0xf0]  ;;  %v9735_v13 = vor.u32 %v10988_v16, %v9732_v55  ;;  %v11056_v0 = vld [vmem:[%s18551_s17 + $0x3c4] sm:$0xf]  ;;  %6175 = vmatmul.bf16.gmra.mxu1 %v16233_v43  ;;  %v4608_v10 = vpop.f32.mrf.mxu2  ;;  %v1650_v26 = vsel %vm1586_vm0, %v15469_v42, %v1618_v18  ;;  %v16296_v31 = vadd.f32 %v16133_v29, %v15045_v32  ;;  %vm1574_vm6 = vcmp.ge.f32.partialorder %v15964_v54, 0.0 }
 0x4c3   :  { %v9879_v14 = vor.u32 %v11024_v17, %v9876_v19  ;;  %v10004_v24 = vld [vmem:[%s18551_s17 + $0x3d0] sm:$0xf0]  ;;  %v10952_v35 = vld [vmem:[%s18551_s17 + $0x84] sm:$0xf]  ;;  %6297 = vmatpush.bf16.msrb.mxu0 %v9607_v15  ;;  %v4627_v52 = vpop.f32.mrf.mxu3  ;;  %v16300_v17 = vmul.f32 %v16165_v53, %v15049_v61  ;;  %v4609_v42 = vadd.f32 %v4608_v10, %v16136_v4  ;;  %v16307_v19 = vmul.f32 %v1526_v22, %v15049_v61 }
 0x4c4   :  { %v10007_v28 = vor.u32 %v11056_v0, %v10004_v24  ;;  %v9588_v30 = vld [vmem:[%s18551_s17 + $0x90] sm:$0xf0]  ;;  %v10984_v38 = vld [vmem:[%s18551_s17 + $0x184] sm:$0xf]  ;;  %6316 = vmatpush.bf16.msrb.mxu1 %v9735_v13  ;;  %v1531_v13 = vmul.f32 %v1515_v25, %v15510_v23  ;;  %v1490_v32 = vsel %vm1489_vm5, %v16016_v51, %v1486_v12  ;;  %v16314_v0 = vpack.c.bf16 %v1649_v45, %v1641_v34 }
 0x4c5   :  { %v9591_v21 = vor.u32 %v10952_v35, %v9588_v30  ;;  %v9716_v37 = vld [vmem:[%s18551_s17 + $0x190] sm:$0xf0]  ;;  %v11020_v58 = vld [vmem:[%s18551_s17 + $0x2a4] sm:$0xf]  ;;  %6334 = vmatpush.bf16.msrb.mxu2 %v9879_v14  ;;  %v16312_v29 = vadd.f32 %v4627_v52, %v4609_v42  ;;  %v4575_v53 = vpop.f32.mrf.mxu0  ;;  %v16316_v24 = vpack.c.bf16 %v1650_v26, %v1642_v6  ;;  %v1539_v22 = vmul.f32 %v1523_v1, %v15510_v23 }
 0x4c6   :  { %v9860_v9 = vld [vmem:[%s18551_s17 + $0x2b0] sm:$0xf0]  ;;  %6353 = vmatpush.bf16.msrb.mxu3 %v10007_v28  ;;  %v9719_v56 = vor.u32 %v10984_v38, %v9716_v37  ;;  %v11052_v15 = vld [vmem:[%s18551_s17 + $0x3a4] sm:$0xf]  ;;  %v1516_v30 = vmul.f32 %v1490_v32, %v15381_v40  ;;  %vm1564_vm8 = vcmp.ge.f32.partialorder %v15859_v2, 0.0  ;;  %v16350_v6 = vadd.f32 %v1531_v13, %v15520_v49  ;;  %v18861_v40 = vld [vmem:[#allocation46_spill] sm:$0xff] }
 0x4c7   :  { %v9863_v16 = vor.u32 %v11020_v58, %v9860_v9  ;;  %v9988_v55 = vld [vmem:[%s18551_s17 + $0x3b0] sm:$0xf0]  ;;  %v4594_v14 = vpop.f32.mrf.mxu1  ;;  %6298 = vmatpush.bf16.msrb.mxu0 %v9591_v21  ;;  %v10948_v61 = vld [vmem:[%s18551_s17 + $0x64] sm:$0xf]  ;;  %v1524_v21 = vmul.f32 %v1490_v32, %v18861_v40  ;;  %v1627_v37 = vsel %vm1563_vm7, %v15772_v36, %v15815_v7  ;;  %v1635_v26 = vsel %vm1571_vm2, %v15856_v62, %v15906_v20 }
 0x4c8   :  { %v9991_v18 = vor.u32 %v11052_v15, %v9988_v55  ;;  %6317 = vmatpush.bf16.msrb.mxu1 %v9719_v56  ;;  %v9572_v51 = vld [vmem:[%s18551_s17 + $0x70] sm:$0xf0]  ;;  %v10980_v4 = vld [vmem:[%s18551_s17 + $0x164] sm:$0xf]  ;;  %v16328_v25 = vadd.f32 %v4594_v14, %v4575_v53  ;;  %v1636_v36 = vsel %vm1572_vm15, %v15935_v60, %v15994_v8  ;;  %v1606_v62 = vmul.f32 0.01, %v15964_v54 }
 0x4c9   :  { %6335 = vmatpush.bf16.msrb.mxu2 %v9863_v16  ;;  %v9575_v12 = vor.u32 %v10948_v61, %v9572_v51  ;;  %v9700_v34 = vld [vmem:[%s18551_s17 + $0x170] sm:$0xf0]  ;;  %v11016_v28 = vld [vmem:[%s18551_s17 + $0x284] sm:$0xf]  ;;  %6213 = vmatmul.bf16.gmra.mxu3 %v16316_v24  ;;  %v1628_v60 = vsel %vm1564_vm8, %v15859_v2, %v15911_v5  ;;  %v1532_v32 = vmul.f32 %v1516_v30, %v15610_v44  ;;  %vm1565_vm9 = vcmp.ge.f32.partialorder %v15658_v63, 0.0 }
 0x4ca   :  { %6354 = vmatpush.bf16.msrb.mxu3 %v9991_v18  ;;  %v9844_v35 = vld [vmem:[%s18551_s17 + $0x290] sm:$0xf0]  ;;  %6194 = vmatmul.bf16.gmra.mxu2 %v16314_v0  ;;  %v9703_v23 = vor.u32 %v10980_v4, %v9700_v34  ;;  %v11048_v38 = vld [vmem:[%s18551_s17 + $0x384] sm:$0xf]  ;;  %v4611_v15 = vpop.f32.mrf.mxu2  ;;  %v16398_v2 = vadd.f32 %v1539_v22, %v15520_v49  ;;  %v1540_v5 = vmul.f32 %v1524_v21, %v15610_v44  ;;  %vm1579_vm11 = vcmp.ge.f32.partialorder %v16350_v6, 0.0 }
 0x4cb   :  { %v9847_v1 = vor.u32 %v11016_v28, %v9844_v35  ;;  %v9972_v45 = vld [vmem:[%s18551_s17 + $0x390] sm:$0xf0]  ;;  %v10944_v9 = vld [vmem:[%s18551_s17 + $0x44] sm:$0xf]  ;;  %6299 = vmatpush.bf16.msrb.mxu0 %v9575_v12  ;;  %v4630_v55 = vpop.f32.mrf.mxu3  ;;  %v4612_v53 = vadd.f32 %v4611_v15, %v16229_v27  ;;  %v16401_v61 = vpack.c.bf16 %v1635_v26, %v1627_v37  ;;  %v16406_v34 = vpack.c.bf16 %v1636_v36, %v1628_v60  ;;  %v18862_v28 = vld [vmem:[#allocation34_spill] sm:$0xff] }
 0x4cc   :  { %v9975_v58 = vor.u32 %v11048_v38, %v9972_v45  ;;  %v9556_v10 = vld [vmem:[%s18551_s17 + $0x50] sm:$0xf0]  ;;  %v10976_v52 = vld [vmem:[%s18551_s17 + $0x144] sm:$0xf]  ;;  %6318 = vmatpush.bf16.msrb.mxu1 %v9703_v23  ;;  %v1637_v27 = vsel %vm1573_vm3, %v15671_v33, %v18862_v28  ;;  %vm1587_vm12 = vcmp.ge.f32.partialorder %v16398_v2, 0.0  ;;  %vm1581_vm2 = vcmp.ge.f32.partialorder %v16149_v50, 0.0 }
 0x4cd   :  { %v9559_v7 = vor.u32 %v10944_v9, %v9556_v10  ;;  %v9684_v56 = vld [vmem:[%s18551_s17 + $0x150] sm:$0xf0]  ;;  %v11012_v16 = vld [vmem:[%s18551_s17 + $0x264] sm:$0xf]  ;;  %6336 = vmatpush.bf16.msrb.mxu2 %v9847_v1  ;;  %v16404_v51 = vadd.f32 %v4630_v55, %v4612_v53  ;;  %v4644_v4 = vpop.f32.mrf.mxu0  ;;  %vm1589_vm15 = vcmp.ge.f32.partialorder %v16296_v31, 0.0 }
 0x4ce   :  { %v9828_v20 = vld [vmem:[%s18551_s17 + $0x270] sm:$0xf0]  ;;  %6355 = vmatpush.bf16.msrb.mxu3 %v9975_v58  ;;  %v9687_v8 = vor.u32 %v10976_v52, %v9684_v56  ;;  %v11044_v18 = vld [vmem:[%s18551_s17 + $0x364] sm:$0xf]  ;;  %v4645_v35 = vadd.f32 %v4644_v4, %v16216_v3 }
 0x4cf   :  { %v9831_v42 = vor.u32 %v11012_v16, %v9828_v20  ;;  %v9956_v13 = vld [vmem:[%s18551_s17 + $0x370] sm:$0xf0]  ;;  %v4663_v12 = vpop.f32.mrf.mxu1  ;;  %6300 = vmatpush.bf16.msrb.mxu0 %v9559_v7  ;;  %v10940_v49 = vld [vmem:[%s18551_s17 + $0x24] sm:$0xf] }
 0x4d0   :  { %v9959_v14 = vor.u32 %v11044_v18, %v9956_v13  ;;  %6319 = vmatpush.bf16.msrb.mxu1 %v9687_v8  ;;  %v9540_v44 = vld [vmem:[%s18551_s17 + $0x30] sm:$0xf0]  ;;  %v10972_v22 = vld [vmem:[%s18551_s17 + $0x124] sm:$0xf]  ;;  %v16453_v26 = vadd.f32 %v4663_v12, %v4645_v35 }
 0x4d1   :  { %v18863_v30 = vld [vmem:[#allocation47_spill] sm:$0xff]  ;;  %6337 = vmatpush.bf16.msrb.mxu2 %v9831_v42  ;;  %v9543_v23 = vor.u32 %v10940_v49, %v9540_v44  ;;  %v11008_v38 = vld [vmem:[%s18551_s17 + $0x244] sm:$0xf]  ;;  %6227 = vmatmul.bf16.vlgmr.msra.gmra.mxu0 %v16401_v61 }
 0x4d2   :  { %v1629_v33 = vsel %vm1565_vm9, %v15658_v63, %v18863_v30  ;;  %6356 = vmatpush.bf16.msrb.mxu3 %v9959_v14  ;;  %v9668_v1 = vld [vmem:[%s18551_s17 + $0x130] sm:$0xf0]  ;;  %v18864_v45 = vld [vmem:[#allocation33_spill] sm:$0xff]  ;;  %v1638_v63 = vsel %vm1574_vm6, %v15964_v54, %v1606_v62  ;;  %6246 = vmatmul.bf16.vlgmr.msra.gmra.mxu1 %v16406_v34  ;;  %v4613_v42 = vpop.f32.mrf.mxu2  ;;  %v1611_v14 = vmul.f32 0.01, %v16350_v6 }
 0x4d3   :  { %v9812_v3 = vld [vmem:[%s18551_s17 + $0x250] sm:$0xf0]  ;;  %v16436_v40 = vadd.f32 %v1532_v32, %v18864_v45  ;;  %v9671_v21 = vor.u32 %v10972_v22, %v9668_v1  ;;  %v11040_v58 = vld [vmem:[%s18551_s17 + $0x344] sm:$0xf]  ;;  %v16451_v52 = vadd.f32 %v1540_v5, %v18864_v45  ;;  %6301 = vmatpush.bf16.msrb.mxu0 %v9543_v23  ;;  %v4632_v18 = vpop.f32.mrf.mxu3  ;;  %v4614_v53 = vadd.f32 %v4613_v42, %v16328_v25 }
 0x4d4   :  { %v9815_v37 = vor.u32 %v11008_v38, %v9812_v3  ;;  %v9940_v9 = vld [vmem:[%s18551_s17 + $0x350] sm:$0xf0]  ;;  %v10936_v10 = vld [vmem:[%s18551_s17 + $0x4] sm:$0xf]  ;;  %v1619_v5 = vmul.f32 0.01, %v16398_v2  ;;  %v16496_v35 = vpack.c.bf16 %v1637_v27, %v1629_v33  ;;  %v1643_v42 = vsel %vm1579_vm11, %v16350_v6, %v1611_v14 }
 0x4d5   :  { %v9943_v54 = vor.u32 %v11040_v58, %v9940_v9  ;;  %v9524_v36 = vld [vmem:[%s18551_s17 + $0x10] sm:$0xf0]  ;;  %v10968_v7 = vld [vmem:[%s18551_s17 + $0x104] sm:$0xf]  ;;  %6320 = vmatpush.bf16.msrb.mxu1 %v9671_v21  ;;  %vm1580_vm13 = vcmp.ge.f32.partialorder %v16436_v40, 0.0  ;;  %vm1588_vm14 = vcmp.ge.f32.partialorder %v16451_v52, 0.0  ;;  %v16494_v49 = vadd.f32 %v4632_v18, %v4614_v53  ;;  %v4646_v44 = vpop.f32.mrf.mxu0 }
 0x4d6   :  { %v9652_v56 = vld [vmem:[%s18551_s17 + $0x110] sm:$0xf0]  ;;  %v9527_v62 = vor.u32 %v10936_v10, %v9524_v36  ;;  %v11004_v55 = vld [vmem:[%s18551_s17 + $0x224] sm:$0xf]  ;;  %6338 = vmatpush.bf16.msrb.mxu2 %v9815_v37  ;;  %v1612_v12 = vmul.f32 0.01, %v16436_v40  ;;  %v4647_v27 = vadd.f32 %v4646_v44, %v16312_v29  ;;  %v1651_v18 = vsel %vm1587_vm12, %v16398_v2, %v1619_v5 }
 0x4d7   :  { %v18865_v16 = vld [vmem:[#allocation35_spill] sm:$0xff]  ;;  %v9655_v15 = vor.u32 %v10968_v7, %v9652_v56  ;;  %v11036_v8 = vld [vmem:[%s18551_s17 + $0x324] sm:$0xf]  ;;  %6357 = vmatpush.bf16.msrb.mxu3 %v9943_v54  ;;  %v1620_v28 = vmul.f32 0.01, %v16451_v52  ;;  %v4665_v22 = vpop.f32.mrf.mxu1  ;;  %v18866_v9 = vld [vmem:[#allocation56_spill] sm:$0xff] }
 0x4d8   :  { %v1630_v20 = vsel %vm1566_vm10, %v15733_v46, %v18865_v16  ;;  %v9796_v60 = vld [vmem:[%s18551_s17 + $0x230] sm:$0xf0]  ;;  %v16482_v46 = vmul.f32 0.01, %v16149_v50  ;;  %6302 = vmatpush.bf16.msrb.mxu0 %v9527_v62  ;;  %v11092_v30 = vld [vmem:[%s18551_s17 + $0x4e4] sm:$0xf]  ;;  %v16534_v10 = vadd.f32 %v16300_v17, %v18866_v9  ;;  %v16538_v54 = vadd.f32 %v16307_v19, %v18866_v9 }
 0x4d9   :  { %v9799_v13 = vor.u32 %v11004_v55, %v9796_v60  ;;  %v9924_v32 = vld [vmem:[%s18551_s17 + $0x330] sm:$0xf0]  ;;  %v16498_v25 = vpack.c.bf16 %v1638_v63, %v1630_v20  ;;  %6321 = vmatpush.bf16.msrb.mxu1 %v9655_v15  ;;  %v11124_v1 = vld [vmem:[%s18551_s17 + $0x5e4] sm:$0xf]  ;;  %v16540_v36 = vadd.f32 %v4665_v22, %v4647_v27  ;;  %v1644_v44 = vsel %vm1580_vm13, %v16436_v40, %v1612_v12 }
 0x4da   :  { %v9927_v4 = vor.u32 %v11036_v8, %v9924_v32  ;;  %v10148_v23 = vld [vmem:[%s18551_s17 + $0x4f0] sm:$0xf0]  ;;  %v11000_v3 = vld [vmem:[%s18551_s17 + $0x204] sm:$0xf]  ;;  %6265 = vmatmul.bf16.vlgmr.msra.gmra.mxu2 %v16496_v35  ;;  %v4682_v60 = vpop.f32.mrf.mxu2  ;;  %v1652_v6 = vsel %vm1588_vm14, %v16451_v52, %v1620_v28  ;;  %vm1582_vm0 = vcmp.ge.f32.partialorder %v16534_v10, 0.0  ;;  %vm1590_vm1 = vcmp.ge.f32.partialorder %v16538_v54, 0.0 }
 0x4db   :  { %6339 = vmatpush.bf16.msrb.mxu2 %v9799_v13  ;;  %v10151_v33 = vor.u32 %v11092_v30, %v10148_v23  ;;  %v10276_v38 = vld [vmem:[%s18551_s17 + $0x5f0] sm:$0xf0]  ;;  %6284 = vmatmul.bf16.vlgmr.msra.gmra.mxu3 %v16498_v25  ;;  %v11032_v21 = vld [vmem:[%s18551_s17 + $0x304] sm:$0xf]  ;;  %v4701_v8 = vpop.f32.mrf.mxu3  ;;  %v1621_v13 = vmul.f32 0.01, %v16296_v31  ;;  %v16593_v23 = vpack.c.bf16 %v1651_v18, %v1643_v42 }
 0x4dc   :  { %6358 = vmatpush.bf16.msrb.mxu3 %v9927_v4  ;;  %v9780_v45 = vld [vmem:[%s18551_s17 + $0x210] sm:$0xf0]  ;;  %v10279_v29 = vor.u32 %v11124_v1, %v10276_v38  ;;  %v11088_v58 = vld [vmem:[%s18551_s17 + $0x4c4] sm:$0xf]  ;;  %v4683_v4 = vadd.f32 %v4682_v60, %v16453_v26  ;;  %v1614_v14 = vmul.f32 0.01, %v16534_v10  ;;  %v16595_v1 = vpack.c.bf16 %v1652_v6, %v1644_v44 }
 0x4dd   :  { %v9783_v63 = vor.u32 %v11000_v3, %v9780_v45  ;;  %v9908_v37 = vld [vmem:[%s18551_s17 + $0x310] sm:$0xf0]  ;;  %6371 = vmatpush.bf16.msra.mxu0 %v10151_v33  ;;  %v11120_v16 = vld [vmem:[%s18551_s17 + $0x5c4] sm:$0xf]  ;;  %v1622_v5 = vmul.f32 0.01, %v16538_v54  ;;  %v4649_v22 = vpop.f32.mrf.mxu0 }
 0x4de   :  { %v9911_v7 = vor.u32 %v11032_v21, %v9908_v37  ;;  %v10132_v56 = vld [vmem:[%s18551_s17 + $0x4d0] sm:$0xf0]  ;;  %6390 = vmatpush.bf16.msra.mxu1 %v10279_v29  ;;  %v11156_v62 = vld [vmem:[%s18551_s17 + $0x6e4] sm:$0xf]  ;;  %v16581_v26 = vadd.f32 %v4701_v8, %v4683_v4  ;;  %v4650_v28 = vadd.f32 %v4649_v22, %v16404_v51 }
 0x4df   :  { %v10260_v17 = vld [vmem:[%s18551_s17 + $0x5d0] sm:$0xf0]  ;;  %v10135_v20 = vor.u32 %v11088_v58, %v10132_v56  ;;  %v11188_v55 = vld [vmem:[%s18551_s17 + $0x7e4] sm:$0xf]  ;;  %6340 = vmatpush.bf16.msrb.mxu2 %v9783_v63  ;;  %v4668_v30 = vpop.f32.mrf.mxu1  ;;  %v1645_v58 = vsel %vm1581_vm2, %v16149_v50, %v16482_v46  ;;  %v1654_v60 = vsel %vm1590_vm1, %v16538_v54, %v1622_v5 }
 0x4e0   :  { %v10263_v19 = vor.u32 %v11120_v16, %v10260_v17  ;;  %v10404_v15 = vld [vmem:[%s18551_s17 + $0x6f0] sm:$0xf0]  ;;  %6359 = vmatpush.bf16.msrb.mxu3 %v9911_v7  ;;  %v11084_v40 = vld [vmem:[%s18551_s17 + $0x4a4] sm:$0xf]  ;;  %v16615_v37 = vadd.f32 %v4668_v30, %v4650_v28  ;;  %v1653_v17 = vsel %vm1589_vm15, %v16296_v31, %v1621_v13  ;;  %v1646_v31 = vsel %vm1582_vm0, %v16534_v10, %v1614_v14 }
 0x4e1   :  { %v10407_v32 = vor.u32 %v11156_v62, %v10404_v15  ;;  %v10532_v53 = vld [vmem:[%s18551_s17 + $0x7f0] sm:$0xf0]  ;;  %6372 = vmatpush.bf16.msra.mxu0 %v10135_v20  ;;  %v11116_v12 = vld [vmem:[%s18551_s17 + $0x5a4] sm:$0xf]  ;;  %v16656_v44 = vpack.c.bf16 %v1653_v17, %v1645_v58  ;;  %v16658_v10 = vpack.c.bf16 %v1654_v60, %v1646_v31 }
 0x4e2   :  { %v10535_v2 = vor.u32 %v11188_v55, %v10532_v53  ;;  %6391 = vmatpush.bf16.msra.mxu1 %v10263_v19  ;;  %v10116_v52 = vld [vmem:[%s18551_s17 + $0x4b0] sm:$0xf0]  ;;  %v11152_v38 = vld [vmem:[%s18551_s17 + $0x6c4] sm:$0xf]  ;;  %6232 = vmatmul.bf16.gmra.mxu0 %v16593_v23  ;;  %v4684_v15 = vpop.f32.mrf.mxu2 }
 0x4e3   :  { %6409 = vmatpush.bf16.msra.mxu2 %v10407_v32  ;;  %v10119_v27 = vor.u32 %v11084_v40, %v10116_v52  ;;  %v10244_v33 = vld [vmem:[%s18551_s17 + $0x5b0] sm:$0xf0]  ;;  %v11184_v51 = vld [vmem:[%s18551_s17 + $0x7c4] sm:$0xf]  ;;  %6251 = vmatmul.bf16.gmra.mxu1 %v16595_v1  ;;  %v4703_v55 = vpop.f32.mrf.mxu3  ;;  %v4685_v18 = vadd.f32 %v4684_v15, %v16540_v36 }
 0x4e4   :  { %6428 = vmatpush.bf16.msra.mxu3 %v10535_v2  ;;  %v10388_v3 = vld [vmem:[%s18551_s17 + $0x6d0] sm:$0xf0]  ;;  %v10247_v45 = vor.u32 %v11116_v12, %v10244_v33  ;;  %v11080_v21 = vld [vmem:[%s18551_s17 + $0x484] sm:$0xf] }
 0x4e5   :  { %v10391_v29 = vor.u32 %v11152_v38, %v10388_v3  ;;  %v10516_v63 = vld [vmem:[%s18551_s17 + $0x7d0] sm:$0xf0]  ;;  %v11112_v56 = vld [vmem:[%s18551_s17 + $0x584] sm:$0xf]  ;;  %6373 = vmatpush.bf16.msra.mxu0 %v10119_v27  ;;  %v16654_v32 = vadd.f32 %v4703_v55, %v4685_v18  ;;  %v4651_v53 = vpop.f32.mrf.mxu0 }
 0x4e6   :  { %v10519_v9 = vor.u32 %v11184_v51, %v10516_v63  ;;  %v10100_v7 = vld [vmem:[%s18551_s17 + $0x490] sm:$0xf0]  ;;  %6392 = vmatpush.bf16.msra.mxu1 %v10247_v45  ;;  %v11148_v20 = vld [vmem:[%s18551_s17 + $0x6a4] sm:$0xf]  ;;  %v4652_v2 = vadd.f32 %v4651_v53, %v16494_v49 }
 0x4e7   :  { %v10228_v16 = vld [vmem:[%s18551_s17 + $0x590] sm:$0xf0]  ;;  %v10103_v50 = vor.u32 %v11080_v21, %v10100_v7  ;;  %v11180_v62 = vld [vmem:[%s18551_s17 + $0x7a4] sm:$0xf]  ;;  %6410 = vmatpush.bf16.msra.mxu2 %v10391_v29  ;;  %v4670_v4 = vpop.f32.mrf.mxu1 }
 0x4e8   :  { %v10231_v46 = vor.u32 %v11112_v56, %v10228_v16  ;;  %v10372_v19 = vld [vmem:[%s18551_s17 + $0x6b0] sm:$0xf0]  ;;  %6429 = vmatpush.bf16.msra.mxu3 %v10519_v9  ;;  %v11076_v54 = vld [vmem:[%s18551_s17 + $0x464] sm:$0xf]  ;;  %v4671_v27 = vadd.f32 %v4670_v4, %v4652_v2 }
 0x4e9   :  { %v10375_v8 = vor.u32 %v11148_v20, %v10372_v19  ;;  %v10500_v42 = vld [vmem:[%s18551_s17 + $0x7b0] sm:$0xf0]  ;;  %6374 = vmatpush.bf16.msra.mxu0 %v10103_v50  ;;  %v11108_v36 = vld [vmem:[%s18551_s17 + $0x564] sm:$0xf] }
 0x4ea   :  { %v10503_v13 = vor.u32 %v11180_v62, %v10500_v42  ;;  %6393 = vmatpush.bf16.msra.mxu1 %v10231_v46  ;;  %v10084_v6 = vld [vmem:[%s18551_s17 + $0x470] sm:$0xf0]  ;;  %v11144_v22 = vld [vmem:[%s18551_s17 + $0x684] sm:$0xf]  ;;  %6270 = vmatmul.bf16.gmra.mxu2 %v16656_v44  ;;  %v4687_v9 = vpop.f32.mrf.mxu2 }
 0x4eb   :  { %6411 = vmatpush.bf16.msra.mxu2 %v10375_v8  ;;  %v10087_v14 = vor.u32 %v11076_v54, %v10084_v6  ;;  %v10212_v5 = vld [vmem:[%s18551_s17 + $0x570] sm:$0xf0]  ;;  %6289 = vmatmul.bf16.gmra.mxu3 %v16658_v10  ;;  %v11176_v52 = vld [vmem:[%s18551_s17 + $0x784] sm:$0xf]  ;;  %v4706_v7 = vpop.f32.mrf.mxu3  ;;  %v4688_v17 = vadd.f32 %v4687_v9, %v16615_v37 }
 0x4ec   :  { %6430 = vmatpush.bf16.msra.mxu3 %v10503_v13  ;;  %v10356_v30 = vld [vmem:[%s18551_s17 + $0x690] sm:$0xf0]  ;;  %v10215_v49 = vor.u32 %v11108_v36, %v10212_v5  ;;  %v11072_v28 = vld [vmem:[%s18551_s17 + $0x444] sm:$0xf] }
 0x4ed   :  { %v10359_v40 = vor.u32 %v11144_v22, %v10356_v30  ;;  %v10484_v12 = vld [vmem:[%s18551_s17 + $0x790] sm:$0xf0]  ;;  %v11104_v3 = vld [vmem:[%s18551_s17 + $0x544] sm:$0xf]  ;;  %6375 = vmatpush.bf16.msra.mxu0 %v10087_v14  ;;  %v16712_v46 = vadd.f32 %v4706_v7, %v4688_v17  ;;  %v4720_v20 = vpop.f32.mrf.mxu0  ;;  %v10999_v7 = vld [vmem:[%s18551_s17 + $0x1f4] sm:$0xf0] }
 0x4ee   :  { %v10487_v33 = vor.u32 %v11176_v52, %v10484_v12  ;;  %v10068_v38 = vld [vmem:[%s18551_s17 + $0x450] sm:$0xf0]  ;;  %6394 = vmatpush.bf16.msra.mxu1 %v10215_v49  ;;  %v11140_v63 = vld [vmem:[%s18551_s17 + $0x664] sm:$0xf] }
 0x4ef   :  { %v10196_v45 = vld [vmem:[%s18551_s17 + $0x550] sm:$0xf0]  ;;  %v10071_v29 = vor.u32 %v11072_v28, %v10068_v38  ;;  %v11172_v58 = vld [vmem:[%s18551_s17 + $0x764] sm:$0xf]  ;;  %6412 = vmatpush.bf16.msra.mxu2 %v10359_v40  ;;  %v4739_v19 = vpop.f32.mrf.mxu1 }
 0x4f0   :  { %v10199_v51 = vor.u32 %v11104_v3, %v10196_v45  ;;  %v10340_v21 = vld [vmem:[%s18551_s17 + $0x670] sm:$0xf0]  ;;  %6431 = vmatpush.bf16.msra.mxu3 %v10487_v33  ;;  %v11068_v62 = vld [vmem:[%s18551_s17 + $0x424] sm:$0xf]  ;;  %v16723_v37 = vadd.f32 %v4739_v19, %v4720_v20 }
 0x4f1   :  { %v10343_v56 = vor.u32 %v11140_v63, %v10340_v21  ;;  %v10468_v16 = vld [vmem:[%s18551_s17 + $0x770] sm:$0xf0]  ;;  %6376 = vmatpush.bf16.msra.mxu0 %v10071_v29  ;;  %v11100_v55 = vld [vmem:[%s18551_s17 + $0x524] sm:$0xf]  ;;  %v9642_v63 = vld [vmem:[%s18551_s17 + $0xe8] sm:$0xf] }
 0x4f2   :  { %v10471_v50 = vor.u32 %v11172_v58, %v10468_v16  ;;  %6395 = vmatpush.bf16.msra.mxu1 %v10199_v51  ;;  %v10052_v15 = vld [vmem:[%s18551_s17 + $0x430] sm:$0xf0]  ;;  %v11136_v8 = vld [vmem:[%s18551_s17 + $0x644] sm:$0xf]  ;;  %6303 = vmatmul.bf16.vlgmr.msrb.gmra.mxu0 %v16024_v39  ;;  %v4689_v49 = vpop.f32.mrf.mxu2  ;;  %v10967_v21 = vld [vmem:[%s18551_s17 + $0xf4] sm:$0xf0] }
 0x4f3   :  { %6413 = vmatpush.bf16.msra.mxu2 %v10343_v56  ;;  %v10055_v31 = vor.u32 %v11068_v62, %v10052_v15  ;;  %v10180_v60 = vld [vmem:[%s18551_s17 + $0x530] sm:$0xf0]  ;;  %v11168_v53 = vld [vmem:[%s18551_s17 + $0x744] sm:$0xf]  ;;  %6322 = vmatmul.bf16.vlgmr.msrb.gmra.mxu1 %v16043_v48  ;;  %v4708_v40 = vpop.f32.mrf.mxu3  ;;  %v4690_v38 = vadd.f32 %v4689_v49, %v4671_v27  ;;  %v9770_v58 = vld [vmem:[%s18551_s17 + $0x1e8] sm:$0xf]  ;;  %v9643_v9 = vor.u32 %v10967_v21, %v9642_v63 }
 0x4f4   :  { %6432 = vmatpush.bf16.msra.mxu3 %v10471_v50  ;;  %v10324_v42 = vld [vmem:[%s18551_s17 + $0x650] sm:$0xf0]  ;;  %v10183_v18 = vor.u32 %v11100_v55, %v10180_v60  ;;  %v11064_v6 = vld [vmem:[%s18551_s17 + $0x404] sm:$0xf]  ;;  %v9771_v17 = vor.u32 %v10999_v7, %v9770_v58  ;;  %v9626_v15 = vld [vmem:[%s18551_s17 + $0xc8] sm:$0xf] }
 0x4f5   :  { %v10327_v13 = vor.u32 %v11136_v8, %v10324_v42  ;;  %v10452_v4 = vld [vmem:[%s18551_s17 + $0x750] sm:$0xf0]  ;;  %v11096_v2 = vld [vmem:[%s18551_s17 + $0x504] sm:$0xf]  ;;  %6377 = vmatpush.bf16.msra.mxu0 %v10055_v31  ;;  %v16766_v45 = vadd.f32 %v4708_v40, %v4690_v38  ;;  %v4722_v29 = vpop.f32.mrf.mxu0  ;;  %v10963_v55 = vld [vmem:[%s18551_s17 + $0xd4] sm:$0xf0] }
 0x4f6   :  { %v10455_v54 = vor.u32 %v11168_v53, %v10452_v4  ;;  %v10036_v36 = vld [vmem:[%s18551_s17 + $0x410] sm:$0xf0]  ;;  %6396 = vmatpush.bf16.msra.mxu1 %v10183_v18  ;;  %v11132_v22 = vld [vmem:[%s18551_s17 + $0x624] sm:$0xf]  ;;  %v9754_v31 = vld [vmem:[%s18551_s17 + $0x1c8] sm:$0xf]  ;;  %v9627_v60 = vor.u32 %v10963_v55, %v9626_v15 }
 0x4f7   :  { %v10039_v14 = vor.u32 %v11064_v6, %v10036_v36  ;;  %v10164_v5 = vld [vmem:[%s18551_s17 + $0x510] sm:$0xf0]  ;;  %6414 = vmatpush.bf16.msra.mxu2 %v10327_v13  ;;  %v11164_v28 = vld [vmem:[%s18551_s17 + $0x724] sm:$0xf]  ;;  %v4741_v51 = vpop.f32.mrf.mxu1  ;;  %v10995_v8 = vld [vmem:[%s18551_s17 + $0x1d4] sm:$0xf0] }
 0x4f8   :  { %v10308_v30 = vld [vmem:[%s18551_s17 + $0x630] sm:$0xf0]  ;;  %6433 = vmatpush.bf16.msra.mxu3 %v10455_v54  ;;  %v10167_v52 = vor.u32 %v11096_v2, %v10164_v5  ;;  %v16777_v27 = vadd.f32 %v4741_v51, %v4722_v29  ;;  %v11128_v56 = vld [vmem:[%s18551_s17 + $0x604] sm:$0xf]  ;;  %v9898_v42 = vld [vmem:[%s18551_s17 + $0x2e8] sm:$0xf]  ;;  %v9755_v4 = vor.u32 %v10995_v8, %v9754_v31 }
 0x4f9   :  { %v10311_v12 = vor.u32 %v11132_v22, %v10308_v30  ;;  %v10436_v33 = vld [vmem:[%s18551_s17 + $0x730] sm:$0xf0]  ;;  %6378 = vmatpush.bf16.msra.mxu0 %v10039_v14  ;;  %v11160_v20 = vld [vmem:[%s18551_s17 + $0x704] sm:$0xf]  ;;  %v11031_v18 = vld [vmem:[%s18551_s17 + $0x2f4] sm:$0xf0] }
 0x4fa   :  { %v10439_v3 = vor.u32 %v11164_v28, %v10436_v33  ;;  %6397 = vmatpush.bf16.msra.mxu1 %v10167_v52  ;;  %v10292_v16 = vld [vmem:[%s18551_s17 + $0x610] sm:$0xf0]  ;;  %6341 = vmatmul.bf16.vlgmr.msrb.gmra.mxu2 %v16118_v47  ;;  %v4758_v13 = vpop.f32.mrf.mxu2  ;;  %v9899_v54 = vor.u32 %v11031_v18, %v9898_v42  ;;  %v10026_v6 = vld [vmem:[%s18551_s17 + $0x3e8] sm:$0xf]  ;;  %v11063_v36 = vld [vmem:[%s18551_s17 + $0x3f4] sm:$0xf0] }
 0x4fb   :  { %6415 = vmatpush.bf16.msra.mxu2 %v10311_v12  ;;  %6360 = vmatmul.bf16.vlgmr.msrb.gmra.mxu3 %v16120_v59  ;;  %v10295_v50 = vor.u32 %v11128_v56, %v10292_v16  ;;  %v10420_v19 = vld [vmem:[%s18551_s17 + $0x710] sm:$0xf0]  ;;  %v4777_v53 = vpop.f32.mrf.mxu3  ;;  %v4759_v2 = vadd.f32 %v4758_v13, %v16723_v37  ;;  %v10027_v14 = vor.u32 %v11063_v36, %v10026_v6  ;;  %v9610_v49 = vld [vmem:[%s18551_s17 + $0xa8] sm:$0xf]  ;;  %v10959_v40 = vld [vmem:[%s18551_s17 + $0xb4] sm:$0xf0] }
 0x4fc   :  { %6434 = vmatpush.bf16.msra.mxu3 %v10439_v3  ;;  %v10423_v62 = vor.u32 %v11160_v20, %v10420_v19  ;;  %v9738_v37 = vld [vmem:[%s18551_s17 + $0x1a8] sm:$0xf]  ;;  %v9611_v12 = vor.u32 %v10959_v40, %v9610_v49  ;;  %v10991_v28 = vld [vmem:[%s18551_s17 + $0x1b4] sm:$0xf0] }
 0x4fd   :  { %6447 = vmatpush.bf16.msrb.mxu0 %v9643_v9  ;;  %v16821_v5 = vadd.f32 %v4777_v53, %v4759_v2  ;;  %v4725_v22 = vpop.f32.mrf.mxu0  ;;  %v9882_v33 = vld [vmem:[%s18551_s17 + $0x2c8] sm:$0xf]  ;;  %v11027_v38 = vld [vmem:[%s18551_s17 + $0x2d4] sm:$0xf0]  ;;  %v9739_v3 = vor.u32 %v10991_v28, %v9738_v37 }
 0x4fe   :  { %6466 = vmatpush.bf16.msrb.mxu1 %v9771_v17  ;;  %v9883_v29 = vor.u32 %v11027_v38, %v9882_v33  ;;  %v10010_v51 = vld [vmem:[%s18551_s17 + $0x3c8] sm:$0xf]  ;;  %v11059_v63 = vld [vmem:[%s18551_s17 + $0x3d4] sm:$0xf0] }
 0x4ff   :  { %6416 = vmatpush.bf16.msra.mxu2 %v10295_v50  ;;  %v4744_v30 = vpop.f32.mrf.mxu1  ;;  %v10011_v21 = vor.u32 %v11059_v63, %v10010_v51  ;;  %v9594_v58 = vld [vmem:[%s18551_s17 + $0x88] sm:$0xf]  ;;  %v10955_v9 = vld [vmem:[%s18551_s17 + $0x94] sm:$0xf0] }
 0x500   :  { %6435 = vmatpush.bf16.msra.mxu3 %v10423_v62  ;;  %v16832_v52 = vadd.f32 %v4744_v30, %v4725_v22  ;;  %v9722_v7 = vld [vmem:[%s18551_s17 + $0x188] sm:$0xf]  ;;  %v9595_v56 = vor.u32 %v10955_v9, %v9594_v58  ;;  %v10987_v16 = vld [vmem:[%s18551_s17 + $0x194] sm:$0xf0] }
 0x501   :  { %6448 = vmatpush.bf16.msrb.mxu0 %v9627_v60  ;;  %v9866_v17 = vld [vmem:[%s18551_s17 + $0x2a8] sm:$0xf]  ;;  %v11023_v50 = vld [vmem:[%s18551_s17 + $0x2b4] sm:$0xf0]  ;;  %v9723_v62 = vor.u32 %v10987_v16, %v9722_v7 }
 0x502   :  { %6467 = vmatpush.bf16.msrb.mxu1 %v9755_v4  ;;  %6308 = vmatmul.bf16.gmra.mxu0 %v16231_v11  ;;  %v4760_v20 = vpop.f32.mrf.mxu2  ;;  %v9867_v15 = vor.u32 %v11023_v50, %v9866_v17  ;;  %v9994_v55 = vld [vmem:[%s18551_s17 + $0x3a8] sm:$0xf]  ;;  %v11055_v31 = vld [vmem:[%s18551_s17 + $0x3b4] sm:$0xf0] }
 0x503   :  { %6485 = vmatpush.bf16.msrb.mxu2 %v9899_v54  ;;  %6327 = vmatmul.bf16.gmra.mxu1 %v16233_v43  ;;  %v4779_v19 = vpop.f32.mrf.mxu3  ;;  %v4761_v60 = vadd.f32 %v4760_v20, %v16777_v27  ;;  %v9995_v8 = vor.u32 %v11055_v31, %v9994_v55  ;;  %v9578_v53 = vld [vmem:[%s18551_s17 + $0x68] sm:$0xf]  ;;  %v10951_v4 = vld [vmem:[%s18551_s17 + $0x74] sm:$0xf0] }
 0x504   :  { %6504 = vmatpush.bf16.msrb.mxu3 %v10027_v14  ;;  %v9706_v54 = vld [vmem:[%s18551_s17 + $0x168] sm:$0xf]  ;;  %v9579_v6 = vor.u32 %v10951_v4, %v9578_v53  ;;  %v10983_v36 = vld [vmem:[%s18551_s17 + $0x174] sm:$0xf0] }
 0x505   :  { %6449 = vmatpush.bf16.msrb.mxu0 %v9611_v12  ;;  %v16876_v42 = vadd.f32 %v4779_v19, %v4761_v60  ;;  %v4727_v18 = vpop.f32.mrf.mxu0  ;;  %v9850_v2 = vld [vmem:[%s18551_s17 + $0x288] sm:$0xf]  ;;  %v11019_v14 = vld [vmem:[%s18551_s17 + $0x294] sm:$0xf0]  ;;  %v9707_v22 = vor.u32 %v10983_v36, %v9706_v54 }
 0x506   :  { %6468 = vmatpush.bf16.msrb.mxu1 %v9739_v3  ;;  %v9851_v30 = vor.u32 %v11019_v14, %v9850_v2  ;;  %v9978_v49 = vld [vmem:[%s18551_s17 + $0x388] sm:$0xf]  ;;  %v11051_v40 = vld [vmem:[%s18551_s17 + $0x394] sm:$0xf0] }
 0x507   :  { %6486 = vmatpush.bf16.msrb.mxu2 %v9883_v29  ;;  %v4746_v13 = vpop.f32.mrf.mxu1  ;;  %v9979_v37 = vor.u32 %v11051_v40, %v9978_v49  ;;  %v9562_v12 = vld [vmem:[%s18551_s17 + $0x48] sm:$0xf]  ;;  %v10947_v28 = vld [vmem:[%s18551_s17 + $0x54] sm:$0xf0] }
 0x508   :  { %6505 = vmatpush.bf16.msrb.mxu3 %v10011_v21  ;;  %v16887_v27 = vadd.f32 %v4746_v13, %v4727_v18  ;;  %v9690_v33 = vld [vmem:[%s18551_s17 + $0x148] sm:$0xf]  ;;  %v9563_v38 = vor.u32 %v10947_v28, %v9562_v12  ;;  %v10979_v3 = vld [vmem:[%s18551_s17 + $0x154] sm:$0xf0] }
 0x509   :  { %6450 = vmatpush.bf16.msrb.mxu0 %v9595_v56  ;;  %v9834_v29 = vld [vmem:[%s18551_s17 + $0x268] sm:$0xf]  ;;  %v11015_v51 = vld [vmem:[%s18551_s17 + $0x274] sm:$0xf0]  ;;  %v9691_v58 = vor.u32 %v10979_v3, %v9690_v33 }
 0x50a   :  { %6469 = vmatpush.bf16.msrb.mxu1 %v9723_v62  ;;  %6346 = vmatmul.bf16.gmra.mxu2 %v16314_v0  ;;  %v4763_v63 = vpop.f32.mrf.mxu2  ;;  %v9835_v9 = vor.u32 %v11015_v51, %v9834_v29  ;;  %v9962_v7 = vld [vmem:[%s18551_s17 + $0x368] sm:$0xf]  ;;  %v11047_v56 = vld [vmem:[%s18551_s17 + $0x374] sm:$0xf0] }
 0x50b   :  { %6487 = vmatpush.bf16.msrb.mxu2 %v9867_v15  ;;  %6365 = vmatmul.bf16.gmra.mxu3 %v16316_v24  ;;  %v4782_v21 = vpop.f32.mrf.mxu3  ;;  %v4764_v16 = vadd.f32 %v4763_v63, %v16832_v52  ;;  %v9963_v17 = vor.u32 %v11047_v56, %v9962_v7  ;;  %v9546_v62 = vld [vmem:[%s18551_s17 + $0x28] sm:$0xf]  ;;  %v10943_v15 = vld [vmem:[%s18551_s17 + $0x34] sm:$0xf0] }
 0x50c   :  { %6506 = vmatpush.bf16.msrb.mxu3 %v9995_v8  ;;  %v9674_v55 = vld [vmem:[%s18551_s17 + $0x128] sm:$0xf]  ;;  %v9547_v31 = vor.u32 %v10943_v15, %v9546_v62  ;;  %v10975_v60 = vld [vmem:[%s18551_s17 + $0x134] sm:$0xf0] }
 0x50d   :  { %6451 = vmatpush.bf16.msrb.mxu0 %v9579_v6  ;;  %v16931_v50 = vadd.f32 %v4782_v21, %v4764_v16  ;;  %v4796_v20 = vpop.f32.mrf.mxu0  ;;  %v9818_v8 = vld [vmem:[%s18551_s17 + $0x248] sm:$0xf]  ;;  %v11011_v18 = vld [vmem:[%s18551_s17 + $0x254] sm:$0xf0]  ;;  %v9675_v13 = vor.u32 %v10975_v60, %v9674_v55 }
 0x50e   :  { %6470 = vmatpush.bf16.msrb.mxu1 %v9707_v22  ;;  %v4797_v52 = vadd.f32 %v4796_v20, %v16821_v5  ;;  %v9819_v53 = vor.u32 %v11011_v18, %v9818_v8  ;;  %v9946_v5 = vld [vmem:[%s18551_s17 + $0x348] sm:$0xf]  ;;  %v11043_v4 = vld [vmem:[%s18551_s17 + $0x354] sm:$0xf0] }
 0x50f   :  { %6488 = vmatpush.bf16.msrb.mxu2 %v9851_v30  ;;  %v4815_v19 = vpop.f32.mrf.mxu1  ;;  %v9947_v6 = vor.u32 %v11043_v4, %v9946_v5  ;;  %v9530_v36 = vld [vmem:[%s18551_s17 + $0x8] sm:$0xf]  ;;  %v10939_v2 = vld [vmem:[%s18551_s17 + $0x14] sm:$0xf0] }
 0x510   :  { %6507 = vmatpush.bf16.msrb.mxu3 %v9979_v37  ;;  %v16958_v54 = vadd.f32 %v4815_v19, %v4797_v52  ;;  %v9658_v14 = vld [vmem:[%s18551_s17 + $0x108] sm:$0xf]  ;;  %v9531_v22 = vor.u32 %v10939_v2, %v9530_v36  ;;  %v10971_v30 = vld [vmem:[%s18551_s17 + $0x114] sm:$0xf0] }
 0x511   :  { %6452 = vmatpush.bf16.msrb.mxu0 %v9563_v38  ;;  %v9802_v49 = vld [vmem:[%s18551_s17 + $0x228] sm:$0xf]  ;;  %v11007_v40 = vld [vmem:[%s18551_s17 + $0x234] sm:$0xf0]  ;;  %v9659_v28 = vor.u32 %v10971_v30, %v9658_v14 }
 0x512   :  { %6471 = vmatpush.bf16.msrb.mxu1 %v9691_v58  ;;  %6379 = vmatmul.bf16.vlgmr.msra.gmra.mxu0 %v16401_v61  ;;  %v4765_v37 = vpop.f32.mrf.mxu2  ;;  %v9803_v33 = vor.u32 %v11007_v40, %v9802_v49  ;;  %v9930_v38 = vld [vmem:[%s18551_s17 + $0x328] sm:$0xf]  ;;  %v11039_v3 = vld [vmem:[%s18551_s17 + $0x334] sm:$0xf0] }
 0x513   :  { %6489 = vmatpush.bf16.msrb.mxu2 %v9835_v9  ;;  %6398 = vmatmul.bf16.vlgmr.msra.gmra.mxu1 %v16406_v34  ;;  %v4784_v12 = vpop.f32.mrf.mxu3  ;;  %v4766_v29 = vadd.f32 %v4765_v37, %v16887_v27  ;;  %v9931_v51 = vor.u32 %v11039_v3, %v9930_v38  ;;  %v10154_v9 = vld [vmem:[%s18551_s17 + $0x4e8] sm:$0xf]  ;;  %v11095_v7 = vld [vmem:[%s18551_s17 + $0x4f4] sm:$0xf0] }
 0x514   :  { %6508 = vmatpush.bf16.msrb.mxu3 %v9963_v17  ;;  %v10282_v56 = vld [vmem:[%s18551_s17 + $0x5e8] sm:$0xf]  ;;  %v10155_v16 = vor.u32 %v11095_v7, %v10154_v9  ;;  %v11127_v17 = vld [vmem:[%s18551_s17 + $0x5f4] sm:$0xf0] }
 0x515   :  { %6453 = vmatpush.bf16.msrb.mxu0 %v9547_v31  ;;  %v16987_v63 = vadd.f32 %v4784_v12, %v4766_v29  ;;  %v4798_v21 = vpop.f32.mrf.mxu0  ;;  %v9786_v20 = vld [vmem:[%s18551_s17 + $0x208] sm:$0xf]  ;;  %v11003_v19 = vld [vmem:[%s18551_s17 + $0x214] sm:$0xf0] }
 0x516   :  { %6472 = vmatpush.bf16.msrb.mxu1 %v9675_v13  ;;  %v4799_v27 = vadd.f32 %v4798_v21, %v16876_v42  ;;  %v10283_v42 = vor.u32 %v11127_v17, %v10282_v56  ;;  %v9787_v62 = vor.u32 %v11003_v19, %v9786_v20  ;;  %v9914_v15 = vld [vmem:[%s18551_s17 + $0x308] sm:$0xf]  ;;  %v11035_v55 = vld [vmem:[%s18551_s17 + $0x314] sm:$0xf0] }
 0x517   :  { %6490 = vmatpush.bf16.msrb.mxu2 %v9819_v53  ;;  %v4817_v58 = vpop.f32.mrf.mxu1  ;;  %v9915_v31 = vor.u32 %v11035_v55, %v9914_v15  ;;  %v10138_v60 = vld [vmem:[%s18551_s17 + $0x4c8] sm:$0xf]  ;;  %v11091_v8 = vld [vmem:[%s18551_s17 + $0x4d4] sm:$0xf0] }
 0x518   :  { %6509 = vmatpush.bf16.msrb.mxu3 %v9947_v6  ;;  %v4818_v52 = vadd.f32 %v4817_v58, %v4799_v27  ;;  %v10266_v18 = vld [vmem:[%s18551_s17 + $0x5c8] sm:$0xf]  ;;  %v10139_v13 = vor.u32 %v11091_v8, %v10138_v60  ;;  %v11123_v53 = vld [vmem:[%s18551_s17 + $0x5d4] sm:$0xf0] }
 0x519   :  { %6454 = vmatpush.bf16.msrb.mxu0 %v9531_v22  ;;  %v10410_v5 = vld [vmem:[%s18551_s17 + $0x6e8] sm:$0xf]  ;;  %v11159_v4 = vld [vmem:[%s18551_s17 + $0x6f4] sm:$0xf0]  ;;  %v10267_v2 = vor.u32 %v11123_v53, %v10266_v18 }
 0x51a   :  { %6473 = vmatpush.bf16.msrb.mxu1 %v9659_v28  ;;  %6417 = vmatmul.bf16.vlgmr.msra.gmra.mxu2 %v16496_v35  ;;  %v4834_v6 = vpop.f32.mrf.mxu2  ;;  %v10411_v14 = vor.u32 %v11159_v4, %v10410_v5  ;;  %v10538_v22 = vld [vmem:[%s18551_s17 + $0x7e8] sm:$0xf]  ;;  %v11191_v30 = vld [vmem:[%s18551_s17 + $0x7f4] sm:$0xf0] }
 0x51b   :  { %6491 = vmatpush.bf16.msrb.mxu2 %v9803_v33  ;;  %6436 = vmatmul.bf16.vlgmr.msra.gmra.mxu3 %v16498_v25  ;;  %v4853_v36 = vpop.f32.mrf.mxu3  ;;  %v4835_v49 = vadd.f32 %v4834_v6, %v16958_v54  ;;  %v10539_v40 = vor.u32 %v11191_v30, %v10538_v22  ;;  %v10122_v33 = vld [vmem:[%s18551_s17 + $0x4a8] sm:$0xf]  ;;  %v11087_v38 = vld [vmem:[%s18551_s17 + $0x4b4] sm:$0xf0] }
 0x51c   :  { %6510 = vmatpush.bf16.msrb.mxu3 %v9931_v51  ;;  %v10250_v54 = vld [vmem:[%s18551_s17 + $0x5a8] sm:$0xf]  ;;  %v10123_v29 = vor.u32 %v11087_v38, %v10122_v33  ;;  %v11119_v51 = vld [vmem:[%s18551_s17 + $0x5b4] sm:$0xf0] }
 0x51d   :  { %6523 = vmatpush.bf16.msra.mxu0 %v10155_v16  ;;  %v17041_v37 = vadd.f32 %v4853_v36, %v4835_v49  ;;  %v4801_v12 = vpop.f32.mrf.mxu0  ;;  %v10394_v21 = vld [vmem:[%s18551_s17 + $0x6c8] sm:$0xf]  ;;  %v11155_v58 = vld [vmem:[%s18551_s17 + $0x6d4] sm:$0xf0]  ;;  %v10251_v9 = vor.u32 %v11119_v51, %v10250_v54 }
 0x51e   :  { %6542 = vmatpush.bf16.msra.mxu1 %v10283_v42  ;;  %v4802_v3 = vadd.f32 %v4801_v12, %v16931_v50  ;;  %v10395_v7 = vor.u32 %v11155_v58, %v10394_v21  ;;  %v10522_v56 = vld [vmem:[%s18551_s17 + $0x7c8] sm:$0xf]  ;;  %v11187_v50 = vld [vmem:[%s18551_s17 + $0x7d4] sm:$0xf0] }
 0x51f   :  { %6492 = vmatpush.bf16.msrb.mxu2 %v9787_v62  ;;  %v4820_v28 = vpop.f32.mrf.mxu1  ;;  %v10523_v16 = vor.u32 %v11187_v50, %v10522_v56  ;;  %v10106_v17 = vld [vmem:[%s18551_s17 + $0x488] sm:$0xf]  ;;  %v11083_v20 = vld [vmem:[%s18551_s17 + $0x494] sm:$0xf0] }
 0x520   :  { %6511 = vmatpush.bf16.msrb.mxu3 %v9915_v31  ;;  %v17068_v27 = vadd.f32 %v4820_v28, %v4802_v3  ;;  %v10234_v19 = vld [vmem:[%s18551_s17 + $0x588] sm:$0xf]  ;;  %v10107_v42 = vor.u32 %v11083_v20, %v10106_v17  ;;  %v11115_v62 = vld [vmem:[%s18551_s17 + $0x594] sm:$0xf0] }
 0x521   :  { %6524 = vmatpush.bf16.msra.mxu0 %v10139_v13  ;;  %v10378_v15 = vld [vmem:[%s18551_s17 + $0x6a8] sm:$0xf]  ;;  %v11151_v55 = vld [vmem:[%s18551_s17 + $0x6b4] sm:$0xf0]  ;;  %v10235_v8 = vor.u32 %v11115_v62, %v10234_v19 }
 0x522   :  { %6543 = vmatpush.bf16.msra.mxu1 %v10267_v2  ;;  %6384 = vmatmul.bf16.gmra.mxu0 %v16593_v23  ;;  %v4836_v31 = vpop.f32.mrf.mxu2  ;;  %v10379_v18 = vor.u32 %v11151_v55, %v10378_v15  ;;  %v10506_v13 = vld [vmem:[%s18551_s17 + $0x7a8] sm:$0xf]  ;;  %v11183_v53 = vld [vmem:[%s18551_s17 + $0x7b4] sm:$0xf0] }
 0x523   :  { %6561 = vmatpush.bf16.msra.mxu2 %v10411_v14  ;;  %6403 = vmatmul.bf16.gmra.mxu1 %v16595_v1  ;;  %v4855_v60 = vpop.f32.mrf.mxu3  ;;  %v4837_v5 = vadd.f32 %v4836_v31, %v4818_v52  ;;  %v10507_v4 = vor.u32 %v11183_v53, %v10506_v13  ;;  %v10090_v14 = vld [vmem:[%s18551_s17 + $0x468] sm:$0xf]  ;;  %v11079_v22 = vld [vmem:[%s18551_s17 + $0x474] sm:$0xf0] }
 0x524   :  { %6580 = vmatpush.bf16.msra.mxu3 %v10539_v40  ;;  %v10218_v30 = vld [vmem:[%s18551_s17 + $0x568] sm:$0xf]  ;;  %v10091_v49 = vor.u32 %v11079_v22, %v10090_v14  ;;  %v11111_v40 = vld [vmem:[%s18551_s17 + $0x574] sm:$0xf0] }
 0x525   :  { %6525 = vmatpush.bf16.msra.mxu0 %v10123_v29  ;;  %v17096_v6 = vadd.f32 %v4855_v60, %v4837_v5  ;;  %v4803_v36 = vpop.f32.mrf.mxu0  ;;  %v10362_v12 = vld [vmem:[%s18551_s17 + $0x688] sm:$0xf]  ;;  %v11147_v28 = vld [vmem:[%s18551_s17 + $0x694] sm:$0xf0] }
 0x526   :  { %6544 = vmatpush.bf16.msra.mxu1 %v10251_v9  ;;  %v4804_v52 = vadd.f32 %v4803_v36, %v16987_v63  ;;  %v10219_v63 = vor.u32 %v11111_v40, %v10218_v30  ;;  %v10363_v33 = vor.u32 %v11147_v28, %v10362_v12  ;;  %v10490_v38 = vld [vmem:[%s18551_s17 + $0x788] sm:$0xf]  ;;  %v11179_v54 = vld [vmem:[%s18551_s17 + $0x794] sm:$0xf0] }
 0x527   :  { %6562 = vmatpush.bf16.msra.mxu2 %v10395_v7  ;;  %v4822_v2 = vpop.f32.mrf.mxu1  ;;  %v10491_v29 = vor.u32 %v11179_v54, %v10490_v38  ;;  %v10074_v51 = vld [vmem:[%s18551_s17 + $0x448] sm:$0xf]  ;;  %v11075_v21 = vld [vmem:[%s18551_s17 + $0x454] sm:$0xf0] }
 0x528   :  { %6581 = vmatpush.bf16.msra.mxu3 %v10523_v16  ;;  %v4823_v3 = vadd.f32 %v4822_v2, %v4804_v52  ;;  %v10202_v58 = vld [vmem:[%s18551_s17 + $0x548] sm:$0xf]  ;;  %v10075_v9 = vor.u32 %v11075_v21, %v10074_v51  ;;  %v11107_v7 = vld [vmem:[%s18551_s17 + $0x554] sm:$0xf0] }
 0x529   :  { %6526 = vmatpush.bf16.msra.mxu0 %v10107_v42  ;;  %v10346_v56 = vld [vmem:[%s18551_s17 + $0x668] sm:$0xf]  ;;  %v11143_v50 = vld [vmem:[%s18551_s17 + $0x674] sm:$0xf0]  ;;  %v10203_v20 = vor.u32 %v11107_v7, %v10202_v58 }
 0x52a   :  { %6545 = vmatpush.bf16.msra.mxu1 %v10235_v8  ;;  %6422 = vmatmul.bf16.gmra.mxu2 %v16656_v44  ;;  %v4839_v16 = vpop.f32.mrf.mxu2  ;;  %v10347_v19 = vor.u32 %v11143_v50, %v10346_v56  ;;  %v10474_v42 = vld [vmem:[%s18551_s17 + $0x768] sm:$0xf]  ;;  %v11175_v62 = vld [vmem:[%s18551_s17 + $0x774] sm:$0xf0] }
 0x52b   :  { %6563 = vmatpush.bf16.msra.mxu2 %v10379_v18  ;;  %6441 = vmatmul.bf16.gmra.mxu3 %v16658_v10  ;;  %v4858_v17 = vpop.f32.mrf.mxu3  ;;  %v4840_v15 = vadd.f32 %v4839_v16, %v17068_v27  ;;  %v10475_v55 = vor.u32 %v11175_v62, %v10474_v42  ;;  %v10058_v18 = vld [vmem:[%s18551_s17 + $0x428] sm:$0xf]  ;;  %v11071_v13 = vld [vmem:[%s18551_s17 + $0x434] sm:$0xf0]  ;;  %v9772_v62 = vld [vmem:[%s18551_s17 + $0x1f8] sm:$0xf0] }
 0x52c   :  { %6582 = vmatpush.bf16.msra.mxu3 %v10507_v4  ;;  %v10186_v27 = vld [vmem:[%s18551_s17 + $0x528] sm:$0xf]  ;;  %v10059_v53 = vor.u32 %v11071_v13, %v10058_v18  ;;  %v11103_v5 = vld [vmem:[%s18551_s17 + $0x534] sm:$0xf0] }
 0x52d   :  { %6527 = vmatpush.bf16.msra.mxu0 %v10091_v49  ;;  %v17150_v31 = vadd.f32 %v4858_v17, %v4840_v15  ;;  %v17152_v60 = vpop.f32.mrf.mxu0  ;;  %v10330_v4 = vld [vmem:[%s18551_s17 + $0x648] sm:$0xf]  ;;  %v11139_v36 = vld [vmem:[%s18551_s17 + $0x654] sm:$0xf0]  ;;  %v10187_v2 = vor.u32 %v11103_v5, %v10186_v27 }
 0x52e   :  { %6546 = vmatpush.bf16.msra.mxu1 %v10219_v63  ;;  %v10331_v14 = vor.u32 %v11139_v36, %v10330_v4  ;;  %v10458_v22 = vld [vmem:[%s18551_s17 + $0x748] sm:$0xf]  ;;  %v11171_v30 = vld [vmem:[%s18551_s17 + $0x754] sm:$0xf0]  ;;  %v10961_v4 = vld [vmem:[%s18551_s17 + $0xcc] sm:$0xf] }
 0x52f   :  { %6564 = vmatpush.bf16.msra.mxu2 %v10363_v33  ;;  %v17154_v8 = vpop.f32.mrf.mxu1  ;;  %v10459_v52 = vor.u32 %v11171_v30, %v10458_v22  ;;  %v10042_v49 = vld [vmem:[%s18551_s17 + $0x408] sm:$0xf]  ;;  %v11067_v40 = vld [vmem:[%s18551_s17 + $0x414] sm:$0xf0]  ;;  %v9628_v36 = vld [vmem:[%s18551_s17 + $0xd8] sm:$0xf0] }
 0x530   :  { %6583 = vmatpush.bf16.msra.mxu3 %v10491_v29  ;;  %v10170_v12 = vld [vmem:[%s18551_s17 + $0x508] sm:$0xf]  ;;  %v10043_v28 = vor.u32 %v11067_v40, %v10042_v49  ;;  %v11099_v63 = vld [vmem:[%s18551_s17 + $0x514] sm:$0xf0]  ;;  %v9756_v22 = vld [vmem:[%s18551_s17 + $0x1d8] sm:$0xf0] }
 0x531   :  { %6528 = vmatpush.bf16.msra.mxu0 %v10075_v9  ;;  %v10314_v33 = vld [vmem:[%s18551_s17 + $0x628] sm:$0xf]  ;;  %v11135_v38 = vld [vmem:[%s18551_s17 + $0x634] sm:$0xf0]  ;;  %v10171_v51 = vor.u32 %v11099_v63, %v10170_v12  ;;  %v11029_v30 = vld [vmem:[%s18551_s17 + $0x2ec] sm:$0xf] }
 0x532   :  { %6547 = vmatpush.bf16.msra.mxu1 %v10203_v20  ;;  %6455 = vmatmul.bf16.vlgmr.msrb.gmra.mxu0 %v16024_v39  ;;  %v4841_v54 = vpop.f32.mrf.mxu2  ;;  %v10315_v21 = vor.u32 %v11135_v38, %v10314_v33  ;;  %v10442_v58 = vld [vmem:[%s18551_s17 + $0x728] sm:$0xf]  ;;  %v11167_v9 = vld [vmem:[%s18551_s17 + $0x734] sm:$0xf0]  ;;  %v10965_v20 = vld [vmem:[%s18551_s17 + $0xec] sm:$0xf] }
 0x533   :  { %6565 = vmatpush.bf16.msra.mxu2 %v10347_v19  ;;  %6474 = vmatmul.bf16.vlgmr.msrb.gmra.mxu1 %v16043_v48  ;;  %v4860_v29 = vpop.f32.mrf.mxu3  ;;  %v4842_v7 = vadd.f32 %v4841_v54, %v4823_v3  ;;  %v10443_v56 = vor.u32 %v11167_v9, %v10442_v58  ;;  %v9644_v19 = vld [vmem:[%s18551_s17 + $0xf8] sm:$0xf0]  ;;  %v10997_v3 = vld [vmem:[%s18551_s17 + $0x1ec] sm:$0xf]  ;;  %v10298_v15 = vld [vmem:[%s18551_s17 + $0x608] sm:$0xf] }
 0x534   :  { %6584 = vmatpush.bf16.msra.mxu3 %v10475_v55  ;;  %v9647_v42 = vor.u32 %v10965_v20, %v9644_v19  ;;  %v11131_v55 = vld [vmem:[%s18551_s17 + $0x614] sm:$0xf0]  ;;  %v9775_v18 = vor.u32 %v10997_v3, %v9772_v62  ;;  %v10426_v27 = vld [vmem:[%s18551_s17 + $0x708] sm:$0xf]  ;;  %v11061_v63 = vld [vmem:[%s18551_s17 + $0x3ec] sm:$0xf] }
 0x535   :  { %6529 = vmatpush.bf16.msra.mxu0 %v10059_v53  ;;  %v17206_v50 = vadd.f32 %v4860_v29, %v4842_v7  ;;  %v17208_v16 = vpop.f32.mrf.mxu0  ;;  %v10299_v13 = vor.u32 %v11131_v55, %v10298_v15  ;;  %v11163_v53 = vld [vmem:[%s18551_s17 + $0x714] sm:$0xf0]  ;;  %v10028_v33 = vld [vmem:[%s18551_s17 + $0x3f8] sm:$0xf0]  ;;  %v10989_v58 = vld [vmem:[%s18551_s17 + $0x1ac] sm:$0xf] }
 0x536   :  { %6548 = vmatpush.bf16.msra.mxu1 %v10187_v2  ;;  %v10427_v5 = vor.u32 %v11163_v53, %v10426_v27  ;;  %v10993_v2 = vld [vmem:[%s18551_s17 + $0x1cc] sm:$0xf]  ;;  %v10031_v38 = vor.u32 %v11061_v63, %v10028_v33  ;;  %v9740_v7 = vld [vmem:[%s18551_s17 + $0x1b8] sm:$0xf0] }
 0x537   :  { %6566 = vmatpush.bf16.msra.mxu2 %v10331_v14  ;;  %v17210_v17 = vpop.f32.mrf.mxu1  ;;  %v9631_v14 = vor.u32 %v10961_v4, %v9628_v36  ;;  %v9759_v12 = vor.u32 %v10993_v2, %v9756_v22  ;;  %v9884_v20 = vld [vmem:[%s18551_s17 + $0x2d8] sm:$0xf0]  ;;  %v9743_v19 = vor.u32 %v10989_v58, %v9740_v7  ;;  %v10953_v55 = vld [vmem:[%s18551_s17 + $0x8c] sm:$0xf]  ;;  %v18868_v7 = vld [vmem:[#allocation57_spill] sm:$0xff] }
 0x538   :  { %6585 = vmatpush.bf16.msra.mxu3 %v10459_v52  ;;  %v9900_v52 = vld [vmem:[%s18551_s17 + $0x2f8] sm:$0xf0] }
 0x539   :  { %6530 = vmatpush.bf16.msra.mxu0 %v10043_v28  ;;  %v9903_v28 = vor.u32 %v11029_v30, %v9900_v52  ;;  %v10012_v62 = vld [vmem:[%s18551_s17 + $0x3d8] sm:$0xf0]  ;;  %v11053_v30 = vld [vmem:[%s18551_s17 + $0x3ac] sm:$0xf] }
 0x53a   :  { %6549 = vmatpush.bf16.msra.mxu1 %v10171_v51  ;;  %6493 = vmatmul.bf16.vlgmr.msrb.gmra.mxu2 %v16118_v47  ;;  %v10957_v51 = vld [vmem:[%s18551_s17 + $0xac] sm:$0xf]  ;;  %v9724_v53 = vld [vmem:[%s18551_s17 + $0x198] sm:$0xf0] }
 0x53b   :  { %6567 = vmatpush.bf16.msra.mxu2 %v10315_v21  ;;  %6512 = vmatmul.bf16.vlgmr.msrb.gmra.mxu3 %v16120_v59  ;;  %v9612_v21 = vld [vmem:[%s18551_s17 + $0xb8] sm:$0xf0] }
 0x53c   :  { %6586 = vmatpush.bf16.msra.mxu3 %v10443_v56  ;;  %v17258_v40 = vpop.f32.mrf.mxu3  ;;  %v9615_v9 = vor.u32 %v10957_v51, %v9612_v21  ;;  %v11025_v56 = vld [vmem:[%s18551_s17 + $0x2cc] sm:$0xf]  ;;  %v9868_v4 = vld [vmem:[%s18551_s17 + $0x2b8] sm:$0xf0] }
 0x53d   :  { %6599 = vmatpush.bf16.msrb.mxu0 %v9647_v42  ;;  %v17256_v49 = vpop.f32.mrf.mxu2  ;;  %v9887_v3 = vor.u32 %v11025_v56, %v9884_v20  ;;  %v11057_v42 = vld [vmem:[%s18551_s17 + $0x3cc] sm:$0xf]  ;;  %v9996_v52 = vld [vmem:[%s18551_s17 + $0x3b8] sm:$0xf0]  ;;  %v6155_v56 = vadd.f32 %v17208_v16, %v18868_v7 }
 0x53e   :  { %6618 = vmatpush.bf16.msrb.mxu1 %v9775_v18  ;;  %v17266_v54 = vpop.f32.mrf.mxu0  ;;  %v10015_v15 = vor.u32 %v11057_v42, %v10012_v62  ;;  %v9596_v18 = vld [vmem:[%s18551_s17 + $0x98] sm:$0xf0] }
 0x53f   :  { %6568 = vmatpush.bf16.msra.mxu2 %v10299_v13  ;;  %v17268_v29 = vpop.f32.mrf.mxu1  ;;  %v10985_v13 = vld [vmem:[%s18551_s17 + $0x18c] sm:$0xf]  ;;  %v9599_v27 = vor.u32 %v10953_v55, %v9596_v18  ;;  %v18867_v58 = vld [vmem:[#allocation16_spill] sm:$0xff]  ;;  %v6174_v42 = vadd.f32 %v17210_v17, %v6155_v56 }
 0x540   :  { %6587 = vmatpush.bf16.msra.mxu3 %v10427_v5  ;;  %v11021_v5 = vld [vmem:[%s18551_s17 + $0x2ac] sm:$0xf] }
 0x541   :  { %6600 = vmatpush.bf16.msrb.mxu0 %v9631_v14  ;;  %v9727_v14 = vor.u32 %v10985_v13, %v9724_v53  ;;  %v9871_v22 = vor.u32 %v11021_v5, %v9868_v4 }
 0x542   :  { %6619 = vmatpush.bf16.msrb.mxu1 %v9759_v12  ;;  %6460 = vmatmul.bf16.gmra.mxu0 %v16231_v11  ;;  %v9999_v12 = vor.u32 %v11053_v30, %v9996_v52  ;;  %v9580_v52 = vld [vmem:[%s18551_s17 + $0x78] sm:$0xf0] }
 0x543   :  { %6637 = vmatpush.bf16.msrb.mxu2 %v9903_v28  ;;  %6479 = vmatmul.bf16.gmra.mxu1 %v16233_v43 }
 0x544   :  { %6656 = vmatpush.bf16.msrb.mxu3 %v10031_v38  ;;  %v6211_v2 = vpop.f32.mrf.mxu3 }
 0x545   :  { %6601 = vmatpush.bf16.msrb.mxu0 %v9615_v9  ;;  %v6192_v36 = vpop.f32.mrf.mxu2  ;;  %v6153_v9 = vadd.f32 %v17152_v60, %v18867_v58  ;;  %v18870_v58 = vld [vmem:[#allocation42_spill] sm:$0xff] }
 0x546   :  { %6620 = vmatpush.bf16.msrb.mxu1 %v9743_v19  ;;  %v6159_v28 = vpop.f32.mrf.mxu0  ;;  %v6193_v60 = vadd.f32 %v6192_v36, %v6174_v42  ;;  %v11017_v42 = vld [vmem:[%s18551_s17 + $0x28c] sm:$0xf] }
 0x547   :  { %6638 = vmatpush.bf16.msrb.mxu2 %v9887_v3  ;;  %v17320_v63 = vpop.f32.mrf.mxu1  ;;  %v6172_v3 = vadd.f32 %v17154_v8, %v6153_v9  ;;  %v6160_v9 = vadd.f32 %v6159_v28, %v18870_v58  ;;  %v9548_v58 = vld [vmem:[%s18551_s17 + $0x38] sm:$0xf0] }
 0x548   :  { %6657 = vmatpush.bf16.msrb.mxu3 %v10015_v15 }
 0x549   :  { %6602 = vmatpush.bf16.msrb.mxu0 %v9599_v27  ;;  %v6191_v62 = vadd.f32 %v17256_v49, %v6172_v3  ;;  %v6212_v27 = vadd.f32 %v6211_v2, %v6193_v60  ;;  %v10949_v2 = vld [vmem:[%s18551_s17 + $0x6c] sm:$0xf]  ;;  %v9980_v60 = vld [vmem:[%s18551_s17 + $0x398] sm:$0xf0] }
 0x54a   :  { %6621 = vmatpush.bf16.msrb.mxu1 %v9727_v14  ;;  %6498 = vmatmul.bf16.gmra.mxu2 %v16314_v0  ;;  %v18869_v14 = vld [vmem:[#allocation39_spill] sm:$0xff] }
 0x54b   :  { %6639 = vmatpush.bf16.msrb.mxu2 %v9871_v22  ;;  %6517 = vmatmul.bf16.gmra.mxu3 %v16316_v24  ;;  %v6210_v18 = vadd.f32 %v17258_v40, %v6191_v62  ;;  %v6158_v22 = vadd.f32 %v17266_v54, %v18869_v14  ;;  %v9708_v54 = vld [vmem:[%s18551_s17 + $0x178] sm:$0xf0] }
 0x54c   :  { %6658 = vmatpush.bf16.msrb.mxu3 %v9999_v12  ;;  %v17324_v38 = vpop.f32.mrf.mxu3  ;;  %v10981_v12 = vld [vmem:[%s18551_s17 + $0x16c] sm:$0xf]  ;;  %v9852_v62 = vld [vmem:[%s18551_s17 + $0x298] sm:$0xf0] }
 0x54d   :  { %v6195_v33 = vpop.f32.mrf.mxu2  ;;  %v9711_v3 = vor.u32 %v10981_v12, %v9708_v54  ;;  %v9855_v28 = vor.u32 %v11017_v42, %v9852_v62  ;;  %v10941_v54 = vld [vmem:[%s18551_s17 + $0x2c] sm:$0xf] }
 0x54e   :  { %v6228_v51 = vpop.f32.mrf.mxu0  ;;  %v9551_v42 = vor.u32 %v10941_v54, %v9548_v58  ;;  %v9932_v54 = vld [vmem:[%s18551_s17 + $0x338] sm:$0xf0] }
 0x54f   :  { %v6247_v21 = vpop.f32.mrf.mxu1  ;;  %v6229_v53 = vadd.f32 %v6228_v51, %v6210_v18  ;;  %6622 = vmatpush.bf16.msrb.mxu1 %v9711_v3  ;;  %6640 = vmatpush.bf16.msrb.mxu2 %v9855_v28  ;;  %v9820_v28 = vld [vmem:[%s18551_s17 + $0x258] sm:$0xf0] }
 0x551   :  { %v6248_v4 = vadd.f32 %v6247_v21, %v6229_v53  ;;  %v9583_v21 = vor.u32 %v10949_v2, %v9580_v52  ;;  %v11045_v52 = vld [vmem:[%s18551_s17 + $0x36c] sm:$0xf] }
 0x552   :  { %6531 = vmatmul.bf16.vlgmr.msra.gmra.mxu0 %v16401_v61 }
 0x553   :  { %6550 = vmatmul.bf16.vlgmr.msra.gmra.mxu1 %v16406_v34  ;;  %6603 = vmatpush.bf16.msrb.mxu0 %v9583_v21 }
 0x554   :  { %v17334_v19 = vpop.f32.mrf.mxu3 }
 0x555   :  { %v17332_v20 = vpop.f32.mrf.mxu2 }
 0x556   :  { %v6230_v15 = vpop.f32.mrf.mxu0 }
 0x557   :  { %v6249_v55 = vpop.f32.mrf.mxu1  ;;  %v6231_v5 = vadd.f32 %v6230_v15, %v6212_v27  ;;  %v11049_v15 = vld [vmem:[%s18551_s17 + $0x38c] sm:$0xf]  ;;  %v9564_v27 = vld [vmem:[%s18551_s17 + $0x58] sm:$0xf0] }
 0x559   :  { %v6250_v49 = vadd.f32 %v6249_v55, %v6231_v5  ;;  %v6177_v55 = vadd.f32 %v17268_v29, %v6158_v22  ;;  %v10977_v29 = vld [vmem:[%s18551_s17 + $0x14c] sm:$0xf] }
 0x55a   :  { %6569 = vmatmul.bf16.vlgmr.msra.gmra.mxu2 %v16496_v35  ;;  %v11013_v22 = vld [vmem:[%s18551_s17 + $0x26c] sm:$0xf] }
 0x55b   :  { %6588 = vmatmul.bf16.vlgmr.msra.gmra.mxu3 %v16498_v25  ;;  %v6196_v53 = vadd.f32 %v6195_v33, %v6177_v55  ;;  %v9836_v33 = vld [vmem:[%s18551_s17 + $0x278] sm:$0xf0]  ;;  %v11009_v55 = vld [vmem:[%s18551_s17 + $0x24c] sm:$0xf] }
 0x55c   :  { %v9839_v2 = vor.u32 %v11013_v22, %v9836_v33 }
 0x55d   :  { %v6266_v16 = vpop.f32.mrf.mxu2  ;;  %v6215_v3 = vadd.f32 %v17324_v38, %v6196_v53 }
 0x55e   :  { %v6285_v13 = vpop.f32.mrf.mxu3  ;;  %v6267_v36 = vadd.f32 %v6266_v16, %v6248_v4  ;;  %v9983_v16 = vor.u32 %v11049_v15, %v9980_v60  ;;  %v9692_v4 = vld [vmem:[%s18551_s17 + $0x158] sm:$0xf0]  ;;  %6641 = vmatpush.bf16.msrb.mxu2 %v9839_v2  ;;  %v11005_v2 = vld [vmem:[%s18551_s17 + $0x22c] sm:$0xf] }
 0x55f   :  { %v17342_v8 = vpop.f32.mrf.mxu0  ;;  %v9695_v14 = vor.u32 %v10977_v29, %v9692_v4  ;;  %v9532_v4 = vld [vmem:[%s18551_s17 + $0x18] sm:$0xf0] }
 0x560   :  { %v17344_v17 = vpop.f32.mrf.mxu1  ;;  %v17363_v7 = vadd.f32 %v6285_v13, %v6267_v36  ;;  %v10945_v13 = vld [vmem:[%s18551_s17 + $0x4c] sm:$0xf]  ;;  %6659 = vmatpush.bf16.msrb.mxu3 %v9983_v16  ;;  %v6234_v60 = vadd.f32 %v17342_v8, %v6215_v3  ;;  %v9823_v16 = vor.u32 %v11009_v55, %v9820_v28  ;;  %v10156_v3 = vld [vmem:[%s18551_s17 + $0x4f8] sm:$0xf0] }
 0x561   :  { %v9567_v5 = vor.u32 %v10945_v13, %v9564_v27  ;;  %6623 = vmatpush.bf16.msrb.mxu1 %v9695_v14  ;;  %v11041_v13 = vld [vmem:[%s18551_s17 + $0x34c] sm:$0xf]  ;;  %v9948_v27 = vld [vmem:[%s18551_s17 + $0x358] sm:$0xf0] }
 0x562   :  { %6536 = vmatmul.bf16.gmra.mxu0 %v16593_v23  ;;  %v10937_v8 = vld [vmem:[%s18551_s17 + $0xc] sm:$0xf]  ;;  %6642 = vmatpush.bf16.msrb.mxu2 %v9823_v16 }
 0x563   :  { %6555 = vmatmul.bf16.gmra.mxu1 %v16595_v1  ;;  %6604 = vmatpush.bf16.msrb.mxu0 %v9567_v5  ;;  %v9951_v5 = vor.u32 %v11041_v13, %v9948_v27  ;;  %v18871_v55 = vld [vmem:[#allocation6_spill] sm:$0xff] }
 0x564   :  { %v11001_v13 = vld [vmem:[%s18551_s17 + $0x20c] sm:$0xf] }
 0x565   :  { %v6268_v40 = vpop.f32.mrf.mxu2  ;;  %v11033_v27 = vld [vmem:[%s18551_s17 + $0x30c] sm:$0xf] }
 0x566   :  { %v6269_v30 = vadd.f32 %v6268_v40, %v6250_v49  ;;  %v6287_v51 = vpop.f32.mrf.mxu3  ;;  %v6179_v49 = vadd.f32 %v17320_v63, %v6160_v9  ;;  %v9964_v63 = vld [vmem:[%s18551_s17 + $0x378] sm:$0xf0]  ;;  %v10973_v9 = vld [vmem:[%s18551_s17 + $0x12c] sm:$0xf] }
 0x567   :  { %v6235_v40 = vpop.f32.mrf.mxu0  ;;  %v9967_v21 = vor.u32 %v11045_v52, %v9964_v63  ;;  %6605 = vmatpush.bf16.msrb.mxu0 %v9551_v42  ;;  %v9804_v52 = vld [vmem:[%s18551_s17 + $0x238] sm:$0xf0]  ;;  %v6253_v63 = vadd.f32 %v17344_v17, %v6234_v60  ;;  %v11093_v17 = vld [vmem:[%s18551_s17 + $0x4ec] sm:$0xf] }
 0x568   :  { %v17365_v56 = vadd.f32 %v6287_v51, %v6269_v30  ;;  %v6254_v30 = vpop.f32.mrf.mxu1  ;;  %v6198_v12 = vadd.f32 %v17332_v20, %v6179_v49  ;;  %v9676_v20 = vld [vmem:[%s18551_s17 + $0x138] sm:$0xf0]  ;;  %v10969_v49 = vld [vmem:[%s18551_s17 + $0x10c] sm:$0xf] }
 0x569   :  { %6660 = vmatpush.bf16.msrb.mxu3 %v9967_v21  ;;  %v9679_v15 = vor.u32 %v10973_v9, %v9676_v20  ;;  %v9807_v21 = vor.u32 %v11005_v2, %v9804_v52  ;;  %v11125_v42 = vld [vmem:[%s18551_s17 + $0x5ec] sm:$0xf] }
 0x56a   :  { %v6753_v18 = vadd.f32 %v17365_v56, %v17363_v7  ;;  %6574 = vmatmul.bf16.gmra.mxu2 %v16656_v44  ;;  %v6217_v29 = vadd.f32 %v17334_v19, %v6198_v12  ;;  %v9660_v19 = vld [vmem:[%s18551_s17 + $0x118] sm:$0xf0] }
 0x56b   :  { %6593 = vmatmul.bf16.gmra.mxu3 %v16658_v10  ;;  %6624 = vmatpush.bf16.msrb.mxu1 %v9679_v15  ;;  %v9663_v33 = vor.u32 %v10969_v49, %v9660_v19  ;;  %v10284_v15 = vld [vmem:[%s18551_s17 + $0x5f8] sm:$0xf0]  ;;  %v11121_v19 = vld [vmem:[%s18551_s17 + $0x5cc] sm:$0xf] }
 0x56c   :  { %v6754_v36 = vrot.slane %v6753_v18, 4  ;;  %v6236_v22 = vadd.f32 %v6235_v40, %v6217_v29  ;;  %v11037_v40 = vld [vmem:[%s18551_s17 + $0x32c] sm:$0xf]  ;;  %6643 = vmatpush.bf16.msrb.mxu2 %v9807_v21  ;;  %v10287_v16 = vor.u32 %v11125_v42, %v10284_v15 }
 0x56d   :  { %v6271_v38 = vpop.f32.mrf.mxu2  ;;  %6661 = vmatpush.bf16.msrb.mxu3 %v9951_v5  ;;  %v9935_v9 = vor.u32 %v11037_v40, %v9932_v54  ;;  %v11189_v21 = vld [vmem:[%s18551_s17 + $0x7ec] sm:$0xf] }
 0x56e   :  { %v6755_v51 = vadd.f32 %v6754_v36, %v6753_v18  ;;  %v6290_v18 = vpop.f32.mrf.mxu3  ;;  %v9535_v36 = vor.u32 %v10937_v8, %v9532_v4  ;;  %v6272_v20 = vadd.f32 %v6271_v38, %v6253_v63  ;;  %v6255_v60 = vadd.f32 %v6254_v30, %v6236_v22  ;;  %v9788_v38 = vld [vmem:[%s18551_s17 + $0x218] sm:$0xf0]  ;;  %v11085_v42 = vld [vmem:[%s18551_s17 + $0x4ac] sm:$0xf] }
 0x56f   :  { %v17456_v12 = vpop.f32.mrf.mxu0  ;;  %6625 = vmatpush.bf16.msrb.mxu1 %v9663_v33  ;;  %v10412_v63 = vld [vmem:[%s18551_s17 + $0x6f8] sm:$0xf0] }
 0x570   :  { %v6756_v62 = vrot.slane %v6755_v51, 2  ;;  %6606 = vmatpush.bf16.msrb.mxu0 %v9535_v36  ;;  %v10140_v36 = vld [vmem:[%s18551_s17 + $0x4d8] sm:$0xf0] }
 0x571   :  { %6662 = vmatpush.bf16.msrb.mxu3 %v9935_v9  ;;  %v10540_v9 = vld [vmem:[%s18551_s17 + $0x7f8] sm:$0xf0] }
 0x572   :  { %v6757_v53 = vadd.f32 %v6756_v62, %v6755_v51  ;;  %v17458_v51 = vpop.f32.mrf.mxu1  ;;  %v10159_v62 = vor.u32 %v11093_v17, %v10156_v3  ;;  %v10543_v15 = vor.u32 %v11189_v21, %v10540_v9  ;;  %v10380_v9 = vld [vmem:[%s18551_s17 + $0x6b8] sm:$0xf0] }
 0x573   :  { %6607 = vmatmul.bf16.vlgmr.msrb.gmra.mxu0 %v16024_v39  ;;  %6626 = vmatmul.bf16.vlgmr.msrb.gmra.mxu1 %v16043_v48  ;;  %v9916_v39 = vld [vmem:[%s18551_s17 + $0x318] sm:$0xf0]  ;;  %v11089_v48 = vld [vmem:[%s18551_s17 + $0x4cc] sm:$0xf] }
 0x574   :  { %v6758_v14 = vrot.slane %v6757_v53, 1  ;;  %6675 = vmatpush.bf16.msra.mxu0 %v10159_v62  ;;  %6694 = vmatpush.bf16.msra.mxu1 %v10287_v16  ;;  %v9919_v49 = vor.u32 %v11033_v27, %v9916_v39  ;;  %v11117_v62 = vld [vmem:[%s18551_s17 + $0x5ac] sm:$0xf]  ;;  %v10396_v27 = vld [vmem:[%s18551_s17 + $0x6d8] sm:$0xf0] }
 0x575   :  { %v6273_v29 = vpop.f32.mrf.mxu2  ;;  %v10524_v39 = vld [vmem:[%s18551_s17 + $0x7d8] sm:$0xf0] }
 0x576   :  { %v6759_v58 = vadd.f32 %v6758_v14, %v6757_v53  ;;  %v6292_v30 = vpop.f32.mrf.mxu3  ;;  %v9791_v53 = vor.u32 %v11001_v13, %v9788_v38  ;;  %v6274_v4 = vadd.f32 %v6273_v29, %v6255_v60  ;;  %v10268_v14 = vld [vmem:[%s18551_s17 + $0x5d8] sm:$0xf0]  ;;  %6663 = vmatpush.bf16.msrb.mxu3 %v9919_v49  ;;  %v11153_v38 = vld [vmem:[%s18551_s17 + $0x6cc] sm:$0xf] }
 0x577   :  { %v10271_v52 = vor.u32 %v11121_v19, %v10268_v14  ;;  %v17528_v40 = vpop.f32.mrf.mxu0  ;;  %v11113_v14 = vld [vmem:[%s18551_s17 + $0x58c] sm:$0xf] }
 0x578   :  { %v6781_v28 = vmul.f32 %v6759_v58, %v18871_v55  ;;  %6644 = vmatpush.bf16.msrb.mxu2 %v9791_v53  ;;  %v17517_v2 = vadd.f32 %v6292_v30, %v6274_v4  ;;  %v10399_v30 = vor.u32 %v11153_v38, %v10396_v27  ;;  %v11185_v53 = vld [vmem:[%s18551_s17 + $0x7cc] sm:$0xf] }
 0x579   :  { %6695 = vmatpush.bf16.msra.mxu1 %v10271_v52  ;;  %v10527_v19 = vor.u32 %v11185_v53, %v10524_v39  ;;  %v11145_v53 = vld [vmem:[%s18551_s17 + $0x68c] sm:$0xf]  ;;  %v10364_v39 = vld [vmem:[%s18551_s17 + $0x698] sm:$0xf0] }
 0x57a   :  { %v17494_v5 = vsub.f32 %v17363_v7, %v6781_v28  ;;  %v17497_v8 = vsub.f32 %v17365_v56, %v6781_v28  ;;  %v17508_v7 = vadd.f32 %v6290_v18, %v6272_v20  ;;  %v10143_v56 = vor.u32 %v11089_v48, %v10140_v36  ;;  %v11157_v18 = vld [vmem:[%s18551_s17 + $0x6ec] sm:$0xf]  ;;  %v17530_v54 = vpop.f32.mrf.mxu1  ;;  %v10124_v20 = vld [vmem:[%s18551_s17 + $0x4b8] sm:$0xf0]  ;;  %6732 = vmatpush.bf16.msra.mxu3 %v10543_v15 }
 0x57b   :  { %v10415_v58 = vor.u32 %v11157_v18, %v10412_v63  ;;  %6645 = vmatmul.bf16.vlgmr.msrb.gmra.mxu2 %v16118_v47  ;;  %6664 = vmatmul.bf16.vlgmr.msrb.gmra.mxu3 %v16120_v59  ;;  %v10127_v28 = vor.u32 %v11085_v42, %v10124_v20  ;;  %v10252_v47 = vld [vmem:[%s18551_s17 + $0x5b8] sm:$0xf0]  ;;  %v11081_v48 = vld [vmem:[%s18551_s17 + $0x48c] sm:$0xf] }
 0x57c   :  { %v6793_v22 = vmul.f32 %v17494_v5, %v17494_v5  ;;  %v6797_v33 = vmul.f32 %v17497_v8, %v17497_v8  ;;  %6676 = vmatpush.bf16.msra.mxu0 %v10143_v56  ;;  %v6919_v3 = vadd.f32 %v17517_v2, %v17508_v7  ;;  %v10255_v13 = vor.u32 %v11117_v62, %v10252_v47  ;;  %v10108_v36 = vld [vmem:[%s18551_s17 + $0x498] sm:$0xf0]  ;;  %v11149_v18 = vld [vmem:[%s18551_s17 + $0x6ac] sm:$0xf] }
 0x57d   :  { %6713 = vmatpush.bf16.msra.mxu2 %v10415_v58  ;;  %v17557_v59 = vpop.f32.mrf.mxu2  ;;  %v10111_v56 = vor.u32 %v11081_v48, %v10108_v36  ;;  %v10383_v62 = vor.u32 %v11149_v18, %v10380_v9  ;;  %v11077_v15 = vld [vmem:[%s18551_s17 + $0x46c] sm:$0xf]  ;;  %v10367_v48 = vor.u32 %v11145_v53, %v10364_v39  ;;  %v10492_v36 = vld [vmem:[%s18551_s17 + $0x798] sm:$0xf0] }
 0x57e   :  { %v6801_v17 = vadd.f32 %v6797_v33, %v6793_v22  ;;  %v6920_v16 = vrot.slane %v6919_v3, 4  ;;  %v17559_v29 = vpop.f32.mrf.mxu3  ;;  %6696 = vmatpush.bf16.msra.mxu1 %v10255_v13  ;;  %v10236_v22 = vld [vmem:[%s18551_s17 + $0x598] sm:$0xf0]  ;;  %6733 = vmatpush.bf16.msra.mxu3 %v10527_v19  ;;  %v11109_v47 = vld [vmem:[%s18551_s17 + $0x56c] sm:$0xf] }
 0x57f   :  { %v17582_v63 = vpop.f32.mrf.mxu0  ;;  %v10239_v58 = vor.u32 %v11113_v14, %v10236_v22  ;;  %v10220_v13 = vld [vmem:[%s18551_s17 + $0x578] sm:$0xf0] }
 0x580   :  { %v6802_v60 = vrot.slane %v6801_v17, 4  ;;  %6677 = vmatpush.bf16.msra.mxu0 %v10127_v28  ;;  %v6921_v49 = vadd.f32 %v6920_v16, %v6919_v3  ;;  %v10508_v3 = vld [vmem:[%s18551_s17 + $0x7b8] sm:$0xf0] }
 0x581   :  { %6714 = vmatpush.bf16.msra.mxu2 %v10399_v30  ;;  %v10092_v28 = vld [vmem:[%s18551_s17 + $0x478] sm:$0xf0]  ;;  %v10223_v30 = vor.u32 %v11109_v47, %v10220_v13 }
 0x582   :  { %v6803_v4 = vadd.f32 %v6802_v60, %v6801_v17  ;;  %v6922_v52 = vrot.slane %v6921_v49, 2  ;;  %v17584_v21 = vpop.f32.mrf.mxu1  ;;  %v11181_v17 = vld [vmem:[%s18551_s17 + $0x7ac] sm:$0xf]  ;;  %6697 = vmatpush.bf16.msra.mxu1 %v10239_v58  ;;  %v10095_v16 = vor.u32 %v11077_v15, %v10092_v28  ;;  %v10076_v22 = vld [vmem:[%s18551_s17 + $0x458] sm:$0xf0] }
 0x583   :  { %v10511_v60 = vor.u32 %v11181_v17, %v10508_v3  ;;  %6612 = vmatmul.bf16.gmra.mxu0 %v16231_v11  ;;  %6631 = vmatmul.bf16.gmra.mxu1 %v16233_v43  ;;  %v11177_v11 = vld [vmem:[%s18551_s17 + $0x78c] sm:$0xf]  ;;  %v10204_v18 = vld [vmem:[%s18551_s17 + $0x558] sm:$0xf0] }
 0x584   :  { %v6804_v33 = vrot.slane %v6803_v4, 2  ;;  %6678 = vmatpush.bf16.msra.mxu0 %v10111_v56  ;;  %v6923_v20 = vadd.f32 %v6922_v52, %v6921_v49  ;;  %v10495_v14 = vor.u32 %v11177_v11, %v10492_v36  ;;  %v11073_v43 = vld [vmem:[%s18551_s17 + $0x44c] sm:$0xf]  ;;  %v10476_v47 = vld [vmem:[%s18551_s17 + $0x778] sm:$0xf0] }
 0x585   :  { %6715 = vmatpush.bf16.msra.mxu2 %v10383_v62  ;;  %6734 = vmatpush.bf16.msra.mxu3 %v10511_v60  ;;  %v10079_v52 = vor.u32 %v11073_v43, %v10076_v22  ;;  %v11141_v3 = vld [vmem:[%s18551_s17 + $0x66c] sm:$0xf]  ;;  %v10460_v43 = vld [vmem:[%s18551_s17 + $0x758] sm:$0xf0] }
 0x586   :  { %v6805_v42 = vadd.f32 %v6804_v33, %v6803_v4  ;;  %v6924_v27 = vrot.slane %v6923_v20, 1  ;;  %v17615_v4 = vpop.f32.mrf.mxu2  ;;  %v17617_v49 = vpop.f32.mrf.mxu3  ;;  %v11105_v33 = vld [vmem:[%s18551_s17 + $0x54c] sm:$0xf]  ;;  %6698 = vmatpush.bf16.msra.mxu1 %v10223_v30 }
 0x587   :  { %v10207_v17 = vor.u32 %v11105_v33, %v10204_v18  ;;  %v17648_v62 = vpop.f32.mrf.mxu0  ;;  %v11169_v11 = vld [vmem:[%s18551_s17 + $0x74c] sm:$0xf]  ;;  %v10044_v18 = vld [vmem:[%s18551_s17 + $0x418] sm:$0xf0] }
 0x588   :  { %v6806_v38 = vrot.slane %v6805_v42, 1  ;;  %v6925_v56 = vadd.f32 %v6924_v27, %v6923_v20  ;;  %6679 = vmatpush.bf16.msra.mxu0 %v10095_v16  ;;  %v11173_v20 = vld [vmem:[%s18551_s17 + $0x76c] sm:$0xf]  ;;  %v10060_v27 = vld [vmem:[%s18551_s17 + $0x438] sm:$0xf0]  ;;  %v10463_v33 = vor.u32 %v11169_v11, %v10460_v43 }
 0x589   :  { %6716 = vmatpush.bf16.msra.mxu2 %v10367_v48  ;;  %6735 = vmatpush.bf16.msra.mxu3 %v10495_v14  ;;  %v10479_v30 = vor.u32 %v11173_v20, %v10476_v47  ;;  %v10332_v48 = vld [vmem:[%s18551_s17 + $0x658] sm:$0xf0]  ;;  %v11133_v20 = vld [vmem:[%s18551_s17 + $0x62c] sm:$0xf]  ;;  %v18872_v47 = vld [vmem:[#allocation25_spill] sm:$0xff] }
 0x58a   :  { %v6807_v19 = vadd.f32 %v6806_v38, %v6805_v42  ;;  %v6947_v9 = vmul.f32 %v6925_v56, %v18871_v55  ;;  %v10348_v42 = vld [vmem:[%s18551_s17 + $0x678] sm:$0xf0]  ;;  %v17650_v15 = vpop.f32.mrf.mxu1  ;;  %v11069_v38 = vld [vmem:[%s18551_s17 + $0x42c] sm:$0xf]  ;;  %6699 = vmatpush.bf16.msra.mxu1 %v10207_v17 }
 0x58b   :  { %v10351_v28 = vor.u32 %v11141_v3, %v10348_v42  ;;  %6650 = vmatmul.bf16.gmra.mxu2 %v16314_v0  ;;  %6669 = vmatmul.bf16.gmra.mxu3 %v16316_v24  ;;  %v10188_v0 = vld [vmem:[%s18551_s17 + $0x538] sm:$0xf0]  ;;  %v11137_v24 = vld [vmem:[%s18551_s17 + $0x64c] sm:$0xf] }
 0x58c   :  { %v6829_v58 = vmul.f32 %v6807_v19, %v18871_v55  ;;  %v17658_v16 = vsub.f32 %v17508_v7, %v6947_v9  ;;  %v17661_v13 = vsub.f32 %v17517_v2, %v6947_v9  ;;  %6680 = vmatpush.bf16.msra.mxu0 %v10079_v52  ;;  %v10063_v7 = vor.u32 %v11069_v38, %v10060_v27  ;;  %v11101_v2 = vld [vmem:[%s18551_s17 + $0x52c] sm:$0xf]  ;;  %v10172_v17 = vld [vmem:[%s18551_s17 + $0x518] sm:$0xf0] }
 0x58d   :  { %6717 = vmatpush.bf16.msra.mxu2 %v10351_v28  ;;  %6736 = vmatpush.bf16.msra.mxu3 %v10479_v30  ;;  %v10191_v56 = vor.u32 %v11101_v2, %v10188_v0  ;;  %v10335_v14 = vor.u32 %v11137_v24, %v10332_v48  ;;  %v11065_v52 = vld [vmem:[%s18551_s17 + $0x40c] sm:$0xf]  ;;  %v10316_v28 = vld [vmem:[%s18551_s17 + $0x638] sm:$0xf0]  ;;  %v6305_v38 = vadd.f32 %v17456_v12, %v18872_v47  ;;  %v10602_v12 = vld [vmem:[%s18555_s21 + $0x70] sm:$0xf] }
 0x58e   :  { %v17655_v60 = vadd.f32 1e-05, %v6829_v58  ;;  %v6959_v53 = vmul.f32 %v17658_v16, %v17658_v16  ;;  %v6963_v39 = vmul.f32 %v17661_v13, %v17661_v13  ;;  %v17691_v36 = vpop.f32.mrf.mxu2  ;;  %v17693_v19 = vpop.f32.mrf.mxu3  ;;  %v11097_v58 = vld [vmem:[%s18551_s17 + $0x50c] sm:$0xf]  ;;  %v10047_v9 = vor.u32 %v11065_v52, %v10044_v18  ;;  %v10444_v0 = vld [vmem:[%s18551_s17 + $0x738] sm:$0xf0] }
 0x58f   :  { %6700 = vmatpush.bf16.msra.mxu1 %v10191_v56  ;;  %v10175_v42 = vor.u32 %v11097_v58, %v10172_v17  ;;  %v17718_v27 = vpop.f32.mrf.mxu0  ;;  %v11165_v2 = vld [vmem:[%s18551_s17 + $0x72c] sm:$0xf]  ;;  %v11463_v48 = vld [vmem:[%s18555_s21 + $0x74] sm:$0xf0]  ;;  %v10300_v52 = vld [vmem:[%s18551_s17 + $0x618] sm:$0xf0]  ;;  %v6324_v58 = vadd.f32 %v17458_v51, %v6305_v38 }
 0x590   :  { %11566 = vrsqrt.f32 %v17655_v60  ;;  %v6967_v22 = vadd.f32 %v6963_v39, %v6959_v53  ;;  %6681 = vmatpush.bf16.msra.mxu0 %v10063_v7  ;;  %v10319_v7 = vor.u32 %v11133_v20, %v10316_v28  ;;  %v10447_v24 = vor.u32 %v11165_v2, %v10444_v0  ;;  %v18873_v56 = vld [vmem:[#allocation28_spill] sm:$0xff]  ;;  %v11461_v28 = vld [vmem:[%s18555_s21 + $0x64] sm:$0xf0]  ;;  %v10586_v0 = vld [vmem:[%s18555_s21 + $0x50] sm:$0xf] }
 0x591   :  { %6718 = vmatpush.bf16.msra.mxu2 %v10335_v14  ;;  %6737 = vmatpush.bf16.msra.mxu3 %v10463_v33  ;;  %v6307_v14 = vadd.f32 %v17528_v40, %v18873_v56  ;;  %v10603_v43 = vor.u32 %v11463_v48, %v10602_v12  ;;  %v10594_v51 = vld [vmem:[%s18555_s21 + $0x60] sm:$0xf]  ;;  %vm6843_vm4 = vweird.f32 %v17655_v60 }
 0x592   :  { %v6968_v3 = vrot.slane %v6967_v22, 4  ;;  %v17720_v30 = vpop.f32.mrf.mxu1  ;;  %v10595_v2 = vor.u32 %v11461_v28, %v10594_v51 }
 0x593   :  { %6701 = vmatpush.bf16.msra.mxu1 %v10175_v42  ;;  %v10428_v42 = vld [vmem:[%s18551_s17 + $0x718] sm:$0xf0]  ;;  %v6326_v38 = vadd.f32 %v17530_v54, %v6307_v14 }
 0x594   :  { %v6969_v39 = vadd.f32 %v6968_v3, %v6967_v22  ;;  %6682 = vmatpush.bf16.msra.mxu0 %v10047_v9  ;;  %v11129_v22 = vld [vmem:[%s18551_s17 + $0x60c] sm:$0xf] }
 0x595   :  { %6719 = vmatpush.bf16.msra.mxu2 %v10319_v7  ;;  %6738 = vmatpush.bf16.msra.mxu3 %v10447_v24  ;;  %v10303_v17 = vor.u32 %v11129_v22, %v10300_v52  ;;  %v11161_v3 = vld [vmem:[%s18551_s17 + $0x70c] sm:$0xf]  ;;  %v6343_v7 = vadd.f32 %v17557_v59, %v6324_v58  ;;  %v17773_v24 = vld [vmem:[%s18553_s19] sm:$0xf]  ;;  %v6345_v54 = vadd.f32 %v17615_v4, %v6326_v38  ;;  %v11457_v22 = vld [vmem:[%s18555_s21 + $0x44] sm:$0xf0] }
 0x596   :  { %v11567_v53 = vpop.eup %11566  ;;  %v6970_v33 = vrot.slane %v6969_v39, 2  ;;  %v17745_v9 = vpop.f32.mrf.mxu2  ;;  %6702 = vmatmul.bf16.vlgmr.msra.gmra.mxu1 %v16406_v34  ;;  %v11459_v34 = vld [vmem:[%s18555_s21 + $0x54] sm:$0xf0]  ;;  %v10578_v4 = vld [vmem:[%s18555_s21 + $0x40] sm:$0xf]  ;;  %v17792_v52 = vperm.slane %v17773_v24, 0 }
 0x597   :  { %v6838_v11 = vmul.f32 %v11567_v53, %v17655_v60  ;;  %6683 = vmatmul.bf16.vlgmr.msra.gmra.mxu0 %v16401_v61  ;;  %v17747_v40 = vpop.f32.mrf.mxu3  ;;  %v10431_v61 = vor.u32 %v11161_v3, %v10428_v42  ;;  %vm6844_vm3 = vweird.f32 %v11567_v53  ;;  %v6382_v59 = vpop.f32.mrf.mxu0  ;;  %v10587_v14 = vor.u32 %v11459_v34, %v10586_v0 }
 0x598   :  { %v6971_v20 = vadd.f32 %v6970_v33, %v6969_v39  ;;  %7507 = vmatpush.bf16.msrb.mxu0 %v10603_v43  ;;  %v6362_v33 = vadd.f32 %v17559_v29, %v6343_v7  ;;  %vm6845_vm5 = vmor %vm6843_vm4, %vm6844_vm3  ;;  %v6364_v60 = vadd.f32 %v17617_v49, %v6345_v54  ;;  %v6310_v49 = vadd.f32 %v17582_v63, %v16022_v41  ;;  %v10570_v7 = vld [vmem:[%s18555_s21 + $0x30] sm:$0xf] }
 0x599   :  { %v6839_v18 = vmul.f32 %v11567_v53, %v6838_v11  ;;  %6720 = vmatpush.bf16.msra.mxu2 %v10303_v17  ;;  %6739 = vmatpush.bf16.msra.mxu3 %v10431_v61  ;;  %v17779_v11 = vld [vmem:[%s18554_s20] sm:$0xf]  ;;  %v10579_v61 = vor.u32 %v11457_v22, %v10578_v4  ;;  %v6312_v41 = vadd.f32 %v17648_v62, %v16116_v57  ;;  %v11453_v57 = vld [vmem:[%s18555_s21 + $0x24] sm:$0xf0] }
 0x59a   :  { %v6972_v39 = vrot.slane %v6971_v20, 1  ;;  %v6401_v48 = vpop.f32.mrf.mxu1  ;;  %v6381_v58 = vadd.f32 %v17718_v27, %v6362_v33  ;;  %v6383_v28 = vadd.f32 %v6382_v59, %v6364_v60 }
 0x59b   :  { %v6840_v47 = vmul.f32 0.5, %v6839_v18 }
 0x59c   :  { %v6973_v56 = vadd.f32 %v6972_v39, %v6971_v20  ;;  %7508 = vmatpush.bf16.msrb.mxu0 %v10595_v2  ;;  %6721 = vmatmul.bf16.vlgmr.msra.gmra.mxu2 %v16496_v35  ;;  %v17797_v35 = vperm.slane %v17779_v11, 0  ;;  %v6400_v38 = vadd.f32 %v17720_v30, %v6381_v58  ;;  %v11455_v2 = vld [vmem:[%s18555_s21 + $0x34] sm:$0xf0]  ;;  %v6402_v63 = vadd.f32 %v6401_v48, %v6383_v28 }
 0x59d   :  { %v6841_v12 = vsub.f32 1.5, %v6840_v47  ;;  %6740 = vmatmul.bf16.vlgmr.msra.gmra.mxu3 %v16498_v25  ;;  %v10571_v0 = vor.u32 %v11455_v2, %v10570_v7  ;;  %v6331_v48 = vadd.f32 %v17650_v15, %v6312_v41  ;;  %v11451_v15 = vld [vmem:[%s18555_s21 + $0x14] sm:$0xf0] }
 0x59e   :  { %v6995_v18 = vmul.f32 %v6973_v56, %v18871_v55  ;;  %v6418_v17 = vpop.f32.mrf.mxu2 }
 0x59f   :  { %v6842_v43 = vmul.f32 %v11567_v53, %v6841_v12  ;;  %v6437_v3 = vpop.f32.mrf.mxu3  ;;  %v6385_v27 = vpop.f32.mrf.mxu0  ;;  %v6419_v34 = vadd.f32 %v6418_v17, %v6400_v38  ;;  %v6329_v12 = vadd.f32 %v17584_v21, %v6310_v49 }
 0x5a0   :  { %v17803_v20 = vadd.f32 1e-05, %v6995_v18  ;;  %7509 = vmatpush.bf16.msrb.mxu0 %v10587_v14 }
 0x5a1   :  { %v6846_v29 = vsel %vm6845_vm5, %v11567_v53, %v6842_v43  ;;  %v10562_v43 = vld [vmem:[%s18555_s21 + $0x20] sm:$0xf]  ;;  %v17835_v33 = vadd.f32 %v6437_v3, %v6419_v34 }
 0x5a2   :  { %v6877_v42 = vmul.f32 %v6846_v29, %v17494_v5  ;;  %v6881_v51 = vmul.f32 %v6846_v29, %v17497_v8  ;;  %11568 = vrsqrt.f32 %v17803_v20  ;;  %v17810_v47 = vpop.f32.mrf.mxu1  ;;  %v10563_v62 = vor.u32 %v11453_v57, %v10562_v43 }
 0x5a3   :  { %v6350_v29 = vadd.f32 %v17745_v9, %v6331_v48  ;;  %vm7009_vm9 = vweird.f32 %v17803_v20 }
 0x5a4   :  { %v6894_v25 = vmul.f32 %v17792_v52, %v6877_v42  ;;  %v6898_v53 = vmul.f32 %v17792_v52, %v6881_v51  ;;  %7510 = vmatpush.bf16.msrb.mxu0 %v10579_v61 }
 0x5a6   :  { %v6911_v5 = vadd.f32 %v17797_v35, %v6894_v25  ;;  %v6915_v8 = vadd.f32 %v17797_v35, %v6898_v53  ;;  %v6420_v30 = vpop.f32.mrf.mxu2  ;;  %6707 = vmatmul.bf16.gmra.mxu1 %v16595_v1 }
 0x5a7   :  { %6688 = vmatmul.bf16.gmra.mxu0 %v16593_v23  ;;  %v6439_v54 = vpop.f32.mrf.mxu3  ;;  %v6421_v14 = vadd.f32 %v6420_v30, %v6402_v63  ;;  %v6348_v23 = vadd.f32 %v17691_v36, %v6329_v12  ;;  %v6387_v22 = vpop.f32.mrf.mxu0  ;;  %v10554_v36 = vld [vmem:[%s18555_s21 + $0x10] sm:$0xf]  ;;  %v10604_v12 = vld [vmem:[%s18555_s21 + $0x78] sm:$0xf0] }
 0x5a8   :  { %v7083_v39 = vmul.f32 0.01, %v6911_v5  ;;  %v11569_v59 = vpop.eup %11568  ;;  %v7087_v56 = vmul.f32 0.01, %v6915_v8  ;;  %7511 = vmatpush.bf16.msrb.mxu0 %v10571_v0  ;;  %vm7071_vm6 = vcmp.ge.f32.partialorder %v6915_v8, 0.0  ;;  %vm7067_vm7 = vcmp.ge.f32.partialorder %v6911_v5, 0.0 }
 0x5a9   :  { %v7004_v21 = vmul.f32 %v11569_v59, %v17803_v20  ;;  %v17837_v1 = vadd.f32 %v6439_v54, %v6421_v14  ;;  %v6367_v42 = vadd.f32 %v17693_v19, %v6348_v23  ;;  %v10555_v9 = vor.u32 %v11451_v15, %v10554_v36  ;;  %v10546_v19 = vld [vmem:[%s18555_s21] sm:$0xf]  ;;  %v11462_v20 = vld [vmem:[%s18555_s21 + $0x74] sm:$0xf]  ;;  %v10596_v23 = vld [vmem:[%s18555_s21 + $0x68] sm:$0xf0] }
 0x5aa   :  { %v6406_v18 = vpop.f32.mrf.mxu1  ;;  %v7099_v58 = vsel %vm7067_vm7, %v6911_v5, %v7083_v39  ;;  %v7103_v17 = vsel %vm7071_vm6, %v6915_v8, %v7087_v56  ;;  %vm7010_vm8 = vweird.f32 %v11569_v59  ;;  %v6369_v5 = vadd.f32 %v17747_v40, %v6350_v29 }
 0x5ab   :  { %v7005_v4 = vmul.f32 %v11569_v59, %v7004_v21  ;;  %v6760_v60 = vadd.f32 %v17837_v1, %v17835_v33  ;;  %v17851_v51 = vpack.c.bf16 %v7103_v17, %v7099_v58  ;;  %v6386_v53 = vadd.f32 %v6385_v27, %v6367_v42  ;;  %vm7011_vm10 = vmor %vm7009_vm9, %vm7010_vm8  ;;  %v11460_v21 = vld [vmem:[%s18555_s21 + $0x64] sm:$0xf]  ;;  %v10588_v42 = vld [vmem:[%s18555_s21 + $0x58] sm:$0xf0] }
 0x5ac   :  { %7512 = vmatpush.bf16.msrb.mxu0 %v10563_v62  ;;  %6726 = vmatmul.bf16.gmra.mxu2 %v16656_v44  ;;  %v11449_v44 = vld [vmem:[%s18555_s21 + $0x4] sm:$0xf0]  ;;  %v6388_v7 = vadd.f32 %v6387_v22, %v6369_v5 }
 0x5ad   :  { %v7006_v3 = vmul.f32 0.5, %v7005_v4  ;;  %v6761_v61 = vrot.slane %v6760_v60, 4  ;;  %6745 = vmatmul.bf16.gmra.mxu3 %v16658_v10  ;;  %v10547_v10 = vor.u32 %v11449_v44, %v10546_v19  ;;  %v6405_v40 = vadd.f32 %v17810_v47, %v6386_v53  ;;  %v11456_v44 = vld [vmem:[%s18555_s21 + $0x44] sm:$0xf] }
 0x5ae   :  { %v6423_v28 = vpop.f32.mrf.mxu2  ;;  %v10607_v47 = vor.u32 %v11462_v20, %v10604_v12  ;;  %v10599_v4 = vor.u32 %v11460_v21, %v10596_v23  ;;  %v10572_v20 = vld [vmem:[%s18555_s21 + $0x38] sm:$0xf0] }
 0x5af   :  { %v7007_v25 = vsub.f32 1.5, %v7006_v3  ;;  %v6442_v49 = vpop.f32.mrf.mxu3  ;;  %v6762_v38 = vadd.f32 %v6761_v61, %v6760_v60  ;;  %v17863_v0 = vpop.f32.mrf.mxu0  ;;  %v6424_v30 = vadd.f32 %v6423_v28, %v6405_v40  ;;  %v11458_v3 = vld [vmem:[%s18555_s21 + $0x54] sm:$0xf] }
 0x5b0   :  { %7513 = vmatpush.bf16.msrb.mxu0 %v10555_v9  ;;  %v10591_v9 = vor.u32 %v11458_v3, %v10588_v42  ;;  %v10666_v3 = vld [vmem:[%s18555_s21 + $0xf0] sm:$0xf] }
 0x5b1   :  { %v7008_v8 = vmul.f32 %v11569_v59, %v7007_v25  ;;  %v6763_v27 = vrot.slane %v6762_v38, 2  ;;  %v6443_v48 = vadd.f32 %v6442_v49, %v6424_v30 }
 0x5b2   :  { %v17865_v41 = vpop.f32.mrf.mxu1 }
 0x5b3   :  { %v7012_v2 = vsel %vm7011_vm10, %v11569_v59, %v7008_v8  ;;  %v6764_v39 = vadd.f32 %v6763_v27, %v6762_v38  ;;  %v10580_v8 = vld [vmem:[%s18555_s21 + $0x48] sm:$0xf0] }
 0x5b4   :  { %v7043_v63 = vmul.f32 %v7012_v2, %v17658_v16  ;;  %v7047_v34 = vmul.f32 %v7012_v2, %v17661_v13  ;;  %7514 = vmatpush.bf16.msrb.mxu0 %v10547_v10  ;;  %v6407_v16 = vadd.f32 %v6406_v18, %v6388_v7  ;;  %v10583_v10 = vor.u32 %v11456_v44, %v10580_v8  ;;  %v10658_v8 = vld [vmem:[%s18555_s21 + $0xe0] sm:$0xf] }
 0x5b5   :  { %v6765_v56 = vrot.slane %v6764_v39, 1 }
 0x5b6   :  { %v7051_v54 = vmul.f32 %v7043_v63, %v17792_v52  ;;  %v7055_v59 = vmul.f32 %v7047_v34, %v17792_v52  ;;  %v6425_v13 = vpop.f32.mrf.mxu2 }
 0x5b7   :  { %7515 = vmatmul.bf16.vlgmr.msrb.gmra.mxu0 %v17851_v51  ;;  %v6444_v14 = vpop.f32.mrf.mxu3  ;;  %v6766_v43 = vadd.f32 %v6765_v56, %v6764_v39  ;;  %v6426_v57 = vadd.f32 %v6425_v13, %v6407_v16  ;;  %v17887_v29 = vpop.f32.mrf.mxu0  ;;  %v11454_v39 = vld [vmem:[%s18555_s21 + $0x34] sm:$0xf]  ;;  %v11452_v13 = vld [vmem:[%s18555_s21 + $0x24] sm:$0xf] }
 0x5b8   :  { %7583 = vmatpush.bf16.msra.mxu0 %v10607_v47  ;;  %v7059_v62 = vadd.f32 %v7051_v54, %v17797_v35  ;;  %v7063_v52 = vadd.f32 %v7055_v59, %v17797_v35  ;;  %v10575_v12 = vor.u32 %v11454_v39, %v10572_v20 }
 0x5b9   :  { %v6782_v22 = vmul.f32 %v6766_v43, %v18871_v55  ;;  %v6445_v18 = vadd.f32 %v6444_v14, %v6426_v57  ;;  %v10564_v14 = vld [vmem:[%s18555_s21 + $0x28] sm:$0xf0] }
 0x5ba   :  { %vm7075_vm11 = vcmp.ge.f32.partialorder %v7059_v62, 0.0  ;;  %vm7079_vm12 = vcmp.ge.f32.partialorder %v7063_v52, 0.0  ;;  %v17889_v60 = vpop.f32.mrf.mxu1  ;;  %v7091_v36 = vmul.f32 0.01, %v7059_v62  ;;  %v7095_v15 = vmul.f32 0.01, %v7063_v52 }
 0x5bb   :  { %v17892_v58 = vsub.f32 %v17835_v33, %v6782_v22  ;;  %v17895_v17 = vsub.f32 %v17837_v1, %v6782_v22  ;;  %v6926_v35 = vadd.f32 %v6445_v18, %v6443_v48  ;;  %v10567_v43 = vor.u32 %v11452_v13, %v10564_v14 }
 0x5bc   :  { %7584 = vmatpush.bf16.msra.mxu0 %v10599_v4  ;;  %v7107_v61 = vsel %vm7075_vm11, %v7059_v62, %v7091_v36  ;;  %v7111_v25 = vsel %vm7079_vm12, %v7063_v52, %v7095_v15  ;;  %v11450_v36 = vld [vmem:[%s18555_s21 + $0x14] sm:$0xf]  ;;  %v10556_v15 = vld [vmem:[%s18555_s21 + $0x18] sm:$0xf0] }
 0x5bd   :  { %v6794_v33 = vmul.f32 %v17892_v58, %v17892_v58  ;;  %v6798_v1 = vmul.f32 %v17895_v17, %v17895_v17  ;;  %v6927_v53 = vrot.slane %v6926_v35, 4  ;;  %v17911_v5 = vpack.c.bf16 %v7111_v25, %v7107_v61 }
 0x5be   :  { %v17907_v28 = vpop.f32.mrf.mxu2 }
 0x5bf   :  { %v17909_v49 = vpop.f32.mrf.mxu3  ;;  %v6808_v38 = vadd.f32 %v6798_v1, %v6794_v33  ;;  %v6928_v19 = vadd.f32 %v6927_v53, %v6926_v35  ;;  %v17919_v2 = vpop.f32.mrf.mxu0  ;;  %v10559_v35 = vor.u32 %v11450_v36, %v10556_v15 }
 0x5c0   :  { %7585 = vmatpush.bf16.msra.mxu0 %v10591_v9 }
 0x5c1   :  { %v6809_v27 = vrot.slane %v6808_v38, 4  ;;  %v6929_v7 = vrot.slane %v6928_v19, 2 }
 0x5c2   :  { %v17921_v40 = vpop.f32.mrf.mxu1 }
 0x5c3   :  { %v6810_v63 = vadd.f32 %v6809_v27, %v6808_v38  ;;  %v6930_v34 = vadd.f32 %v6929_v7, %v6928_v19  ;;  %v11448_v38 = vld [vmem:[%s18555_s21 + $0x4] sm:$0xf]  ;;  %v10548_v19 = vld [vmem:[%s18555_s21 + $0x8] sm:$0xf0]  ;;  %v6457_v7 = vadd.f32 %v17863_v0, %v16581_v26  ;;  %v10642_v26 = vld [vmem:[%s18555_s21 + $0xc0] sm:$0xf] }
 0x5c4   :  { %7586 = vmatpush.bf16.msra.mxu0 %v10583_v10  ;;  %v10551_v44 = vor.u32 %v11448_v38, %v10548_v19  ;;  %v11477_v10 = vld [vmem:[%s18555_s21 + $0xe4] sm:$0xf0] }
 0x5c5   :  { %v6811_v30 = vrot.slane %v6810_v63, 2  ;;  %v6931_v47 = vrot.slane %v6930_v34, 1  ;;  %v10659_v39 = vor.u32 %v11477_v10, %v10658_v8  ;;  %v11473_v0 = vld [vmem:[%s18555_s21 + $0xc4] sm:$0xf0]  ;;  %v6476_v13 = vadd.f32 %v17865_v41, %v6457_v7  ;;  %v10634_v41 = vld [vmem:[%s18555_s21 + $0xb0] sm:$0xf] }
 0x5c6   :  { %v17930_v54 = vpop.f32.mrf.mxu2  ;;  %v11469_v38 = vld [vmem:[%s18555_s21 + $0xa4] sm:$0xf0] }
 0x5c7   :  { %7520 = vmatmul.bf16.gmra.mxu0 %v17911_v5  ;;  %v17932_v59 = vpop.f32.mrf.mxu3  ;;  %v6812_v56 = vadd.f32 %v6811_v30, %v6810_v63  ;;  %v6932_v16 = vadd.f32 %v6931_v47, %v6930_v34  ;;  %v17941_v23 = vpop.f32.mrf.mxu0  ;;  %v11475_v30 = vld [vmem:[%s18555_s21 + $0xd4] sm:$0xf0] }
 0x5c8   :  { %7587 = vmatpush.bf16.msra.mxu0 %v10575_v12  ;;  %v10650_v12 = vld [vmem:[%s18555_s21 + $0xd0] sm:$0xf] }
 0x5c9   :  { %v6813_v57 = vrot.slane %v6812_v56, 1  ;;  %v6948_v21 = vmul.f32 %v6932_v16, %v18871_v55  ;;  %v10651_v16 = vor.u32 %v11475_v30, %v10650_v12 }
 0x5ca   :  { %v17943_v62 = vpop.f32.mrf.mxu1 }
 0x5cb   :  { %v6814_v52 = vadd.f32 %v6813_v57, %v6812_v56  ;;  %v17945_v4 = vsub.f32 %v6443_v48, %v6948_v21  ;;  %v17947_v22 = vsub.f32 %v6445_v18, %v6948_v21  ;;  %v11479_v48 = vld [vmem:[%s18555_s21 + $0xf4] sm:$0xf0]  ;;  %v6459_v56 = vadd.f32 %v17887_v29, %v16654_v32 }
 0x5cc   :  { %7588 = vmatpush.bf16.msra.mxu0 %v10567_v43  ;;  %v10667_v33 = vor.u32 %v11479_v48, %v10666_v3  ;;  %v6495_v29 = vadd.f32 %v17907_v28, %v6476_v13 }
 0x5cd   :  { %v6830_v18 = vmul.f32 %v6814_v52, %v18871_v55  ;;  %v6960_v42 = vmul.f32 %v17945_v4, %v17945_v4  ;;  %v6964_v9 = vmul.f32 %v17947_v22, %v17947_v22  ;;  %v10643_v52 = vor.u32 %v11473_v0, %v10642_v26 }
 0x5ce   :  { %v17966_v61 = vpop.f32.mrf.mxu2  ;;  %7526 = vmatpush.bf16.msrb.mxu1 %v10667_v33  ;;  %v6478_v15 = vadd.f32 %v17889_v60, %v6459_v56  ;;  %v6464_v26 = vadd.f32 %v17941_v23, %v16766_v45 }
 0x5cf   :  { %v17968_v25 = vpop.f32.mrf.mxu3  ;;  %v6834_v1 = vadd.f32 1e-05, %v6830_v18  ;;  %v6974_v53 = vadd.f32 %v6964_v9, %v6960_v42  ;;  %v6532_v63 = vpop.f32.mrf.mxu0  ;;  %v6514_v9 = vadd.f32 %v17909_v49, %v6495_v29 }
 0x5d0   :  { %7589 = vmatpush.bf16.msra.mxu0 %v10559_v35  ;;  %v6497_v42 = vadd.f32 %v17930_v54, %v6478_v15  ;;  %v6483_v15 = vadd.f32 %v17943_v62, %v6464_v26 }
 0x5d1   :  { %11570 = vrsqrt.f32 %v6834_v1  ;;  %v6975_v27 = vrot.slane %v6974_v53, 4  ;;  %vm6853_vm14 = vweird.f32 %v6834_v1 }
 0x5d2   :  { %v6551_v34 = vpop.f32.mrf.mxu1  ;;  %7527 = vmatpush.bf16.msrb.mxu1 %v10659_v39  ;;  %v6516_v49 = vadd.f32 %v17932_v59, %v6497_v42  ;;  %v18025_v39 = vperm.slane %v17773_v24, 1 }
 0x5d3   :  { %v6976_v20 = vadd.f32 %v6975_v27, %v6974_v53  ;;  %v10626_v53 = vld [vmem:[%s18555_s21 + $0xa0] sm:$0xf] }
 0x5d4   :  { %7590 = vmatpush.bf16.msra.mxu0 %v10551_v44  ;;  %v6533_v44 = vadd.f32 %v6532_v63, %v6514_v9  ;;  %v10627_v7 = vor.u32 %v11469_v38, %v10626_v53  ;;  %v6462_v63 = vadd.f32 %v17919_v2, %v16712_v46  ;;  %v10618_v46 = vld [vmem:[%s18555_s21 + $0x90] sm:$0xf]  ;;  %v11467_v2 = vld [vmem:[%s18555_s21 + $0x94] sm:$0xf0] }
 0x5d5   :  { %v6977_v47 = vrot.slane %v6976_v20, 2  ;;  %v10619_v13 = vor.u32 %v11467_v2, %v10618_v46 }
 0x5d6   :  { %v18000_v14 = vpop.f32.mrf.mxu2  ;;  %7528 = vmatpush.bf16.msrb.mxu1 %v10651_v16  ;;  %v6552_v30 = vadd.f32 %v6551_v34, %v6533_v44  ;;  %v18035_v16 = vperm.slane %v17779_v11, 1  ;;  %v11478_v44 = vld [vmem:[%s18555_s21 + $0xf4] sm:$0xf] }
 0x5d7   :  { %7591 = vmatmul.bf16.vlgmr.msra.gmra.mxu0 %v17851_v51  ;;  %v18002_v43 = vpop.f32.mrf.mxu3  ;;  %v11571_v57 = vpop.eup %11570  ;;  %v6978_v21 = vadd.f32 %v6977_v47, %v6976_v20  ;;  %v11471_v51 = vld [vmem:[%s18555_s21 + $0xb4] sm:$0xf0] }
 0x5d8   :  { %v6848_v32 = vmul.f32 %v11571_v57, %v6834_v1  ;;  %v6534_v3 = vpop.f32.mrf.mxu0  ;;  %v10635_v33 = vor.u32 %v11471_v51, %v10634_v41  ;;  %vm6854_vm13 = vweird.f32 %v11571_v57 }
 0x5d9   :  { %v6979_v36 = vrot.slane %v6978_v21, 1  ;;  %vm6855_vm2 = vmor %vm6853_vm14, %vm6854_vm13  ;;  %v6535_v20 = vadd.f32 %v6534_v3, %v6516_v49 }
 0x5da   :  { %v6849_v35 = vmul.f32 %v11571_v57, %v6848_v32  ;;  %v6553_v48 = vpop.f32.mrf.mxu1  ;;  %7529 = vmatpush.bf16.msrb.mxu1 %v10643_v52 }
 0x5db   :  { %v6980_v18 = vadd.f32 %v6979_v36, %v6978_v21  ;;  %v6554_v34 = vadd.f32 %v6553_v48, %v6535_v20 }
 0x5dc   :  { %v6850_v28 = vmul.f32 0.5, %v6849_v35 }
 0x5dd   :  { %v6996_v60 = vmul.f32 %v6980_v18, %v18871_v55 }
 0x5de   :  { %v6851_v19 = vsub.f32 1.5, %v6850_v28  ;;  %v6570_v8 = vpop.f32.mrf.mxu2  ;;  %7530 = vmatpush.bf16.msrb.mxu1 %v10635_v33  ;;  %v6502_v28 = vadd.f32 %v18000_v14, %v6483_v15 }
 0x5df   :  { %v6589_v54 = vpop.f32.mrf.mxu3  ;;  %v18021_v10 = vadd.f32 1e-05, %v6996_v60  ;;  %v6571_v0 = vadd.f32 %v6570_v8, %v6552_v30  ;;  %v10668_v8 = vld [vmem:[%s18555_s21 + $0xf8] sm:$0xf0]  ;;  %v11476_v30 = vld [vmem:[%s18555_s21 + $0xe4] sm:$0xf] }
 0x5e0   :  { %v6852_v27 = vmul.f32 %v11571_v57, %v6851_v19  ;;  %v6537_v47 = vpop.f32.mrf.mxu0 }
 0x5e1   :  { %11572 = vrsqrt.f32 %v18021_v10  ;;  %v18054_v51 = vadd.f32 %v6589_v54, %v6571_v0  ;;  %v10671_v54 = vor.u32 %v11478_v44, %v10668_v8  ;;  %vm7019_vm3 = vweird.f32 %v18021_v10 }
 0x5e2   :  { %v6856_v12 = vsel %vm6855_vm2, %v11571_v57, %v6852_v27  ;;  %v18030_v56 = vpop.f32.mrf.mxu1  ;;  %7531 = vmatpush.bf16.msrb.mxu1 %v10627_v7  ;;  %v6481_v57 = vadd.f32 %v17921_v40, %v6462_v63  ;;  %v11465_v40 = vld [vmem:[%s18555_s21 + $0x84] sm:$0xf0] }
 0x5e3   :  { %v6878_v59 = vmul.f32 %v6856_v12, %v17892_v58  ;;  %v6882_v1 = vmul.f32 %v6856_v12, %v17895_v17 }
 0x5e4   :  { %v6500_v41 = vadd.f32 %v17966_v61, %v6481_v57  ;;  %v10652_v57 = vld [vmem:[%s18555_s21 + $0xd8] sm:$0xf0] }
 0x5e5   :  { %v6895_v58 = vmul.f32 %v18025_v39, %v6878_v59  ;;  %v6899_v17 = vmul.f32 %v18025_v39, %v6882_v1  ;;  %v10660_v59 = vld [vmem:[%s18555_s21 + $0xe8] sm:$0xf0] }
 0x5e6   :  { %v6572_v45 = vpop.f32.mrf.mxu2  ;;  %7532 = vmatpush.bf16.msrb.mxu1 %v10619_v13  ;;  %v6519_v38 = vadd.f32 %v17968_v25, %v6500_v41  ;;  %v6521_v25 = vadd.f32 %v18002_v43, %v6502_v28  ;;  %v10663_v26 = vor.u32 %v11476_v30, %v10660_v59  ;;  %v11474_v13 = vld [vmem:[%s18555_s21 + $0xd4] sm:$0xf] }
 0x5e7   :  { %7596 = vmatmul.bf16.gmra.mxu0 %v17911_v5  ;;  %v6591_v23 = vpop.f32.mrf.mxu3  ;;  %v11573_v21 = vpop.eup %11572  ;;  %v6912_v32 = vadd.f32 %v18035_v16, %v6895_v58  ;;  %v6916_v29 = vadd.f32 %v18035_v16, %v6899_v17  ;;  %v6573_v52 = vadd.f32 %v6572_v45, %v6554_v34  ;;  %v10610_v5 = vld [vmem:[%s18555_s21 + $0x80] sm:$0xf] }
 0x5e8   :  { %v7014_v36 = vmul.f32 %v11573_v21, %v18021_v10  ;;  %v6539_v62 = vpop.f32.mrf.mxu0  ;;  %v10611_v61 = vor.u32 %v11465_v40, %v10610_v5  ;;  %vm7020_vm1 = vweird.f32 %v11573_v21  ;;  %v6538_v27 = vadd.f32 %v6537_v47, %v6519_v38  ;;  %v11472_v5 = vld [vmem:[%s18555_s21 + $0xc4] sm:$0xf]  ;;  %v10636_v38 = vld [vmem:[%s18555_s21 + $0xb8] sm:$0xf0] }
 0x5e9   :  { %vm7072_vm15 = vcmp.ge.f32.partialorder %v6916_v29, 0.0  ;;  %v7084_v35 = vmul.f32 0.01, %v6912_v32  ;;  %v7088_v3 = vmul.f32 0.01, %v6916_v29  ;;  %v18062_v48 = vadd.f32 %v6591_v23, %v6573_v52  ;;  %vm7021_vm4 = vmor %vm7019_vm3, %vm7020_vm1 }
 0x5ea   :  { %v7015_v18 = vmul.f32 %v11573_v21, %v7014_v36  ;;  %v6558_v42 = vpop.f32.mrf.mxu1  ;;  %vm7068_vm0 = vcmp.ge.f32.partialorder %v6912_v32, 0.0  ;;  %7533 = vmatpush.bf16.msrb.mxu1 %v10611_v61  ;;  %v6540_v1 = vadd.f32 %v6539_v62, %v6521_v25  ;;  %v6557_v0 = vadd.f32 %v18030_v56, %v6538_v27  ;;  %v10628_v25 = vld [vmem:[%s18555_s21 + $0xa8] sm:$0xf0] }
 0x5eb   :  { %v6767_v9 = vadd.f32 %v18062_v48, %v18054_v51  ;;  %v7100_v33 = vsel %vm7068_vm0, %v6912_v32, %v7084_v35  ;;  %v7104_v60 = vsel %vm7072_vm15, %v6916_v29, %v7088_v3  ;;  %v10655_v32 = vor.u32 %v11474_v13, %v10652_v57 }
 0x5ec   :  { %v7016_v53 = vmul.f32 0.5, %v7015_v18  ;;  %v18068_v19 = vpack.c.bf16 %v7104_v60, %v7100_v33  ;;  %v6559_v23 = vadd.f32 %v6558_v42, %v6540_v1 }
 0x5ed   :  { %v6768_v14 = vrot.slane %v6767_v9, 4 }
 0x5ee   :  { %v7017_v49 = vsub.f32 1.5, %v7016_v53  ;;  %v6575_v7 = vpop.f32.mrf.mxu2  ;;  %7534 = vmatmul.bf16.vlgmr.msrb.gmra.mxu1 %v18068_v19  ;;  %v11470_v53 = vld [vmem:[%s18555_s21 + $0xb4] sm:$0xf] }
 0x5ef   :  { %v6594_v20 = vpop.f32.mrf.mxu3  ;;  %v6769_v12 = vadd.f32 %v6768_v14, %v6767_v9  ;;  %7602 = vmatpush.bf16.msra.mxu1 %v10671_v54  ;;  %v6576_v34 = vadd.f32 %v6575_v7, %v6557_v0  ;;  %v10639_v54 = vor.u32 %v11470_v53, %v10636_v38  ;;  %v10620_v0 = vld [vmem:[%s18555_s21 + $0x98] sm:$0xf0]  ;;  %v11493_v53 = vld [vmem:[%s18555_s21 + $0x164] sm:$0xf0] }
 0x5f0   :  { %v7018_v63 = vmul.f32 %v11573_v21, %v7017_v49  ;;  %v18086_v46 = vpop.f32.mrf.mxu0 }
 0x5f1   :  { %v6770_v47 = vrot.slane %v6769_v12, 2  ;;  %v6595_v41 = vadd.f32 %v6594_v20, %v6576_v34  ;;  %v11468_v20 = vld [vmem:[%s18555_s21 + $0xa4] sm:$0xf] }
 0x5f2   :  { %v7022_v43 = vsel %vm7021_vm4, %v11573_v21, %v7018_v63  ;;  %v18090_v17 = vpop.f32.mrf.mxu1  ;;  %v10631_v30 = vor.u32 %v11468_v20, %v10628_v25 }
 0x5f3   :  { %v7044_v10 = vmul.f32 %v7022_v43, %v17945_v4  ;;  %v7048_v2 = vmul.f32 %v7022_v43, %v17947_v22  ;;  %v6771_v58 = vadd.f32 %v6770_v47, %v6769_v12  ;;  %7603 = vmatpush.bf16.msra.mxu1 %v10663_v26  ;;  %v11466_v43 = vld [vmem:[%s18555_s21 + $0x94] sm:$0xf] }
 0x5f4   :  { %v10623_v34 = vor.u32 %v11466_v43, %v10620_v0 }
 0x5f5   :  { %v7052_v56 = vmul.f32 %v7044_v10, %v18025_v39  ;;  %v7056_v45 = vmul.f32 %v7048_v2, %v18025_v39  ;;  %v6772_v4 = vrot.slane %v6771_v58, 1  ;;  %v10644_v39 = vld [vmem:[%s18555_s21 + $0xc8] sm:$0xf0] }
 0x5f6   :  { %v6577_v22 = vpop.f32.mrf.mxu2  ;;  %v10647_v3 = vor.u32 %v11472_v5, %v10644_v39  ;;  %v11495_v5 = vld [vmem:[%s18555_s21 + $0x174] sm:$0xf0] }
 0x5f7   :  { %v6596_v21 = vpop.f32.mrf.mxu3  ;;  %v6773_v29 = vadd.f32 %v6772_v4, %v6771_v58  ;;  %v6578_v52 = vadd.f32 %v6577_v22, %v6559_v23  ;;  %v7060_v36 = vadd.f32 %v7052_v56, %v18035_v16  ;;  %v7064_v15 = vadd.f32 %v7056_v45, %v18035_v16  ;;  %7604 = vmatpush.bf16.msra.mxu1 %v10655_v32  ;;  %v11464_v45 = vld [vmem:[%s18555_s21 + $0x84] sm:$0xf]  ;;  %v10612_v4 = vld [vmem:[%s18555_s21 + $0x88] sm:$0xf0] }
 0x5f8   :  { %v18109_v18 = vpop.f32.mrf.mxu0 }
 0x5f9   :  { %v6783_v40 = vmul.f32 %v6773_v29, %v18871_v55  ;;  %v6597_v35 = vadd.f32 %v6596_v21, %v6578_v52  ;;  %vm7076_vm5 = vcmp.ge.f32.partialorder %v7060_v36, 0.0  ;;  %vm7080_vm6 = vcmp.ge.f32.partialorder %v7064_v15, 0.0 }
 0x5fa   :  { %v7092_v62 = vmul.f32 0.01, %v7060_v36  ;;  %v7096_v16 = vmul.f32 0.01, %v7064_v15  ;;  %v18117_v9 = vpop.f32.mrf.mxu1  ;;  %v10615_v21 = vor.u32 %v11464_v45, %v10612_v4  ;;  %v6611_v20 = vadd.f32 %v18109_v18, %v17096_v6 }
 0x5fb   :  { %v18112_v42 = vsub.f32 %v18054_v51, %v6783_v40  ;;  %v18115_v61 = vsub.f32 %v18062_v48, %v6783_v40  ;;  %v6933_v28 = vadd.f32 %v6597_v35, %v6595_v41  ;;  %7605 = vmatpush.bf16.msra.mxu1 %v10647_v3 }
 0x5fc   :  { %v7108_v33 = vsel %vm7076_vm5, %v7060_v36, %v7092_v62  ;;  %v7112_v60 = vsel %vm7080_vm6, %v7064_v15, %v7096_v16  ;;  %v10730_v15 = vld [vmem:[%s18555_s21 + $0x170] sm:$0xf] }
 0x5fd   :  { %v6795_v51 = vmul.f32 %v18112_v42, %v18112_v42  ;;  %v6799_v48 = vmul.f32 %v18115_v61, %v18115_v61  ;;  %v6934_v44 = vrot.slane %v6933_v28, 4  ;;  %v18131_v14 = vpack.c.bf16 %v7112_v60, %v7108_v33  ;;  %v10722_v60 = vld [vmem:[%s18555_s21 + $0x160] sm:$0xf] }
 0x5fe   :  { %v18129_v8 = vpop.f32.mrf.mxu2  ;;  %v10731_v62 = vor.u32 %v11495_v5, %v10730_v15 }
 0x5ff   :  { %v6815_v49 = vadd.f32 %v6799_v48, %v6795_v51  ;;  %v6935_v27 = vadd.f32 %v6934_v44, %v6933_v28  ;;  %v18133_v7 = vpop.f32.mrf.mxu3  ;;  %7539 = vmatmul.bf16.gmra.mxu1 %v18131_v14  ;;  %v10723_v51 = vor.u32 %v11493_v53, %v10722_v60  ;;  %v18233_v60 = vperm.slane %v17773_v24, 2 }
 0x600   :  { %7606 = vmatpush.bf16.msra.mxu1 %v10639_v54  ;;  %v18142_v59 = vpop.f32.mrf.mxu0  ;;  %7545 = vmatpush.bf16.msrb.mxu2 %v10731_v62  ;;  %v6609_v54 = vadd.f32 %v18086_v46, %v17041_v37  ;;  %v10706_v46 = vld [vmem:[%s18555_s21 + $0x140] sm:$0xf] }
 0x601   :  { %v6816_v12 = vrot.slane %v6815_v49, 4  ;;  %v6936_v63 = vrot.slane %v6935_v27, 2 }
 0x602   :  { %v18144_v26 = vpop.f32.mrf.mxu1  ;;  %v6628_v0 = vadd.f32 %v18090_v17, %v6609_v54 }
 0x603   :  { %v6817_v47 = vadd.f32 %v6816_v12, %v6815_v49  ;;  %v6937_v1 = vadd.f32 %v6936_v63, %v6935_v27  ;;  %v11491_v49 = vld [vmem:[%s18555_s21 + $0x154] sm:$0xf0] }
 0x604   :  { %7607 = vmatpush.bf16.msra.mxu1 %v10631_v30  ;;  %7546 = vmatpush.bf16.msrb.mxu2 %v10723_v51 }
 0x605   :  { %v6818_v10 = vrot.slane %v6817_v47, 2  ;;  %v6938_v2 = vrot.slane %v6937_v1, 1 }
 0x606   :  { %v6648_v58 = vpop.f32.mrf.mxu2 }
 0x607   :  { %v6819_v13 = vadd.f32 %v6818_v10, %v6817_v47  ;;  %v6939_v57 = vadd.f32 %v6938_v2, %v6937_v1  ;;  %v18152_v56 = vpop.f32.mrf.mxu3  ;;  %v11489_v1 = vld [vmem:[%s18555_s21 + $0x144] sm:$0xf0]  ;;  %v6630_v10 = vadd.f32 %v18117_v9, %v6611_v20  ;;  %v10698_v2 = vld [vmem:[%s18555_s21 + $0x130] sm:$0xf]  ;;  %v10690_v9 = vld [vmem:[%s18555_s21 + $0x120] sm:$0xf] }
 0x608   :  { %7608 = vmatpush.bf16.msra.mxu1 %v10623_v34  ;;  %v18161_v32 = vpop.f32.mrf.mxu0  ;;  %v10707_v6 = vor.u32 %v11489_v1, %v10706_v46  ;;  %v11487_v34 = vld [vmem:[%s18555_s21 + $0x134] sm:$0xf0]  ;;  %v11481_v1 = vld [vmem:[%s18555_s21 + $0x104] sm:$0xf0] }
 0x609   :  { %v6820_v23 = vrot.slane %v6819_v13, 1  ;;  %v6949_v22 = vmul.f32 %v6939_v57, %v18871_v55  ;;  %v6647_v57 = vadd.f32 %v18129_v8, %v6628_v0  ;;  %v6649_v4 = vadd.f32 %v6648_v58, %v6630_v10 }
 0x60b   :  { %v6821_v29 = vadd.f32 %v6820_v23, %v6819_v13  ;;  %v18163_v52 = vsub.f32 %v6595_v41, %v6949_v22  ;;  %v18165_v36 = vsub.f32 %v6597_v35, %v6949_v22  ;;  %v18178_v41 = vpop.f32.mrf.mxu1  ;;  %v10699_v22 = vor.u32 %v11487_v34, %v10698_v2 }
 0x60c   :  { %7609 = vmatpush.bf16.msra.mxu1 %v10615_v21  ;;  %v6666_v8 = vadd.f32 %v18133_v7, %v6647_v57  ;;  %v6668_v58 = vadd.f32 %v18152_v56, %v6649_v4  ;;  %v6614_v56 = vadd.f32 %v18142_v59, %v17150_v31  ;;  %v11483_v31 = vld [vmem:[%s18555_s21 + $0x114] sm:$0xf0] }
 0x60d   :  { %v6831_v39 = vmul.f32 %v6821_v29, %v18871_v55  ;;  %v6961_v40 = vmul.f32 %v18163_v52, %v18163_v52  ;;  %v6965_v3 = vmul.f32 %v18165_v36, %v18165_v36  ;;  %v11485_v29 = vld [vmem:[%s18555_s21 + $0x124] sm:$0xf0] }
 0x60e   :  { %v18180_v35 = vpop.f32.mrf.mxu2  ;;  %v6633_v54 = vadd.f32 %v18144_v26, %v6614_v56  ;;  %v10674_v26 = vld [vmem:[%s18555_s21 + $0x100] sm:$0xf] }
 0x60f   :  { %v6835_v16 = vadd.f32 1e-05, %v6831_v39  ;;  %v6981_v28 = vadd.f32 %v6965_v3, %v6961_v40  ;;  %v18182_v33 = vpop.f32.mrf.mxu3  ;;  %7610 = vmatmul.bf16.vlgmr.msra.gmra.mxu1 %v18068_v19  ;;  %v10714_v19 = vld [vmem:[%s18555_s21 + $0x150] sm:$0xf] }
 0x610   :  { %v10715_v25 = vor.u32 %v11491_v49, %v10714_v19 }
 0x611   :  { %11574 = vrsqrt.f32 %v6835_v16  ;;  %v6982_v38 = vrot.slane %v6981_v28, 4  ;;  %vm6863_vm8 = vweird.f32 %v6835_v16 }
 0x612   :  { %7547 = vmatpush.bf16.msrb.mxu2 %v10715_v25 }
 0x613   :  { %v6983_v48 = vadd.f32 %v6982_v38, %v6981_v28  ;;  %v6703_v47 = vpop.f32.mrf.mxu1  ;;  %v10691_v28 = vor.u32 %v11485_v29, %v10690_v9 }
 0x614   :  { %v6684_v44 = vpop.f32.mrf.mxu0 }
 0x615   :  { %v6984_v27 = vrot.slane %v6983_v48, 2  ;;  %v6685_v3 = vadd.f32 %v6684_v44, %v6666_v8  ;;  %v10682_v44 = vld [vmem:[%s18555_s21 + $0x110] sm:$0xf] }
 0x616   :  { %v18201_v12 = vpop.f32.mrf.mxu2  ;;  %7548 = vmatpush.bf16.msrb.mxu2 %v10707_v6 }
 0x617   :  { %v11575_v63 = vpop.eup %11574  ;;  %v6985_v30 = vadd.f32 %v6984_v27, %v6983_v48  ;;  %v18203_v37 = vpop.f32.mrf.mxu3  ;;  %v6616_v48 = vadd.f32 %v18161_v32, %v17206_v50  ;;  %v6704_v24 = vadd.f32 %v6703_v47, %v6685_v3 }
 0x618   :  { %v6858_v43 = vmul.f32 %v11575_v63, %v6835_v16  ;;  %vm6864_vm7 = vweird.f32 %v11575_v63 }
 0x619   :  { %v6986_v18 = vrot.slane %v6985_v30, 1  ;;  %vm6865_vm9 = vmor %vm6863_vm8, %vm6864_vm7 }
 0x61a   :  { %v6859_v13 = vmul.f32 %v11575_v63, %v6858_v43  ;;  %7549 = vmatpush.bf16.msrb.mxu2 %v10699_v22 }
 0x61b   :  { %v6987_v45 = vadd.f32 %v6986_v18, %v6985_v30  ;;  %v6705_v7 = vpop.f32.mrf.mxu1  ;;  %v6652_v30 = vadd.f32 %v18180_v35, %v6633_v54  ;;  %v10675_v35 = vor.u32 %v11481_v1, %v10674_v26 }
 0x61c   :  { %v6686_v23 = vpop.f32.mrf.mxu0  ;;  %v6860_v17 = vmul.f32 0.5, %v6859_v13 }
 0x61d   :  { %v6997_v21 = vmul.f32 %v6987_v45, %v18871_v55  ;;  %v6687_v38 = vadd.f32 %v6686_v23, %v6668_v58  ;;  %v11494_v23 = vld [vmem:[%s18555_s21 + $0x174] sm:$0xf] }
 0x61e   :  { %v6861_v15 = vsub.f32 1.5, %v6860_v17  ;;  %7550 = vmatpush.bf16.msrb.mxu2 %v10691_v28  ;;  %v10732_v17 = vld [vmem:[%s18555_s21 + $0x178] sm:$0xf0] }
 0x61f   :  { %v18228_v5 = vadd.f32 1e-05, %v6997_v21  ;;  %v6722_v39 = vpop.f32.mrf.mxu2  ;;  %7615 = vmatmul.bf16.gmra.mxu1 %v18131_v14  ;;  %v18241_v14 = vperm.slane %v17779_v11, 2  ;;  %v10683_v11 = vor.u32 %v11483_v31, %v10682_v44  ;;  %v6706_v19 = vadd.f32 %v6705_v7, %v6687_v38 }
 0x620   :  { %v6862_v40 = vmul.f32 %v11575_v63, %v6861_v15  ;;  %v6741_v62 = vpop.f32.mrf.mxu3  ;;  %v6723_v50 = vadd.f32 %v6722_v39, %v6704_v24  ;;  %v10735_v22 = vor.u32 %v11494_v23, %v10732_v17  ;;  %v6671_v21 = vadd.f32 %v18182_v33, %v6652_v30  ;;  %v10724_v33 = vld [vmem:[%s18555_s21 + $0x168] sm:$0xf0] }
 0x621   :  { %11576 = vrsqrt.f32 %v18228_v5  ;;  %vm7029_vm13 = vweird.f32 %v18228_v5 }
 0x622   :  { %v6866_v53 = vsel %vm6865_vm9, %v11575_v63, %v6862_v40  ;;  %v6635_v63 = vadd.f32 %v18178_v41, %v6616_v48  ;;  %7551 = vmatpush.bf16.msrb.mxu2 %v10683_v11  ;;  %v18265_v18 = vadd.f32 %v6741_v62, %v6723_v50  ;;  %v11492_v62 = vld [vmem:[%s18555_s21 + $0x164] sm:$0xf]  ;;  %v10716_v48 = vld [vmem:[%s18555_s21 + $0x158] sm:$0xf0] }
 0x623   :  { %v6879_v16 = vmul.f32 %v6866_v53, %v18112_v42  ;;  %v6883_v51 = vmul.f32 %v6866_v53, %v18115_v61  ;;  %v6708_v2 = vpop.f32.mrf.mxu1 }
 0x624   :  { %v6689_v59 = vpop.f32.mrf.mxu0  ;;  %v6654_v10 = vadd.f32 %v18201_v12, %v6635_v63 }
 0x625   :  { %v6896_v42 = vmul.f32 %v18233_v60, %v6879_v16  ;;  %v6900_v61 = vmul.f32 %v18233_v60, %v6883_v51  ;;  %v6690_v39 = vadd.f32 %v6689_v59, %v6671_v21  ;;  %v11490_v51 = vld [vmem:[%s18555_s21 + $0x154] sm:$0xf] }
 0x626   :  { %7552 = vmatpush.bf16.msrb.mxu2 %v10675_v35  ;;  %v6673_v29 = vadd.f32 %v18203_v37, %v6654_v10  ;;  %v10727_v37 = vor.u32 %v11492_v62, %v10724_v33  ;;  %v10676_v62 = vld [vmem:[%s18555_s21 + $0x108] sm:$0xf0] }
 0x627   :  { %v11577_v32 = vpop.eup %11576  ;;  %v6913_v49 = vadd.f32 %v18241_v14, %v6896_v42  ;;  %v6917_v27 = vadd.f32 %v18241_v14, %v6900_v61  ;;  %v6724_v20 = vpop.f32.mrf.mxu2  ;;  %v6709_v38 = vadd.f32 %v6708_v2, %v6690_v39  ;;  %v10719_v42 = vor.u32 %v11490_v51, %v10716_v48 }
 0x628   :  { %v7024_v25 = vmul.f32 %v11577_v32, %v18228_v5  ;;  %v6725_v47 = vadd.f32 %v6724_v20, %v6706_v19  ;;  %v6743_v46 = vpop.f32.mrf.mxu3  ;;  %vm7030_vm12 = vweird.f32 %v11577_v32 }
 0x629   :  { %vm7069_vm10 = vcmp.ge.f32.partialorder %v6913_v49, 0.0  ;;  %vm7073_vm11 = vcmp.ge.f32.partialorder %v6917_v27, 0.0  ;;  %v7085_v43 = vmul.f32 0.01, %v6913_v49  ;;  %v7089_v0 = vmul.f32 0.01, %v6917_v27  ;;  %vm7031_vm14 = vmor %vm7029_vm13, %vm7030_vm12 }
 0x62a   :  { %v7025_v6 = vmul.f32 %v11577_v32, %v7024_v25  ;;  %v18267_v41 = vadd.f32 %v6743_v46, %v6725_v47  ;;  %7621 = vmatpush.bf16.msra.mxu2 %v10735_v22 }
 0x62b   :  { %v7101_v34 = vsel %vm7069_vm10, %v6913_v49, %v7085_v43  ;;  %v7105_v13 = vsel %vm7073_vm11, %v6917_v27, %v7089_v0  ;;  %v6710_v31 = vpop.f32.mrf.mxu1  ;;  %v11486_v0 = vld [vmem:[%s18555_s21 + $0x134] sm:$0xf] }
 0x62c   :  { %v7026_v57 = vmul.f32 0.5, %v7025_v6  ;;  %v6774_v45 = vadd.f32 %v18267_v41, %v18265_v18  ;;  %v18272_v4 = vpack.c.bf16 %v7105_v13, %v7101_v34  ;;  %v6691_v15 = vpop.f32.mrf.mxu0  ;;  %v10700_v6 = vld [vmem:[%s18555_s21 + $0x138] sm:$0xf0] }
 0x62d   :  { %v6692_v53 = vadd.f32 %v6691_v15, %v6673_v29  ;;  %v10703_v10 = vor.u32 %v11486_v0, %v10700_v6  ;;  %v10684_v29 = vld [vmem:[%s18555_s21 + $0x118] sm:$0xf0]  ;;  %v11501_v0 = vld [vmem:[%s18555_s21 + $0x1a4] sm:$0xf0] }
 0x62e   :  { %v7027_v12 = vsub.f32 1.5, %v7026_v57  ;;  %v6775_v9 = vrot.slane %v6774_v45, 4  ;;  %7553 = vmatmul.bf16.vlgmr.msrb.gmra.mxu2 %v18272_v4  ;;  %v11484_v57 = vld [vmem:[%s18555_s21 + $0x124] sm:$0xf] }
 0x62f   :  { %v6727_v8 = vpop.f32.mrf.mxu2  ;;  %7622 = vmatpush.bf16.msra.mxu2 %v10727_v37  ;;  %v6711_v61 = vadd.f32 %v6710_v31, %v6692_v53 }
 0x630   :  { %v7028_v58 = vmul.f32 %v11577_v32, %v7027_v12  ;;  %v6776_v40 = vadd.f32 %v6775_v9, %v6774_v45  ;;  %v6746_v3 = vpop.f32.mrf.mxu3  ;;  %v10692_v45 = vld [vmem:[%s18555_s21 + $0x128] sm:$0xf0]  ;;  %v11482_v9 = vld [vmem:[%s18555_s21 + $0x114] sm:$0xf] }
 0x631   :  { %v10695_v23 = vor.u32 %v11484_v57, %v10692_v45  ;;  %v10687_v15 = vor.u32 %v11482_v9, %v10684_v29  ;;  %v11593_v45 = vld [vmem:[%s18553_s19] sm:$0xf] }
 0x632   :  { %v7032_v28 = vsel %vm7031_vm14, %v11577_v32, %v7028_v58  ;;  %v6777_v7 = vrot.slane %v6776_v40, 2  ;;  %v11488_v32 = vld [vmem:[%s18555_s21 + $0x144] sm:$0xf]  ;;  %v10738_v29 = vld [vmem:[%s18555_s21 + $0x180] sm:$0xf] }
 0x633   :  { %v7045_v5 = vmul.f32 %v7032_v28, %v18163_v52  ;;  %v7049_v56 = vmul.f32 %v7032_v28, %v18165_v36  ;;  %v6728_v36 = vadd.f32 %v6727_v8, %v6709_v38  ;;  %7623 = vmatpush.bf16.msra.mxu2 %v10719_v42  ;;  %v11511_v38 = vld [vmem:[%s18555_s21 + $0x1f4] sm:$0xf0]  ;;  %v10786_v42 = vld [vmem:[%s18555_s21 + $0x1e0] sm:$0xf] }
 0x634   :  { %v6778_v16 = vadd.f32 %v6777_v7, %v6776_v40 }
 0x635   :  { %v7053_v24 = vmul.f32 %v7045_v5, %v18233_v60  ;;  %v7057_v44 = vmul.f32 %v7049_v56, %v18233_v60  ;;  %v10708_v60 = vld [vmem:[%s18555_s21 + $0x148] sm:$0xf0]  ;;  %v6747_v63 = vadd.f32 %v6746_v3, %v6728_v36  ;;  %v11480_v3 = vld [vmem:[%s18555_s21 + $0x104] sm:$0xf]  ;;  %v10794_v56 = vld [vmem:[%s18555_s21 + $0x1f0] sm:$0xf] }
 0x636   :  { %v6779_v52 = vrot.slane %v6778_v16, 1  ;;  %v10711_v27 = vor.u32 %v11488_v32, %v10708_v60  ;;  %v10679_v33 = vor.u32 %v11480_v3, %v10676_v62  ;;  %v10770_v60 = vld [vmem:[%s18555_s21 + $0x1c0] sm:$0xf] }
 0x637   :  { %v7065_v59 = vadd.f32 %v7057_v44, %v18241_v14  ;;  %v6729_v11 = vpop.f32.mrf.mxu2  ;;  %v7061_v54 = vadd.f32 %v7053_v24, %v18241_v14 }
 0x638   :  { %v6780_v19 = vadd.f32 %v6779_v52, %v6778_v16  ;;  %v6730_v50 = vadd.f32 %v6729_v11, %v6711_v61  ;;  %v6748_v49 = vpop.f32.mrf.mxu3  ;;  %7624 = vmatpush.bf16.msra.mxu2 %v10711_v27  ;;  %v10795_v16 = vor.u32 %v11511_v38, %v10794_v56  ;;  %v11509_v52 = vld [vmem:[%s18555_s21 + $0x1e4] sm:$0xf0]  ;;  %v11507_v11 = vld [vmem:[%s18555_s21 + $0x1d4] sm:$0xf0]  ;;  %v10762_v27 = vld [vmem:[%s18555_s21 + $0x1b0] sm:$0xf] }
 0x639   :  { %vm7077_vm2 = vcmp.ge.f32.partialorder %v7061_v54, 0.0  ;;  %vm7081_vm15 = vcmp.ge.f32.partialorder %v7065_v59, 0.0  ;;  %v7093_v20 = vmul.f32 0.01, %v7061_v54  ;;  %v7097_v30 = vmul.f32 0.01, %v7065_v59 }
 0x63a   :  { %v6784_v25 = vmul.f32 %v6780_v19, %v18871_v55  ;;  %v6749_v14 = vadd.f32 %v6748_v49, %v6730_v50  ;;  %7564 = vmatpush.bf16.msrb.mxu3 %v10795_v16  ;;  %v10787_v61 = vor.u32 %v11509_v52, %v10786_v42  ;;  %v11505_v49 = vld [vmem:[%s18555_s21 + $0x1c4] sm:$0xf0]  ;;  %v11506_v42 = vld [vmem:[%s18555_s21 + $0x1d4] sm:$0xf]  ;;  %v10780_v52 = vld [vmem:[%s18555_s21 + $0x1d8] sm:$0xf0] }
 0x63b   :  { %v7109_v47 = vsel %vm7077_vm2, %v7061_v54, %v7093_v20  ;;  %v7113_v43 = vsel %vm7081_vm15, %v7065_v59, %v7097_v30 }
 0x63c   :  { %v18311_v46 = vsub.f32 %v18265_v18, %v6784_v25  ;;  %v18314_v26 = vsub.f32 %v18267_v41, %v6784_v25  ;;  %v6940_v1 = vadd.f32 %v6749_v14, %v6747_v63  ;;  %v18322_v35 = vpack.c.bf16 %v7113_v43, %v7109_v47  ;;  %7625 = vmatpush.bf16.msra.mxu2 %v10703_v10  ;;  %v10754_v43 = vld [vmem:[%s18555_s21 + $0x1a0] sm:$0xf] }
 0x63d   :  { %v10771_v25 = vor.u32 %v11505_v49, %v10770_v60  ;;  %v11502_v60 = vld [vmem:[%s18555_s21 + $0x1b4] sm:$0xf]  ;;  %v10764_v49 = vld [vmem:[%s18555_s21 + $0x1b8] sm:$0xf0] }
 0x63e   :  { %v6796_v18 = vmul.f32 %v18311_v46, %v18311_v46  ;;  %v6800_v41 = vmul.f32 %v18314_v26, %v18314_v26  ;;  %v6941_v2 = vrot.slane %v6940_v1, 4  ;;  %7558 = vmatmul.bf16.gmra.mxu2 %v18322_v35  ;;  %7565 = vmatpush.bf16.msrb.mxu3 %v10787_v61 }
 0x640   :  { %v6822_v34 = vadd.f32 %v6800_v41, %v6796_v18  ;;  %v6942_v13 = vadd.f32 %v6941_v2, %v6940_v1  ;;  %7626 = vmatpush.bf16.msra.mxu2 %v10695_v23  ;;  %v10755_v41 = vor.u32 %v11501_v0, %v10754_v43  ;;  %v6889_v23 = vperm.slane %v11593_v45, 3  ;;  %v7516_v45 = vpop.f32.mrf.mxu0 }
 0x642   :  { %v6823_v17 = vrot.slane %v6822_v34, 4  ;;  %v6943_v22 = vrot.slane %v6942_v13, 2 }
 0x644   :  { %v6824_v12 = vadd.f32 %v6823_v17, %v6822_v34  ;;  %v6944_v21 = vadd.f32 %v6943_v22, %v6942_v13  ;;  %7627 = vmatpush.bf16.msra.mxu2 %v10687_v15  ;;  %v10746_v34 = vld [vmem:[%s18555_s21 + $0x190] sm:$0xf]  ;;  %v11499_v13 = vld [vmem:[%s18555_s21 + $0x194] sm:$0xf0]  ;;  %v11497_v15 = vld [vmem:[%s18555_s21 + $0x184] sm:$0xf0] }
 0x645   :  { %v10747_v17 = vor.u32 %v11499_v13, %v10746_v34  ;;  %v10740_v34 = vld [vmem:[%s18555_s21 + $0x188] sm:$0xf0] }
 0x646   :  { %v6825_v8 = vrot.slane %v6824_v12, 2  ;;  %v6945_v58 = vrot.slane %v6944_v21, 1 }
 0x648   :  { %v6826_v39 = vadd.f32 %v6825_v8, %v6824_v12  ;;  %v6946_v40 = vadd.f32 %v6945_v58, %v6944_v21  ;;  %7628 = vmatpush.bf16.msra.mxu2 %v10679_v33  ;;  %v11594_v21 = vld [vmem:[%s18554_s20] sm:$0xf]  ;;  %v11510_v8 = vld [vmem:[%s18555_s21 + $0x1f4] sm:$0xf] }
 0x649   :  { %v6906_v9 = vperm.slane %v11594_v21, 3 }
 0x64a   :  { %v6827_v37 = vrot.slane %v6826_v39, 1  ;;  %v6950_v28 = vmul.f32 %v6946_v40, %v18871_v55 }
 0x64c   :  { %v6828_v7 = vadd.f32 %v6827_v37, %v6826_v39  ;;  %v18348_v53 = vsub.f32 %v6747_v63, %v6950_v28  ;;  %v18350_v5 = vsub.f32 %v6749_v14, %v6950_v28  ;;  %v11503_v63 = vld [vmem:[%s18555_s21 + $0x1b4] sm:$0xf0]  ;;  %v10739_v39 = vor.u32 %v11497_v15, %v10738_v29  ;;  %v11508_v28 = vld [vmem:[%s18555_s21 + $0x1e4] sm:$0xf] }
 0x64d   :  { %v10763_v47 = vor.u32 %v11503_v63, %v10762_v27 }
 0x64e   :  { %v6832_v51 = vmul.f32 %v6828_v7, %v18871_v55  ;;  %v6962_v48 = vmul.f32 %v18348_v53, %v18348_v53  ;;  %v6966_v24 = vmul.f32 %v18350_v5, %v18350_v5  ;;  %7629 = vmatmul.bf16.vlgmr.msra.gmra.mxu2 %v18272_v4  ;;  %v10778_v4 = vld [vmem:[%s18555_s21 + $0x1d0] sm:$0xf]  ;;  %v10788_v7 = vld [vmem:[%s18555_s21 + $0x1e8] sm:$0xf0] }
 0x64f   :  { %v10779_v54 = vor.u32 %v11507_v11, %v10778_v4  ;;  %v11504_v4 = vld [vmem:[%s18555_s21 + $0x1c4] sm:$0xf]  ;;  %v10772_v11 = vld [vmem:[%s18555_s21 + $0x1c8] sm:$0xf0] }
 0x650   :  { %v6836_v44 = vadd.f32 1e-05, %v6832_v51  ;;  %v6988_v31 = vadd.f32 %v6966_v24, %v6962_v48  ;;  %v10791_v24 = vor.u32 %v11508_v28, %v10788_v7 }
 0x651   :  { %7566 = vmatpush.bf16.msrb.mxu3 %v10779_v54 }
 0x652   :  { %11578 = vrsqrt.f32 %v6836_v44  ;;  %v6989_v36 = vrot.slane %v6988_v31, 4  ;;  %vm6873_vm1 = vweird.f32 %v6836_v44 }
 0x654   :  { %v6990_v59 = vadd.f32 %v6989_v36, %v6988_v31  ;;  %v10783_v36 = vor.u32 %v11506_v42, %v10780_v52 }
 0x655   :  { %7567 = vmatpush.bf16.msrb.mxu3 %v10771_v25 }
 0x656   :  { %v6991_v19 = vrot.slane %v6990_v59, 2 }
 0x658   :  { %v11579_v50 = vpop.eup %11578  ;;  %v6992_v32 = vadd.f32 %v6991_v19, %v6990_v59 }
 0x659   :  { %v6868_v20 = vmul.f32 %v11579_v50, %v6836_v44  ;;  %vm6874_vm0 = vweird.f32 %v11579_v50  ;;  %7568 = vmatpush.bf16.msrb.mxu3 %v10763_v47 }
 0x65a   :  { %v6993_v14 = vrot.slane %v6992_v32, 1  ;;  %vm6875_vm3 = vmor %vm6873_vm1, %vm6874_vm0 }
 0x65b   :  { %v6869_v30 = vmul.f32 %v11579_v50, %v6868_v20 }
 0x65c   :  { %v6994_v1 = vadd.f32 %v6993_v14, %v6992_v32  ;;  %v10775_v32 = vor.u32 %v11504_v4, %v10772_v11  ;;  %v10767_v14 = vor.u32 %v11502_v60, %v10764_v49 }
 0x65d   :  { %v6870_v6 = vmul.f32 0.5, %v6869_v30  ;;  %7569 = vmatpush.bf16.msrb.mxu3 %v10755_v41 }
 0x65e   :  { %v6998_v10 = vmul.f32 %v6994_v1, %v18871_v55  ;;  %7634 = vmatmul.bf16.gmra.mxu2 %v18322_v35 }
 0x65f   :  { %v6871_v18 = vsub.f32 1.5, %v6870_v6 }
 0x660   :  { %v7002_v2 = vadd.f32 1e-05, %v6998_v10  ;;  %v11498_v10 = vld [vmem:[%s18555_s21 + $0x194] sm:$0xf] }
 0x661   :  { %v6872_v57 = vmul.f32 %v11579_v50, %v6871_v18  ;;  %7570 = vmatpush.bf16.msrb.mxu3 %v10747_v17  ;;  %v10748_v18 = vld [vmem:[%s18555_s21 + $0x198] sm:$0xf0]  ;;  %v7518_v17 = vpop.f32.mrf.mxu0 }
 0x662   :  { %11580 = vrsqrt.f32 %v7002_v2  ;;  %vm7039_vm7 = vweird.f32 %v7002_v2  ;;  %v10751_v41 = vor.u32 %v11498_v10, %v10748_v18 }
 0x663   :  { %v6876_v35 = vsel %vm6875_vm3, %v11579_v50, %v6872_v57 }
 0x664   :  { %v6880_v22 = vmul.f32 %v6876_v35, %v18311_v46  ;;  %v6884_v12 = vmul.f32 %v6876_v35, %v18314_v26  ;;  %v10796_v46 = vld [vmem:[%s18555_s21 + $0x1f8] sm:$0xf0] }
 0x665   :  { %v10799_v33 = vor.u32 %v11510_v8, %v10796_v46  ;;  %7571 = vmatpush.bf16.msrb.mxu3 %v10739_v39 }
 0x666   :  { %v6897_v26 = vmul.f32 %v6889_v23, %v6880_v22  ;;  %v6901_v58 = vmul.f32 %v6889_v23, %v6884_v12 }
 0x668   :  { %v11581_v40 = vpop.eup %11580  ;;  %v6914_v3 = vadd.f32 %v6906_v9, %v6897_v26  ;;  %v6918_v62 = vadd.f32 %v6906_v9, %v6901_v58 }
 0x669   :  { %v7034_v37 = vmul.f32 %v11581_v40, %v7002_v2  ;;  %7640 = vmatpush.bf16.msra.mxu3 %v10799_v33  ;;  %vm7040_vm6 = vweird.f32 %v11581_v40  ;;  %v11496_v2 = vld [vmem:[%s18555_s21 + $0x184] sm:$0xf] }
 0x66a   :  { %vm7070_vm4 = vcmp.ge.f32.partialorder %v6914_v3, 0.0  ;;  %vm7074_vm5 = vcmp.ge.f32.partialorder %v6918_v62, 0.0  ;;  %v7086_v56 = vmul.f32 0.01, %v6914_v3  ;;  %v7090_v38 = vmul.f32 0.01, %v6918_v62  ;;  %vm7041_vm8 = vmor %vm7039_vm7, %vm7040_vm6 }
 0x66b   :  { %v7035_v16 = vmul.f32 %v11581_v40, %v7034_v37  ;;  %v10743_v13 = vor.u32 %v11496_v2, %v10740_v34  ;;  %v7535_v57 = vpop.f32.mrf.mxu1 }
 0x66c   :  { %v7102_v51 = vsel %vm7070_vm4, %v6914_v3, %v7086_v56  ;;  %v7106_v48 = vsel %vm7074_vm5, %v6918_v62, %v7090_v38  ;;  %v7536_v15 = vadd.f32 %v7535_v57, %v7516_v45 }
 0x66d   :  { %v7036_v44 = vmul.f32 0.5, %v7035_v16  ;;  %v7118_v31 = vpack.c.bf16 %v7106_v48, %v7102_v51  ;;  %7641 = vmatpush.bf16.msra.mxu3 %v10791_v24 }
 0x66f   :  { %v7037_v61 = vsub.f32 1.5, %v7036_v44  ;;  %7572 = vmatmul.bf16.vlgmr.msrb.gmra.mxu3 %v7118_v31 }
 0x671   :  { %v7038_v59 = vmul.f32 %v11581_v40, %v7037_v61  ;;  %7642 = vmatpush.bf16.msra.mxu3 %v10783_v36 }
 0x673   :  { %v7042_v54 = vsel %vm7041_vm8, %v11581_v40, %v7038_v59  ;;  %v7537_v35 = vpop.f32.mrf.mxu1 }
 0x674   :  { %v7046_v19 = vmul.f32 %v7042_v54, %v18348_v53  ;;  %v7050_v50 = vmul.f32 %v7042_v54, %v18350_v5  ;;  %v11500_v53 = vld [vmem:[%s18555_s21 + $0x1a4] sm:$0xf]  ;;  %v10756_v5 = vld [vmem:[%s18555_s21 + $0x1a8] sm:$0xf0]  ;;  %v7538_v8 = vadd.f32 %v7537_v35, %v7518_v17 }
 0x675   :  { %7643 = vmatpush.bf16.msra.mxu3 %v10775_v32  ;;  %v10759_v0 = vor.u32 %v11500_v53, %v10756_v5 }
 0x676   :  { %v7054_v27 = vmul.f32 %v7046_v19, %v6889_v23  ;;  %v7058_v20 = vmul.f32 %v7050_v50, %v6889_v23 }
 0x678   :  { %v7066_v25 = vadd.f32 %v7058_v20, %v6906_v9  ;;  %v7062_v63 = vadd.f32 %v7054_v27, %v6906_v9  ;;  %v7521_v9 = vpop.f32.mrf.mxu0 }
 0x679   :  { %7644 = vmatpush.bf16.msra.mxu3 %v10767_v14 }
 0x67a   :  { %vm7078_vm9 = vcmp.ge.f32.partialorder %v7062_v63, 0.0  ;;  %vm7082_vm10 = vcmp.ge.f32.partialorder %v7066_v25, 0.0  ;;  %v7094_v30 = vmul.f32 0.01, %v7062_v63  ;;  %v7098_v47 = vmul.f32 0.01, %v7066_v25 }
 0x67c   :  { %v7110_v1 = vsel %vm7078_vm9, %v7062_v63, %v7094_v30  ;;  %v7114_v43 = vsel %vm7082_vm10, %v7066_v25, %v7098_v47  ;;  %v7540_v12 = vpop.f32.mrf.mxu1 }
 0x67d   :  { %v7122_v6 = vpack.c.bf16 %v7114_v43, %v7110_v1  ;;  %7645 = vmatpush.bf16.msra.mxu3 %v10759_v0  ;;  %v7541_v24 = vadd.f32 %v7540_v12, %v7521_v9 }
 0x67f   :  { %7577 = vmatmul.bf16.gmra.mxu3 %v7122_v6 }
 0x680   :  { %v7523_v62 = vpop.f32.mrf.mxu0 }
 0x681   :  { %7646 = vmatpush.bf16.msra.mxu3 %v10751_v41 }
 0x684   :  { %v7542_v3 = vpop.f32.mrf.mxu1 }
 0x685   :  { %7647 = vmatpush.bf16.msra.mxu3 %v10743_v13  ;;  %v7543_v44 = vadd.f32 %v7542_v3, %v7523_v62 }
 0x688   :  { %v7592_v48 = vpop.f32.mrf.mxu0 }
 0x68c   :  { %v7611_v51 = vpop.f32.mrf.mxu1 }
 0x68d   :  { %v7612_v0 = vadd.f32 %v7611_v51, %v7592_v48 }
 0x68f   :  { %7648 = vmatmul.bf16.vlgmr.msra.gmra.mxu3 %v7118_v31 }
 0x690   :  { %v7594_v25 = vpop.f32.mrf.mxu0 }
 0x694   :  { %v7613_v20 = vpop.f32.mrf.mxu1 }
 0x698   :  { %v7597_v12 = vpop.f32.mrf.mxu0 }
 0x69c   :  { %v7616_v57 = vpop.f32.mrf.mxu1 }
 0x69d   :  { %v7617_v48 = vadd.f32 %v7616_v57, %v7597_v12 }
 0x69f   :  { %7653 = vmatmul.bf16.gmra.mxu3 %v7122_v6  ;;  %v7614_v6 = vadd.f32 %v7613_v20, %v7594_v25 }
 0x6b1   :  { %v7554_v23 = vpop.f32.mrf.mxu2 }
 0x6b2   :  { %v7555_v46 = vadd.f32 %v7554_v23, %v7536_v15 }
 0x6b9   :  { %v7556_v22 = vpop.f32.mrf.mxu2 }
 0x6ba   :  { %v7557_v26 = vadd.f32 %v7556_v22, %v7538_v8 }
 0x6c1   :  { %v7559_v29 = vpop.f32.mrf.mxu2 }
 0x6c2   :  { %v7560_v52 = vadd.f32 %v7559_v29, %v7541_v24 }
 0x6c9   :  { %v7561_v37 = vpop.f32.mrf.mxu2 }
 0x6ca   :  { %v7562_v61 = vadd.f32 %v7561_v37, %v7543_v44 }
 0x6d1   :  { %v7630_v42 = vpop.f32.mrf.mxu2 }
 0x6d2   :  { %v7631_v41 = vadd.f32 %v7630_v42, %v7612_v0 }
 0x6d9   :  { %v7632_v53 = vpop.f32.mrf.mxu2 }
 0x6da   :  { %v7633_v2 = vadd.f32 %v7632_v53, %v7614_v6 }
 0x6f2   :  { %v7573_v21 = vpop.f32.mrf.mxu3 }
 0x6f3   :  { %v7574_v39 = vadd.f32 %v7573_v21, %v7555_v46  ;;  %v7635_v21 = vpop.f32.mrf.mxu2 }
 0x6fa   :  { %v7575_v58 = vpop.f32.mrf.mxu3 }
 0x6fb   :  { %v7576_v40 = vadd.f32 %v7575_v58, %v7557_v26  ;;  %v7637_v51 = vpop.f32.mrf.mxu2 }
 0x6fd   :  { %v7661_v33 = vadd.f32 %v7576_v40, %v7574_v39 }
 0x6ff   :  { %v7662_v28 = vrot.slane %v7661_v33, 4 }
 0x701   :  { %v7663_v7 = vadd.f32 %v7662_v28, %v7661_v33 }
 0x702   :  { %v7578_v56 = vpop.f32.mrf.mxu3 }
 0x703   :  { %v7664_v38 = vrot.slane %v7663_v7, 2  ;;  %v7579_v11 = vadd.f32 %v7578_v56, %v7560_v52  ;;  %v7636_v52 = vadd.f32 %v7635_v21, %v7617_v48 }
 0x705   :  { %v7665_v16 = vadd.f32 %v7664_v38, %v7663_v7  ;;  %v7618_v7 = vpop.f32.mrf.mxu1 }
 0x707   :  { %v7666_v31 = vrot.slane %v7665_v16, 1 }
 0x709   :  { %v7667_v36 = vadd.f32 %v7666_v31, %v7665_v16  ;;  %v7599_v16 = vpop.f32.mrf.mxu0 }
 0x70a   :  { %v7580_v59 = vpop.f32.mrf.mxu3  ;;  %v7619_v24 = vadd.f32 %v7618_v7, %v7599_v16 }
 0x70b   :  { %v7675_v4 = vmul.f32 %v7667_v36, %v18871_v55  ;;  %v7581_v54 = vadd.f32 %v7580_v59, %v7562_v61 }
 0x70c   :  { %v7638_v61 = vadd.f32 %v7637_v51, %v7619_v24 }
 0x70d   :  { %v18467_v19 = vsub.f32 %v7574_v39, %v7675_v4  ;;  %v18469_v50 = vsub.f32 %v7576_v40, %v7675_v4  ;;  %v7745_v32 = vadd.f32 %v7581_v54, %v7579_v11 }
 0x70f   :  { %v7681_v60 = vmul.f32 %v18467_v19, %v18467_v19  ;;  %v7683_v49 = vmul.f32 %v18469_v50, %v18469_v50  ;;  %v7746_v27 = vrot.slane %v7745_v32, 4 }
 0x711   :  { %v7685_v63 = vadd.f32 %v7683_v49, %v7681_v60  ;;  %v7747_v14 = vadd.f32 %v7746_v27, %v7745_v32 }
 0x712   :  { %v7649_v5 = vpop.f32.mrf.mxu3 }
 0x713   :  { %v7686_v30 = vrot.slane %v7685_v63, 4  ;;  %v7748_v47 = vrot.slane %v7747_v14, 2  ;;  %v7650_v17 = vadd.f32 %v7649_v5, %v7631_v41  ;;  %v18503_v41 = vld [vmem:[%s18557_s23] sm:$0x3] }
 0x715   :  { %v7687_v1 = vadd.f32 %v7686_v30, %v7685_v63  ;;  %v7749_v43 = vadd.f32 %v7748_v47, %v7747_v14 }
 0x717   :  { %v7688_v10 = vrot.slane %v7687_v1, 2  ;;  %v7750_v18 = vrot.slane %v7749_v43, 1 }
 0x719   :  { %v7689_v34 = vadd.f32 %v7688_v10, %v7687_v1  ;;  %v7751_v13 = vadd.f32 %v7750_v18, %v7749_v43  ;;  %v18498_v43 = vld [vmem:[%s18556_s22] sm:$0x3] }
 0x71a   :  { %v7651_v45 = vpop.f32.mrf.mxu3 }
 0x71b   :  { %v7690_v23 = vrot.slane %v7689_v34, 1  ;;  %v7759_v35 = vmul.f32 %v7751_v13, %v18871_v55  ;;  %v7652_v22 = vadd.f32 %v7651_v45, %v7633_v2 }
 0x71d   :  { %v7691_v9 = vadd.f32 %v7690_v23, %v7689_v34  ;;  %v18476_v29 = vsub.f32 %v7579_v11, %v7759_v35  ;;  %v18478_v15 = vsub.f32 %v7581_v54, %v7759_v35  ;;  %v7668_v8 = vadd.f32 %v7652_v22, %v7650_v17 }
 0x71e   :  { %v7728_v34 = vperm.slane %v18498_v43, 0 }
 0x71f   :  { %v7699_v46 = vmul.f32 %v7691_v9, %v18871_v55  ;;  %v7765_v26 = vmul.f32 %v18476_v29, %v18476_v29  ;;  %v7767_v58 = vmul.f32 %v18478_v15, %v18478_v15  ;;  %v7669_v39 = vrot.slane %v7668_v8, 4 }
 0x721   :  { %v7701_v40 = vadd.f32 1e-05, %v7699_v46  ;;  %v7769_v3 = vadd.f32 %v7767_v58, %v7765_v26  ;;  %v7670_v62 = vadd.f32 %v7669_v39, %v7668_v8 }
 0x722   :  { %v7654_v33 = vpop.f32.mrf.mxu3 }
 0x723   :  { %11582 = vrsqrt.f32 %v7701_v40  ;;  %v7770_v37 = vrot.slane %v7769_v3, 4  ;;  %v7671_v28 = vrot.slane %v7670_v62, 2  ;;  %v7655_v60 = vadd.f32 %v7654_v33, %v7636_v52 }
 0x724   :  { %vm7709_vm12 = vweird.f32 %v7701_v40 }
 0x725   :  { %v7771_v56 = vadd.f32 %v7770_v37, %v7769_v3  ;;  %v7672_v38 = vadd.f32 %v7671_v28, %v7670_v62 }
 0x727   :  { %v7772_v44 = vrot.slane %v7771_v56, 2  ;;  %v7673_v31 = vrot.slane %v7672_v38, 1 }
 0x729   :  { %v11583_v42 = vpop.eup %11582  ;;  %v7773_v36 = vadd.f32 %v7772_v44, %v7771_v56  ;;  %v7674_v59 = vadd.f32 %v7673_v31, %v7672_v38 }
 0x72a   :  { %v7704_v4 = vmul.f32 %v11583_v42, %v7701_v40  ;;  %v7656_v11 = vpop.f32.mrf.mxu3  ;;  %vm7710_vm11 = vweird.f32 %v11583_v42 }
 0x72b   :  { %v7774_v54 = vrot.slane %v7773_v36, 1  ;;  %v7676_v32 = vmul.f32 %v7674_v59, %v18871_v55  ;;  %v7657_v49 = vadd.f32 %v7656_v11, %v7638_v61  ;;  %vm7711_vm13 = vmor %vm7709_vm12, %vm7710_vm11 }
 0x72c   :  { %v7705_v27 = vmul.f32 %v11583_v42, %v7704_v4 }
 0x72d   :  { %v7775_v20 = vadd.f32 %v7774_v54, %v7773_v36  ;;  %v18486_v25 = vsub.f32 %v7650_v17, %v7676_v32  ;;  %v18488_v63 = vsub.f32 %v7652_v22, %v7676_v32  ;;  %v7752_v14 = vadd.f32 %v7657_v49, %v7655_v60 }
 0x72e   :  { %v7706_v53 = vmul.f32 0.5, %v7705_v27  ;;  %v7737_v17 = vperm.slane %v18503_v41, 0 }
 0x72f   :  { %v7783_v5 = vmul.f32 %v7775_v20, %v18871_v55  ;;  %v7682_v30 = vmul.f32 %v18486_v25, %v18486_v25  ;;  %v7684_v47 = vmul.f32 %v18488_v63, %v18488_v63  ;;  %v7753_v1 = vrot.slane %v7752_v14, 4 }
 0x730   :  { %v7707_v0 = vsub.f32 1.5, %v7706_v53 }
 0x731   :  { %v7785_v6 = vadd.f32 1e-05, %v7783_v5  ;;  %v7692_v10 = vadd.f32 %v7684_v47, %v7682_v30  ;;  %v7754_v18 = vadd.f32 %v7753_v1, %v7752_v14 }
 0x732   :  { %v7708_v2 = vmul.f32 %v11583_v42, %v7707_v0 }
 0x733   :  { %11584 = vrsqrt.f32 %v7785_v6  ;;  %v7693_v13 = vrot.slane %v7692_v10, 4  ;;  %v7755_v57 = vrot.slane %v7754_v18, 2  ;;  %vm7793_vm0 = vweird.f32 %v7785_v6 }
 0x734   :  { %v7712_v45 = vsel %vm7711_vm13, %v11583_v42, %v7708_v2 }
 0x735   :  { %v7723_v23 = vmul.f32 %v7712_v45, %v18467_v19  ;;  %v7725_v35 = vmul.f32 %v7712_v45, %v18469_v50  ;;  %v7694_v22 = vadd.f32 %v7693_v13, %v7692_v10  ;;  %v7756_v12 = vadd.f32 %v7755_v57, %v7754_v18  ;;  %v7843_v45 = vld [vmem:[%s18558_s24] sm:$0x3]  ;;  %s11623_s24 = smov [#allocation3]  }
 0x736   :  { %7854 = vst [vmem:[#allocation1] ss:$9 sm:$0xff] %v7843_v45  ;;  %s7926_s6 = sshll.u32 %s11623_s24, 4  ;;  %s7927_s6 = int_to_ptr.vmem [resolvable:$true] %s7926_s6 }
 0x737   :  { %v7732_v21 = vmul.f32 %v7728_v34, %v7723_v23  ;;  %v7734_v9 = vmul.f32 %v7728_v34, %v7725_v35  ;;  %v7695_v8 = vrot.slane %v7694_v22, 2  ;;  %v7757_v46 = vrot.slane %v7756_v12, 1  ;;  %v7844_v23 = vld [vmem:[#allocation2] sm:$0x1] }
 0x739   :  { %v11585_v26 = vpop.eup %11584  ;;  %v7741_v58 = vadd.f32 %v7737_v17, %v7732_v21  ;;  %v7743_v39 = vadd.f32 %v7737_v17, %v7734_v9  ;;  %v7696_v40 = vadd.f32 %v7695_v8, %v7694_v22  ;;  %v7758_v62 = vadd.f32 %v7757_v46, %v7756_v12 }
 0x73a   :  { %v7788_v3 = vmul.f32 %v11585_v26, %v7785_v6  ;;  %vm7794_vm15 = vweird.f32 %v11585_v26  ;;  %v11622_v22 = vmov 0   ;;  %v7729_v12 = vperm.slane %v18498_v43, 1 }
 0x73b   :  { %v7697_v33 = vrot.slane %v7696_v40, 1  ;;  %vm7819_vm14 = vcmp.ge.f32.partialorder %v7741_v58, 0.0  ;;  %vm7821_vm2 = vcmp.ge.f32.partialorder %v7743_v39, 0.0  ;;  %v7827_v19 = vmul.f32 0.01, %v7741_v58  ;;  %vm7795_vm1 = vmor %vm7793_vm0, %vm7794_vm15  ;;  %11517 = vset.pattern.permute.xlu0 %v11622_v22 }
 0x73c   :  { %v7789_v37 = vmul.f32 %v11585_v26, %v7788_v3  ;;  %v7760_v50 = vmul.f32 %v7758_v62, %v18871_v55  ;;  %v7829_v28 = vmul.f32 0.01, %v7743_v39  ;;  %7849 = vperm.xlu0 %11517, %v7844_v23   ;;  %v7738_v8 = vperm.slane %v18503_v41, 1 }
 0x73d   :  { %v7698_v7 = vadd.f32 %v7697_v33, %v7696_v40  ;;  %v7835_v56 = vsel %vm7819_vm14, %v7741_v58, %v7827_v19  ;;  %v7855_v40 = vld [vmem:[#allocation1] sm:$0xff]  ;;  %v7856_v3 = vld [vmem:[#allocation1 + $0x9] sm:$0xff] }
 0x73e   :  { %v7790_v38 = vmul.f32 0.5, %v7789_v37  ;;  %v18510_v16 = vsub.f32 %v7655_v60, %v7760_v50  ;;  %v18512_v51 = vsub.f32 %v7657_v49, %v7760_v50  ;;  %v7837_v48 = vsel %vm7821_vm2, %v7743_v39, %v7829_v28  ;;  %7889 = vst [vmem:[#allocation1] ss:$9 sm:$0xff] %v7843_v45 }
 0x73f   :  { %v7700_v24 = vmul.f32 %v7698_v7, %v18871_v55  ;;  %v7845_v44 = vpack.c.bf16 %v7837_v48, %v7835_v56  ;;  %vm7885_vm2 = vcmask 122880  }
 0x740   :  { %v7791_v31 = vsub.f32 1.5, %v7790_v38  ;;  %v7766_v42 = vmul.f32 %v18510_v16, %v18510_v16  ;;  %v7768_v52 = vmul.f32 %v18512_v51, %v18512_v51 }
 0x741   :  { %v7702_v61 = vadd.f32 1e-05, %v7700_v24  ;;  %7866 = vmatpush.bf16.xpose.msrb.mxu0 %v7845_v44 }
 0x742   :  { %v7792_v36 = vmul.f32 %v11585_v26, %v7791_v31  ;;  %v7776_v59 = vadd.f32 %v7768_v52, %v7766_v42 }
 0x743   :  { %11586 = vrsqrt.f32 %v7702_v61  ;;  %vm7719_vm6 = vweird.f32 %v7702_v61 }
 0x744   :  { %v7796_v4 = vsel %vm7795_vm1, %v11585_v26, %v7792_v36  ;;  %v7777_v11 = vrot.slane %v7776_v59, 4 }
 0x745   :  { %v7807_v54 = vmul.f32 %v7796_v4, %v18476_v29  ;;  %v7809_v32 = vmul.f32 %v7796_v4, %v18478_v15  ;;  %v7890_v24 = vld [vmem:[#allocation1] sm:$0xff] }
 0x746   :  { %v7778_v60 = vadd.f32 %v7777_v11, %v7776_v59 }
 0x747   :  { %v7811_v49 = vmul.f32 %v7807_v54, %v7728_v34  ;;  %v7813_v27 = vmul.f32 %v7809_v32, %v7728_v34  ;;  %v7891_v54 = vld [vmem:[#allocation1 + $0x9] sm:$0xff] }
 0x748   :  { %v7779_v20 = vrot.slane %v7778_v60, 2  ;;  %7867 = vmatmul.bf16.vlgmr.msrb.gmra.mxu0 %v7855_v40 }
 0x749   :  { %v11587_v14 = vpop.eup %11586  ;;  %v7815_v53 = vadd.f32 %v7811_v49, %v7737_v17  ;;  %v7817_v5 = vadd.f32 %v7813_v27, %v7737_v17 }
 0x74a   :  { %v7714_v30 = vmul.f32 %v11587_v14, %v7702_v61  ;;  %v7780_v47 = vadd.f32 %v7779_v20, %v7778_v60  ;;  %vm7720_vm5 = vweird.f32 %v11587_v14 }
 0x74b   :  { %vm7823_vm3 = vcmp.ge.f32.partialorder %v7815_v53, 0.0  ;;  %vm7825_vm4 = vcmp.ge.f32.partialorder %v7817_v5, 0.0  ;;  %v7831_v1 = vmul.f32 0.01, %v7815_v53  ;;  %v7833_v0 = vmul.f32 0.01, %v7817_v5  ;;  %vm7721_vm7 = vmor %vm7719_vm6, %vm7720_vm5 }
 0x74c   :  { %v7715_v6 = vmul.f32 %v11587_v14, %v7714_v30  ;;  %v7781_v10 = vrot.slane %v7780_v47, 1 }
 0x74d   :  { %v7839_v18 = vsel %vm7823_vm3, %v7815_v53, %v7831_v1  ;;  %v7841_v2 = vsel %vm7825_vm4, %v7817_v5, %v7833_v0 }
 0x74e   :  { %v7716_v29 = vmul.f32 0.5, %v7715_v6  ;;  %v7782_v13 = vadd.f32 %v7781_v10, %v7780_v47  ;;  %v7887_v15 = vpack.c.bf16 %v7841_v2, %v7839_v18 }
 0x750   :  { %v7717_v57 = vsub.f32 1.5, %v7716_v29  ;;  %v7784_v34 = vmul.f32 %v7782_v13, %v18871_v55  ;;  %7901 = vmatpush.bf16.xpose.msra.mxu0 %v7887_v15 }
 0x752   :  { %v7718_v35 = vmul.f32 %v11587_v14, %v7717_v57  ;;  %v7786_v17 = vadd.f32 1e-05, %v7784_v34 }
 0x754   :  { %v7722_v21 = vsel %vm7721_vm7, %v11587_v14, %v7718_v35  ;;  %11588 = vrsqrt.f32 %v7786_v17  ;;  %vm7803_vm11 = vweird.f32 %v7786_v17 }
 0x755   :  { %v7724_v55 = vmul.f32 %v7722_v21, %v18486_v25  ;;  %v7726_v9 = vmul.f32 %v7722_v21, %v18488_v63 }
 0x757   :  { %v7733_v46 = vmul.f32 %v7729_v12, %v7724_v55  ;;  %v7735_v26 = vmul.f32 %v7729_v12, %v7726_v9 }
 0x758   :  { %7902 = vmatmul.bf16.vlgmr.msra.gmra.mxu0 %v7890_v24 }
 0x759   :  { %v7742_v58 = vadd.f32 %v7738_v8, %v7733_v46  ;;  %v7744_v39 = vadd.f32 %v7738_v8, %v7735_v26 }
 0x75a   :  { %v11589_v62 = vpop.eup %11588 }
 0x75b   :  { %v7798_v33 = vmul.f32 %v11589_v62, %v7786_v17  ;;  %vm7820_vm8 = vcmp.ge.f32.partialorder %v7742_v58, 0.0  ;;  %vm7822_vm9 = vcmp.ge.f32.partialorder %v7744_v39, 0.0  ;;  %v7828_v43 = vmul.f32 0.01, %v7742_v58 }
 0x75c   :  { %v7830_v19 = vmul.f32 0.01, %v7744_v39  ;;  %vm7804_vm10 = vweird.f32 %v11589_v62 }
 0x75d   :  { %v7799_v37 = vmul.f32 %v11589_v62, %v7798_v33  ;;  %v7836_v25 = vsel %vm7820_vm8, %v7742_v58, %v7828_v43  ;;  %vm7805_vm12 = vmor %vm7803_vm11, %vm7804_vm10 }
 0x75e   :  { %v7838_v50 = vsel %vm7822_vm9, %v7744_v39, %v7830_v19 }
 0x75f   :  { %v7800_v63 = vmul.f32 0.5, %v7799_v37  ;;  %v7846_v28 = vpack.c.bf16 %v7838_v50, %v7836_v25 }
 0x761   :  { %v7801_v41 = vsub.f32 1.5, %v7800_v63  ;;  %7879 = vmatpush.bf16.xpose.msrb.mxu1 %v7846_v28 }
 0x763   :  { %v7802_v7 = vmul.f32 %v11589_v62, %v7801_v41 }
 0x765   :  { %v7806_v56 = vsel %vm7805_vm12, %v11589_v62, %v7802_v7 }
 0x766   :  { %v7808_v38 = vmul.f32 %v7806_v56, %v18510_v16  ;;  %v7810_v48 = vmul.f32 %v7806_v56, %v18512_v51 }
 0x768   :  { %v7812_v44 = vmul.f32 %v7808_v38, %v7729_v12  ;;  %v7814_v31 = vmul.f32 %v7810_v48, %v7729_v12  ;;  %7880 = vmatmul.bf16.vlgmr.msrb.gmra.mxu1 %v7856_v3 }
 0x76a   :  { %v7816_v42 = vadd.f32 %v7812_v44, %v7738_v8  ;;  %v7818_v52 = vadd.f32 %v7814_v31, %v7738_v8 }
 0x76c   :  { %vm7824_vm13 = vcmp.ge.f32.partialorder %v7816_v42, 0.0  ;;  %vm7826_vm14 = vcmp.ge.f32.partialorder %v7818_v52, 0.0  ;;  %v7832_v61 = vmul.f32 0.01, %v7816_v42  ;;  %v7834_v36 = vmul.f32 0.01, %v7818_v52 }
 0x76e   :  { %v7840_v59 = vsel %vm7824_vm13, %v7816_v42, %v7832_v61  ;;  %v7842_v4 = vsel %vm7826_vm14, %v7818_v52, %v7834_v36 }
 0x76f   :  { %v7888_v11 = vpack.c.bf16 %v7842_v4, %v7840_v59 }
 0x771   :  { %7914 = vmatpush.bf16.xpose.msra.mxu1 %v7888_v11 }
 0x778   :  { %7915 = vmatmul.bf16.vlgmr.msra.gmra.mxu1 %v7891_v54 }
 0x7ae   :  { %v7850_v32 = vpop.permute.xlu0 %7849 }
 0x7af   :  { %v7852_v51 = vperm.slane %v7850_v32, 0 }
 0x7c5   :  { %v7868_v16 = vpop.f32.mrf.mxu0 }
 0x7c6   :  { %v7869_v49 = vadd.f32 %v7868_v16, %v7852_v51 }
 0x7cd   :  { %v7870_v60 = vpop.f32.mrf.mxu0 }
 0x7d5   :  { %v7903_v14 = vpop.f32.mrf.mxu0 }
 0x7d6   :  { %v7904_v30 = vadd.f32 %v7903_v14, %v7852_v51 }
 0x7dd   :  { %v7905_v5 = vpop.f32.mrf.mxu0 }
 0x7e5   :  { %v7881_v27 = vpop.f32.mrf.mxu1 }
 0x7e6   :  { %v7882_v20 = vadd.f32 %v7881_v27, %v7869_v49 }
 0x7e8   :  { %7886 = vst.msk [vmem:[#allocation3] sm:$0x1] %vm7885_vm2, %v7882_v20 }
 0x7ed   :  { %v7883_v53 = vpop.f32.mrf.mxu1 }
 0x7f5   :  { %v7916_v47 = vpop.f32.mrf.mxu1 }
 0x7f6   :  { %v7917_v1 = vadd.f32 %v7916_v47, %v7904_v30 }
 0x7f8   :  { %7921 = vst.msk [vmem:[#allocation3 + $0x1] sm:$0x1] %vm7885_vm2, %v7917_v1 }
 0x7f9   :  { %7934 = dma.vmem_to_hbm [thread:$0]  %s7927_s6, 32, %s7929_s28, [#allocation4], %s11624_s8, %s11624_s8, %s11625_s1  }
 0x7fd   :  { %v7918_v0 = vpop.f32.mrf.mxu1 }
 0x7fe   :  { %11619 = dma.done.wait [#allocation4], 32  }
 0x7ff   :  { %11620 = vsyncadd [#allocation4], 4294967264 }
 0x800   :  { %7939 = vsyncpa [#allocation4], 1 }

</bundles_post_ra>
